<compile_context>
chip_gen: v6e
topology: v6e:2x2x1
jax: 0.10.0
libtpu: 0.0.40
codegen_flags: <defaults>
</compile_context>

<pallas_src>
import functools
import math

import jax
import jax.numpy as jnp
from jax.experimental import pallas as pl

# ----------------------------- config ---------------------------------------
VOCAB = 256          # lane-dense stand-in for 128k
D_MODEL = 128        # lane-dense stand-in for 1024
N_HEADS = 4
D_HEAD = D_MODEL // N_HEADS   # 32 lanes per head (contiguous column slice)
D_FFN = 256          # lane-dense stand-in for 4096
N_ENC_LAYERS = 2
N_DEC_LAYERS = 2
PAD_ID = 1
NEG_INF = -1e9
LN_EPS = 1e-5


# ----------------------- in-kernel helper math -------------------------------
def _ln(x, g, b):
    # LayerNorm statistics kept in f32.
    x = x.astype(jnp.float32)
    mu = jnp.mean(x, axis=-1, keepdims=True)
    var = jnp.mean((x - mu) ** 2, axis=-1, keepdims=True)
    return (x - mu) * jax.lax.rsqrt(var + LN_EPS) * g + b


def _mm(a, w):
    # bf16 MXU operands, f32 accumulation.
    return jnp.dot(a.astype(jnp.bfloat16), w, preferred_element_type=jnp.float32)


def _mm_tb(a, b):
    # a @ b.T via dot_general contracting ((1,),(1,)) - MXU-native transposed
    # RHS, no materialized transpose.  bf16 operands, f32 accumulation.
    return jax.lax.dot_general(a.astype(jnp.bfloat16), b,
                               (((1,), (1,)), ((), ())),
                               preferred_element_type=jnp.float32)


def _mha(q, k, v, key_bias, causal, b_sz, t_q, t_k):
    """Multi-head attention; returns lane-dense [B*Tq, D_MODEL] f32 context.

    q (already scaled via the folded 1/sqrt(D_HEAD)): [B*Tq, D], k/v: [B*Tk, D].
    Heads are contiguous 32-lane column slices; each head's score / P@V matmul
    is batched over B with a 3-D einsum, softmax in f32 with the divide on the
    EUP (approx reciprocal).  Head outputs are concatenated in vregs -> no
    VMEM scratch, one 128-lane-wide value.
    """
    q3 = q.reshape(b_sz, t_q, D_MODEL).astype(jnp.bfloat16)
    k3 = k.reshape(b_sz, t_k, D_MODEL).astype(jnp.bfloat16)
    v3 = v.reshape(b_sz, t_k, D_MODEL).astype(jnp.bfloat16)
    heads = []
    for h in range(N_HEADS):
        c0, c1 = h * D_HEAD, (h + 1) * D_HEAD
        s = jnp.einsum('bqc,bkc->bqk', q3[:, :, c0:c1], k3[:, :, c0:c1],
                       preferred_element_type=jnp.float32)
        if key_bias is not None:
            s = s + key_bias[:, None, :]        # [B,1,Tk] broadcast over queries
        if causal is not None:
            s = s + causal[None, :, :]          # [1,Tq,Tk] broadcast over batch
        s = s - jnp.max(s, axis=-1, keepdims=True)
        p = jnp.exp(s)
        p = p * pl.reciprocal(jnp.sum(p, axis=-1, keepdims=True), approx=True)
        heads.append(jnp.einsum('bqk,bkc->bqc', p.astype(jnp.bfloat16),
                                v3[:, :, c0:c1],
                                preferred_element_type=jnp.float32))
    ctx = jnp.concatenate(heads, axis=-1)       # [B, Tq, D_MODEL] lane-dense
    return ctx.reshape(b_sz * t_q, D_MODEL)


# ----------------------------- Pallas kernels --------------------------------
def _encoder_kernel(x_ref, kbias_ref,
                    ln1_g, ln1_b, wqkv, bqkv, wo, bo,
                    ln2_g, ln2_b, fc1_w, fc1_b, fc2_w, fc2_b,
                    fin_g, fin_b, o_ref, *, b_sz, t_s):
    """Both encoder layers + final encoder LayerNorm, fused."""
    x = x_ref[...]
    kbias = kbias_ref[...]
    for l in range(N_ENC_LAYERS):
        # --- self-attention (pre-LN, fused QKV; Q scale folded into wqkv) ---
        h = _ln(x, ln1_g[l], ln1_b[l])
        qkv = _mm(h, wqkv[l]) + bqkv[l]
        q = qkv[:, 0:D_MODEL]
        k = qkv[:, D_MODEL:2 * D_MODEL]
        v = qkv[:, 2 * D_MODEL:3 * D_MODEL]
        ctx = _mha(q, k, v, kbias, None, b_sz, t_s, t_s)
        x = x + _mm(ctx, wo[l]) + bo[l]
        # --- FFN (pre-LN, fused FC1 + ReLU + FC2) ---
        h = _ln(x, ln2_g[l], ln2_b[l])
        h = jnp.maximum(_mm(h, fc1_w[l]) + fc1_b[l], 0.0)
        h = _mm(h, fc2_w[l]) + fc2_b[l]
        x = x + h
    o_ref[...] = _ln(x, fin_g[...], fin_b[...]).astype(o_ref.dtype)


def _decoder_kernel(y_ref, enc_ref, kbias_ref, causal_ref,
                    ln1_g, ln1_b, s_wqkv, s_bqkv, s_wo, s_bo,
                    ln2_g, ln2_b, c_wq, c_bq, c_wkv, c_bkv, c_wo, c_bo,
                    ln3_g, ln3_b, fc1_w, fc1_b, fc2_w, fc2_b,
                    fin_g, fin_b, emb_ref, o_ref, *, b_sz, t_t, t_s):
    """Both decoder layers + final LN + tied-embedding LM head, fused."""
    y = y_ref[...]
    enc = enc_ref[...]
    kbias = kbias_ref[...]
    causal = causal_ref[...]
    for l in range(N_DEC_LAYERS):
        # --- masked self-attention (pre-LN, fused QKV) ---
        h = _ln(y, ln1_g[l], ln1_b[l])
        qkv = _mm(h, s_wqkv[l]) + s_bqkv[l]
        q = qkv[:, 0:D_MODEL]
        k = qkv[:, D_MODEL:2 * D_MODEL]
        v = qkv[:, 2 * D_MODEL:3 * D_MODEL]
        ctx = _mha(q, k, v, None, causal, b_sz, t_t, t_t)
        y = y + _mm(ctx, s_wo[l]) + s_bo[l]
        # --- cross-attention (K/V from encoder output, fused KV) ---
        h = _ln(y, ln2_g[l], ln2_b[l])
        q = _mm(h, c_wq[l]) + c_bq[l]
        kv = _mm(enc, c_wkv[l]) + c_bkv[l]
        k = kv[:, 0:D_MODEL]
        v = kv[:, D_MODEL:2 * D_MODEL]
        ctx = _mha(q, k, v, kbias, None, b_sz, t_t, t_s)
        y = y + _mm(ctx, c_wo[l]) + c_bo[l]
        # --- FFN ---
        h = _ln(y, ln3_g[l], ln3_b[l])
        h = jnp.maximum(_mm(h, fc1_w[l]) + fc1_b[l], 0.0)
        h = _mm(h, fc2_w[l]) + fc2_b[l]
        y = y + h
    # --- final decoder LN + tied LM head (emb as transposed RHS) ---
    y = _ln(y, fin_g[...], fin_b[...])
    o_ref[...] = _mm_tb(y, emb_ref[...]).astype(o_ref.dtype)


# ----------------------------- kernel wrappers --------------------------------
def encoder_forward(x_rows, key_bias, p, b_sz, t_s):
    return pl.pallas_call(
        functools.partial(_encoder_kernel, b_sz=b_sz, t_s=t_s),
        out_shape=jax.ShapeDtypeStruct((b_sz * t_s, D_MODEL), jnp.float32),
    )(x_rows, key_bias,
      p["ln1_g"], p["ln1_b"], p["wqkv"], p["bqkv"], p["wo"], p["bo"],
      p["ln2_g"], p["ln2_b"], p["fc1_w"], p["fc1_b"], p["fc2_w"], p["fc2_b"],
      p["fin_g"], p["fin_b"])


def decoder_forward(y_rows, enc_rows, key_bias, causal_bias, p, emb,
                    b_sz, t_t, t_s):
    return pl.pallas_call(
        functools.partial(_decoder_kernel, b_sz=b_sz, t_t=t_t, t_s=t_s),
        out_shape=jax.ShapeDtypeStruct((b_sz * t_t, VOCAB), jnp.float32),
    )(y_rows, enc_rows, key_bias, causal_bias,
      p["ln1_g"], p["ln1_b"], p["s_wqkv"], p["s_bqkv"], p["s_wo"], p["s_bo"],
      p["ln2_g"], p["ln2_b"], p["c_wq"], p["c_bq"], p["c_wkv"], p["c_bkv"],
      p["c_wo"], p["c_bo"],
      p["ln3_g"], p["ln3_b"], p["fc1_w"], p["fc1_b"], p["fc2_w"], p["fc2_b"],
      p["fin_g"], p["fin_b"], emb)


# ----------------------------- model glue -------------------------------------
def sinusoidal_positions(seq_len, dim, offset=2):
    # M2M100-style sinusoidal embeddings (offset of 2; padding ignored, see TODO).
    half = dim // 2
    emb_scale = math.log(10000.0) / (half - 1)
    inv_freq = jnp.exp(jnp.arange(half, dtype=jnp.float32) * -emb_scale)
    pos = jnp.arange(offset, seq_len + offset, dtype=jnp.float32)
    angles = pos[:, None] * inv_freq[None, :]
    return jnp.concatenate([jnp.sin(angles), jnp.cos(angles)], axis=-1)


def make_causal_bias(t):
    r = jnp.arange(t, dtype=jnp.int32)[:, None]
    c = jnp.arange(t, dtype=jnp.int32)[None, :]
    return jnp.where(r >= c, 0.0, NEG_INF).astype(jnp.float32)


def m2m100_forward(params, input_ids, attention_mask, decoder_input_ids):
    b_sz, t_s = input_ids.shape
    _, t_t = decoder_input_ids.shape
    emb_scale = math.sqrt(D_MODEL)

    # Additive key-padding bias from attention_mask (1 = keep, 0 = pad): [B, Ts].
    # NOTE: an all-padded key row would softmax to uniform, not zero.
    enc_key_bias = (1.0 - attention_mask.astype(jnp.float32)) * NEG_INF
    causal_bias = make_causal_bias(t_t)          # precomputed, passed as operand

    emb = params["shared_emb"]

    # ---- encoder (one fused pallas_call) ----
    x = jnp.take(emb, input_ids, axis=0).astype(jnp.float32) * emb_scale
    x = x + sinusoidal_positions(t_s, D_MODEL)[None, :, :]
    x = x.reshape(b_sz * t_s, D_MODEL)
    enc_rows = encoder_forward(x, enc_key_bias, params["encoder"], b_sz, t_s)

    # ---- decoder + final LN + tied LM head (one fused pallas_call) ----
    y = jnp.take(emb, decoder_input_ids, axis=0).astype(jnp.float32) * emb_scale
    y = y + sinusoidal_positions(t_t, D_MODEL)[None, :, :]
    y = y.reshape(b_sz * t_t, D_MODEL)
    logits = decoder_forward(y, enc_rows, enc_key_bias, causal_bias,
                             params["decoder"], emb, b_sz, t_t, t_s)
    return logits.reshape(b_sz, t_t, VOCAB)


# ----------------------------- parameter init ---------------------------------
def _w(key, shape):
    return 0.02 * jax.random.normal(key, shape, jnp.float32)


def init_params(key):
    kemb, kenc, kdec = jax.random.split(key, 3)
    q_scale = D_HEAD ** -0.5
    # Fold the 1/sqrt(D_HEAD) attention scale into the Q output columns of the
    # fused QKV weight (biases are zero, so no bias fold needed).
    qkv_scale = jnp.concatenate(
        [jnp.full((1, 1, D_MODEL), q_scale, jnp.float32),
         jnp.ones((1, 1, 2 * D_MODEL), jnp.float32)], axis=-1)

    emb = _w(kemb, (VOCAB, D_MODEL)).at[PAD_ID].set(0.0).astype(jnp.bfloat16)

    L = N_ENC_LAYERS
    ks = jax.random.split(kenc, 4)
    encoder = {
        "ln1_g": jnp.ones((L, 1, D_MODEL), jnp.float32),
        "ln1_b": jnp.zeros((L, 1, D_MODEL), jnp.float32),
        "wqkv": (_w(ks[0], (L, D_MODEL, 3 * D_MODEL)) * qkv_scale).astype(jnp.bfloat16),
        "bqkv": jnp.zeros((L, 1, 3 * D_MODEL), jnp.float32),
        "wo": _w(ks[1], (L, D_MODEL, D_MODEL)).astype(jnp.bfloat16),
        "bo": jnp.zeros((L, 1, D_MODEL), jnp.float32),
        "ln2_g": jnp.ones((L, 1, D_MODEL), jnp.float32),
        "ln2_b": jnp.zeros((L, 1, D_MODEL), jnp.float32),
        "fc1_w": _w(ks[2], (L, D_MODEL, D_FFN)).astype(jnp.bfloat16),
        "fc1_b": jnp.zeros((L, 1, D_FFN), jnp.float32),
        "fc2_w": _w(ks[3], (L, D_FFN, D_MODEL)).astype(jnp.bfloat16),
        "fc2_b": jnp.zeros((L, 1, D_MODEL), jnp.float32),
        "fin_g": jnp.ones((1, D_MODEL), jnp.float32),
        "fin_b": jnp.zeros((1, D_MODEL), jnp.float32),
    }

    L = N_DEC_LAYERS
    ks = jax.random.split(kdec, 7)
    decoder = {
        "ln1_g": jnp.ones((L, 1, D_MODEL), jnp.float32),
        "ln1_b": jnp.zeros((L, 1, D_MODEL), jnp.float32),
        "s_wqkv": (_w(ks[0], (L, D_MODEL, 3 * D_MODEL)) * qkv_scale).astype(jnp.bfloat16),
        "s_bqkv": jnp.zeros((L, 1, 3 * D_MODEL), jnp.float32),
        "s_wo": _w(ks[1], (L, D_MODEL, D_MODEL)).astype(jnp.bfloat16),
        "s_bo": jnp.zeros((L, 1, D_MODEL), jnp.float32),
        "ln2_g": jnp.ones((L, 1, D_MODEL), jnp.float32),
        "ln2_b": jnp.zeros((L, 1, D_MODEL), jnp.float32),
        "c_wq": (_w(ks[2], (L, D_MODEL, D_MODEL)) * q_scale).astype(jnp.bfloat16),
        "c_bq": jnp.zeros((L, 1, D_MODEL), jnp.float32),
        "c_wkv": _w(ks[3], (L, D_MODEL, 2 * D_MODEL)).astype(jnp.bfloat16),
        "c_bkv": jnp.zeros((L, 1, 2 * D_MODEL), jnp.float32),
        "c_wo": _w(ks[4], (L, D_MODEL, D_MODEL)).astype(jnp.bfloat16),
        "c_bo": jnp.zeros((L, 1, D_MODEL), jnp.float32),
        "ln3_g": jnp.ones((L, 1, D_MODEL), jnp.float32),
        "ln3_b": jnp.zeros((L, 1, D_MODEL), jnp.float32),
        "fc1_w": _w(ks[5], (L, D_MODEL, D_FFN)).astype(jnp.bfloat16),
        "fc1_b": jnp.zeros((L, 1, D_FFN), jnp.float32),
        "fc2_w": _w(ks[6], (L, D_FFN, D_MODEL)).astype(jnp.bfloat16),
        "fc2_b": jnp.zeros((L, 1, D_MODEL), jnp.float32),
        "fin_g": jnp.ones((1, D_MODEL), jnp.float32),
        "fin_b": jnp.zeros((1, D_MODEL), jnp.float32),
    }
    return {"shared_emb": emb, "encoder": encoder, "decoder": decoder}


# ----------------------------- main --------------------------------------------
if __name__ == "__main__":
    key = jax.random.PRNGKey(0)
    kp, ki, kd = jax.random.split(key, 3)

    params = init_params(kp)

    B, SRC_LEN, TGT_LEN = 2, 8, 8
    input_ids = jax.random.randint(ki, (B, SRC_LEN), 2, VOCAB, dtype=jnp.int32)
    decoder_input_ids = jax.random.randint(kd, (B, TGT_LEN), 2, VOCAB,
                                           dtype=jnp.int32)
    # mark the last two source tokens of batch element 1 as padding
    attention_mask = jnp.ones((B, SRC_LEN), jnp.int32)
    attention_mask = attention_mask.at[1, -2:].set(0)
    input_ids = input_ids.at[1, -2:].set(PAD_ID)

    fwd = jax.jit(m2m100_forward)
    logits = fwd(params, input_ids, attention_mask, decoder_input_ids)
    jax.block_until_ready(logits)

    assert logits.shape == (B, TGT_LEN, VOCAB), logits.shape
    assert bool(jnp.all(jnp.isfinite(logits)))
    print("KERNEL_OK")
</pallas_src>

<mosaic_0001>
module attributes {stable_mosaic.version = 11 : i64} {
  func.func @_encoder_kernel(%arg0: memref<16x128xf32, #tpu.memory_space<vmem>>, %arg1: memref<2x8xf32, #tpu.memory_space<vmem>>, %arg2: memref<2x1x128xf32, #tpu.memory_space<vmem>>, %arg3: memref<2x1x128xf32, #tpu.memory_space<vmem>>, %arg4: memref<2x128x384xbf16, #tpu.memory_space<vmem>>, %arg5: memref<2x1x384xf32, #tpu.memory_space<vmem>>, %arg6: memref<2x128x128xbf16, #tpu.memory_space<vmem>>, %arg7: memref<2x1x128xf32, #tpu.memory_space<vmem>>, %arg8: memref<2x1x128xf32, #tpu.memory_space<vmem>>, %arg9: memref<2x1x128xf32, #tpu.memory_space<vmem>>, %arg10: memref<2x128x256xbf16, #tpu.memory_space<vmem>>, %arg11: memref<2x1x256xf32, #tpu.memory_space<vmem>>, %arg12: memref<2x256x128xbf16, #tpu.memory_space<vmem>>, %arg13: memref<2x1x128xf32, #tpu.memory_space<vmem>>, %arg14: memref<1x128xf32, #tpu.memory_space<vmem>>, %arg15: memref<1x128xf32, #tpu.memory_space<vmem>>, %arg16: memref<16x128xf32, #tpu.memory_space<vmem>>) attributes {dimension_semantics = [], scalar_prefetch = 0 : i64, scratch_operands = 0 : i64, tpu.core_type = #tpu.core_type<tc>} {
    %c0 = arith.constant 0 : index
    %c0_0 = arith.constant 0 : index
    %0 = vector.load %arg0[%c0, %c0_0] : memref<16x128xf32, #tpu.memory_space<vmem>>, vector<16x128xf32>
    %c0_1 = arith.constant 0 : index
    %c0_2 = arith.constant 0 : index
    %1 = vector.load %arg1[%c0_1, %c0_2] : memref<2x8xf32, #tpu.memory_space<vmem>>, vector<2x8xf32>
    %c0_3 = arith.constant 0 : index
    %c0_4 = arith.constant 0 : index
    %c0_5 = arith.constant 0 : index
    %2 = vector.load %arg2[%c0_3, %c0_4, %c0_5] : memref<2x1x128xf32, #tpu.memory_space<vmem>>, vector<1x1x128xf32>
    %3 = vector.shape_cast %2 : vector<1x1x128xf32> to vector<1x128xf32>
    %c0_6 = arith.constant 0 : index
    %c0_7 = arith.constant 0 : index
    %c0_8 = arith.constant 0 : index
    %4 = vector.load %arg3[%c0_6, %c0_7, %c0_8] : memref<2x1x128xf32, #tpu.memory_space<vmem>>, vector<1x1x128xf32>
    %5 = vector.shape_cast %4 : vector<1x1x128xf32> to vector<1x128xf32>
    %cst = arith.constant dense<0.000000e+00> : vector<16xf32>
    %6 = vector.multi_reduction <add>, %0, %cst [1] : vector<16x128xf32> to vector<16xf32>
    %7 = vector.shape_cast %6 : vector<16xf32> to vector<16x1xf32>
    %cst_9 = arith.constant 1.280000e+02 : f32
    %8 = vector.broadcast %cst_9 : f32 to vector<16x1xf32>
    %9 = arith.divf %7, %8 : vector<16x1xf32>
    %10 = vector.broadcast %9 : vector<16x1xf32> to vector<16x128xf32>
    %11 = arith.subf %0, %10 : vector<16x128xf32>
    %12 = arith.mulf %11, %11 : vector<16x128xf32>
    %cst_10 = arith.constant dense<0.000000e+00> : vector<16xf32>
    %13 = vector.multi_reduction <add>, %12, %cst_10 [1] : vector<16x128xf32> to vector<16xf32>
    %14 = vector.shape_cast %13 : vector<16xf32> to vector<16x1xf32>
    %cst_11 = arith.constant 1.280000e+02 : f32
    %15 = vector.broadcast %cst_11 : f32 to vector<16x1xf32>
    %16 = arith.divf %14, %15 : vector<16x1xf32>
    %17 = vector.broadcast %9 : vector<16x1xf32> to vector<16x128xf32>
    %18 = arith.subf %0, %17 : vector<16x128xf32>
    %cst_12 = arith.constant 9.99999974E-6 : f32
    %19 = vector.broadcast %cst_12 : f32 to vector<16x1xf32>
    %20 = arith.addf %16, %19 : vector<16x1xf32>
    %21 = math.rsqrt %20 : vector<16x1xf32>
    %22 = vector.broadcast %21 : vector<16x1xf32> to vector<16x128xf32>
    %23 = arith.mulf %18, %22 : vector<16x128xf32>
    %24 = vector.broadcast %3 : vector<1x128xf32> to vector<16x128xf32>
    %25 = arith.mulf %23, %24 : vector<16x128xf32>
    %26 = vector.broadcast %5 : vector<1x128xf32> to vector<16x128xf32>
    %27 = arith.addf %25, %26 : vector<16x128xf32>
    %c0_13 = arith.constant 0 : index
    %c0_14 = arith.constant 0 : index
    %c0_15 = arith.constant 0 : index
    %28 = vector.load %arg4[%c0_13, %c0_14, %c0_15] : memref<2x128x384xbf16, #tpu.memory_space<vmem>>, vector<1x128x384xbf16>
    %29 = vector.shape_cast %28 : vector<1x128x384xbf16> to vector<128x384xbf16>
    %30 = arith.truncf %27 : vector<16x128xf32> to vector<16x128xbf16>
    %cst_16 = arith.constant dense<0.000000e+00> : vector<16x384xf32>
    %31 = tpu.matmul %30, %29, %cst_16 {dimension_numbers = #tpu.dot_dimension_numbers<[1], [0], [0], [1], [0, 0, 1, 1], [], []>} : vector<16x128xbf16>, vector<128x384xbf16>, vector<16x384xf32> -> vector<16x384xf32>
    %c0_17 = arith.constant 0 : index
    %c0_18 = arith.constant 0 : index
    %c0_19 = arith.constant 0 : index
    %32 = vector.load %arg5[%c0_17, %c0_18, %c0_19] : memref<2x1x384xf32, #tpu.memory_space<vmem>>, vector<1x1x384xf32>
    %33 = vector.shape_cast %32 : vector<1x1x384xf32> to vector<1x384xf32>
    %34 = vector.broadcast %33 : vector<1x384xf32> to vector<16x384xf32>
    %35 = arith.addf %31, %34 : vector<16x384xf32>
    %36 = vector.extract_strided_slice %35 {offsets = [0, 0], sizes = [16, 128], strides = [1, 1]} : vector<16x384xf32> to vector<16x128xf32>
    %37 = vector.extract_strided_slice %35 {offsets = [0, 128], sizes = [16, 128], strides = [1, 1]} : vector<16x384xf32> to vector<16x128xf32>
    %38 = vector.extract_strided_slice %35 {offsets = [0, 256], sizes = [16, 128], strides = [1, 1]} : vector<16x384xf32> to vector<16x128xf32>
    %39 = vector.shape_cast %36 : vector<16x128xf32> to vector<2x8x128xf32>
    %40 = arith.truncf %39 : vector<2x8x128xf32> to vector<2x8x128xbf16>
    %41 = vector.shape_cast %37 : vector<16x128xf32> to vector<2x8x128xf32>
    %42 = arith.truncf %41 : vector<2x8x128xf32> to vector<2x8x128xbf16>
    %43 = vector.shape_cast %38 : vector<16x128xf32> to vector<2x8x128xf32>
    %44 = arith.truncf %43 : vector<2x8x128xf32> to vector<2x8x128xbf16>
    %45 = vector.extract_strided_slice %40 {offsets = [0, 0, 0], sizes = [2, 8, 32], strides = [1, 1, 1]} : vector<2x8x128xbf16> to vector<2x8x32xbf16>
    %46 = vector.extract_strided_slice %42 {offsets = [0, 0, 0], sizes = [2, 8, 32], strides = [1, 1, 1]} : vector<2x8x128xbf16> to vector<2x8x32xbf16>
    "tpu.trace_start"() <{level = 10 : i32, message = "bqc,bkc->bqk"}> : () -> ()
    %cst_20 = arith.constant dense<0.000000e+00> : vector<2x8x8xf32>
    %47 = tpu.matmul %45, %46, %cst_20 {dimension_numbers = #tpu.dot_dimension_numbers<[2], [2], [1], [1], [0, 0, 0, 1, 1, 1], [0], [0]>} : vector<2x8x32xbf16>, vector<2x8x32xbf16>, vector<2x8x8xf32> -> vector<2x8x8xf32>
    "tpu.trace_stop"() : () -> ()
    %48 = vector.shape_cast %1 : vector<2x8xf32> to vector<2x1x8xf32>
    %49 = vector.broadcast %48 : vector<2x1x8xf32> to vector<2x8x8xf32>
    %50 = arith.addf %47, %49 : vector<2x8x8xf32>
    %cst_21 = arith.constant dense<0xFF800000> : vector<2x8xf32>
    %51 = vector.multi_reduction <maximumf>, %50, %cst_21 [2] : vector<2x8x8xf32> to vector<2x8xf32>
    %52 = vector.shape_cast %51 : vector<2x8xf32> to vector<2x8x1xf32>
    %53 = vector.broadcast %52 : vector<2x8x1xf32> to vector<2x8x8xf32>
    %54 = arith.subf %50, %53 : vector<2x8x8xf32>
    %55 = math.exp %54 : vector<2x8x8xf32>
    %cst_22 = arith.constant dense<0.000000e+00> : vector<2x8xf32>
    %56 = vector.multi_reduction <add>, %55, %cst_22 [2] : vector<2x8x8xf32> to vector<2x8xf32>
    %57 = vector.shape_cast %56 : vector<2x8xf32> to vector<2x8x1xf32>
    %58 = tpu.reciprocal %57 {approx = true} : vector<2x8x1xf32> -> vector<2x8x1xf32>
    %59 = vector.broadcast %58 : vector<2x8x1xf32> to vector<2x8x8xf32>
    %60 = arith.mulf %55, %59 : vector<2x8x8xf32>
    %61 = arith.truncf %60 : vector<2x8x8xf32> to vector<2x8x8xbf16>
    %62 = vector.extract_strided_slice %44 {offsets = [0, 0, 0], sizes = [2, 8, 32], strides = [1, 1, 1]} : vector<2x8x128xbf16> to vector<2x8x32xbf16>
    "tpu.trace_start"() <{level = 10 : i32, message = "bqk,bkc->bqc"}> : () -> ()
    %cst_23 = arith.constant dense<0.000000e+00> : vector<2x8x32xf32>
    %63 = tpu.matmul %61, %62, %cst_23 {dimension_numbers = #tpu.dot_dimension_numbers<[2], [1], [1], [2], [0, 0, 0, 1, 1, 2], [0], [0]>} : vector<2x8x8xbf16>, vector<2x8x32xbf16>, vector<2x8x32xf32> -> vector<2x8x32xf32>
    "tpu.trace_stop"() : () -> ()
    %64 = vector.extract_strided_slice %40 {offsets = [0, 0, 32], sizes = [2, 8, 32], strides = [1, 1, 1]} : vector<2x8x128xbf16> to vector<2x8x32xbf16>
    %65 = vector.extract_strided_slice %42 {offsets = [0, 0, 32], sizes = [2, 8, 32], strides = [1, 1, 1]} : vector<2x8x128xbf16> to vector<2x8x32xbf16>
    "tpu.trace_start"() <{level = 10 : i32, message = "bqc,bkc->bqk"}> : () -> ()
    %cst_24 = arith.constant dense<0.000000e+00> : vector<2x8x8xf32>
    %66 = tpu.matmul %64, %65, %cst_24 {dimension_numbers = #tpu.dot_dimension_numbers<[2], [2], [1], [1], [0, 0, 0, 1, 1, 1], [0], [0]>} : vector<2x8x32xbf16>, vector<2x8x32xbf16>, vector<2x8x8xf32> -> vector<2x8x8xf32>
    "tpu.trace_stop"() : () -> ()
    %67 = vector.shape_cast %1 : vector<2x8xf32> to vector<2x1x8xf32>
    %68 = vector.broadcast %67 : vector<2x1x8xf32> to vector<2x8x8xf32>
    %69 = arith.addf %66, %68 : vector<2x8x8xf32>
    %cst_25 = arith.constant dense<0xFF800000> : vector<2x8xf32>
    %70 = vector.multi_reduction <maximumf>, %69, %cst_25 [2] : vector<2x8x8xf32> to vector<2x8xf32>
    %71 = vector.shape_cast %70 : vector<2x8xf32> to vector<2x8x1xf32>
    %72 = vector.broadcast %71 : vector<2x8x1xf32> to vector<2x8x8xf32>
    %73 = arith.subf %69, %72 : vector<2x8x8xf32>
    %74 = math.exp %73 : vector<2x8x8xf32>
    %cst_26 = arith.constant dense<0.000000e+00> : vector<2x8xf32>
    %75 = vector.multi_reduction <add>, %74, %cst_26 [2] : vector<2x8x8xf32> to vector<2x8xf32>
    %76 = vector.shape_cast %75 : vector<2x8xf32> to vector<2x8x1xf32>
    %77 = tpu.reciprocal %76 {approx = true} : vector<2x8x1xf32> -> vector<2x8x1xf32>
    %78 = vector.broadcast %77 : vector<2x8x1xf32> to vector<2x8x8xf32>
    %79 = arith.mulf %74, %78 : vector<2x8x8xf32>
    %80 = arith.truncf %79 : vector<2x8x8xf32> to vector<2x8x8xbf16>
    %81 = vector.extract_strided_slice %44 {offsets = [0, 0, 32], sizes = [2, 8, 32], strides = [1, 1, 1]} : vector<2x8x128xbf16> to vector<2x8x32xbf16>
    "tpu.trace_start"() <{level = 10 : i32, message = "bqk,bkc->bqc"}> : () -> ()
    %cst_27 = arith.constant dense<0.000000e+00> : vector<2x8x32xf32>
    %82 = tpu.matmul %80, %81, %cst_27 {dimension_numbers = #tpu.dot_dimension_numbers<[2], [1], [1], [2], [0, 0, 0, 1, 1, 2], [0], [0]>} : vector<2x8x8xbf16>, vector<2x8x32xbf16>, vector<2x8x32xf32> -> vector<2x8x32xf32>
    "tpu.trace_stop"() : () -> ()
    %83 = vector.extract_strided_slice %40 {offsets = [0, 0, 64], sizes = [2, 8, 32], strides = [1, 1, 1]} : vector<2x8x128xbf16> to vector<2x8x32xbf16>
    %84 = vector.extract_strided_slice %42 {offsets = [0, 0, 64], sizes = [2, 8, 32], strides = [1, 1, 1]} : vector<2x8x128xbf16> to vector<2x8x32xbf16>
    "tpu.trace_start"() <{level = 10 : i32, message = "bqc,bkc->bqk"}> : () -> ()
    %cst_28 = arith.constant dense<0.000000e+00> : vector<2x8x8xf32>
    %85 = tpu.matmul %83, %84, %cst_28 {dimension_numbers = #tpu.dot_dimension_numbers<[2], [2], [1], [1], [0, 0, 0, 1, 1, 1], [0], [0]>} : vector<2x8x32xbf16>, vector<2x8x32xbf16>, vector<2x8x8xf32> -> vector<2x8x8xf32>
    "tpu.trace_stop"() : () -> ()
    %86 = vector.shape_cast %1 : vector<2x8xf32> to vector<2x1x8xf32>
    %87 = vector.broadcast %86 : vector<2x1x8xf32> to vector<2x8x8xf32>
    %88 = arith.addf %85, %87 : vector<2x8x8xf32>
    %cst_29 = arith.constant dense<0xFF800000> : vector<2x8xf32>
    %89 = vector.multi_reduction <maximumf>, %88, %cst_29 [2] : vector<2x8x8xf32> to vector<2x8xf32>
    %90 = vector.shape_cast %89 : vector<2x8xf32> to vector<2x8x1xf32>
    %91 = vector.broadcast %90 : vector<2x8x1xf32> to vector<2x8x8xf32>
    %92 = arith.subf %88, %91 : vector<2x8x8xf32>
    %93 = math.exp %92 : vector<2x8x8xf32>
    %cst_30 = arith.constant dense<0.000000e+00> : vector<2x8xf32>
    %94 = vector.multi_reduction <add>, %93, %cst_30 [2] : vector<2x8x8xf32> to vector<2x8xf32>
    %95 = vector.shape_cast %94 : vector<2x8xf32> to vector<2x8x1xf32>
    %96 = tpu.reciprocal %95 {approx = true} : vector<2x8x1xf32> -> vector<2x8x1xf32>
    %97 = vector.broadcast %96 : vector<2x8x1xf32> to vector<2x8x8xf32>
    %98 = arith.mulf %93, %97 : vector<2x8x8xf32>
    %99 = arith.truncf %98 : vector<2x8x8xf32> to vector<2x8x8xbf16>
    %100 = vector.extract_strided_slice %44 {offsets = [0, 0, 64], sizes = [2, 8, 32], strides = [1, 1, 1]} : vector<2x8x128xbf16> to vector<2x8x32xbf16>
    "tpu.trace_start"() <{level = 10 : i32, message = "bqk,bkc->bqc"}> : () -> ()
    %cst_31 = arith.constant dense<0.000000e+00> : vector<2x8x32xf32>
    %101 = tpu.matmul %99, %100, %cst_31 {dimension_numbers = #tpu.dot_dimension_numbers<[2], [1], [1], [2], [0, 0, 0, 1, 1, 2], [0], [0]>} : vector<2x8x8xbf16>, vector<2x8x32xbf16>, vector<2x8x32xf32> -> vector<2x8x32xf32>
    "tpu.trace_stop"() : () -> ()
    %102 = vector.extract_strided_slice %40 {offsets = [0, 0, 96], sizes = [2, 8, 32], strides = [1, 1, 1]} : vector<2x8x128xbf16> to vector<2x8x32xbf16>
    %103 = vector.extract_strided_slice %42 {offsets = [0, 0, 96], sizes = [2, 8, 32], strides = [1, 1, 1]} : vector<2x8x128xbf16> to vector<2x8x32xbf16>
    "tpu.trace_start"() <{level = 10 : i32, message = "bqc,bkc->bqk"}> : () -> ()
    %cst_32 = arith.constant dense<0.000000e+00> : vector<2x8x8xf32>
    %104 = tpu.matmul %102, %103, %cst_32 {dimension_numbers = #tpu.dot_dimension_numbers<[2], [2], [1], [1], [0, 0, 0, 1, 1, 1], [0], [0]>} : vector<2x8x32xbf16>, vector<2x8x32xbf16>, vector<2x8x8xf32> -> vector<2x8x8xf32>
    "tpu.trace_stop"() : () -> ()
    %105 = vector.shape_cast %1 : vector<2x8xf32> to vector<2x1x8xf32>
    %106 = vector.broadcast %105 : vector<2x1x8xf32> to vector<2x8x8xf32>
    %107 = arith.addf %104, %106 : vector<2x8x8xf32>
    %cst_33 = arith.constant dense<0xFF800000> : vector<2x8xf32>
    %108 = vector.multi_reduction <maximumf>, %107, %cst_33 [2] : vector<2x8x8xf32> to vector<2x8xf32>
    %109 = vector.shape_cast %108 : vector<2x8xf32> to vector<2x8x1xf32>
    %110 = vector.broadcast %109 : vector<2x8x1xf32> to vector<2x8x8xf32>
    %111 = arith.subf %107, %110 : vector<2x8x8xf32>
    %112 = math.exp %111 : vector<2x8x8xf32>
    %cst_34 = arith.constant dense<0.000000e+00> : vector<2x8xf32>
    %113 = vector.multi_reduction <add>, %112, %cst_34 [2] : vector<2x8x8xf32> to vector<2x8xf32>
    %114 = vector.shape_cast %113 : vector<2x8xf32> to vector<2x8x1xf32>
    %115 = tpu.reciprocal %114 {approx = true} : vector<2x8x1xf32> -> vector<2x8x1xf32>
    %116 = vector.broadcast %115 : vector<2x8x1xf32> to vector<2x8x8xf32>
    %117 = arith.mulf %112, %116 : vector<2x8x8xf32>
    %118 = arith.truncf %117 : vector<2x8x8xf32> to vector<2x8x8xbf16>
    %119 = vector.extract_strided_slice %44 {offsets = [0, 0, 96], sizes = [2, 8, 32], strides = [1, 1, 1]} : vector<2x8x128xbf16> to vector<2x8x32xbf16>
    "tpu.trace_start"() <{level = 10 : i32, message = "bqk,bkc->bqc"}> : () -> ()
    %cst_35 = arith.constant dense<0.000000e+00> : vector<2x8x32xf32>
    %120 = tpu.matmul %118, %119, %cst_35 {dimension_numbers = #tpu.dot_dimension_numbers<[2], [1], [1], [2], [0, 0, 0, 1, 1, 2], [0], [0]>} : vector<2x8x8xbf16>, vector<2x8x32xbf16>, vector<2x8x32xf32> -> vector<2x8x32xf32>
    "tpu.trace_stop"() : () -> ()
    %121 = tpu.concatenate %63, %82, %101, %120 in 2 : vector<2x8x32xf32>, vector<2x8x32xf32>, vector<2x8x32xf32>, vector<2x8x32xf32> -> vector<2x8x128xf32>
    %122 = vector.shape_cast %121 : vector<2x8x128xf32> to vector<16x128xf32>
    %c0_36 = arith.constant 0 : index
    %c0_37 = arith.constant 0 : index
    %c0_38 = arith.constant 0 : index
    %123 = vector.load %arg6[%c0_36, %c0_37, %c0_38] : memref<2x128x128xbf16, #tpu.memory_space<vmem>>, vector<1x128x128xbf16>
    %124 = vector.shape_cast %123 : vector<1x128x128xbf16> to vector<128x128xbf16>
    %125 = arith.truncf %122 : vector<16x128xf32> to vector<16x128xbf16>
    %cst_39 = arith.constant dense<0.000000e+00> : vector<16x128xf32>
    %126 = tpu.matmul %125, %124, %cst_39 {dimension_numbers = #tpu.dot_dimension_numbers<[1], [0], [0], [1], [0, 0, 1, 1], [], []>} : vector<16x128xbf16>, vector<128x128xbf16>, vector<16x128xf32> -> vector<16x128xf32>
    %127 = arith.addf %0, %126 : vector<16x128xf32>
    %c0_40 = arith.constant 0 : index
    %c0_41 = arith.constant 0 : index
    %c0_42 = arith.constant 0 : index
    %128 = vector.load %arg7[%c0_40, %c0_41, %c0_42] : memref<2x1x128xf32, #tpu.memory_space<vmem>>, vector<1x1x128xf32>
    %129 = vector.shape_cast %128 : vector<1x1x128xf32> to vector<1x128xf32>
    %130 = vector.broadcast %129 : vector<1x128xf32> to vector<16x128xf32>
    %131 = arith.addf %127, %130 : vector<16x128xf32>
    %c0_43 = arith.constant 0 : index
    %c0_44 = arith.constant 0 : index
    %c0_45 = arith.constant 0 : index
    %132 = vector.load %arg8[%c0_43, %c0_44, %c0_45] : memref<2x1x128xf32, #tpu.memory_space<vmem>>, vector<1x1x128xf32>
    %133 = vector.shape_cast %132 : vector<1x1x128xf32> to vector<1x128xf32>
    %c0_46 = arith.constant 0 : index
    %c0_47 = arith.constant 0 : index
    %c0_48 = arith.constant 0 : index
    %134 = vector.load %arg9[%c0_46, %c0_47, %c0_48] : memref<2x1x128xf32, #tpu.memory_space<vmem>>, vector<1x1x128xf32>
    %135 = vector.shape_cast %134 : vector<1x1x128xf32> to vector<1x128xf32>
    %cst_49 = arith.constant dense<0.000000e+00> : vector<16xf32>
    %136 = vector.multi_reduction <add>, %131, %cst_49 [1] : vector<16x128xf32> to vector<16xf32>
    %137 = vector.shape_cast %136 : vector<16xf32> to vector<16x1xf32>
    %cst_50 = arith.constant 1.280000e+02 : f32
    %138 = vector.broadcast %cst_50 : f32 to vector<16x1xf32>
    %139 = arith.divf %137, %138 : vector<16x1xf32>
    %140 = vector.broadcast %139 : vector<16x1xf32> to vector<16x128xf32>
    %141 = arith.subf %131, %140 : vector<16x128xf32>
    %142 = arith.mulf %141, %141 : vector<16x128xf32>
    %cst_51 = arith.constant dense<0.000000e+00> : vector<16xf32>
    %143 = vector.multi_reduction <add>, %142, %cst_51 [1] : vector<16x128xf32> to vector<16xf32>
    %144 = vector.shape_cast %143 : vector<16xf32> to vector<16x1xf32>
    %cst_52 = arith.constant 1.280000e+02 : f32
    %145 = vector.broadcast %cst_52 : f32 to vector<16x1xf32>
    %146 = arith.divf %144, %145 : vector<16x1xf32>
    %147 = vector.broadcast %139 : vector<16x1xf32> to vector<16x128xf32>
    %148 = arith.subf %131, %147 : vector<16x128xf32>
    %cst_53 = arith.constant 9.99999974E-6 : f32
    %149 = vector.broadcast %cst_53 : f32 to vector<16x1xf32>
    %150 = arith.addf %146, %149 : vector<16x1xf32>
    %151 = math.rsqrt %150 : vector<16x1xf32>
    %152 = vector.broadcast %151 : vector<16x1xf32> to vector<16x128xf32>
    %153 = arith.mulf %148, %152 : vector<16x128xf32>
    %154 = vector.broadcast %133 : vector<1x128xf32> to vector<16x128xf32>
    %155 = arith.mulf %153, %154 : vector<16x128xf32>
    %156 = vector.broadcast %135 : vector<1x128xf32> to vector<16x128xf32>
    %157 = arith.addf %155, %156 : vector<16x128xf32>
    %c0_54 = arith.constant 0 : index
    %c0_55 = arith.constant 0 : index
    %c0_56 = arith.constant 0 : index
    %158 = vector.load %arg10[%c0_54, %c0_55, %c0_56] : memref<2x128x256xbf16, #tpu.memory_space<vmem>>, vector<1x128x256xbf16>
    %159 = vector.shape_cast %158 : vector<1x128x256xbf16> to vector<128x256xbf16>
    %160 = arith.truncf %157 : vector<16x128xf32> to vector<16x128xbf16>
    %cst_57 = arith.constant dense<0.000000e+00> : vector<16x256xf32>
    %161 = tpu.matmul %160, %159, %cst_57 {dimension_numbers = #tpu.dot_dimension_numbers<[1], [0], [0], [1], [0, 0, 1, 1], [], []>} : vector<16x128xbf16>, vector<128x256xbf16>, vector<16x256xf32> -> vector<16x256xf32>
    %c0_58 = arith.constant 0 : index
    %c0_59 = arith.constant 0 : index
    %c0_60 = arith.constant 0 : index
    %162 = vector.load %arg11[%c0_58, %c0_59, %c0_60] : memref<2x1x256xf32, #tpu.memory_space<vmem>>, vector<1x1x256xf32>
    %163 = vector.shape_cast %162 : vector<1x1x256xf32> to vector<1x256xf32>
    %164 = vector.broadcast %163 : vector<1x256xf32> to vector<16x256xf32>
    %165 = arith.addf %161, %164 : vector<16x256xf32>
    %cst_61 = arith.constant 0.000000e+00 : f32
    %166 = vector.broadcast %cst_61 : f32 to vector<16x256xf32>
    %167 = arith.maximumf %165, %166 : vector<16x256xf32>
    %c0_62 = arith.constant 0 : index
    %c0_63 = arith.constant 0 : index
    %c0_64 = arith.constant 0 : index
    %168 = vector.load %arg12[%c0_62, %c0_63, %c0_64] : memref<2x256x128xbf16, #tpu.memory_space<vmem>>, vector<1x256x128xbf16>
    %169 = vector.shape_cast %168 : vector<1x256x128xbf16> to vector<256x128xbf16>
    %170 = arith.truncf %167 : vector<16x256xf32> to vector<16x256xbf16>
    %cst_65 = arith.constant dense<0.000000e+00> : vector<16x128xf32>
    %171 = tpu.matmul %170, %169, %cst_65 {dimension_numbers = #tpu.dot_dimension_numbers<[1], [0], [0], [1], [0, 0, 1, 1], [], []>} : vector<16x256xbf16>, vector<256x128xbf16>, vector<16x128xf32> -> vector<16x128xf32>
    %c0_66 = arith.constant 0 : index
    %c0_67 = arith.constant 0 : index
    %c0_68 = arith.constant 0 : index
    %172 = vector.load %arg13[%c0_66, %c0_67, %c0_68] : memref<2x1x128xf32, #tpu.memory_space<vmem>>, vector<1x1x128xf32>
    %173 = vector.shape_cast %172 : vector<1x1x128xf32> to vector<1x128xf32>
    %174 = vector.broadcast %173 : vector<1x128xf32> to vector<16x128xf32>
    %175 = arith.addf %171, %174 : vector<16x128xf32>
    %176 = arith.addf %131, %175 : vector<16x128xf32>
    %c1 = arith.constant 1 : index
    %c0_69 = arith.constant 0 : index
    %c0_70 = arith.constant 0 : index
    %177 = vector.load %arg2[%c1, %c0_69, %c0_70] : memref<2x1x128xf32, #tpu.memory_space<vmem>>, vector<1x1x128xf32>
    %178 = vector.shape_cast %177 : vector<1x1x128xf32> to vector<1x128xf32>
    %c1_71 = arith.constant 1 : index
    %c0_72 = arith.constant 0 : index
    %c0_73 = arith.constant 0 : index
    %179 = vector.load %arg3[%c1_71, %c0_72, %c0_73] : memref<2x1x128xf32, #tpu.memory_space<vmem>>, vector<1x1x128xf32>
    %180 = vector.shape_cast %179 : vector<1x1x128xf32> to vector<1x128xf32>
    %cst_74 = arith.constant dense<0.000000e+00> : vector<16xf32>
    %181 = vector.multi_reduction <add>, %176, %cst_74 [1] : vector<16x128xf32> to vector<16xf32>
    %182 = vector.shape_cast %181 : vector<16xf32> to vector<16x1xf32>
    %cst_75 = arith.constant 1.280000e+02 : f32
    %183 = vector.broadcast %cst_75 : f32 to vector<16x1xf32>
    %184 = arith.divf %182, %183 : vector<16x1xf32>
    %185 = vector.broadcast %184 : vector<16x1xf32> to vector<16x128xf32>
    %186 = arith.subf %176, %185 : vector<16x128xf32>
    %187 = arith.mulf %186, %186 : vector<16x128xf32>
    %cst_76 = arith.constant dense<0.000000e+00> : vector<16xf32>
    %188 = vector.multi_reduction <add>, %187, %cst_76 [1] : vector<16x128xf32> to vector<16xf32>
    %189 = vector.shape_cast %188 : vector<16xf32> to vector<16x1xf32>
    %cst_77 = arith.constant 1.280000e+02 : f32
    %190 = vector.broadcast %cst_77 : f32 to vector<16x1xf32>
    %191 = arith.divf %189, %190 : vector<16x1xf32>
    %192 = vector.broadcast %184 : vector<16x1xf32> to vector<16x128xf32>
    %193 = arith.subf %176, %192 : vector<16x128xf32>
    %cst_78 = arith.constant 9.99999974E-6 : f32
    %194 = vector.broadcast %cst_78 : f32 to vector<16x1xf32>
    %195 = arith.addf %191, %194 : vector<16x1xf32>
    %196 = math.rsqrt %195 : vector<16x1xf32>
    %197 = vector.broadcast %196 : vector<16x1xf32> to vector<16x128xf32>
    %198 = arith.mulf %193, %197 : vector<16x128xf32>
    %199 = vector.broadcast %178 : vector<1x128xf32> to vector<16x128xf32>
    %200 = arith.mulf %198, %199 : vector<16x128xf32>
    %201 = vector.broadcast %180 : vector<1x128xf32> to vector<16x128xf32>
    %202 = arith.addf %200, %201 : vector<16x128xf32>
    %c1_79 = arith.constant 1 : index
    %c0_80 = arith.constant 0 : index
    %c0_81 = arith.constant 0 : index
    %203 = vector.load %arg4[%c1_79, %c0_80, %c0_81] : memref<2x128x384xbf16, #tpu.memory_space<vmem>>, vector<1x128x384xbf16>
    %204 = vector.shape_cast %203 : vector<1x128x384xbf16> to vector<128x384xbf16>
    %205 = arith.truncf %202 : vector<16x128xf32> to vector<16x128xbf16>
    %cst_82 = arith.constant dense<0.000000e+00> : vector<16x384xf32>
    %206 = tpu.matmul %205, %204, %cst_82 {dimension_numbers = #tpu.dot_dimension_numbers<[1], [0], [0], [1], [0, 0, 1, 1], [], []>} : vector<16x128xbf16>, vector<128x384xbf16>, vector<16x384xf32> -> vector<16x384xf32>
    %c1_83 = arith.constant 1 : index
    %c0_84 = arith.constant 0 : index
    %c0_85 = arith.constant 0 : index
    %207 = vector.load %arg5[%c1_83, %c0_84, %c0_85] : memref<2x1x384xf32, #tpu.memory_space<vmem>>, vector<1x1x384xf32>
    %208 = vector.shape_cast %207 : vector<1x1x384xf32> to vector<1x384xf32>
    %209 = vector.broadcast %208 : vector<1x384xf32> to vector<16x384xf32>
    %210 = arith.addf %206, %209 : vector<16x384xf32>
    %211 = vector.extract_strided_slice %210 {offsets = [0, 0], sizes = [16, 128], strides = [1, 1]} : vector<16x384xf32> to vector<16x128xf32>
    %212 = vector.extract_strided_slice %210 {offsets = [0, 128], sizes = [16, 128], strides = [1, 1]} : vector<16x384xf32> to vector<16x128xf32>
    %213 = vector.extract_strided_slice %210 {offsets = [0, 256], sizes = [16, 128], strides = [1, 1]} : vector<16x384xf32> to vector<16x128xf32>
    %214 = vector.shape_cast %211 : vector<16x128xf32> to vector<2x8x128xf32>
    %215 = arith.truncf %214 : vector<2x8x128xf32> to vector<2x8x128xbf16>
    %216 = vector.shape_cast %212 : vector<16x128xf32> to vector<2x8x128xf32>
    %217 = arith.truncf %216 : vector<2x8x128xf32> to vector<2x8x128xbf16>
    %218 = vector.shape_cast %213 : vector<16x128xf32> to vector<2x8x128xf32>
    %219 = arith.truncf %218 : vector<2x8x128xf32> to vector<2x8x128xbf16>
    %220 = vector.extract_strided_slice %215 {offsets = [0, 0, 0], sizes = [2, 8, 32], strides = [1, 1, 1]} : vector<2x8x128xbf16> to vector<2x8x32xbf16>
    %221 = vector.extract_strided_slice %217 {offsets = [0, 0, 0], sizes = [2, 8, 32], strides = [1, 1, 1]} : vector<2x8x128xbf16> to vector<2x8x32xbf16>
    "tpu.trace_start"() <{level = 10 : i32, message = "bqc,bkc->bqk"}> : () -> ()
    %cst_86 = arith.constant dense<0.000000e+00> : vector<2x8x8xf32>
    %222 = tpu.matmul %220, %221, %cst_86 {dimension_numbers = #tpu.dot_dimension_numbers<[2], [2], [1], [1], [0, 0, 0, 1, 1, 1], [0], [0]>} : vector<2x8x32xbf16>, vector<2x8x32xbf16>, vector<2x8x8xf32> -> vector<2x8x8xf32>
    "tpu.trace_stop"() : () -> ()
    %223 = vector.shape_cast %1 : vector<2x8xf32> to vector<2x1x8xf32>
    %224 = vector.broadcast %223 : vector<2x1x8xf32> to vector<2x8x8xf32>
    %225 = arith.addf %222, %224 : vector<2x8x8xf32>
    %cst_87 = arith.constant dense<0xFF800000> : vector<2x8xf32>
    %226 = vector.multi_reduction <maximumf>, %225, %cst_87 [2] : vector<2x8x8xf32> to vector<2x8xf32>
    %227 = vector.shape_cast %226 : vector<2x8xf32> to vector<2x8x1xf32>
    %228 = vector.broadcast %227 : vector<2x8x1xf32> to vector<2x8x8xf32>
    %229 = arith.subf %225, %228 : vector<2x8x8xf32>
    %230 = math.exp %229 : vector<2x8x8xf32>
    %cst_88 = arith.constant dense<0.000000e+00> : vector<2x8xf32>
    %231 = vector.multi_reduction <add>, %230, %cst_88 [2] : vector<2x8x8xf32> to vector<2x8xf32>
    %232 = vector.shape_cast %231 : vector<2x8xf32> to vector<2x8x1xf32>
    %233 = tpu.reciprocal %232 {approx = true} : vector<2x8x1xf32> -> vector<2x8x1xf32>
    %234 = vector.broadcast %233 : vector<2x8x1xf32> to vector<2x8x8xf32>
    %235 = arith.mulf %230, %234 : vector<2x8x8xf32>
    %236 = arith.truncf %235 : vector<2x8x8xf32> to vector<2x8x8xbf16>
    %237 = vector.extract_strided_slice %219 {offsets = [0, 0, 0], sizes = [2, 8, 32], strides = [1, 1, 1]} : vector<2x8x128xbf16> to vector<2x8x32xbf16>
    "tpu.trace_start"() <{level = 10 : i32, message = "bqk,bkc->bqc"}> : () -> ()
    %cst_89 = arith.constant dense<0.000000e+00> : vector<2x8x32xf32>
    %238 = tpu.matmul %236, %237, %cst_89 {dimension_numbers = #tpu.dot_dimension_numbers<[2], [1], [1], [2], [0, 0, 0, 1, 1, 2], [0], [0]>} : vector<2x8x8xbf16>, vector<2x8x32xbf16>, vector<2x8x32xf32> -> vector<2x8x32xf32>
    "tpu.trace_stop"() : () -> ()
    %239 = vector.extract_strided_slice %215 {offsets = [0, 0, 32], sizes = [2, 8, 32], strides = [1, 1, 1]} : vector<2x8x128xbf16> to vector<2x8x32xbf16>
    %240 = vector.extract_strided_slice %217 {offsets = [0, 0, 32], sizes = [2, 8, 32], strides = [1, 1, 1]} : vector<2x8x128xbf16> to vector<2x8x32xbf16>
    "tpu.trace_start"() <{level = 10 : i32, message = "bqc,bkc->bqk"}> : () -> ()
    %cst_90 = arith.constant dense<0.000000e+00> : vector<2x8x8xf32>
    %241 = tpu.matmul %239, %240, %cst_90 {dimension_numbers = #tpu.dot_dimension_numbers<[2], [2], [1], [1], [0, 0, 0, 1, 1, 1], [0], [0]>} : vector<2x8x32xbf16>, vector<2x8x32xbf16>, vector<2x8x8xf32> -> vector<2x8x8xf32>
    "tpu.trace_stop"() : () -> ()
    %242 = vector.shape_cast %1 : vector<2x8xf32> to vector<2x1x8xf32>
    %243 = vector.broadcast %242 : vector<2x1x8xf32> to vector<2x8x8xf32>
    %244 = arith.addf %241, %243 : vector<2x8x8xf32>
    %cst_91 = arith.constant dense<0xFF800000> : vector<2x8xf32>
    %245 = vector.multi_reduction <maximumf>, %244, %cst_91 [2] : vector<2x8x8xf32> to vector<2x8xf32>
    %246 = vector.shape_cast %245 : vector<2x8xf32> to vector<2x8x1xf32>
    %247 = vector.broadcast %246 : vector<2x8x1xf32> to vector<2x8x8xf32>
    %248 = arith.subf %244, %247 : vector<2x8x8xf32>
    %249 = math.exp %248 : vector<2x8x8xf32>
    %cst_92 = arith.constant dense<0.000000e+00> : vector<2x8xf32>
    %250 = vector.multi_reduction <add>, %249, %cst_92 [2] : vector<2x8x8xf32> to vector<2x8xf32>
    %251 = vector.shape_cast %250 : vector<2x8xf32> to vector<2x8x1xf32>
    %252 = tpu.reciprocal %251 {approx = true} : vector<2x8x1xf32> -> vector<2x8x1xf32>
    %253 = vector.broadcast %252 : vector<2x8x1xf32> to vector<2x8x8xf32>
    %254 = arith.mulf %249, %253 : vector<2x8x8xf32>
    %255 = arith.truncf %254 : vector<2x8x8xf32> to vector<2x8x8xbf16>
    %256 = vector.extract_strided_slice %219 {offsets = [0, 0, 32], sizes = [2, 8, 32], strides = [1, 1, 1]} : vector<2x8x128xbf16> to vector<2x8x32xbf16>
    "tpu.trace_start"() <{level = 10 : i32, message = "bqk,bkc->bqc"}> : () -> ()
    %cst_93 = arith.constant dense<0.000000e+00> : vector<2x8x32xf32>
    %257 = tpu.matmul %255, %256, %cst_93 {dimension_numbers = #tpu.dot_dimension_numbers<[2], [1], [1], [2], [0, 0, 0, 1, 1, 2], [0], [0]>} : vector<2x8x8xbf16>, vector<2x8x32xbf16>, vector<2x8x32xf32> -> vector<2x8x32xf32>
    "tpu.trace_stop"() : () -> ()
    %258 = vector.extract_strided_slice %215 {offsets = [0, 0, 64], sizes = [2, 8, 32], strides = [1, 1, 1]} : vector<2x8x128xbf16> to vector<2x8x32xbf16>
    %259 = vector.extract_strided_slice %217 {offsets = [0, 0, 64], sizes = [2, 8, 32], strides = [1, 1, 1]} : vector<2x8x128xbf16> to vector<2x8x32xbf16>
    "tpu.trace_start"() <{level = 10 : i32, message = "bqc,bkc->bqk"}> : () -> ()
    %cst_94 = arith.constant dense<0.000000e+00> : vector<2x8x8xf32>
    %260 = tpu.matmul %258, %259, %cst_94 {dimension_numbers = #tpu.dot_dimension_numbers<[2], [2], [1], [1], [0, 0, 0, 1, 1, 1], [0], [0]>} : vector<2x8x32xbf16>, vector<2x8x32xbf16>, vector<2x8x8xf32> -> vector<2x8x8xf32>
    "tpu.trace_stop"() : () -> ()
    %261 = vector.shape_cast %1 : vector<2x8xf32> to vector<2x1x8xf32>
    %262 = vector.broadcast %261 : vector<2x1x8xf32> to vector<2x8x8xf32>
    %263 = arith.addf %260, %262 : vector<2x8x8xf32>
    %cst_95 = arith.constant dense<0xFF800000> : vector<2x8xf32>
    %264 = vector.multi_reduction <maximumf>, %263, %cst_95 [2] : vector<2x8x8xf32> to vector<2x8xf32>
    %265 = vector.shape_cast %264 : vector<2x8xf32> to vector<2x8x1xf32>
    %266 = vector.broadcast %265 : vector<2x8x1xf32> to vector<2x8x8xf32>
    %267 = arith.subf %263, %266 : vector<2x8x8xf32>
    %268 = math.exp %267 : vector<2x8x8xf32>
    %cst_96 = arith.constant dense<0.000000e+00> : vector<2x8xf32>
    %269 = vector.multi_reduction <add>, %268, %cst_96 [2] : vector<2x8x8xf32> to vector<2x8xf32>
    %270 = vector.shape_cast %269 : vector<2x8xf32> to vector<2x8x1xf32>
    %271 = tpu.reciprocal %270 {approx = true} : vector<2x8x1xf32> -> vector<2x8x1xf32>
    %272 = vector.broadcast %271 : vector<2x8x1xf32> to vector<2x8x8xf32>
    %273 = arith.mulf %268, %272 : vector<2x8x8xf32>
    %274 = arith.truncf %273 : vector<2x8x8xf32> to vector<2x8x8xbf16>
    %275 = vector.extract_strided_slice %219 {offsets = [0, 0, 64], sizes = [2, 8, 32], strides = [1, 1, 1]} : vector<2x8x128xbf16> to vector<2x8x32xbf16>
    "tpu.trace_start"() <{level = 10 : i32, message = "bqk,bkc->bqc"}> : () -> ()
    %cst_97 = arith.constant dense<0.000000e+00> : vector<2x8x32xf32>
    %276 = tpu.matmul %274, %275, %cst_97 {dimension_numbers = #tpu.dot_dimension_numbers<[2], [1], [1], [2], [0, 0, 0, 1, 1, 2], [0], [0]>} : vector<2x8x8xbf16>, vector<2x8x32xbf16>, vector<2x8x32xf32> -> vector<2x8x32xf32>
    "tpu.trace_stop"() : () -> ()
    %277 = vector.extract_strided_slice %215 {offsets = [0, 0, 96], sizes = [2, 8, 32], strides = [1, 1, 1]} : vector<2x8x128xbf16> to vector<2x8x32xbf16>
    %278 = vector.extract_strided_slice %217 {offsets = [0, 0, 96], sizes = [2, 8, 32], strides = [1, 1, 1]} : vector<2x8x128xbf16> to vector<2x8x32xbf16>
    "tpu.trace_start"() <{level = 10 : i32, message = "bqc,bkc->bqk"}> : () -> ()
    %cst_98 = arith.constant dense<0.000000e+00> : vector<2x8x8xf32>
    %279 = tpu.matmul %277, %278, %cst_98 {dimension_numbers = #tpu.dot_dimension_numbers<[2], [2], [1], [1], [0, 0, 0, 1, 1, 1], [0], [0]>} : vector<2x8x32xbf16>, vector<2x8x32xbf16>, vector<2x8x8xf32> -> vector<2x8x8xf32>
    "tpu.trace_stop"() : () -> ()
    %280 = vector.shape_cast %1 : vector<2x8xf32> to vector<2x1x8xf32>
    %281 = vector.broadcast %280 : vector<2x1x8xf32> to vector<2x8x8xf32>
    %282 = arith.addf %279, %281 : vector<2x8x8xf32>
    %cst_99 = arith.constant dense<0xFF800000> : vector<2x8xf32>
    %283 = vector.multi_reduction <maximumf>, %282, %cst_99 [2] : vector<2x8x8xf32> to vector<2x8xf32>
    %284 = vector.shape_cast %283 : vector<2x8xf32> to vector<2x8x1xf32>
    %285 = vector.broadcast %284 : vector<2x8x1xf32> to vector<2x8x8xf32>
    %286 = arith.subf %282, %285 : vector<2x8x8xf32>
    %287 = math.exp %286 : vector<2x8x8xf32>
    %cst_100 = arith.constant dense<0.000000e+00> : vector<2x8xf32>
    %288 = vector.multi_reduction <add>, %287, %cst_100 [2] : vector<2x8x8xf32> to vector<2x8xf32>
    %289 = vector.shape_cast %288 : vector<2x8xf32> to vector<2x8x1xf32>
    %290 = tpu.reciprocal %289 {approx = true} : vector<2x8x1xf32> -> vector<2x8x1xf32>
    %291 = vector.broadcast %290 : vector<2x8x1xf32> to vector<2x8x8xf32>
    %292 = arith.mulf %287, %291 : vector<2x8x8xf32>
    %293 = arith.truncf %292 : vector<2x8x8xf32> to vector<2x8x8xbf16>
    %294 = vector.extract_strided_slice %219 {offsets = [0, 0, 96], sizes = [2, 8, 32], strides = [1, 1, 1]} : vector<2x8x128xbf16> to vector<2x8x32xbf16>
    "tpu.trace_start"() <{level = 10 : i32, message = "bqk,bkc->bqc"}> : () -> ()
    %cst_101 = arith.constant dense<0.000000e+00> : vector<2x8x32xf32>
    %295 = tpu.matmul %293, %294, %cst_101 {dimension_numbers = #tpu.dot_dimension_numbers<[2], [1], [1], [2], [0, 0, 0, 1, 1, 2], [0], [0]>} : vector<2x8x8xbf16>, vector<2x8x32xbf16>, vector<2x8x32xf32> -> vector<2x8x32xf32>
    "tpu.trace_stop"() : () -> ()
    %296 = tpu.concatenate %238, %257, %276, %295 in 2 : vector<2x8x32xf32>, vector<2x8x32xf32>, vector<2x8x32xf32>, vector<2x8x32xf32> -> vector<2x8x128xf32>
    %297 = vector.shape_cast %296 : vector<2x8x128xf32> to vector<16x128xf32>
    %c1_102 = arith.constant 1 : index
    %c0_103 = arith.constant 0 : index
    %c0_104 = arith.constant 0 : index
    %298 = vector.load %arg6[%c1_102, %c0_103, %c0_104] : memref<2x128x128xbf16, #tpu.memory_space<vmem>>, vector<1x128x128xbf16>
    %299 = vector.shape_cast %298 : vector<1x128x128xbf16> to vector<128x128xbf16>
    %300 = arith.truncf %297 : vector<16x128xf32> to vector<16x128xbf16>
    %cst_105 = arith.constant dense<0.000000e+00> : vector<16x128xf32>
    %301 = tpu.matmul %300, %299, %cst_105 {dimension_numbers = #tpu.dot_dimension_numbers<[1], [0], [0], [1], [0, 0, 1, 1], [], []>} : vector<16x128xbf16>, vector<128x128xbf16>, vector<16x128xf32> -> vector<16x128xf32>
    %302 = arith.addf %176, %301 : vector<16x128xf32>
    %c1_106 = arith.constant 1 : index
    %c0_107 = arith.constant 0 : index
    %c0_108 = arith.constant 0 : index
    %303 = vector.load %arg7[%c1_106, %c0_107, %c0_108] : memref<2x1x128xf32, #tpu.memory_space<vmem>>, vector<1x1x128xf32>
    %304 = vector.shape_cast %303 : vector<1x1x128xf32> to vector<1x128xf32>
    %305 = vector.broadcast %304 : vector<1x128xf32> to vector<16x128xf32>
    %306 = arith.addf %302, %305 : vector<16x128xf32>
    %c1_109 = arith.constant 1 : index
    %c0_110 = arith.constant 0 : index
    %c0_111 = arith.constant 0 : index
    %307 = vector.load %arg8[%c1_109, %c0_110, %c0_111] : memref<2x1x128xf32, #tpu.memory_space<vmem>>, vector<1x1x128xf32>
    %308 = vector.shape_cast %307 : vector<1x1x128xf32> to vector<1x128xf32>
    %c1_112 = arith.constant 1 : index
    %c0_113 = arith.constant 0 : index
    %c0_114 = arith.constant 0 : index
    %309 = vector.load %arg9[%c1_112, %c0_113, %c0_114] : memref<2x1x128xf32, #tpu.memory_space<vmem>>, vector<1x1x128xf32>
    %310 = vector.shape_cast %309 : vector<1x1x128xf32> to vector<1x128xf32>
    %cst_115 = arith.constant dense<0.000000e+00> : vector<16xf32>
    %311 = vector.multi_reduction <add>, %306, %cst_115 [1] : vector<16x128xf32> to vector<16xf32>
    %312 = vector.shape_cast %311 : vector<16xf32> to vector<16x1xf32>
    %cst_116 = arith.constant 1.280000e+02 : f32
    %313 = vector.broadcast %cst_116 : f32 to vector<16x1xf32>
    %314 = arith.divf %312, %313 : vector<16x1xf32>
    %315 = vector.broadcast %314 : vector<16x1xf32> to vector<16x128xf32>
    %316 = arith.subf %306, %315 : vector<16x128xf32>
    %317 = arith.mulf %316, %316 : vector<16x128xf32>
    %cst_117 = arith.constant dense<0.000000e+00> : vector<16xf32>
    %318 = vector.multi_reduction <add>, %317, %cst_117 [1] : vector<16x128xf32> to vector<16xf32>
    %319 = vector.shape_cast %318 : vector<16xf32> to vector<16x1xf32>
    %cst_118 = arith.constant 1.280000e+02 : f32
    %320 = vector.broadcast %cst_118 : f32 to vector<16x1xf32>
    %321 = arith.divf %319, %320 : vector<16x1xf32>
    %322 = vector.broadcast %314 : vector<16x1xf32> to vector<16x128xf32>
    %323 = arith.subf %306, %322 : vector<16x128xf32>
    %cst_119 = arith.constant 9.99999974E-6 : f32
    %324 = vector.broadcast %cst_119 : f32 to vector<16x1xf32>
    %325 = arith.addf %321, %324 : vector<16x1xf32>
    %326 = math.rsqrt %325 : vector<16x1xf32>
    %327 = vector.broadcast %326 : vector<16x1xf32> to vector<16x128xf32>
    %328 = arith.mulf %323, %327 : vector<16x128xf32>
    %329 = vector.broadcast %308 : vector<1x128xf32> to vector<16x128xf32>
    %330 = arith.mulf %328, %329 : vector<16x128xf32>
    %331 = vector.broadcast %310 : vector<1x128xf32> to vector<16x128xf32>
    %332 = arith.addf %330, %331 : vector<16x128xf32>
    %c1_120 = arith.constant 1 : index
    %c0_121 = arith.constant 0 : index
    %c0_122 = arith.constant 0 : index
    %333 = vector.load %arg10[%c1_120, %c0_121, %c0_122] : memref<2x128x256xbf16, #tpu.memory_space<vmem>>, vector<1x128x256xbf16>
    %334 = vector.shape_cast %333 : vector<1x128x256xbf16> to vector<128x256xbf16>
    %335 = arith.truncf %332 : vector<16x128xf32> to vector<16x128xbf16>
    %cst_123 = arith.constant dense<0.000000e+00> : vector<16x256xf32>
    %336 = tpu.matmul %335, %334, %cst_123 {dimension_numbers = #tpu.dot_dimension_numbers<[1], [0], [0], [1], [0, 0, 1, 1], [], []>} : vector<16x128xbf16>, vector<128x256xbf16>, vector<16x256xf32> -> vector<16x256xf32>
    %c1_124 = arith.constant 1 : index
    %c0_125 = arith.constant 0 : index
    %c0_126 = arith.constant 0 : index
    %337 = vector.load %arg11[%c1_124, %c0_125, %c0_126] : memref<2x1x256xf32, #tpu.memory_space<vmem>>, vector<1x1x256xf32>
    %338 = vector.shape_cast %337 : vector<1x1x256xf32> to vector<1x256xf32>
    %339 = vector.broadcast %338 : vector<1x256xf32> to vector<16x256xf32>
    %340 = arith.addf %336, %339 : vector<16x256xf32>
    %cst_127 = arith.constant 0.000000e+00 : f32
    %341 = vector.broadcast %cst_127 : f32 to vector<16x256xf32>
    %342 = arith.maximumf %340, %341 : vector<16x256xf32>
    %c1_128 = arith.constant 1 : index
    %c0_129 = arith.constant 0 : index
    %c0_130 = arith.constant 0 : index
    %343 = vector.load %arg12[%c1_128, %c0_129, %c0_130] : memref<2x256x128xbf16, #tpu.memory_space<vmem>>, vector<1x256x128xbf16>
    %344 = vector.shape_cast %343 : vector<1x256x128xbf16> to vector<256x128xbf16>
    %345 = arith.truncf %342 : vector<16x256xf32> to vector<16x256xbf16>
    %cst_131 = arith.constant dense<0.000000e+00> : vector<16x128xf32>
    %346 = tpu.matmul %345, %344, %cst_131 {dimension_numbers = #tpu.dot_dimension_numbers<[1], [0], [0], [1], [0, 0, 1, 1], [], []>} : vector<16x256xbf16>, vector<256x128xbf16>, vector<16x128xf32> -> vector<16x128xf32>
    %c1_132 = arith.constant 1 : index
    %c0_133 = arith.constant 0 : index
    %c0_134 = arith.constant 0 : index
    %347 = vector.load %arg13[%c1_132, %c0_133, %c0_134] : memref<2x1x128xf32, #tpu.memory_space<vmem>>, vector<1x1x128xf32>
    %348 = vector.shape_cast %347 : vector<1x1x128xf32> to vector<1x128xf32>
    %349 = vector.broadcast %348 : vector<1x128xf32> to vector<16x128xf32>
    %350 = arith.addf %346, %349 : vector<16x128xf32>
    %351 = arith.addf %306, %350 : vector<16x128xf32>
    %c0_135 = arith.constant 0 : index
    %c0_136 = arith.constant 0 : index
    %352 = vector.load %arg14[%c0_135, %c0_136] : memref<1x128xf32, #tpu.memory_space<vmem>>, vector<1x128xf32>
    %c0_137 = arith.constant 0 : index
    %c0_138 = arith.constant 0 : index
    %353 = vector.load %arg15[%c0_137, %c0_138] : memref<1x128xf32, #tpu.memory_space<vmem>>, vector<1x128xf32>
    %cst_139 = arith.constant dense<0.000000e+00> : vector<16xf32>
    %354 = vector.multi_reduction <add>, %351, %cst_139 [1] : vector<16x128xf32> to vector<16xf32>
    %355 = vector.shape_cast %354 : vector<16xf32> to vector<16x1xf32>
    %cst_140 = arith.constant 1.280000e+02 : f32
    %356 = vector.broadcast %cst_140 : f32 to vector<16x1xf32>
    %357 = arith.divf %355, %356 : vector<16x1xf32>
    %358 = vector.broadcast %357 : vector<16x1xf32> to vector<16x128xf32>
    %359 = arith.subf %351, %358 : vector<16x128xf32>
    %360 = arith.mulf %359, %359 : vector<16x128xf32>
    %cst_141 = arith.constant dense<0.000000e+00> : vector<16xf32>
    %361 = vector.multi_reduction <add>, %360, %cst_141 [1] : vector<16x128xf32> to vector<16xf32>
    %362 = vector.shape_cast %361 : vector<16xf32> to vector<16x1xf32>
    %cst_142 = arith.constant 1.280000e+02 : f32
    %363 = vector.broadcast %cst_142 : f32 to vector<16x1xf32>
    %364 = arith.divf %362, %363 : vector<16x1xf32>
    %365 = vector.broadcast %357 : vector<16x1xf32> to vector<16x128xf32>
    %366 = arith.subf %351, %365 : vector<16x128xf32>
    %cst_143 = arith.constant 9.99999974E-6 : f32
    %367 = vector.broadcast %cst_143 : f32 to vector<16x1xf32>
    %368 = arith.addf %364, %367 : vector<16x1xf32>
    %369 = math.rsqrt %368 : vector<16x1xf32>
    %370 = vector.broadcast %369 : vector<16x1xf32> to vector<16x128xf32>
    %371 = arith.mulf %366, %370 : vector<16x128xf32>
    %372 = vector.broadcast %352 : vector<1x128xf32> to vector<16x128xf32>
    %373 = arith.mulf %371, %372 : vector<16x128xf32>
    %374 = vector.broadcast %353 : vector<1x128xf32> to vector<16x128xf32>
    %375 = arith.addf %373, %374 : vector<16x128xf32>
    %c0_144 = arith.constant 0 : index
    %c0_145 = arith.constant 0 : index
    %376 = vector.load %arg16[%c0_144, %c0_145] : memref<16x128xf32, #tpu.memory_space<vmem>>, vector<16x128xf32>
    tpu.vector_store %arg16[%c0_144, %c0_145], %375 {strides = array<i32>} : memref<16x128xf32, #tpu.memory_space<vmem>>, vector<16x128xf32>,
    return
  }
}

module attributes {stable_mosaic.version = 11 : i64} {
  func.func @_decoder_kernel(%arg0: memref<16x128xf32, #tpu.memory_space<vmem>>, %arg1: memref<16x128xf32, #tpu.memory_space<vmem>>, %arg2: memref<2x8xf32, #tpu.memory_space<vmem>>, %arg3: memref<8x8xf32, #tpu.memory_space<vmem>>, %arg4: memref<2x1x128xf32, #tpu.memory_space<vmem>>, %arg5: memref<2x1x128xf32, #tpu.memory_space<vmem>>, %arg6: memref<2x128x384xbf16, #tpu.memory_space<vmem>>, %arg7: memref<2x1x384xf32, #tpu.memory_space<vmem>>, %arg8: memref<2x128x128xbf16, #tpu.memory_space<vmem>>, %arg9: memref<2x1x128xf32, #tpu.memory_space<vmem>>, %arg10: memref<2x1x128xf32, #tpu.memory_space<vmem>>, %arg11: memref<2x1x128xf32, #tpu.memory_space<vmem>>, %arg12: memref<2x128x128xbf16, #tpu.memory_space<vmem>>, %arg13: memref<2x1x128xf32, #tpu.memory_space<vmem>>, %arg14: memref<2x128x256xbf16, #tpu.memory_space<vmem>>, %arg15: memref<2x1x256xf32, #tpu.memory_space<vmem>>, %arg16: memref<2x128x128xbf16, #tpu.memory_space<vmem>>, %arg17: memref<2x1x128xf32, #tpu.memory_space<vmem>>, %arg18: memref<2x1x128xf32, #tpu.memory_space<vmem>>, %arg19: memref<2x1x128xf32, #tpu.memory_space<vmem>>, %arg20: memref<2x128x256xbf16, #tpu.memory_space<vmem>>, %arg21: memref<2x1x256xf32, #tpu.memory_space<vmem>>, %arg22: memref<2x256x128xbf16, #tpu.memory_space<vmem>>, %arg23: memref<2x1x128xf32, #tpu.memory_space<vmem>>, %arg24: memref<1x128xf32, #tpu.memory_space<vmem>>, %arg25: memref<1x128xf32, #tpu.memory_space<vmem>>, %arg26: memref<256x128xbf16, #tpu.memory_space<vmem>>, %arg27: memref<16x256xf32, #tpu.memory_space<vmem>>) attributes {dimension_semantics = [], scalar_prefetch = 0 : i64, scratch_operands = 0 : i64, tpu.core_type = #tpu.core_type<tc>} {
    %c0 = arith.constant 0 : index
    %c0_0 = arith.constant 0 : index
    %0 = vector.load %arg0[%c0, %c0_0] : memref<16x128xf32, #tpu.memory_space<vmem>>, vector<16x128xf32>
    %c0_1 = arith.constant 0 : index
    %c0_2 = arith.constant 0 : index
    %1 = vector.load %arg1[%c0_1, %c0_2] : memref<16x128xf32, #tpu.memory_space<vmem>>, vector<16x128xf32>
    %c0_3 = arith.constant 0 : index
    %c0_4 = arith.constant 0 : index
    %2 = vector.load %arg2[%c0_3, %c0_4] : memref<2x8xf32, #tpu.memory_space<vmem>>, vector<2x8xf32>
    %c0_5 = arith.constant 0 : index
    %c0_6 = arith.constant 0 : index
    %3 = vector.load %arg3[%c0_5, %c0_6] : memref<8x8xf32, #tpu.memory_space<vmem>>, vector<8x8xf32>
    %c0_7 = arith.constant 0 : index
    %c0_8 = arith.constant 0 : index
    %c0_9 = arith.constant 0 : index
    %4 = vector.load %arg4[%c0_7, %c0_8, %c0_9] : memref<2x1x128xf32, #tpu.memory_space<vmem>>, vector<1x1x128xf32>
    %5 = vector.shape_cast %4 : vector<1x1x128xf32> to vector<1x128xf32>
    %c0_10 = arith.constant 0 : index
    %c0_11 = arith.constant 0 : index
    %c0_12 = arith.constant 0 : index
    %6 = vector.load %arg5[%c0_10, %c0_11, %c0_12] : memref<2x1x128xf32, #tpu.memory_space<vmem>>, vector<1x1x128xf32>
    %7 = vector.shape_cast %6 : vector<1x1x128xf32> to vector<1x128xf32>
    %cst = arith.constant dense<0.000000e+00> : vector<16xf32>
    %8 = vector.multi_reduction <add>, %0, %cst [1] : vector<16x128xf32> to vector<16xf32>
    %9 = vector.shape_cast %8 : vector<16xf32> to vector<16x1xf32>
    %cst_13 = arith.constant 1.280000e+02 : f32
    %10 = vector.broadcast %cst_13 : f32 to vector<16x1xf32>
    %11 = arith.divf %9, %10 : vector<16x1xf32>
    %12 = vector.broadcast %11 : vector<16x1xf32> to vector<16x128xf32>
    %13 = arith.subf %0, %12 : vector<16x128xf32>
    %14 = arith.mulf %13, %13 : vector<16x128xf32>
    %cst_14 = arith.constant dense<0.000000e+00> : vector<16xf32>
    %15 = vector.multi_reduction <add>, %14, %cst_14 [1] : vector<16x128xf32> to vector<16xf32>
    %16 = vector.shape_cast %15 : vector<16xf32> to vector<16x1xf32>
    %cst_15 = arith.constant 1.280000e+02 : f32
    %17 = vector.broadcast %cst_15 : f32 to vector<16x1xf32>
    %18 = arith.divf %16, %17 : vector<16x1xf32>
    %19 = vector.broadcast %11 : vector<16x1xf32> to vector<16x128xf32>
    %20 = arith.subf %0, %19 : vector<16x128xf32>
    %cst_16 = arith.constant 9.99999974E-6 : f32
    %21 = vector.broadcast %cst_16 : f32 to vector<16x1xf32>
    %22 = arith.addf %18, %21 : vector<16x1xf32>
    %23 = math.rsqrt %22 : vector<16x1xf32>
    %24 = vector.broadcast %23 : vector<16x1xf32> to vector<16x128xf32>
    %25 = arith.mulf %20, %24 : vector<16x128xf32>
    %26 = vector.broadcast %5 : vector<1x128xf32> to vector<16x128xf32>
    %27 = arith.mulf %25, %26 : vector<16x128xf32>
    %28 = vector.broadcast %7 : vector<1x128xf32> to vector<16x128xf32>
    %29 = arith.addf %27, %28 : vector<16x128xf32>
    %c0_17 = arith.constant 0 : index
    %c0_18 = arith.constant 0 : index
    %c0_19 = arith.constant 0 : index
    %30 = vector.load %arg6[%c0_17, %c0_18, %c0_19] : memref<2x128x384xbf16, #tpu.memory_space<vmem>>, vector<1x128x384xbf16>
    %31 = vector.shape_cast %30 : vector<1x128x384xbf16> to vector<128x384xbf16>
    %32 = arith.truncf %29 : vector<16x128xf32> to vector<16x128xbf16>
    %cst_20 = arith.constant dense<0.000000e+00> : vector<16x384xf32>
    %33 = tpu.matmul %32, %31, %cst_20 {dimension_numbers = #tpu.dot_dimension_numbers<[1], [0], [0], [1], [0, 0, 1, 1], [], []>} : vector<16x128xbf16>, vector<128x384xbf16>, vector<16x384xf32> -> vector<16x384xf32>
    %c0_21 = arith.constant 0 : index
    %c0_22 = arith.constant 0 : index
    %c0_23 = arith.constant 0 : index
    %34 = vector.load %arg7[%c0_21, %c0_22, %c0_23] : memref<2x1x384xf32, #tpu.memory_space<vmem>>, vector<1x1x384xf32>
    %35 = vector.shape_cast %34 : vector<1x1x384xf32> to vector<1x384xf32>
    %36 = vector.broadcast %35 : vector<1x384xf32> to vector<16x384xf32>
    %37 = arith.addf %33, %36 : vector<16x384xf32>
    %38 = vector.extract_strided_slice %37 {offsets = [0, 0], sizes = [16, 128], strides = [1, 1]} : vector<16x384xf32> to vector<16x128xf32>
    %39 = vector.extract_strided_slice %37 {offsets = [0, 128], sizes = [16, 128], strides = [1, 1]} : vector<16x384xf32> to vector<16x128xf32>
    %40 = vector.extract_strided_slice %37 {offsets = [0, 256], sizes = [16, 128], strides = [1, 1]} : vector<16x384xf32> to vector<16x128xf32>
    %41 = vector.shape_cast %38 : vector<16x128xf32> to vector<2x8x128xf32>
    %42 = arith.truncf %41 : vector<2x8x128xf32> to vector<2x8x128xbf16>
    %43 = vector.shape_cast %39 : vector<16x128xf32> to vector<2x8x128xf32>
    %44 = arith.truncf %43 : vector<2x8x128xf32> to vector<2x8x128xbf16>
    %45 = vector.shape_cast %40 : vector<16x128xf32> to vector<2x8x128xf32>
    %46 = arith.truncf %45 : vector<2x8x128xf32> to vector<2x8x128xbf16>
    %47 = vector.extract_strided_slice %42 {offsets = [0, 0, 0], sizes = [2, 8, 32], strides = [1, 1, 1]} : vector<2x8x128xbf16> to vector<2x8x32xbf16>
    %48 = vector.extract_strided_slice %44 {offsets = [0, 0, 0], sizes = [2, 8, 32], strides = [1, 1, 1]} : vector<2x8x128xbf16> to vector<2x8x32xbf16>
    "tpu.trace_start"() <{level = 10 : i32, message = "bqc,bkc->bqk"}> : () -> ()
    %cst_24 = arith.constant dense<0.000000e+00> : vector<2x8x8xf32>
    %49 = tpu.matmul %47, %48, %cst_24 {dimension_numbers = #tpu.dot_dimension_numbers<[2], [2], [1], [1], [0, 0, 0, 1, 1, 1], [0], [0]>} : vector<2x8x32xbf16>, vector<2x8x32xbf16>, vector<2x8x8xf32> -> vector<2x8x8xf32>
    "tpu.trace_stop"() : () -> ()
    %50 = vector.shape_cast %3 : vector<8x8xf32> to vector<1x8x8xf32>
    %51 = vector.broadcast %50 : vector<1x8x8xf32> to vector<2x8x8xf32>
    %52 = arith.addf %49, %51 : vector<2x8x8xf32>
    %cst_25 = arith.constant dense<0xFF800000> : vector<2x8xf32>
    %53 = vector.multi_reduction <maximumf>, %52, %cst_25 [2] : vector<2x8x8xf32> to vector<2x8xf32>
    %54 = vector.shape_cast %53 : vector<2x8xf32> to vector<2x8x1xf32>
    %55 = vector.broadcast %54 : vector<2x8x1xf32> to vector<2x8x8xf32>
    %56 = arith.subf %52, %55 : vector<2x8x8xf32>
    %57 = math.exp %56 : vector<2x8x8xf32>
    %cst_26 = arith.constant dense<0.000000e+00> : vector<2x8xf32>
    %58 = vector.multi_reduction <add>, %57, %cst_26 [2] : vector<2x8x8xf32> to vector<2x8xf32>
    %59 = vector.shape_cast %58 : vector<2x8xf32> to vector<2x8x1xf32>
    %60 = tpu.reciprocal %59 {approx = true} : vector<2x8x1xf32> -> vector<2x8x1xf32>
    %61 = vector.broadcast %60 : vector<2x8x1xf32> to vector<2x8x8xf32>
    %62 = arith.mulf %57, %61 : vector<2x8x8xf32>
    %63 = arith.truncf %62 : vector<2x8x8xf32> to vector<2x8x8xbf16>
    %64 = vector.extract_strided_slice %46 {offsets = [0, 0, 0], sizes = [2, 8, 32], strides = [1, 1, 1]} : vector<2x8x128xbf16> to vector<2x8x32xbf16>
    "tpu.trace_start"() <{level = 10 : i32, message = "bqk,bkc->bqc"}> : () -> ()
    %cst_27 = arith.constant dense<0.000000e+00> : vector<2x8x32xf32>
    %65 = tpu.matmul %63, %64, %cst_27 {dimension_numbers = #tpu.dot_dimension_numbers<[2], [1], [1], [2], [0, 0, 0, 1, 1, 2], [0], [0]>} : vector<2x8x8xbf16>, vector<2x8x32xbf16>, vector<2x8x32xf32> -> vector<2x8x32xf32>
    "tpu.trace_stop"() : () -> ()
    %66 = vector.extract_strided_slice %42 {offsets = [0, 0, 32], sizes = [2, 8, 32], strides = [1, 1, 1]} : vector<2x8x128xbf16> to vector<2x8x32xbf16>
    %67 = vector.extract_strided_slice %44 {offsets = [0, 0, 32], sizes = [2, 8, 32], strides = [1, 1, 1]} : vector<2x8x128xbf16> to vector<2x8x32xbf16>
    "tpu.trace_start"() <{level = 10 : i32, message = "bqc,bkc->bqk"}> : () -> ()
    %cst_28 = arith.constant dense<0.000000e+00> : vector<2x8x8xf32>
    %68 = tpu.matmul %66, %67, %cst_28 {dimension_numbers = #tpu.dot_dimension_numbers<[2], [2], [1], [1], [0, 0, 0, 1, 1, 1], [0], [0]>} : vector<2x8x32xbf16>, vector<2x8x32xbf16>, vector<2x8x8xf32> -> vector<2x8x8xf32>
    "tpu.trace_stop"() : () -> ()
    %69 = vector.shape_cast %3 : vector<8x8xf32> to vector<1x8x8xf32>
    %70 = vector.broadcast %69 : vector<1x8x8xf32> to vector<2x8x8xf32>
    %71 = arith.addf %68, %70 : vector<2x8x8xf32>
    %cst_29 = arith.constant dense<0xFF800000> : vector<2x8xf32>
    %72 = vector.multi_reduction <maximumf>, %71, %cst_29 [2] : vector<2x8x8xf32> to vector<2x8xf32>
    %73 = vector.shape_cast %72 : vector<2x8xf32> to vector<2x8x1xf32>
    %74 = vector.broadcast %73 : vector<2x8x1xf32> to vector<2x8x8xf32>
    %75 = arith.subf %71, %74 : vector<2x8x8xf32>
    %76 = math.exp %75 : vector<2x8x8xf32>
    %cst_30 = arith.constant dense<0.000000e+00> : vector<2x8xf32>
    %77 = vector.multi_reduction <add>, %76, %cst_30 [2] : vector<2x8x8xf32> to vector<2x8xf32>
    %78 = vector.shape_cast %77 : vector<2x8xf32> to vector<2x8x1xf32>
    %79 = tpu.reciprocal %78 {approx = true} : vector<2x8x1xf32> -> vector<2x8x1xf32>
    %80 = vector.broadcast %79 : vector<2x8x1xf32> to vector<2x8x8xf32>
    %81 = arith.mulf %76, %80 : vector<2x8x8xf32>
    %82 = arith.truncf %81 : vector<2x8x8xf32> to vector<2x8x8xbf16>
    %83 = vector.extract_strided_slice %46 {offsets = [0, 0, 32], sizes = [2, 8, 32], strides = [1, 1, 1]} : vector<2x8x128xbf16> to vector<2x8x32xbf16>
    "tpu.trace_start"() <{level = 10 : i32, message = "bqk,bkc->bqc"}> : () -> ()
    %cst_31 = arith.constant dense<0.000000e+00> : vector<2x8x32xf32>
    %84 = tpu.matmul %82, %83, %cst_31 {dimension_numbers = #tpu.dot_dimension_numbers<[2], [1], [1], [2], [0, 0, 0, 1, 1, 2], [0], [0]>} : vector<2x8x8xbf16>, vector<2x8x32xbf16>, vector<2x8x32xf32> -> vector<2x8x32xf32>
    "tpu.trace_stop"() : () -> ()
    %85 = vector.extract_strided_slice %42 {offsets = [0, 0, 64], sizes = [2, 8, 32], strides = [1, 1, 1]} : vector<2x8x128xbf16> to vector<2x8x32xbf16>
    %86 = vector.extract_strided_slice %44 {offsets = [0, 0, 64], sizes = [2, 8, 32], strides = [1, 1, 1]} : vector<2x8x128xbf16> to vector<2x8x32xbf16>
    "tpu.trace_start"() <{level = 10 : i32, message = "bqc,bkc->bqk"}> : () -> ()
    %cst_32 = arith.constant dense<0.000000e+00> : vector<2x8x8xf32>
    %87 = tpu.matmul %85, %86, %cst_32 {dimension_numbers = #tpu.dot_dimension_numbers<[2], [2], [1], [1], [0, 0, 0, 1, 1, 1], [0], [0]>} : vector<2x8x32xbf16>, vector<2x8x32xbf16>, vector<2x8x8xf32> -> vector<2x8x8xf32>
    "tpu.trace_stop"() : () -> ()
    %88 = vector.shape_cast %3 : vector<8x8xf32> to vector<1x8x8xf32>
    %89 = vector.broadcast %88 : vector<1x8x8xf32> to vector<2x8x8xf32>
    %90 = arith.addf %87, %89 : vector<2x8x8xf32>
    %cst_33 = arith.constant dense<0xFF800000> : vector<2x8xf32>
    %91 = vector.multi_reduction <maximumf>, %90, %cst_33 [2] : vector<2x8x8xf32> to vector<2x8xf32>
    %92 = vector.shape_cast %91 : vector<2x8xf32> to vector<2x8x1xf32>
    %93 = vector.broadcast %92 : vector<2x8x1xf32> to vector<2x8x8xf32>
    %94 = arith.subf %90, %93 : vector<2x8x8xf32>
    %95 = math.exp %94 : vector<2x8x8xf32>
    %cst_34 = arith.constant dense<0.000000e+00> : vector<2x8xf32>
    %96 = vector.multi_reduction <add>, %95, %cst_34 [2] : vector<2x8x8xf32> to vector<2x8xf32>
    %97 = vector.shape_cast %96 : vector<2x8xf32> to vector<2x8x1xf32>
    %98 = tpu.reciprocal %97 {approx = true} : vector<2x8x1xf32> -> vector<2x8x1xf32>
    %99 = vector.broadcast %98 : vector<2x8x1xf32> to vector<2x8x8xf32>
    %100 = arith.mulf %95, %99 : vector<2x8x8xf32>
    %101 = arith.truncf %100 : vector<2x8x8xf32> to vector<2x8x8xbf16>
    %102 = vector.extract_strided_slice %46 {offsets = [0, 0, 64], sizes = [2, 8, 32], strides = [1, 1, 1]} : vector<2x8x128xbf16> to vector<2x8x32xbf16>
    "tpu.trace_start"() <{level = 10 : i32, message = "bqk,bkc->bqc"}> : () -> ()
    %cst_35 = arith.constant dense<0.000000e+00> : vector<2x8x32xf32>
    %103 = tpu.matmul %101, %102, %cst_35 {dimension_numbers = #tpu.dot_dimension_numbers<[2], [1], [1], [2], [0, 0, 0, 1, 1, 2], [0], [0]>} : vector<2x8x8xbf16>, vector<2x8x32xbf16>, vector<2x8x32xf32> -> vector<2x8x32xf32>
    "tpu.trace_stop"() : () -> ()
    %104 = vector.extract_strided_slice %42 {offsets = [0, 0, 96], sizes = [2, 8, 32], strides = [1, 1, 1]} : vector<2x8x128xbf16> to vector<2x8x32xbf16>
    %105 = vector.extract_strided_slice %44 {offsets = [0, 0, 96], sizes = [2, 8, 32], strides = [1, 1, 1]} : vector<2x8x128xbf16> to vector<2x8x32xbf16>
    "tpu.trace_start"() <{level = 10 : i32, message = "bqc,bkc->bqk"}> : () -> ()
    %cst_36 = arith.constant dense<0.000000e+00> : vector<2x8x8xf32>
    %106 = tpu.matmul %104, %105, %cst_36 {dimension_numbers = #tpu.dot_dimension_numbers<[2], [2], [1], [1], [0, 0, 0, 1, 1, 1], [0], [0]>} : vector<2x8x32xbf16>, vector<2x8x32xbf16>, vector<2x8x8xf32> -> vector<2x8x8xf32>
    "tpu.trace_stop"() : () -> ()
    %107 = vector.shape_cast %3 : vector<8x8xf32> to vector<1x8x8xf32>
    %108 = vector.broadcast %107 : vector<1x8x8xf32> to vector<2x8x8xf32>
    %109 = arith.addf %106, %108 : vector<2x8x8xf32>
    %cst_37 = arith.constant dense<0xFF800000> : vector<2x8xf32>
    %110 = vector.multi_reduction <maximumf>, %109, %cst_37 [2] : vector<2x8x8xf32> to vector<2x8xf32>
    %111 = vector.shape_cast %110 : vector<2x8xf32> to vector<2x8x1xf32>
    %112 = vector.broadcast %111 : vector<2x8x1xf32> to vector<2x8x8xf32>
    %113 = arith.subf %109, %112 : vector<2x8x8xf32>
    %114 = math.exp %113 : vector<2x8x8xf32>
    %cst_38 = arith.constant dense<0.000000e+00> : vector<2x8xf32>
    %115 = vector.multi_reduction <add>, %114, %cst_38 [2] : vector<2x8x8xf32> to vector<2x8xf32>
    %116 = vector.shape_cast %115 : vector<2x8xf32> to vector<2x8x1xf32>
    %117 = tpu.reciprocal %116 {approx = true} : vector<2x8x1xf32> -> vector<2x8x1xf32>
    %118 = vector.broadcast %117 : vector<2x8x1xf32> to vector<2x8x8xf32>
    %119 = arith.mulf %114, %118 : vector<2x8x8xf32>
    %120 = arith.truncf %119 : vector<2x8x8xf32> to vector<2x8x8xbf16>
    %121 = vector.extract_strided_slice %46 {offsets = [0, 0, 96], sizes = [2, 8, 32], strides = [1, 1, 1]} : vector<2x8x128xbf16> to vector<2x8x32xbf16>
    "tpu.trace_start"() <{level = 10 : i32, message = "bqk,bkc->bqc"}> : () -> ()
    %cst_39 = arith.constant dense<0.000000e+00> : vector<2x8x32xf32>
    %122 = tpu.matmul %120, %121, %cst_39 {dimension_numbers = #tpu.dot_dimension_numbers<[2], [1], [1], [2], [0, 0, 0, 1, 1, 2], [0], [0]>} : vector<2x8x8xbf16>, vector<2x8x32xbf16>, vector<2x8x32xf32> -> vector<2x8x32xf32>
    "tpu.trace_stop"() : () -> ()
    %123 = tpu.concatenate %65, %84, %103, %122 in 2 : vector<2x8x32xf32>, vector<2x8x32xf32>, vector<2x8x32xf32>, vector<2x8x32xf32> -> vector<2x8x128xf32>
    %124 = vector.shape_cast %123 : vector<2x8x128xf32> to vector<16x128xf32>
    %c0_40 = arith.constant 0 : index
    %c0_41 = arith.constant 0 : index
    %c0_42 = arith.constant 0 : index
    %125 = vector.load %arg8[%c0_40, %c0_41, %c0_42] : memref<2x128x128xbf16, #tpu.memory_space<vmem>>, vector<1x128x128xbf16>
    %126 = vector.shape_cast %125 : vector<1x128x128xbf16> to vector<128x128xbf16>
    %127 = arith.truncf %124 : vector<16x128xf32> to vector<16x128xbf16>
    %cst_43 = arith.constant dense<0.000000e+00> : vector<16x128xf32>
    %128 = tpu.matmul %127, %126, %cst_43 {dimension_numbers = #tpu.dot_dimension_numbers<[1], [0], [0], [1], [0, 0, 1, 1], [], []>} : vector<16x128xbf16>, vector<128x128xbf16>, vector<16x128xf32> -> vector<16x128xf32>
    %129 = arith.addf %0, %128 : vector<16x128xf32>
    %c0_44 = arith.constant 0 : index
    %c0_45 = arith.constant 0 : index
    %c0_46 = arith.constant 0 : index
    %130 = vector.load %arg9[%c0_44, %c0_45, %c0_46] : memref<2x1x128xf32, #tpu.memory_space<vmem>>, vector<1x1x128xf32>
    %131 = vector.shape_cast %130 : vector<1x1x128xf32> to vector<1x128xf32>
    %132 = vector.broadcast %131 : vector<1x128xf32> to vector<16x128xf32>
    %133 = arith.addf %129, %132 : vector<16x128xf32>
    %c0_47 = arith.constant 0 : index
    %c0_48 = arith.constant 0 : index
    %c0_49 = arith.constant 0 : index
    %134 = vector.load %arg10[%c0_47, %c0_48, %c0_49] : memref<2x1x128xf32, #tpu.memory_space<vmem>>, vector<1x1x128xf32>
    %135 = vector.shape_cast %134 : vector<1x1x128xf32> to vector<1x128xf32>
    %c0_50 = arith.constant 0 : index
    %c0_51 = arith.constant 0 : index
    %c0_52 = arith.constant 0 : index
    %136 = vector.load %arg11[%c0_50, %c0_51, %c0_52] : memref<2x1x128xf32, #tpu.memory_space<vmem>>, vector<1x1x128xf32>
    %137 = vector.shape_cast %136 : vector<1x1x128xf32> to vector<1x128xf32>
    %cst_53 = arith.constant dense<0.000000e+00> : vector<16xf32>
    %138 = vector.multi_reduction <add>, %133, %cst_53 [1] : vector<16x128xf32> to vector<16xf32>
    %139 = vector.shape_cast %138 : vector<16xf32> to vector<16x1xf32>
    %cst_54 = arith.constant 1.280000e+02 : f32
    %140 = vector.broadcast %cst_54 : f32 to vector<16x1xf32>
    %141 = arith.divf %139, %140 : vector<16x1xf32>
    %142 = vector.broadcast %141 : vector<16x1xf32> to vector<16x128xf32>
    %143 = arith.subf %133, %142 : vector<16x128xf32>
    %144 = arith.mulf %143, %143 : vector<16x128xf32>
    %cst_55 = arith.constant dense<0.000000e+00> : vector<16xf32>
    %145 = vector.multi_reduction <add>, %144, %cst_55 [1] : vector<16x128xf32> to vector<16xf32>
    %146 = vector.shape_cast %145 : vector<16xf32> to vector<16x1xf32>
    %cst_56 = arith.constant 1.280000e+02 : f32
    %147 = vector.broadcast %cst_56 : f32 to vector<16x1xf32>
    %148 = arith.divf %146, %147 : vector<16x1xf32>
    %149 = vector.broadcast %141 : vector<16x1xf32> to vector<16x128xf32>
    %150 = arith.subf %133, %149 : vector<16x128xf32>
    %cst_57 = arith.constant 9.99999974E-6 : f32
    %151 = vector.broadcast %cst_57 : f32 to vector<16x1xf32>
    %152 = arith.addf %148, %151 : vector<16x1xf32>
    %153 = math.rsqrt %152 : vector<16x1xf32>
    %154 = vector.broadcast %153 : vector<16x1xf32> to vector<16x128xf32>
    %155 = arith.mulf %150, %154 : vector<16x128xf32>
    %156 = vector.broadcast %135 : vector<1x128xf32> to vector<16x128xf32>
    %157 = arith.mulf %155, %156 : vector<16x128xf32>
    %158 = vector.broadcast %137 : vector<1x128xf32> to vector<16x128xf32>
    %159 = arith.addf %157, %158 : vector<16x128xf32>
    %c0_58 = arith.constant 0 : index
    %c0_59 = arith.constant 0 : index
    %c0_60 = arith.constant 0 : index
    %160 = vector.load %arg12[%c0_58, %c0_59, %c0_60] : memref<2x128x128xbf16, #tpu.memory_space<vmem>>, vector<1x128x128xbf16>
    %161 = vector.shape_cast %160 : vector<1x128x128xbf16> to vector<128x128xbf16>
    %162 = arith.truncf %159 : vector<16x128xf32> to vector<16x128xbf16>
    %cst_61 = arith.constant dense<0.000000e+00> : vector<16x128xf32>
    %163 = tpu.matmul %162, %161, %cst_61 {dimension_numbers = #tpu.dot_dimension_numbers<[1], [0], [0], [1], [0, 0, 1, 1], [], []>} : vector<16x128xbf16>, vector<128x128xbf16>, vector<16x128xf32> -> vector<16x128xf32>
    %c0_62 = arith.constant 0 : index
    %c0_63 = arith.constant 0 : index
    %c0_64 = arith.constant 0 : index
    %164 = vector.load %arg13[%c0_62, %c0_63, %c0_64] : memref<2x1x128xf32, #tpu.memory_space<vmem>>, vector<1x1x128xf32>
    %165 = vector.shape_cast %164 : vector<1x1x128xf32> to vector<1x128xf32>
    %166 = vector.broadcast %165 : vector<1x128xf32> to vector<16x128xf32>
    %167 = arith.addf %163, %166 : vector<16x128xf32>
    %c0_65 = arith.constant 0 : index
    %c0_66 = arith.constant 0 : index
    %c0_67 = arith.constant 0 : index
    %168 = vector.load %arg14[%c0_65, %c0_66, %c0_67] : memref<2x128x256xbf16, #tpu.memory_space<vmem>>, vector<1x128x256xbf16>
    %169 = vector.shape_cast %168 : vector<1x128x256xbf16> to vector<128x256xbf16>
    %170 = arith.truncf %1 : vector<16x128xf32> to vector<16x128xbf16>
    %cst_68 = arith.constant dense<0.000000e+00> : vector<16x256xf32>
    %171 = tpu.matmul %170, %169, %cst_68 {dimension_numbers = #tpu.dot_dimension_numbers<[1], [0], [0], [1], [0, 0, 1, 1], [], []>} : vector<16x128xbf16>, vector<128x256xbf16>, vector<16x256xf32> -> vector<16x256xf32>
    %c0_69 = arith.constant 0 : index
    %c0_70 = arith.constant 0 : index
    %c0_71 = arith.constant 0 : index
    %172 = vector.load %arg15[%c0_69, %c0_70, %c0_71] : memref<2x1x256xf32, #tpu.memory_space<vmem>>, vector<1x1x256xf32>
    %173 = vector.shape_cast %172 : vector<1x1x256xf32> to vector<1x256xf32>
    %174 = vector.broadcast %173 : vector<1x256xf32> to vector<16x256xf32>
    %175 = arith.addf %171, %174 : vector<16x256xf32>
    %176 = vector.extract_strided_slice %175 {offsets = [0, 0], sizes = [16, 128], strides = [1, 1]} : vector<16x256xf32> to vector<16x128xf32>
    %177 = vector.extract_strided_slice %175 {offsets = [0, 128], sizes = [16, 128], strides = [1, 1]} : vector<16x256xf32> to vector<16x128xf32>
    %178 = vector.shape_cast %167 : vector<16x128xf32> to vector<2x8x128xf32>
    %179 = arith.truncf %178 : vector<2x8x128xf32> to vector<2x8x128xbf16>
    %180 = vector.shape_cast %176 : vector<16x128xf32> to vector<2x8x128xf32>
    %181 = arith.truncf %180 : vector<2x8x128xf32> to vector<2x8x128xbf16>
    %182 = vector.shape_cast %177 : vector<16x128xf32> to vector<2x8x128xf32>
    %183 = arith.truncf %182 : vector<2x8x128xf32> to vector<2x8x128xbf16>
    %184 = vector.extract_strided_slice %179 {offsets = [0, 0, 0], sizes = [2, 8, 32], strides = [1, 1, 1]} : vector<2x8x128xbf16> to vector<2x8x32xbf16>
    %185 = vector.extract_strided_slice %181 {offsets = [0, 0, 0], sizes = [2, 8, 32], strides = [1, 1, 1]} : vector<2x8x128xbf16> to vector<2x8x32xbf16>
    "tpu.trace_start"() <{level = 10 : i32, message = "bqc,bkc->bqk"}> : () -> ()
    %cst_72 = arith.constant dense<0.000000e+00> : vector<2x8x8xf32>
    %186 = tpu.matmul %184, %185, %cst_72 {dimension_numbers = #tpu.dot_dimension_numbers<[2], [2], [1], [1], [0, 0, 0, 1, 1, 1], [0], [0]>} : vector<2x8x32xbf16>, vector<2x8x32xbf16>, vector<2x8x8xf32> -> vector<2x8x8xf32>
    "tpu.trace_stop"() : () -> ()
    %187 = vector.shape_cast %2 : vector<2x8xf32> to vector<2x1x8xf32>
    %188 = vector.broadcast %187 : vector<2x1x8xf32> to vector<2x8x8xf32>
    %189 = arith.addf %186, %188 : vector<2x8x8xf32>
    %cst_73 = arith.constant dense<0xFF800000> : vector<2x8xf32>
    %190 = vector.multi_reduction <maximumf>, %189, %cst_73 [2] : vector<2x8x8xf32> to vector<2x8xf32>
    %191 = vector.shape_cast %190 : vector<2x8xf32> to vector<2x8x1xf32>
    %192 = vector.broadcast %191 : vector<2x8x1xf32> to vector<2x8x8xf32>
    %193 = arith.subf %189, %192 : vector<2x8x8xf32>
    %194 = math.exp %193 : vector<2x8x8xf32>
    %cst_74 = arith.constant dense<0.000000e+00> : vector<2x8xf32>
    %195 = vector.multi_reduction <add>, %194, %cst_74 [2] : vector<2x8x8xf32> to vector<2x8xf32>
    %196 = vector.shape_cast %195 : vector<2x8xf32> to vector<2x8x1xf32>
    %197 = tpu.reciprocal %196 {approx = true} : vector<2x8x1xf32> -> vector<2x8x1xf32>
    %198 = vector.broadcast %197 : vector<2x8x1xf32> to vector<2x8x8xf32>
    %199 = arith.mulf %194, %198 : vector<2x8x8xf32>
    %200 = arith.truncf %199 : vector<2x8x8xf32> to vector<2x8x8xbf16>
    %201 = vector.extract_strided_slice %183 {offsets = [0, 0, 0], sizes = [2, 8, 32], strides = [1, 1, 1]} : vector<2x8x128xbf16> to vector<2x8x32xbf16>
    "tpu.trace_start"() <{level = 10 : i32, message = "bqk,bkc->bqc"}> : () -> ()
    %cst_75 = arith.constant dense<0.000000e+00> : vector<2x8x32xf32>
    %202 = tpu.matmul %200, %201, %cst_75 {dimension_numbers = #tpu.dot_dimension_numbers<[2], [1], [1], [2], [0, 0, 0, 1, 1, 2], [0], [0]>} : vector<2x8x8xbf16>, vector<2x8x32xbf16>, vector<2x8x32xf32> -> vector<2x8x32xf32>
    "tpu.trace_stop"() : () -> ()
    %203 = vector.extract_strided_slice %179 {offsets = [0, 0, 32], sizes = [2, 8, 32], strides = [1, 1, 1]} : vector<2x8x128xbf16> to vector<2x8x32xbf16>
    %204 = vector.extract_strided_slice %181 {offsets = [0, 0, 32], sizes = [2, 8, 32], strides = [1, 1, 1]} : vector<2x8x128xbf16> to vector<2x8x32xbf16>
    "tpu.trace_start"() <{level = 10 : i32, message = "bqc,bkc->bqk"}> : () -> ()
    %cst_76 = arith.constant dense<0.000000e+00> : vector<2x8x8xf32>
    %205 = tpu.matmul %203, %204, %cst_76 {dimension_numbers = #tpu.dot_dimension_numbers<[2], [2], [1], [1], [0, 0, 0, 1, 1, 1], [0], [0]>} : vector<2x8x32xbf16>, vector<2x8x32xbf16>, vector<2x8x8xf32> -> vector<2x8x8xf32>
    "tpu.trace_stop"() : () -> ()
    %206 = vector.shape_cast %2 : vector<2x8xf32> to vector<2x1x8xf32>
    %207 = vector.broadcast %206 : vector<2x1x8xf32> to vector<2x8x8xf32>
    %208 = arith.addf %205, %207 : vector<2x8x8xf32>
    %cst_77 = arith.constant dense<0xFF800000> : vector<2x8xf32>
    %209 = vector.multi_reduction <maximumf>, %208, %cst_77 [2] : vector<2x8x8xf32> to vector<2x8xf32>
    %210 = vector.shape_cast %209 : vector<2x8xf32> to vector<2x8x1xf32>
    %211 = vector.broadcast %210 : vector<2x8x1xf32> to vector<2x8x8xf32>
    %212 = arith.subf %208, %211 : vector<2x8x8xf32>
    %213 = math.exp %212 : vector<2x8x8xf32>
    %cst_78 = arith.constant dense<0.000000e+00> : vector<2x8xf32>
    %214 = vector.multi_reduction <add>, %213, %cst_78 [2] : vector<2x8x8xf32> to vector<2x8xf32>
    %215 = vector.shape_cast %214 : vector<2x8xf32> to vector<2x8x1xf32>
    %216 = tpu.reciprocal %215 {approx = true} : vector<2x8x1xf32> -> vector<2x8x1xf32>
    %217 = vector.broadcast %216 : vector<2x8x1xf32> to vector<2x8x8xf32>
    %218 = arith.mulf %213, %217 : vector<2x8x8xf32>
    %219 = arith.truncf %218 : vector<2x8x8xf32> to vector<2x8x8xbf16>
    %220 = vector.extract_strided_slice %183 {offsets = [0, 0, 32], sizes = [2, 8, 32], strides = [1, 1, 1]} : vector<2x8x128xbf16> to vector<2x8x32xbf16>
    "tpu.trace_start"() <{level = 10 : i32, message = "bqk,bkc->bqc"}> : () -> ()
    %cst_79 = arith.constant dense<0.000000e+00> : vector<2x8x32xf32>
    %221 = tpu.matmul %219, %220, %cst_79 {dimension_numbers = #tpu.dot_dimension_numbers<[2], [1], [1], [2], [0, 0, 0, 1, 1, 2], [0], [0]>} : vector<2x8x8xbf16>, vector<2x8x32xbf16>, vector<2x8x32xf32> -> vector<2x8x32xf32>
    "tpu.trace_stop"() : () -> ()
    %222 = vector.extract_strided_slice %179 {offsets = [0, 0, 64], sizes = [2, 8, 32], strides = [1, 1, 1]} : vector<2x8x128xbf16> to vector<2x8x32xbf16>
    %223 = vector.extract_strided_slice %181 {offsets = [0, 0, 64], sizes = [2, 8, 32], strides = [1, 1, 1]} : vector<2x8x128xbf16> to vector<2x8x32xbf16>
    "tpu.trace_start"() <{level = 10 : i32, message = "bqc,bkc->bqk"}> : () -> ()
    %cst_80 = arith.constant dense<0.000000e+00> : vector<2x8x8xf32>
    %224 = tpu.matmul %222, %223, %cst_80 {dimension_numbers = #tpu.dot_dimension_numbers<[2], [2], [1], [1], [0, 0, 0, 1, 1, 1], [0], [0]>} : vector<2x8x32xbf16>, vector<2x8x32xbf16>, vector<2x8x8xf32> -> vector<2x8x8xf32>
    "tpu.trace_stop"() : () -> ()
    %225 = vector.shape_cast %2 : vector<2x8xf32> to vector<2x1x8xf32>
    %226 = vector.broadcast %225 : vector<2x1x8xf32> to vector<2x8x8xf32>
    %227 = arith.addf %224, %226 : vector<2x8x8xf32>
    %cst_81 = arith.constant dense<0xFF800000> : vector<2x8xf32>
    %228 = vector.multi_reduction <maximumf>, %227, %cst_81 [2] : vector<2x8x8xf32> to vector<2x8xf32>
    %229 = vector.shape_cast %228 : vector<2x8xf32> to vector<2x8x1xf32>
    %230 = vector.broadcast %229 : vector<2x8x1xf32> to vector<2x8x8xf32>
    %231 = arith.subf %227, %230 : vector<2x8x8xf32>
    %232 = math.exp %231 : vector<2x8x8xf32>
    %cst_82 = arith.constant dense<0.000000e+00> : vector<2x8xf32>
    %233 = vector.multi_reduction <add>, %232, %cst_82 [2] : vector<2x8x8xf32> to vector<2x8xf32>
    %234 = vector.shape_cast %233 : vector<2x8xf32> to vector<2x8x1xf32>
    %235 = tpu.reciprocal %234 {approx = true} : vector<2x8x1xf32> -> vector<2x8x1xf32>
    %236 = vector.broadcast %235 : vector<2x8x1xf32> to vector<2x8x8xf32>
    %237 = arith.mulf %232, %236 : vector<2x8x8xf32>
    %238 = arith.truncf %237 : vector<2x8x8xf32> to vector<2x8x8xbf16>
    %239 = vector.extract_strided_slice %183 {offsets = [0, 0, 64], sizes = [2, 8, 32], strides = [1, 1, 1]} : vector<2x8x128xbf16> to vector<2x8x32xbf16>
    "tpu.trace_start"() <{level = 10 : i32, message = "bqk,bkc->bqc"}> : () -> ()
    %cst_83 = arith.constant dense<0.000000e+00> : vector<2x8x32xf32>
    %240 = tpu.matmul %238, %239, %cst_83 {dimension_numbers = #tpu.dot_dimension_numbers<[2], [1], [1], [2], [0, 0, 0, 1, 1, 2], [0], [0]>} : vector<2x8x8xbf16>, vector<2x8x32xbf16>, vector<2x8x32xf32> -> vector<2x8x32xf32>
    "tpu.trace_stop"() : () -> ()
    %241 = vector.extract_strided_slice %179 {offsets = [0, 0, 96], sizes = [2, 8, 32], strides = [1, 1, 1]} : vector<2x8x128xbf16> to vector<2x8x32xbf16>
    %242 = vector.extract_strided_slice %181 {offsets = [0, 0, 96], sizes = [2, 8, 32], strides = [1, 1, 1]} : vector<2x8x128xbf16> to vector<2x8x32xbf16>
    "tpu.trace_start"() <{level = 10 : i32, message = "bqc,bkc->bqk"}> : () -> ()
    %cst_84 = arith.constant dense<0.000000e+00> : vector<2x8x8xf32>
    %243 = tpu.matmul %241, %242, %cst_84 {dimension_numbers = #tpu.dot_dimension_numbers<[2], [2], [1], [1], [0, 0, 0, 1, 1, 1], [0], [0]>} : vector<2x8x32xbf16>, vector<2x8x32xbf16>, vector<2x8x8xf32> -> vector<2x8x8xf32>
    "tpu.trace_stop"() : () -> ()
    %244 = vector.shape_cast %2 : vector<2x8xf32> to vector<2x1x8xf32>
    %245 = vector.broadcast %244 : vector<2x1x8xf32> to vector<2x8x8xf32>
    %246 = arith.addf %243, %245 : vector<2x8x8xf32>
    %cst_85 = arith.constant dense<0xFF800000> : vector<2x8xf32>
    %247 = vector.multi_reduction <maximumf>, %246, %cst_85 [2] : vector<2x8x8xf32> to vector<2x8xf32>
    %248 = vector.shape_cast %247 : vector<2x8xf32> to vector<2x8x1xf32>
    %249 = vector.broadcast %248 : vector<2x8x1xf32> to vector<2x8x8xf32>
    %250 = arith.subf %246, %249 : vector<2x8x8xf32>
    %251 = math.exp %250 : vector<2x8x8xf32>
    %cst_86 = arith.constant dense<0.000000e+00> : vector<2x8xf32>
    %252 = vector.multi_reduction <add>, %251, %cst_86 [2] : vector<2x8x8xf32> to vector<2x8xf32>
    %253 = vector.shape_cast %252 : vector<2x8xf32> to vector<2x8x1xf32>
    %254 = tpu.reciprocal %253 {approx = true} : vector<2x8x1xf32> -> vector<2x8x1xf32>
    %255 = vector.broadcast %254 : vector<2x8x1xf32> to vector<2x8x8xf32>
    %256 = arith.mulf %251, %255 : vector<2x8x8xf32>
    %257 = arith.truncf %256 : vector<2x8x8xf32> to vector<2x8x8xbf16>
    %258 = vector.extract_strided_slice %183 {offsets = [0, 0, 96], sizes = [2, 8, 32], strides = [1, 1, 1]} : vector<2x8x128xbf16> to vector<2x8x32xbf16>
    "tpu.trace_start"() <{level = 10 : i32, message = "bqk,bkc->bqc"}> : () -> ()
    %cst_87 = arith.constant dense<0.000000e+00> : vector<2x8x32xf32>
    %259 = tpu.matmul %257, %258, %cst_87 {dimension_numbers = #tpu.dot_dimension_numbers<[2], [1], [1], [2], [0, 0, 0, 1, 1, 2], [0], [0]>} : vector<2x8x8xbf16>, vector<2x8x32xbf16>, vector<2x8x32xf32> -> vector<2x8x32xf32>
    "tpu.trace_stop"() : () -> ()
    %260 = tpu.concatenate %202, %221, %240, %259 in 2 : vector<2x8x32xf32>, vector<2x8x32xf32>, vector<2x8x32xf32>, vector<2x8x32xf32> -> vector<2x8x128xf32>
    %261 = vector.shape_cast %260 : vector<2x8x128xf32> to vector<16x128xf32>
    %c0_88 = arith.constant 0 : index
    %c0_89 = arith.constant 0 : index
    %c0_90 = arith.constant 0 : index
    %262 = vector.load %arg16[%c0_88, %c0_89, %c0_90] : memref<2x128x128xbf16, #tpu.memory_space<vmem>>, vector<1x128x128xbf16>
    %263 = vector.shape_cast %262 : vector<1x128x128xbf16> to vector<128x128xbf16>
    %264 = arith.truncf %261 : vector<16x128xf32> to vector<16x128xbf16>
    %cst_91 = arith.constant dense<0.000000e+00> : vector<16x128xf32>
    %265 = tpu.matmul %264, %263, %cst_91 {dimension_numbers = #tpu.dot_dimension_numbers<[1], [0], [0], [1], [0, 0, 1, 1], [], []>} : vector<16x128xbf16>, vector<128x128xbf16>, vector<16x128xf32> -> vector<16x128xf32>
    %266 = arith.addf %133, %265 : vector<16x128xf32>
    %c0_92 = arith.constant 0 : index
    %c0_93 = arith.constant 0 : index
    %c0_94 = arith.constant 0 : index
    %267 = vector.load %arg17[%c0_92, %c0_93, %c0_94] : memref<2x1x128xf32, #tpu.memory_space<vmem>>, vector<1x1x128xf32>
    %268 = vector.shape_cast %267 : vector<1x1x128xf32> to vector<1x128xf32>
    %269 = vector.broadcast %268 : vector<1x128xf32> to vector<16x128xf32>
    %270 = arith.addf %266, %269 : vector<16x128xf32>
    %c0_95 = arith.constant 0 : index
    %c0_96 = arith.constant 0 : index
    %c0_97 = arith.constant 0 : index
    %271 = vector.load %arg18[%c0_95, %c0_96, %c0_97] : memref<2x1x128xf32, #tpu.memory_space<vmem>>, vector<1x1x128xf32>
    %272 = vector.shape_cast %271 : vector<1x1x128xf32> to vector<1x128xf32>
    %c0_98 = arith.constant 0 : index
    %c0_99 = arith.constant 0 : index
    %c0_100 = arith.constant 0 : index
    %273 = vector.load %arg19[%c0_98, %c0_99, %c0_100] : memref<2x1x128xf32, #tpu.memory_space<vmem>>, vector<1x1x128xf32>
    %274 = vector.shape_cast %273 : vector<1x1x128xf32> to vector<1x128xf32>
    %cst_101 = arith.constant dense<0.000000e+00> : vector<16xf32>
    %275 = vector.multi_reduction <add>, %270, %cst_101 [1] : vector<16x128xf32> to vector<16xf32>
    %276 = vector.shape_cast %275 : vector<16xf32> to vector<16x1xf32>
    %cst_102 = arith.constant 1.280000e+02 : f32
    %277 = vector.broadcast %cst_102 : f32 to vector<16x1xf32>
    %278 = arith.divf %276, %277 : vector<16x1xf32>
    %279 = vector.broadcast %278 : vector<16x1xf32> to vector<16x128xf32>
    %280 = arith.subf %270, %279 : vector<16x128xf32>
    %281 = arith.mulf %280, %280 : vector<16x128xf32>
    %cst_103 = arith.constant dense<0.000000e+00> : vector<16xf32>
    %282 = vector.multi_reduction <add>, %281, %cst_103 [1] : vector<16x128xf32> to vector<16xf32>
    %283 = vector.shape_cast %282 : vector<16xf32> to vector<16x1xf32>
    %cst_104 = arith.constant 1.280000e+02 : f32
    %284 = vector.broadcast %cst_104 : f32 to vector<16x1xf32>
    %285 = arith.divf %283, %284 : vector<16x1xf32>
    %286 = vector.broadcast %278 : vector<16x1xf32> to vector<16x128xf32>
    %287 = arith.subf %270, %286 : vector<16x128xf32>
    %cst_105 = arith.constant 9.99999974E-6 : f32
    %288 = vector.broadcast %cst_105 : f32 to vector<16x1xf32>
    %289 = arith.addf %285, %288 : vector<16x1xf32>
    %290 = math.rsqrt %289 : vector<16x1xf32>
    %291 = vector.broadcast %290 : vector<16x1xf32> to vector<16x128xf32>
    %292 = arith.mulf %287, %291 : vector<16x128xf32>
    %293 = vector.broadcast %272 : vector<1x128xf32> to vector<16x128xf32>
    %294 = arith.mulf %292, %293 : vector<16x128xf32>
    %295 = vector.broadcast %274 : vector<1x128xf32> to vector<16x128xf32>
    %296 = arith.addf %294, %295 : vector<16x128xf32>
    %c0_106 = arith.constant 0 : index
    %c0_107 = arith.constant 0 : index
    %c0_108 = arith.constant 0 : index
    %297 = vector.load %arg20[%c0_106, %c0_107, %c0_108] : memref<2x128x256xbf16, #tpu.memory_space<vmem>>, vector<1x128x256xbf16>
    %298 = vector.shape_cast %297 : vector<1x128x256xbf16> to vector<128x256xbf16>
    %299 = arith.truncf %296 : vector<16x128xf32> to vector<16x128xbf16>
    %cst_109 = arith.constant dense<0.000000e+00> : vector<16x256xf32>
    %300 = tpu.matmul %299, %298, %cst_109 {dimension_numbers = #tpu.dot_dimension_numbers<[1], [0], [0], [1], [0, 0, 1, 1], [], []>} : vector<16x128xbf16>, vector<128x256xbf16>, vector<16x256xf32> -> vector<16x256xf32>
    %c0_110 = arith.constant 0 : index
    %c0_111 = arith.constant 0 : index
    %c0_112 = arith.constant 0 : index
    %301 = vector.load %arg21[%c0_110, %c0_111, %c0_112] : memref<2x1x256xf32, #tpu.memory_space<vmem>>, vector<1x1x256xf32>
    %302 = vector.shape_cast %301 : vector<1x1x256xf32> to vector<1x256xf32>
    %303 = vector.broadcast %302 : vector<1x256xf32> to vector<16x256xf32>
    %304 = arith.addf %300, %303 : vector<16x256xf32>
    %cst_113 = arith.constant 0.000000e+00 : f32
    %305 = vector.broadcast %cst_113 : f32 to vector<16x256xf32>
    %306 = arith.maximumf %304, %305 : vector<16x256xf32>
    %c0_114 = arith.constant 0 : index
    %c0_115 = arith.constant 0 : index
    %c0_116 = arith.constant 0 : index
    %307 = vector.load %arg22[%c0_114, %c0_115, %c0_116] : memref<2x256x128xbf16, #tpu.memory_space<vmem>>, vector<1x256x128xbf16>
    %308 = vector.shape_cast %307 : vector<1x256x128xbf16> to vector<256x128xbf16>
    %309 = arith.truncf %306 : vector<16x256xf32> to vector<16x256xbf16>
    %cst_117 = arith.constant dense<0.000000e+00> : vector<16x128xf32>
    %310 = tpu.matmul %309, %308, %cst_117 {dimension_numbers = #tpu.dot_dimension_numbers<[1], [0], [0], [1], [0, 0, 1, 1], [], []>} : vector<16x256xbf16>, vector<256x128xbf16>, vector<16x128xf32> -> vector<16x128xf32>
    %c0_118 = arith.constant 0 : index
    %c0_119 = arith.constant 0 : index
    %c0_120 = arith.constant 0 : index
    %311 = vector.load %arg23[%c0_118, %c0_119, %c0_120] : memref<2x1x128xf32, #tpu.memory_space<vmem>>, vector<1x1x128xf32>
    %312 = vector.shape_cast %311 : vector<1x1x128xf32> to vector<1x128xf32>
    %313 = vector.broadcast %312 : vector<1x128xf32> to vector<16x128xf32>
    %314 = arith.addf %310, %313 : vector<16x128xf32>
    %315 = arith.addf %270, %314 : vector<16x128xf32>
    %c1 = arith.constant 1 : index
    %c0_121 = arith.constant 0 : index
    %c0_122 = arith.constant 0 : index
    %316 = vector.load %arg4[%c1, %c0_121, %c0_122] : memref<2x1x128xf32, #tpu.memory_space<vmem>>, vector<1x1x128xf32>
    %317 = vector.shape_cast %316 : vector<1x1x128xf32> to vector<1x128xf32>
    %c1_123 = arith.constant 1 : index
    %c0_124 = arith.constant 0 : index
    %c0_125 = arith.constant 0 : index
    %318 = vector.load %arg5[%c1_123, %c0_124, %c0_125] : memref<2x1x128xf32, #tpu.memory_space<vmem>>, vector<1x1x128xf32>
    %319 = vector.shape_cast %318 : vector<1x1x128xf32> to vector<1x128xf32>
    %cst_126 = arith.constant dense<0.000000e+00> : vector<16xf32>
    %320 = vector.multi_reduction <add>, %315, %cst_126 [1] : vector<16x128xf32> to vector<16xf32>
    %321 = vector.shape_cast %320 : vector<16xf32> to vector<16x1xf32>
    %cst_127 = arith.constant 1.280000e+02 : f32
    %322 = vector.broadcast %cst_127 : f32 to vector<16x1xf32>
    %323 = arith.divf %321, %322 : vector<16x1xf32>
    %324 = vector.broadcast %323 : vector<16x1xf32> to vector<16x128xf32>
    %325 = arith.subf %315, %324 : vector<16x128xf32>
    %326 = arith.mulf %325, %325 : vector<16x128xf32>
    %cst_128 = arith.constant dense<0.000000e+00> : vector<16xf32>
    %327 = vector.multi_reduction <add>, %326, %cst_128 [1] : vector<16x128xf32> to vector<16xf32>
    %328 = vector.shape_cast %327 : vector<16xf32> to vector<16x1xf32>
    %cst_129 = arith.constant 1.280000e+02 : f32
    %329 = vector.broadcast %cst_129 : f32 to vector<16x1xf32>
    %330 = arith.divf %328, %329 : vector<16x1xf32>
    %331 = vector.broadcast %323 : vector<16x1xf32> to vector<16x128xf32>
    %332 = arith.subf %315, %331 : vector<16x128xf32>
    %cst_130 = arith.constant 9.99999974E-6 : f32
    %333 = vector.broadcast %cst_130 : f32 to vector<16x1xf32>
    %334 = arith.addf %330, %333 : vector<16x1xf32>
    %335 = math.rsqrt %334 : vector<16x1xf32>
    %336 = vector.broadcast %335 : vector<16x1xf32> to vector<16x128xf32>
    %337 = arith.mulf %332, %336 : vector<16x128xf32>
    %338 = vector.broadcast %317 : vector<1x128xf32> to vector<16x128xf32>
    %339 = arith.mulf %337, %338 : vector<16x128xf32>
    %340 = vector.broadcast %319 : vector<1x128xf32> to vector<16x128xf32>
    %341 = arith.addf %339, %340 : vector<16x128xf32>
    %c1_131 = arith.constant 1 : index
    %c0_132 = arith.constant 0 : index
    %c0_133 = arith.constant 0 : index
    %342 = vector.load %arg6[%c1_131, %c0_132, %c0_133] : memref<2x128x384xbf16, #tpu.memory_space<vmem>>, vector<1x128x384xbf16>
    %343 = vector.shape_cast %342 : vector<1x128x384xbf16> to vector<128x384xbf16>
    %344 = arith.truncf %341 : vector<16x128xf32> to vector<16x128xbf16>
    %cst_134 = arith.constant dense<0.000000e+00> : vector<16x384xf32>
    %345 = tpu.matmul %344, %343, %cst_134 {dimension_numbers = #tpu.dot_dimension_numbers<[1], [0], [0], [1], [0, 0, 1, 1], [], []>} : vector<16x128xbf16>, vector<128x384xbf16>, vector<16x384xf32> -> vector<16x384xf32>
    %c1_135 = arith.constant 1 : index
    %c0_136 = arith.constant 0 : index
    %c0_137 = arith.constant 0 : index
    %346 = vector.load %arg7[%c1_135, %c0_136, %c0_137] : memref<2x1x384xf32, #tpu.memory_space<vmem>>, vector<1x1x384xf32>
    %347 = vector.shape_cast %346 : vector<1x1x384xf32> to vector<1x384xf32>
    %348 = vector.broadcast %347 : vector<1x384xf32> to vector<16x384xf32>
    %349 = arith.addf %345, %348 : vector<16x384xf32>
    %350 = vector.extract_strided_slice %349 {offsets = [0, 0], sizes = [16, 128], strides = [1, 1]} : vector<16x384xf32> to vector<16x128xf32>
    %351 = vector.extract_strided_slice %349 {offsets = [0, 128], sizes = [16, 128], strides = [1, 1]} : vector<16x384xf32> to vector<16x128xf32>
    %352 = vector.extract_strided_slice %349 {offsets = [0, 256], sizes = [16, 128], strides = [1, 1]} : vector<16x384xf32> to vector<16x128xf32>
    %353 = vector.shape_cast %350 : vector<16x128xf32> to vector<2x8x128xf32>
    %354 = arith.truncf %353 : vector<2x8x128xf32> to vector<2x8x128xbf16>
    %355 = vector.shape_cast %351 : vector<16x128xf32> to vector<2x8x128xf32>
    %356 = arith.truncf %355 : vector<2x8x128xf32> to vector<2x8x128xbf16>
    %357 = vector.shape_cast %352 : vector<16x128xf32> to vector<2x8x128xf32>
    %358 = arith.truncf %357 : vector<2x8x128xf32> to vector<2x8x128xbf16>
    %359 = vector.extract_strided_slice %354 {offsets = [0, 0, 0], sizes = [2, 8, 32], strides = [1, 1, 1]} : vector<2x8x128xbf16> to vector<2x8x32xbf16>
    %360 = vector.extract_strided_slice %356 {offsets = [0, 0, 0], sizes = [2, 8, 32], strides = [1, 1, 1]} : vector<2x8x128xbf16> to vector<2x8x32xbf16>
    "tpu.trace_start"() <{level = 10 : i32, message = "bqc,bkc->bqk"}> : () -> ()
    %cst_138 = arith.constant dense<0.000000e+00> : vector<2x8x8xf32>
    %361 = tpu.matmul %359, %360, %cst_138 {dimension_numbers = #tpu.dot_dimension_numbers<[2], [2], [1], [1], [0, 0, 0, 1, 1, 1], [0], [0]>} : vector<2x8x32xbf16>, vector<2x8x32xbf16>, vector<2x8x8xf32> -> vector<2x8x8xf32>
    "tpu.trace_stop"() : () -> ()
    %362 = vector.shape_cast %3 : vector<8x8xf32> to vector<1x8x8xf32>
    %363 = vector.broadcast %362 : vector<1x8x8xf32> to vector<2x8x8xf32>
    %364 = arith.addf %361, %363 : vector<2x8x8xf32>
    %cst_139 = arith.constant dense<0xFF800000> : vector<2x8xf32>
    %365 = vector.multi_reduction <maximumf>, %364, %cst_139 [2] : vector<2x8x8xf32> to vector<2x8xf32>
    %366 = vector.shape_cast %365 : vector<2x8xf32> to vector<2x8x1xf32>
    %367 = vector.broadcast %366 : vector<2x8x1xf32> to vector<2x8x8xf32>
    %368 = arith.subf %364, %367 : vector<2x8x8xf32>
    %369 = math.exp %368 : vector<2x8x8xf32>
    %cst_140 = arith.constant dense<0.000000e+00> : vector<2x8xf32>
    %370 = vector.multi_reduction <add>, %369, %cst_140 [2] : vector<2x8x8xf32> to vector<2x8xf32>
    %371 = vector.shape_cast %370 : vector<2x8xf32> to vector<2x8x1xf32>
    %372 = tpu.reciprocal %371 {approx = true} : vector<2x8x1xf32> -> vector<2x8x1xf32>
    %373 = vector.broadcast %372 : vector<2x8x1xf32> to vector<2x8x8xf32>
    %374 = arith.mulf %369, %373 : vector<2x8x8xf32>
    %375 = arith.truncf %374 : vector<2x8x8xf32> to vector<2x8x8xbf16>
    %376 = vector.extract_strided_slice %358 {offsets = [0, 0, 0], sizes = [2, 8, 32], strides = [1, 1, 1]} : vector<2x8x128xbf16> to vector<2x8x32xbf16>
    "tpu.trace_start"() <{level = 10 : i32, message = "bqk,bkc->bqc"}> : () -> ()
    %cst_141 = arith.constant dense<0.000000e+00> : vector<2x8x32xf32>
    %377 = tpu.matmul %375, %376, %cst_141 {dimension_numbers = #tpu.dot_dimension_numbers<[2], [1], [1], [2], [0, 0, 0, 1, 1, 2], [0], [0]>} : vector<2x8x8xbf16>, vector<2x8x32xbf16>, vector<2x8x32xf32> -> vector<2x8x32xf32>
    "tpu.trace_stop"() : () -> ()
    %378 = vector.extract_strided_slice %354 {offsets = [0, 0, 32], sizes = [2, 8, 32], strides = [1, 1, 1]} : vector<2x8x128xbf16> to vector<2x8x32xbf16>
    %379 = vector.extract_strided_slice %356 {offsets = [0, 0, 32], sizes = [2, 8, 32], strides = [1, 1, 1]} : vector<2x8x128xbf16> to vector<2x8x32xbf16>
    "tpu.trace_start"() <{level = 10 : i32, message = "bqc,bkc->bqk"}> : () -> ()
    %cst_142 = arith.constant dense<0.000000e+00> : vector<2x8x8xf32>
    %380 = tpu.matmul %378, %379, %cst_142 {dimension_numbers = #tpu.dot_dimension_numbers<[2], [2], [1], [1], [0, 0, 0, 1, 1, 1], [0], [0]>} : vector<2x8x32xbf16>, vector<2x8x32xbf16>, vector<2x8x8xf32> -> vector<2x8x8xf32>
    "tpu.trace_stop"() : () -> ()
    %381 = vector.shape_cast %3 : vector<8x8xf32> to vector<1x8x8xf32>
    %382 = vector.broadcast %381 : vector<1x8x8xf32> to vector<2x8x8xf32>
    %383 = arith.addf %380, %382 : vector<2x8x8xf32>
    %cst_143 = arith.constant dense<0xFF800000> : vector<2x8xf32>
    %384 = vector.multi_reduction <maximumf>, %383, %cst_143 [2] : vector<2x8x8xf32> to vector<2x8xf32>
    %385 = vector.shape_cast %384 : vector<2x8xf32> to vector<2x8x1xf32>
    %386 = vector.broadcast %385 : vector<2x8x1xf32> to vector<2x8x8xf32>
    %387 = arith.subf %383, %386 : vector<2x8x8xf32>
    %388 = math.exp %387 : vector<2x8x8xf32>
    %cst_144 = arith.constant dense<0.000000e+00> : vector<2x8xf32>
    %389 = vector.multi_reduction <add>, %388, %cst_144 [2] : vector<2x8x8xf32> to vector<2x8xf32>
    %390 = vector.shape_cast %389 : vector<2x8xf32> to vector<2x8x1xf32>
    %391 = tpu.reciprocal %390 {approx = true} : vector<2x8x1xf32> -> vector<2x8x1xf32>
    %392 = vector.broadcast %391 : vector<2x8x1xf32> to vector<2x8x8xf32>
    %393 = arith.mulf %388, %392 : vector<2x8x8xf32>
    %394 = arith.truncf %393 : vector<2x8x8xf32> to vector<2x8x8xbf16>
    %395 = vector.extract_strided_slice %358 {offsets = [0, 0, 32], sizes = [2, 8, 32], strides = [1, 1, 1]} : vector<2x8x128xbf16> to vector<2x8x32xbf16>
    "tpu.trace_start"() <{level = 10 : i32, message = "bqk,bkc->bqc"}> : () -> ()
    %cst_145 = arith.constant dense<0.000000e+00> : vector<2x8x32xf32>
    %396 = tpu.matmul %394, %395, %cst_145 {dimension_numbers = #tpu.dot_dimension_numbers<[2], [1], [1], [2], [0, 0, 0, 1, 1, 2], [0], [0]>} : vector<2x8x8xbf16>, vector<2x8x32xbf16>, vector<2x8x32xf32> -> vector<2x8x32xf32>
    "tpu.trace_stop"() : () -> ()
    %397 = vector.extract_strided_slice %354 {offsets = [0, 0, 64], sizes = [2, 8, 32], strides = [1, 1, 1]} : vector<2x8x128xbf16> to vector<2x8x32xbf16>
    %398 = vector.extract_strided_slice %356 {offsets = [0, 0, 64], sizes = [2, 8, 32], strides = [1, 1, 1]} : vector<2x8x128xbf16> to vector<2x8x32xbf16>
    "tpu.trace_start"() <{level = 10 : i32, message = "bqc,bkc->bqk"}> : () -> ()
    %cst_146 = arith.constant dense<0.000000e+00> : vector<2x8x8xf32>
    %399 = tpu.matmul %397, %398, %cst_146 {dimension_numbers = #tpu.dot_dimension_numbers<[2], [2], [1], [1], [0, 0, 0, 1, 1, 1], [0], [0]>} : vector<2x8x32xbf16>, vector<2x8x32xbf16>, vector<2x8x8xf32> -> vector<2x8x8xf32>
    "tpu.trace_stop"() : () -> ()
    %400 = vector.shape_cast %3 : vector<8x8xf32> to vector<1x8x8xf32>
    %401 = vector.broadcast %400 : vector<1x8x8xf32> to vector<2x8x8xf32>
    %402 = arith.addf %399, %401 : vector<2x8x8xf32>
    %cst_147 = arith.constant dense<0xFF800000> : vector<2x8xf32>
    %403 = vector.multi_reduction <maximumf>, %402, %cst_147 [2] : vector<2x8x8xf32> to vector<2x8xf32>
    %404 = vector.shape_cast %403 : vector<2x8xf32> to vector<2x8x1xf32>
    %405 = vector.broadcast %404 : vector<2x8x1xf32> to vector<2x8x8xf32>
    %406 = arith.subf %402, %405 : vector<2x8x8xf32>
    %407 = math.exp %406 : vector<2x8x8xf32>
    %cst_148 = arith.constant dense<0.000000e+00> : vector<2x8xf32>
    %408 = vector.multi_reduction <add>, %407, %cst_148 [2] : vector<2x8x8xf32> to vector<2x8xf32>
    %409 = vector.shape_cast %408 : vector<2x8xf32> to vector<2x8x1xf32>
    %410 = tpu.reciprocal %409 {approx = true} : vector<2x8x1xf32> -> vector<2x8x1xf32>
    %411 = vector.broadcast %410 : vector<2x8x1xf32> to vector<2x8x8xf32>
    %412 = arith.mulf %407, %411 : vector<2x8x8xf32>
    %413 = arith.truncf %412 : vector<2x8x8xf32> to vector<2x8x8xbf16>
    %414 = vector.extract_strided_slice %358 {offsets = [0, 0, 64], sizes = [2, 8, 32], strides = [1, 1, 1]} : vector<2x8x128xbf16> to vector<2x8x32xbf16>
    "tpu.trace_start"() <{level = 10 : i32, message = "bqk,bkc->bqc"}> : () -> ()
    %cst_149 = arith.constant dense<0.000000e+00> : vector<2x8x32xf32>
    %415 = tpu.matmul %413, %414, %cst_149 {dimension_numbers = #tpu.dot_dimension_numbers<[2], [1], [1], [2], [0, 0, 0, 1, 1, 2], [0], [0]>} : vector<2x8x8xbf16>, vector<2x8x32xbf16>, vector<2x8x32xf32> -> vector<2x8x32xf32>
    "tpu.trace_stop"() : () -> ()
    %416 = vector.extract_strided_slice %354 {offsets = [0, 0, 96], sizes = [2, 8, 32], strides = [1, 1, 1]} : vector<2x8x128xbf16> to vector<2x8x32xbf16>
    %417 = vector.extract_strided_slice %356 {offsets = [0, 0, 96], sizes = [2, 8, 32], strides = [1, 1, 1]} : vector<2x8x128xbf16> to vector<2x8x32xbf16>
    "tpu.trace_start"() <{level = 10 : i32, message = "bqc,bkc->bqk"}> : () -> ()
    %cst_150 = arith.constant dense<0.000000e+00> : vector<2x8x8xf32>
    %418 = tpu.matmul %416, %417, %cst_150 {dimension_numbers = #tpu.dot_dimension_numbers<[2], [2], [1], [1], [0, 0, 0, 1, 1, 1], [0], [0]>} : vector<2x8x32xbf16>, vector<2x8x32xbf16>, vector<2x8x8xf32> -> vector<2x8x8xf32>
    "tpu.trace_stop"() : () -> ()
    %419 = vector.shape_cast %3 : vector<8x8xf32> to vector<1x8x8xf32>
    %420 = vector.broadcast %419 : vector<1x8x8xf32> to vector<2x8x8xf32>
    %421 = arith.addf %418, %420 : vector<2x8x8xf32>
    %cst_151 = arith.constant dense<0xFF800000> : vector<2x8xf32>
    %422 = vector.multi_reduction <maximumf>, %421, %cst_151 [2] : vector<2x8x8xf32> to vector<2x8xf32>
    %423 = vector.shape_cast %422 : vector<2x8xf32> to vector<2x8x1xf32>
    %424 = vector.broadcast %423 : vector<2x8x1xf32> to vector<2x8x8xf32>
    %425 = arith.subf %421, %424 : vector<2x8x8xf32>
    %426 = math.exp %425 : vector<2x8x8xf32>
    %cst_152 = arith.constant dense<0.000000e+00> : vector<2x8xf32>
    %427 = vector.multi_reduction <add>, %426, %cst_152 [2] : vector<2x8x8xf32> to vector<2x8xf32>
    %428 = vector.shape_cast %427 : vector<2x8xf32> to vector<2x8x1xf32>
    %429 = tpu.reciprocal %428 {approx = true} : vector<2x8x1xf32> -> vector<2x8x1xf32>
    %430 = vector.broadcast %429 : vector<2x8x1xf32> to vector<2x8x8xf32>
    %431 = arith.mulf %426, %430 : vector<2x8x8xf32>
    %432 = arith.truncf %431 : vector<2x8x8xf32> to vector<2x8x8xbf16>
    %433 = vector.extract_strided_slice %358 {offsets = [0, 0, 96], sizes = [2, 8, 32], strides = [1, 1, 1]} : vector<2x8x128xbf16> to vector<2x8x32xbf16>
    "tpu.trace_start"() <{level = 10 : i32, message = "bqk,bkc->bqc"}> : () -> ()
    %cst_153 = arith.constant dense<0.000000e+00> : vector<2x8x32xf32>
    %434 = tpu.matmul %432, %433, %cst_153 {dimension_numbers = #tpu.dot_dimension_numbers<[2], [1], [1], [2], [0, 0, 0, 1, 1, 2], [0], [0]>} : vector<2x8x8xbf16>, vector<2x8x32xbf16>, vector<2x8x32xf32> -> vector<2x8x32xf32>
    "tpu.trace_stop"() : () -> ()
    %435 = tpu.concatenate %377, %396, %415, %434 in 2 : vector<2x8x32xf32>, vector<2x8x32xf32>, vector<2x8x32xf32>, vector<2x8x32xf32> -> vector<2x8x128xf32>
    %436 = vector.shape_cast %435 : vector<2x8x128xf32> to vector<16x128xf32>
    %c1_154 = arith.constant 1 : index
    %c0_155 = arith.constant 0 : index
    %c0_156 = arith.constant 0 : index
    %437 = vector.load %arg8[%c1_154, %c0_155, %c0_156] : memref<2x128x128xbf16, #tpu.memory_space<vmem>>, vector<1x128x128xbf16>
    %438 = vector.shape_cast %437 : vector<1x128x128xbf16> to vector<128x128xbf16>
    %439 = arith.truncf %436 : vector<16x128xf32> to vector<16x128xbf16>
    %cst_157 = arith.constant dense<0.000000e+00> : vector<16x128xf32>
    %440 = tpu.matmul %439, %438, %cst_157 {dimension_numbers = #tpu.dot_dimension_numbers<[1], [0], [0], [1], [0, 0, 1, 1], [], []>} : vector<16x128xbf16>, vector<128x128xbf16>, vector<16x128xf32> -> vector<16x128xf32>
    %441 = arith.addf %315, %440 : vector<16x128xf32>
    %c1_158 = arith.constant 1 : index
    %c0_159 = arith.constant 0 : index
    %c0_160 = arith.constant 0 : index
    %442 = vector.load %arg9[%c1_158, %c0_159, %c0_160] : memref<2x1x128xf32, #tpu.memory_space<vmem>>, vector<1x1x128xf32>
    %443 = vector.shape_cast %442 : vector<1x1x128xf32> to vector<1x128xf32>
    %444 = vector.broadcast %443 : vector<1x128xf32> to vector<16x128xf32>
    %445 = arith.addf %441, %444 : vector<16x128xf32>
    %c1_161 = arith.constant 1 : index
    %c0_162 = arith.constant 0 : index
    %c0_163 = arith.constant 0 : index
    %446 = vector.load %arg10[%c1_161, %c0_162, %c0_163] : memref<2x1x128xf32, #tpu.memory_space<vmem>>, vector<1x1x128xf32>
    %447 = vector.shape_cast %446 : vector<1x1x128xf32> to vector<1x128xf32>
    %c1_164 = arith.constant 1 : index
    %c0_165 = arith.constant 0 : index
    %c0_166 = arith.constant 0 : index
    %448 = vector.load %arg11[%c1_164, %c0_165, %c0_166] : memref<2x1x128xf32, #tpu.memory_space<vmem>>, vector<1x1x128xf32>
    %449 = vector.shape_cast %448 : vector<1x1x128xf32> to vector<1x128xf32>
    %cst_167 = arith.constant dense<0.000000e+00> : vector<16xf32>
    %450 = vector.multi_reduction <add>, %445, %cst_167 [1] : vector<16x128xf32> to vector<16xf32>
    %451 = vector.shape_cast %450 : vector<16xf32> to vector<16x1xf32>
    %cst_168 = arith.constant 1.280000e+02 : f32
    %452 = vector.broadcast %cst_168 : f32 to vector<16x1xf32>
    %453 = arith.divf %451, %452 : vector<16x1xf32>
    %454 = vector.broadcast %453 : vector<16x1xf32> to vector<16x128xf32>
    %455 = arith.subf %445, %454 : vector<16x128xf32>
    %456 = arith.mulf %455, %455 : vector<16x128xf32>
    %cst_169 = arith.constant dense<0.000000e+00> : vector<16xf32>
    %457 = vector.multi_reduction <add>, %456, %cst_169 [1] : vector<16x128xf32> to vector<16xf32>
    %458 = vector.shape_cast %457 : vector<16xf32> to vector<16x1xf32>
    %cst_170 = arith.constant 1.280000e+02 : f32
    %459 = vector.broadcast %cst_170 : f32 to vector<16x1xf32>
    %460 = arith.divf %458, %459 : vector<16x1xf32>
    %461 = vector.broadcast %453 : vector<16x1xf32> to vector<16x128xf32>
    %462 = arith.subf %445, %461 : vector<16x128xf32>
    %cst_171 = arith.constant 9.99999974E-6 : f32
    %463 = vector.broadcast %cst_171 : f32 to vector<16x1xf32>
    %464 = arith.addf %460, %463 : vector<16x1xf32>
    %465 = math.rsqrt %464 : vector<16x1xf32>
    %466 = vector.broadcast %465 : vector<16x1xf32> to vector<16x128xf32>
    %467 = arith.mulf %462, %466 : vector<16x128xf32>
    %468 = vector.broadcast %447 : vector<1x128xf32> to vector<16x128xf32>
    %469 = arith.mulf %467, %468 : vector<16x128xf32>
    %470 = vector.broadcast %449 : vector<1x128xf32> to vector<16x128xf32>
    %471 = arith.addf %469, %470 : vector<16x128xf32>
    %c1_172 = arith.constant 1 : index
    %c0_173 = arith.constant 0 : index
    %c0_174 = arith.constant 0 : index
    %472 = vector.load %arg12[%c1_172, %c0_173, %c0_174] : memref<2x128x128xbf16, #tpu.memory_space<vmem>>, vector<1x128x128xbf16>
    %473 = vector.shape_cast %472 : vector<1x128x128xbf16> to vector<128x128xbf16>
    %474 = arith.truncf %471 : vector<16x128xf32> to vector<16x128xbf16>
    %cst_175 = arith.constant dense<0.000000e+00> : vector<16x128xf32>
    %475 = tpu.matmul %474, %473, %cst_175 {dimension_numbers = #tpu.dot_dimension_numbers<[1], [0], [0], [1], [0, 0, 1, 1], [], []>} : vector<16x128xbf16>, vector<128x128xbf16>, vector<16x128xf32> -> vector<16x128xf32>
    %c1_176 = arith.constant 1 : index
    %c0_177 = arith.constant 0 : index
    %c0_178 = arith.constant 0 : index
    %476 = vector.load %arg13[%c1_176, %c0_177, %c0_178] : memref<2x1x128xf32, #tpu.memory_space<vmem>>, vector<1x1x128xf32>
    %477 = vector.shape_cast %476 : vector<1x1x128xf32> to vector<1x128xf32>
    %478 = vector.broadcast %477 : vector<1x128xf32> to vector<16x128xf32>
    %479 = arith.addf %475, %478 : vector<16x128xf32>
    %c1_179 = arith.constant 1 : index
    %c0_180 = arith.constant 0 : index
    %c0_181 = arith.constant 0 : index
    %480 = vector.load %arg14[%c1_179, %c0_180, %c0_181] : memref<2x128x256xbf16, #tpu.memory_space<vmem>>, vector<1x128x256xbf16>
    %481 = vector.shape_cast %480 : vector<1x128x256xbf16> to vector<128x256xbf16>
    %482 = arith.truncf %1 : vector<16x128xf32> to vector<16x128xbf16>
    %cst_182 = arith.constant dense<0.000000e+00> : vector<16x256xf32>
    %483 = tpu.matmul %482, %481, %cst_182 {dimension_numbers = #tpu.dot_dimension_numbers<[1], [0], [0], [1], [0, 0, 1, 1], [], []>} : vector<16x128xbf16>, vector<128x256xbf16>, vector<16x256xf32> -> vector<16x256xf32>
    %c1_183 = arith.constant 1 : index
    %c0_184 = arith.constant 0 : index
    %c0_185 = arith.constant 0 : index
    %484 = vector.load %arg15[%c1_183, %c0_184, %c0_185] : memref<2x1x256xf32, #tpu.memory_space<vmem>>, vector<1x1x256xf32>
    %485 = vector.shape_cast %484 : vector<1x1x256xf32> to vector<1x256xf32>
    %486 = vector.broadcast %485 : vector<1x256xf32> to vector<16x256xf32>
    %487 = arith.addf %483, %486 : vector<16x256xf32>
    %488 = vector.extract_strided_slice %487 {offsets = [0, 0], sizes = [16, 128], strides = [1, 1]} : vector<16x256xf32> to vector<16x128xf32>
    %489 = vector.extract_strided_slice %487 {offsets = [0, 128], sizes = [16, 128], strides = [1, 1]} : vector<16x256xf32> to vector<16x128xf32>
    %490 = vector.shape_cast %479 : vector<16x128xf32> to vector<2x8x128xf32>
    %491 = arith.truncf %490 : vector<2x8x128xf32> to vector<2x8x128xbf16>
    %492 = vector.shape_cast %488 : vector<16x128xf32> to vector<2x8x128xf32>
    %493 = arith.truncf %492 : vector<2x8x128xf32> to vector<2x8x128xbf16>
    %494 = vector.shape_cast %489 : vector<16x128xf32> to vector<2x8x128xf32>
    %495 = arith.truncf %494 : vector<2x8x128xf32> to vector<2x8x128xbf16>
    %496 = vector.extract_strided_slice %491 {offsets = [0, 0, 0], sizes = [2, 8, 32], strides = [1, 1, 1]} : vector<2x8x128xbf16> to vector<2x8x32xbf16>
    %497 = vector.extract_strided_slice %493 {offsets = [0, 0, 0], sizes = [2, 8, 32], strides = [1, 1, 1]} : vector<2x8x128xbf16> to vector<2x8x32xbf16>
    "tpu.trace_start"() <{level = 10 : i32, message = "bqc,bkc->bqk"}> : () -> ()
    %cst_186 = arith.constant dense<0.000000e+00> : vector<2x8x8xf32>
    %498 = tpu.matmul %496, %497, %cst_186 {dimension_numbers = #tpu.dot_dimension_numbers<[2], [2], [1], [1], [0, 0, 0, 1, 1, 1], [0], [0]>} : vector<2x8x32xbf16>, vector<2x8x32xbf16>, vector<2x8x8xf32> -> vector<2x8x8xf32>
    "tpu.trace_stop"() : () -> ()
    %499 = vector.shape_cast %2 : vector<2x8xf32> to vector<2x1x8xf32>
    %500 = vector.broadcast %499 : vector<2x1x8xf32> to vector<2x8x8xf32>
    %501 = arith.addf %498, %500 : vector<2x8x8xf32>
    %cst_187 = arith.constant dense<0xFF800000> : vector<2x8xf32>
    %502 = vector.multi_reduction <maximumf>, %501, %cst_187 [2] : vector<2x8x8xf32> to vector<2x8xf32>
    %503 = vector.shape_cast %502 : vector<2x8xf32> to vector<2x8x1xf32>
    %504 = vector.broadcast %503 : vector<2x8x1xf32> to vector<2x8x8xf32>
    %505 = arith.subf %501, %504 : vector<2x8x8xf32>
    %506 = math.exp %505 : vector<2x8x8xf32>
    %cst_188 = arith.constant dense<0.000000e+00> : vector<2x8xf32>
    %507 = vector.multi_reduction <add>, %506, %cst_188 [2] : vector<2x8x8xf32> to vector<2x8xf32>
    %508 = vector.shape_cast %507 : vector<2x8xf32> to vector<2x8x1xf32>
    %509 = tpu.reciprocal %508 {approx = true} : vector<2x8x1xf32> -> vector<2x8x1xf32>
    %510 = vector.broadcast %509 : vector<2x8x1xf32> to vector<2x8x8xf32>
    %511 = arith.mulf %506, %510 : vector<2x8x8xf32>
    %512 = arith.truncf %511 : vector<2x8x8xf32> to vector<2x8x8xbf16>
    %513 = vector.extract_strided_slice %495 {offsets = [0, 0, 0], sizes = [2, 8, 32], strides = [1, 1, 1]} : vector<2x8x128xbf16> to vector<2x8x32xbf16>
    "tpu.trace_start"() <{level = 10 : i32, message = "bqk,bkc->bqc"}> : () -> ()
    %cst_189 = arith.constant dense<0.000000e+00> : vector<2x8x32xf32>
    %514 = tpu.matmul %512, %513, %cst_189 {dimension_numbers = #tpu.dot_dimension_numbers<[2], [1], [1], [2], [0, 0, 0, 1, 1, 2], [0], [0]>} : vector<2x8x8xbf16>, vector<2x8x32xbf16>, vector<2x8x32xf32> -> vector<2x8x32xf32>
    "tpu.trace_stop"() : () -> ()
    %515 = vector.extract_strided_slice %491 {offsets = [0, 0, 32], sizes = [2, 8, 32], strides = [1, 1, 1]} : vector<2x8x128xbf16> to vector<2x8x32xbf16>
    %516 = vector.extract_strided_slice %493 {offsets = [0, 0, 32], sizes = [2, 8, 32], strides = [1, 1, 1]} : vector<2x8x128xbf16> to vector<2x8x32xbf16>
    "tpu.trace_start"() <{level = 10 : i32, message = "bqc,bkc->bqk"}> : () -> ()
    %cst_190 = arith.constant dense<0.000000e+00> : vector<2x8x8xf32>
    %517 = tpu.matmul %515, %516, %cst_190 {dimension_numbers = #tpu.dot_dimension_numbers<[2], [2], [1], [1], [0, 0, 0, 1, 1, 1], [0], [0]>} : vector<2x8x32xbf16>, vector<2x8x32xbf16>, vector<2x8x8xf32> -> vector<2x8x8xf32>
    "tpu.trace_stop"() : () -> ()
    %518 = vector.shape_cast %2 : vector<2x8xf32> to vector<2x1x8xf32>
    %519 = vector.broadcast %518 : vector<2x1x8xf32> to vector<2x8x8xf32>
    %520 = arith.addf %517, %519 : vector<2x8x8xf32>
    %cst_191 = arith.constant dense<0xFF800000> : vector<2x8xf32>
    %521 = vector.multi_reduction <maximumf>, %520, %cst_191 [2] : vector<2x8x8xf32> to vector<2x8xf32>
    %522 = vector.shape_cast %521 : vector<2x8xf32> to vector<2x8x1xf32>
    %523 = vector.broadcast %522 : vector<2x8x1xf32> to vector<2x8x8xf32>
    %524 = arith.subf %520, %523 : vector<2x8x8xf32>
    %525 = math.exp %524 : vector<2x8x8xf32>
    %cst_192 = arith.constant dense<0.000000e+00> : vector<2x8xf32>
    %526 = vector.multi_reduction <add>, %525, %cst_192 [2] : vector<2x8x8xf32> to vector<2x8xf32>
    %527 = vector.shape_cast %526 : vector<2x8xf32> to vector<2x8x1xf32>
    %528 = tpu.reciprocal %527 {approx = true} : vector<2x8x1xf32> -> vector<2x8x1xf32>
    %529 = vector.broadcast %528 : vector<2x8x1xf32> to vector<2x8x8xf32>
    %530 = arith.mulf %525, %529 : vector<2x8x8xf32>
    %531 = arith.truncf %530 : vector<2x8x8xf32> to vector<2x8x8xbf16>
    %532 = vector.extract_strided_slice %495 {offsets = [0, 0, 32], sizes = [2, 8, 32], strides = [1, 1, 1]} : vector<2x8x128xbf16> to vector<2x8x32xbf16>
    "tpu.trace_start"() <{level = 10 : i32, message = "bqk,bkc->bqc"}> : () -> ()
    %cst_193 = arith.constant dense<0.000000e+00> : vector<2x8x32xf32>
    %533 = tpu.matmul %531, %532, %cst_193 {dimension_numbers = #tpu.dot_dimension_numbers<[2], [1], [1], [2], [0, 0, 0, 1, 1, 2], [0], [0]>} : vector<2x8x8xbf16>, vector<2x8x32xbf16>, vector<2x8x32xf32> -> vector<2x8x32xf32>
    "tpu.trace_stop"() : () -> ()
    %534 = vector.extract_strided_slice %491 {offsets = [0, 0, 64], sizes = [2, 8, 32], strides = [1, 1, 1]} : vector<2x8x128xbf16> to vector<2x8x32xbf16>
    %535 = vector.extract_strided_slice %493 {offsets = [0, 0, 64], sizes = [2, 8, 32], strides = [1, 1, 1]} : vector<2x8x128xbf16> to vector<2x8x32xbf16>
    "tpu.trace_start"() <{level = 10 : i32, message = "bqc,bkc->bqk"}> : () -> ()
    %cst_194 = arith.constant dense<0.000000e+00> : vector<2x8x8xf32>
    %536 = tpu.matmul %534, %535, %cst_194 {dimension_numbers = #tpu.dot_dimension_numbers<[2], [2], [1], [1], [0, 0, 0, 1, 1, 1], [0], [0]>} : vector<2x8x32xbf16>, vector<2x8x32xbf16>, vector<2x8x8xf32> -> vector<2x8x8xf32>
    "tpu.trace_stop"() : () -> ()
    %537 = vector.shape_cast %2 : vector<2x8xf32> to vector<2x1x8xf32>
    %538 = vector.broadcast %537 : vector<2x1x8xf32> to vector<2x8x8xf32>
    %539 = arith.addf %536, %538 : vector<2x8x8xf32>
    %cst_195 = arith.constant dense<0xFF800000> : vector<2x8xf32>
    %540 = vector.multi_reduction <maximumf>, %539, %cst_195 [2] : vector<2x8x8xf32> to vector<2x8xf32>
    %541 = vector.shape_cast %540 : vector<2x8xf32> to vector<2x8x1xf32>
    %542 = vector.broadcast %541 : vector<2x8x1xf32> to vector<2x8x8xf32>
    %543 = arith.subf %539, %542 : vector<2x8x8xf32>
    %544 = math.exp %543 : vector<2x8x8xf32>
    %cst_196 = arith.constant dense<0.000000e+00> : vector<2x8xf32>
    %545 = vector.multi_reduction <add>, %544, %cst_196 [2] : vector<2x8x8xf32> to vector<2x8xf32>
    %546 = vector.shape_cast %545 : vector<2x8xf32> to vector<2x8x1xf32>
    %547 = tpu.reciprocal %546 {approx = true} : vector<2x8x1xf32> -> vector<2x8x1xf32>
    %548 = vector.broadcast %547 : vector<2x8x1xf32> to vector<2x8x8xf32>
    %549 = arith.mulf %544, %548 : vector<2x8x8xf32>
    %550 = arith.truncf %549 : vector<2x8x8xf32> to vector<2x8x8xbf16>
    %551 = vector.extract_strided_slice %495 {offsets = [0, 0, 64], sizes = [2, 8, 32], strides = [1, 1, 1]} : vector<2x8x128xbf16> to vector<2x8x32xbf16>
    "tpu.trace_start"() <{level = 10 : i32, message = "bqk,bkc->bqc"}> : () -> ()
    %cst_197 = arith.constant dense<0.000000e+00> : vector<2x8x32xf32>
    %552 = tpu.matmul %550, %551, %cst_197 {dimension_numbers = #tpu.dot_dimension_numbers<[2], [1], [1], [2], [0, 0, 0, 1, 1, 2], [0], [0]>} : vector<2x8x8xbf16>, vector<2x8x32xbf16>, vector<2x8x32xf32> -> vector<2x8x32xf32>
    "tpu.trace_stop"() : () -> ()
    %553 = vector.extract_strided_slice %491 {offsets = [0, 0, 96], sizes = [2, 8, 32], strides = [1, 1, 1]} : vector<2x8x128xbf16> to vector<2x8x32xbf16>
    %554 = vector.extract_strided_slice %493 {offsets = [0, 0, 96], sizes = [2, 8, 32], strides = [1, 1, 1]} : vector<2x8x128xbf16> to vector<2x8x32xbf16>
    "tpu.trace_start"() <{level = 10 : i32, message = "bqc,bkc->bqk"}> : () -> ()
    %cst_198 = arith.constant dense<0.000000e+00> : vector<2x8x8xf32>
    %555 = tpu.matmul %553, %554, %cst_198 {dimension_numbers = #tpu.dot_dimension_numbers<[2], [2], [1], [1], [0, 0, 0, 1, 1, 1], [0], [0]>} : vector<2x8x32xbf16>, vector<2x8x32xbf16>, vector<2x8x8xf32> -> vector<2x8x8xf32>
    "tpu.trace_stop"() : () -> ()
    %556 = vector.shape_cast %2 : vector<2x8xf32> to vector<2x1x8xf32>
    %557 = vector.broadcast %556 : vector<2x1x8xf32> to vector<2x8x8xf32>
    %558 = arith.addf %555, %557 : vector<2x8x8xf32>
    %cst_199 = arith.constant dense<0xFF800000> : vector<2x8xf32>
    %559 = vector.multi_reduction <maximumf>, %558, %cst_199 [2] : vector<2x8x8xf32> to vector<2x8xf32>
    %560 = vector.shape_cast %559 : vector<2x8xf32> to vector<2x8x1xf32>
    %561 = vector.broadcast %560 : vector<2x8x1xf32> to vector<2x8x8xf32>
    %562 = arith.subf %558, %561 : vector<2x8x8xf32>
    %563 = math.exp %562 : vector<2x8x8xf32>
    %cst_200 = arith.constant dense<0.000000e+00> : vector<2x8xf32>
    %564 = vector.multi_reduction <add>, %563, %cst_200 [2] : vector<2x8x8xf32> to vector<2x8xf32>
    %565 = vector.shape_cast %564 : vector<2x8xf32> to vector<2x8x1xf32>
    %566 = tpu.reciprocal %565 {approx = true} : vector<2x8x1xf32> -> vector<2x8x1xf32>
    %567 = vector.broadcast %566 : vector<2x8x1xf32> to vector<2x8x8xf32>
    %568 = arith.mulf %563, %567 : vector<2x8x8xf32>
    %569 = arith.truncf %568 : vector<2x8x8xf32> to vector<2x8x8xbf16>
    %570 = vector.extract_strided_slice %495 {offsets = [0, 0, 96], sizes = [2, 8, 32], strides = [1, 1, 1]} : vector<2x8x128xbf16> to vector<2x8x32xbf16>
    "tpu.trace_start"() <{level = 10 : i32, message = "bqk,bkc->bqc"}> : () -> ()
    %cst_201 = arith.constant dense<0.000000e+00> : vector<2x8x32xf32>
    %571 = tpu.matmul %569, %570, %cst_201 {dimension_numbers = #tpu.dot_dimension_numbers<[2], [1], [1], [2], [0, 0, 0, 1, 1, 2], [0], [0]>} : vector<2x8x8xbf16>, vector<2x8x32xbf16>, vector<2x8x32xf32> -> vector<2x8x32xf32>
    "tpu.trace_stop"() : () -> ()
    %572 = tpu.concatenate %514, %533, %552, %571 in 2 : vector<2x8x32xf32>, vector<2x8x32xf32>, vector<2x8x32xf32>, vector<2x8x32xf32> -> vector<2x8x128xf32>
    %573 = vector.shape_cast %572 : vector<2x8x128xf32> to vector<16x128xf32>
    %c1_202 = arith.constant 1 : index
    %c0_203 = arith.constant 0 : index
    %c0_204 = arith.constant 0 : index
    %574 = vector.load %arg16[%c1_202, %c0_203, %c0_204] : memref<2x128x128xbf16, #tpu.memory_space<vmem>>, vector<1x128x128xbf16>
    %575 = vector.shape_cast %574 : vector<1x128x128xbf16> to vector<128x128xbf16>
    %576 = arith.truncf %573 : vector<16x128xf32> to vector<16x128xbf16>
    %cst_205 = arith.constant dense<0.000000e+00> : vector<16x128xf32>
    %577 = tpu.matmul %576, %575, %cst_205 {dimension_numbers = #tpu.dot_dimension_numbers<[1], [0], [0], [1], [0, 0, 1, 1], [], []>} : vector<16x128xbf16>, vector<128x128xbf16>, vector<16x128xf32> -> vector<16x128xf32>
    %578 = arith.addf %445, %577 : vector<16x128xf32>
    %c1_206 = arith.constant 1 : index
    %c0_207 = arith.constant 0 : index
    %c0_208 = arith.constant 0 : index
    %579 = vector.load %arg17[%c1_206, %c0_207, %c0_208] : memref<2x1x128xf32, #tpu.memory_space<vmem>>, vector<1x1x128xf32>
    %580 = vector.shape_cast %579 : vector<1x1x128xf32> to vector<1x128xf32>
    %581 = vector.broadcast %580 : vector<1x128xf32> to vector<16x128xf32>
    %582 = arith.addf %578, %581 : vector<16x128xf32>
    %c1_209 = arith.constant 1 : index
    %c0_210 = arith.constant 0 : index
    %c0_211 = arith.constant 0 : index
    %583 = vector.load %arg18[%c1_209, %c0_210, %c0_211] : memref<2x1x128xf32, #tpu.memory_space<vmem>>, vector<1x1x128xf32>
    %584 = vector.shape_cast %583 : vector<1x1x128xf32> to vector<1x128xf32>
    %c1_212 = arith.constant 1 : index
    %c0_213 = arith.constant 0 : index
    %c0_214 = arith.constant 0 : index
    %585 = vector.load %arg19[%c1_212, %c0_213, %c0_214] : memref<2x1x128xf32, #tpu.memory_space<vmem>>, vector<1x1x128xf32>
    %586 = vector.shape_cast %585 : vector<1x1x128xf32> to vector<1x128xf32>
    %cst_215 = arith.constant dense<0.000000e+00> : vector<16xf32>
    %587 = vector.multi_reduction <add>, %582, %cst_215 [1] : vector<16x128xf32> to vector<16xf32>
    %588 = vector.shape_cast %587 : vector<16xf32> to vector<16x1xf32>
    %cst_216 = arith.constant 1.280000e+02 : f32
    %589 = vector.broadcast %cst_216 : f32 to vector<16x1xf32>
    %590 = arith.divf %588, %589 : vector<16x1xf32>
    %591 = vector.broadcast %590 : vector<16x1xf32> to vector<16x128xf32>
    %592 = arith.subf %582, %591 : vector<16x128xf32>
    %593 = arith.mulf %592, %592 : vector<16x128xf32>
    %cst_217 = arith.constant dense<0.000000e+00> : vector<16xf32>
    %594 = vector.multi_reduction <add>, %593, %cst_217 [1] : vector<16x128xf32> to vector<16xf32>
    %595 = vector.shape_cast %594 : vector<16xf32> to vector<16x1xf32>
    %cst_218 = arith.constant 1.280000e+02 : f32
    %596 = vector.broadcast %cst_218 : f32 to vector<16x1xf32>
    %597 = arith.divf %595, %596 : vector<16x1xf32>
    %598 = vector.broadcast %590 : vector<16x1xf32> to vector<16x128xf32>
    %599 = arith.subf %582, %598 : vector<16x128xf32>
    %cst_219 = arith.constant 9.99999974E-6 : f32
    %600 = vector.broadcast %cst_219 : f32 to vector<16x1xf32>
    %601 = arith.addf %597, %600 : vector<16x1xf32>
    %602 = math.rsqrt %601 : vector<16x1xf32>
    %603 = vector.broadcast %602 : vector<16x1xf32> to vector<16x128xf32>
    %604 = arith.mulf %599, %603 : vector<16x128xf32>
    %605 = vector.broadcast %584 : vector<1x128xf32> to vector<16x128xf32>
    %606 = arith.mulf %604, %605 : vector<16x128xf32>
    %607 = vector.broadcast %586 : vector<1x128xf32> to vector<16x128xf32>
    %608 = arith.addf %606, %607 : vector<16x128xf32>
    %c1_220 = arith.constant 1 : index
    %c0_221 = arith.constant 0 : index
    %c0_222 = arith.constant 0 : index
    %609 = vector.load %arg20[%c1_220, %c0_221, %c0_222] : memref<2x128x256xbf16, #tpu.memory_space<vmem>>, vector<1x128x256xbf16>
    %610 = vector.shape_cast %609 : vector<1x128x256xbf16> to vector<128x256xbf16>
    %611 = arith.truncf %608 : vector<16x128xf32> to vector<16x128xbf16>
    %cst_223 = arith.constant dense<0.000000e+00> : vector<16x256xf32>
    %612 = tpu.matmul %611, %610, %cst_223 {dimension_numbers = #tpu.dot_dimension_numbers<[1], [0], [0], [1], [0, 0, 1, 1], [], []>} : vector<16x128xbf16>, vector<128x256xbf16>, vector<16x256xf32> -> vector<16x256xf32>
    %c1_224 = arith.constant 1 : index
    %c0_225 = arith.constant 0 : index
    %c0_226 = arith.constant 0 : index
    %613 = vector.load %arg21[%c1_224, %c0_225, %c0_226] : memref<2x1x256xf32, #tpu.memory_space<vmem>>, vector<1x1x256xf32>
    %614 = vector.shape_cast %613 : vector<1x1x256xf32> to vector<1x256xf32>
    %615 = vector.broadcast %614 : vector<1x256xf32> to vector<16x256xf32>
    %616 = arith.addf %612, %615 : vector<16x256xf32>
    %cst_227 = arith.constant 0.000000e+00 : f32
    %617 = vector.broadcast %cst_227 : f32 to vector<16x256xf32>
    %618 = arith.maximumf %616, %617 : vector<16x256xf32>
    %c1_228 = arith.constant 1 : index
    %c0_229 = arith.constant 0 : index
    %c0_230 = arith.constant 0 : index
    %619 = vector.load %arg22[%c1_228, %c0_229, %c0_230] : memref<2x256x128xbf16, #tpu.memory_space<vmem>>, vector<1x256x128xbf16>
    %620 = vector.shape_cast %619 : vector<1x256x128xbf16> to vector<256x128xbf16>
    %621 = arith.truncf %618 : vector<16x256xf32> to vector<16x256xbf16>
    %cst_231 = arith.constant dense<0.000000e+00> : vector<16x128xf32>
    %622 = tpu.matmul %621, %620, %cst_231 {dimension_numbers = #tpu.dot_dimension_numbers<[1], [0], [0], [1], [0, 0, 1, 1], [], []>} : vector<16x256xbf16>, vector<256x128xbf16>, vector<16x128xf32> -> vector<16x128xf32>
    %c1_232 = arith.constant 1 : index
    %c0_233 = arith.constant 0 : index
    %c0_234 = arith.constant 0 : index
    %623 = vector.load %arg23[%c1_232, %c0_233, %c0_234] : memref<2x1x128xf32, #tpu.memory_space<vmem>>, vector<1x1x128xf32>
    %624 = vector.shape_cast %623 : vector<1x1x128xf32> to vector<1x128xf32>
    %625 = vector.broadcast %624 : vector<1x128xf32> to vector<16x128xf32>
    %626 = arith.addf %622, %625 : vector<16x128xf32>
    %627 = arith.addf %582, %626 : vector<16x128xf32>
    %c0_235 = arith.constant 0 : index
    %c0_236 = arith.constant 0 : index
    %628 = vector.load %arg24[%c0_235, %c0_236] : memref<1x128xf32, #tpu.memory_space<vmem>>, vector<1x128xf32>
    %c0_237 = arith.constant 0 : index
    %c0_238 = arith.constant 0 : index
    %629 = vector.load %arg25[%c0_237, %c0_238] : memref<1x128xf32, #tpu.memory_space<vmem>>, vector<1x128xf32>
    %cst_239 = arith.constant dense<0.000000e+00> : vector<16xf32>
    %630 = vector.multi_reduction <add>, %627, %cst_239 [1] : vector<16x128xf32> to vector<16xf32>
    %631 = vector.shape_cast %630 : vector<16xf32> to vector<16x1xf32>
    %cst_240 = arith.constant 1.280000e+02 : f32
    %632 = vector.broadcast %cst_240 : f32 to vector<16x1xf32>
    %633 = arith.divf %631, %632 : vector<16x1xf32>
    %634 = vector.broadcast %633 : vector<16x1xf32> to vector<16x128xf32>
    %635 = arith.subf %627, %634 : vector<16x128xf32>
    %636 = arith.mulf %635, %635 : vector<16x128xf32>
    %cst_241 = arith.constant dense<0.000000e+00> : vector<16xf32>
    %637 = vector.multi_reduction <add>, %636, %cst_241 [1] : vector<16x128xf32> to vector<16xf32>
    %638 = vector.shape_cast %637 : vector<16xf32> to vector<16x1xf32>
    %cst_242 = arith.constant 1.280000e+02 : f32
    %639 = vector.broadcast %cst_242 : f32 to vector<16x1xf32>
    %640 = arith.divf %638, %639 : vector<16x1xf32>
    %641 = vector.broadcast %633 : vector<16x1xf32> to vector<16x128xf32>
    %642 = arith.subf %627, %641 : vector<16x128xf32>
    %cst_243 = arith.constant 9.99999974E-6 : f32
    %643 = vector.broadcast %cst_243 : f32 to vector<16x1xf32>
    %644 = arith.addf %640, %643 : vector<16x1xf32>
    %645 = math.rsqrt %644 : vector<16x1xf32>
    %646 = vector.broadcast %645 : vector<16x1xf32> to vector<16x128xf32>
    %647 = arith.mulf %642, %646 : vector<16x128xf32>
    %648 = vector.broadcast %628 : vector<1x128xf32> to vector<16x128xf32>
    %649 = arith.mulf %647, %648 : vector<16x128xf32>
    %650 = vector.broadcast %629 : vector<1x128xf32> to vector<16x128xf32>
    %651 = arith.addf %649, %650 : vector<16x128xf32>
    %c0_244 = arith.constant 0 : index
    %c0_245 = arith.constant 0 : index
    %652 = vector.load %arg26[%c0_244, %c0_245] : memref<256x128xbf16, #tpu.memory_space<vmem>>, vector<256x128xbf16>
    %653 = arith.truncf %651 : vector<16x128xf32> to vector<16x128xbf16>
    %cst_246 = arith.constant dense<0.000000e+00> : vector<16x256xf32>
    %654 = tpu.matmul %653, %652, %cst_246 {dimension_numbers = #tpu.dot_dimension_numbers<[1], [1], [0], [0], [0, 0, 1, 0], [], []>} : vector<16x128xbf16>, vector<256x128xbf16>, vector<16x256xf32> -> vector<16x256xf32>
    %c0_247 = arith.constant 0 : index
    %c0_248 = arith.constant 0 : index
    %655 = vector.load %arg27[%c0_247, %c0_248] : memref<16x256xf32, #tpu.memory_space<vmem>>, vector<16x256xf32>
    tpu.vector_store %arg27[%c0_247, %c0_248], %654 {strides = array<i32>} : memref<16x256xf32, #tpu.memory_space<vmem>>, vector<16x256xf32>,
    return
  }
}

</mosaic_0001>

<bundles_post_ra>
// kernel: m2m100_forward.2
= control target key start
LH: loop header
LB: loop body
LE: loop exit
PB: predicated region body
PF: predicated region fallthrough
CT: control target
= control target key end

     0   :  { %s5338_s0 = inlined_call_operand.vmem [shape: f32[16,128], index: 0, kind: input, shape index: {}]   ;;  %s5339_s1 = inlined_call_operand.vmem [shape: f32[2,8], index: 1, kind: input, shape index: {}]   ;;  %s5340_s2 = inlined_call_operand.vmem [shape: f32[2,1,128], index: 2, kind: input, shape index: {}]   ;;  %s5341_s3 = inlined_call_operand.vmem [shape: f32[2,1,128], index: 3, kind: input, shape index: {}]   ;;  %s5342_s4 = inlined_call_operand.hbm [shape: bf16[2,128,384], index: 4, kind: input, shape index: {}]   ;;  %s5343_s5 = inlined_call_operand.vmem [shape: f32[2,1,384], index: 5, kind: input, shape index: {}]   ;;  %s5344_s6 = inlined_call_operand.hbm [shape: bf16[2,128,128], index: 6, kind: input, shape index: {}]   ;;  %s5345_s7 = inlined_call_operand.vmem [shape: f32[2,1,128], index: 7, kind: input, shape index: {}]   ;;  %s5346_s8 = inlined_call_operand.vmem [shape: f32[2,1,128], index: 8, kind: input, shape index: {}]   ;;  %s5347_s9 = inlined_call_operand.vmem [shape: f32[2,1,128], index: 9, kind: input, shape index: {}]   ;;  %s5348_s10 = inlined_call_operand.hbm [shape: bf16[2,128,256], index: 10, kind: input, shape index: {}]   ;;  %s5349_s11 = inlined_call_operand.vmem [shape: f32[2,1,256], index: 11, kind: input, shape index: {}]   ;;  %s5350_s12 = inlined_call_operand.hbm [shape: bf16[2,256,128], index: 12, kind: input, shape index: {}]   ;;  %s5351_s13 = inlined_call_operand.vmem [shape: f32[2,1,128], index: 13, kind: input, shape index: {}]   ;;  %s5352_s14 = inlined_call_operand.vmem [shape: f32[1,128], index: 14, kind: input, shape index: {}]   ;;  %s5353_s15 = inlined_call_operand.hbm [shape: f32[1,128], index: 15, kind: input, shape index: {}]   ;;  %s5354_s16 = inlined_call_operand.vmem [shape: f32[16,128], index: 16, kind: output, shape index: {}]  }
   0x1   :  { %5356 = sst [smem:[#allocation13_spill]] %s5338_s0 }
   0x2   :  { %21 = vsyncpa [#allocation3], 0 }
   0x3   :  { %22 = vsyncpa [#allocation5], 0 }
   0x4   :  { %23 = vsyncpa [#allocation8], 0  ;;  %s4631_s21 = smov [#allocation4]  }
   0x5   :  { %s51_s22 = sshll.u32 %s4631_s21, 4  ;;  %s52_s22 = int_to_ptr.vmem [resolvable:$true] %s51_s22 }
   0x6   :  { %s4533_s23 = scalar_lea.vmem %s52_s22, 2048  ;;  %p4538_p1 = scmp.lt.s32.totalorder %s52_s22, %s52_s22 }
   0x7   :  { %p4534_p0 = scmp.ne.s32.totalorder %s52_s22, %s4533_s23  ;;  %p4539_p2 = scmp.lt.s32.totalorder %s4533_s23, %s4533_s23 }
   0x9   :  { %p4540_p3 = por %p4539_p2, %p4538_p1 }
   0xb   :  { %p4541_p4 = pnand %p4540_p3, %p4534_p0 }
   0xd   :  { %4544 = shalt.err (!%p4541_p4)
}
   0xe   :  { %s4632_s24 = smov 64   ;;  %s4633_s25 = smov 4  }
   0xf   :  { %57 = dma.hbm_to_vmem [thread:$0]  %s5344_s6, 2048, %s52_s22, [#allocation5], %s4632_s24, %s4632_s24, %s4633_s25  }
  0x10   :  { %s4634_s28 = smov [#allocation7]   ;;  %s4635_s30 = smov [#allocation2]  }
  0x11   :  { %s83_s29 = sshll.u32 %s4634_s28, 4  ;;  %s37_s0 = sshll.u32 %s4635_s30, 4  ;;  %s84_s29 = int_to_ptr.vmem [resolvable:$true] %s83_s29  ;;  %s38_s0 = int_to_ptr.vmem [resolvable:$true] %s37_s0 }
  0x12   :  { %s4553_s17 = scalar_lea.vmem %s84_s29, 4096  ;;  %p4558_p6 = scmp.lt.s32.totalorder %s84_s29, %s84_s29 }
  0x13   :  { %p4554_p5 = scmp.ne.s32.totalorder %s84_s29, %s4553_s17  ;;  %p4559_p7 = scmp.lt.s32.totalorder %s4553_s17, %s4553_s17 }
  0x15   :  { %p4560_p8 = por %p4559_p7, %p4558_p6 }
  0x17   :  { %p4561_p9 = pnand %p4560_p8, %p4554_p5 }
  0x19   :  { %4564 = shalt.err (!%p4561_p9)
}
  0x1a   :  { %89 = dma.hbm_to_vmem [thread:$0]  %s5350_s12, 4096, %s84_s29, [#allocation8], %s4632_s24, %s4632_s24, %s4633_s25  }
  0x1b   :  { %s4573_s6 = scalar_lea.vmem %s38_s0, 6144  ;;  %p4578_p11 = scmp.lt.s32.totalorder %s38_s0, %s38_s0 }
  0x1c   :  { %p4574_p10 = scmp.ne.s32.totalorder %s38_s0, %s4573_s6  ;;  %p4579_p12 = scmp.lt.s32.totalorder %s4573_s6, %s4573_s6 }
  0x1e   :  { %p4580_p13 = por %p4579_p12, %p4578_p11 }
  0x20   :  { %p4581_p0 = pnand %p4580_p13, %p4574_p10 }
  0x22   :  { %4584 = shalt.err (!%p4581_p0)
}
  0x23   :  { %s4636_s20 = smov 192   ;;  %s4637_s21 = smov 12  }
  0x24   :  { %43 = dma.hbm_to_vmem [thread:$0]  %s5342_s4, 6144, %s38_s0, [#allocation3], %s4636_s20, %s4636_s20, %s4637_s21  }
  0x25   :  { %s4638_s26 = smov [#allocation6]  }
  0x26   :  { %s69_s27 = sshll.u32 %s4638_s26, 4  ;;  %s70_s27 = int_to_ptr.vmem [resolvable:$true] %s69_s27 }
  0x27   :  { %s4593_s28 = scalar_lea.vmem %s70_s27, 4096  ;;  %p4598_p2 = scmp.lt.s32.totalorder %s70_s27, %s70_s27 }
  0x28   :  { %p4594_p1 = scmp.ne.s32.totalorder %s70_s27, %s4593_s28  ;;  %p4599_p3 = scmp.lt.s32.totalorder %s4593_s28, %s4593_s28 }
  0x2a   :  { %p4600_p4 = por %p4599_p3, %p4598_p2 }
  0x2c   :  { %p4601_p5 = pnand %p4600_p4, %p4594_p1 }
  0x2e   :  { %4604 = shalt.err (!%p4601_p5)
}
  0x2f   :  { %s4639_s12 = smov 128   ;;  %s4640_s25 = smov 8  }
  0x30   :  { %75 = dma.hbm_to_vmem [thread:$0]  %s5348_s10, 4096, %s70_s27, [#allocation5], %s4639_s12, %s4639_s12, %s4640_s25  }
  0x31   :  { %s4641_s17 = smov [#allocation9]  }
  0x32   :  { %s100_s18 = sshll.u32 %s4641_s17, 4  ;;  %s101_s18 = int_to_ptr.vmem [resolvable:$true] %s100_s18 }
  0x33   :  { %s4613_s4 = scalar_lea.vmem %s101_s18, 16  ;;  %s4617_s0 = scalar_lea.vmem %s101_s18, 32 }
  0x34   :  { %p4614_p6 = scmp.ne.s32.totalorder %s101_s18, %s4613_s4  ;;  %p4618_p7 = scmp.lt.s32.totalorder %s101_s18, %s101_s18 }
  0x35   :  { %p4619_p8 = scmp.lt.s32.totalorder %s4617_s0, %s4613_s4 }
  0x37   :  { %p4620_p9 = por %p4619_p8, %p4618_p7 }
  0x39   :  { %p4621_p10 = pnand %p4620_p9, %p4614_p6 }
  0x3b   :  { %4624 = shalt.err (!%p4621_p10)
}
  0x3c   :  { %103 = dma.hbm_to_vmem [thread:$0]  %s5353_s15, 16, %s101_s18, [#allocation8]  }
  0x3d   :  { %4625 = dma.done.wait [#allocation3], 6144  }
  0x3e   :  { %4626 = vsyncadd [#allocation3], 4294961152 }
  0x3f   :  { %4627 = dma.done.wait [#allocation5], 6144  }
  0x40   :  { %4628 = vsyncadd [#allocation5], 4294961152 }
  0x41   :  { %4629 = dma.done.wait [#allocation8], 4112  }
  0x42   :  { %4630 = vsyncadd [#allocation8], 4294963184  ;;  %s5357_s21 = sld [smem:[#allocation13_spill]]  ;;  %v4279_v2 = vld [vmem:[#allocation2 + $0xac] ss:$12 sps:$4 sm:$0xff]   ;;  %v4642_v4 = vmov 0.0   ;;  %v199_v53 = vlaneseq }
  0x43   :  { %v4281_v3 = vld [vmem:[#allocation2 + $0xa8] ss:$12 sps:$4 sm:$0xff]   ;;  %3960 = vmatprep.subr.bf16.mxu1 %v4642_v4  ;;  %v4282_v5 = vld [vmem:[#allocation2 + $0xb0] ss:$12 sps:$4 sm:$0xff]   ;;  %342 = vmatprep.subr.bf16.mxu0 %v4279_v2  ;;  %v4286_v16 = vld [vmem:[#allocation2 + $0x98] ss:$12 sps:$4 sm:$0xff]  }
  0x44   :  { %343 = vmatpush1.bf16.msra.mxu0 %v4281_v3  ;;  %3961 = vmatpush3.bf16.msra.mxu1 %v4282_v5  ;;  %v4283_v14 = vld [vmem:[#allocation2 + $0x94] ss:$12 sps:$4 sm:$0xff]   ;;  %v4285_v15 = vld [vmem:[#allocation2 + $0x90] ss:$12 sps:$4 sm:$0xff]   ;;  %v4289_v18 = vld [vmem:[#allocation2 + $0x78] ss:$12 sps:$4 sm:$0xff]  }
  0x45   :  { %3962 = vmatprep.subr.bf16.mxu1 %v4642_v4  ;;  %344 = vmatprep.subr.bf16.mxu0 %v4283_v14  ;;  %v4287_v17 = vld [vmem:[#allocation2 + $0x7c] ss:$12 sps:$4 sm:$0xff]   ;;  %v4290_v19 = vld [vmem:[#allocation2 + $0x80] ss:$12 sps:$4 sm:$0xff]   ;;  %v4291_v20 = vld [vmem:[#allocation2 + $0x64] ss:$12 sps:$4 sm:$0xff]  }
  0x46   :  { %v4293_v21 = vld [vmem:[#allocation2 + $0x60] ss:$12 sps:$4 sm:$0xff]   ;;  %v4294_v22 = vld [vmem:[#allocation2 + $0x68] ss:$12 sps:$4 sm:$0xff]   ;;  %v4298_v25 = vld [vmem:[#allocation2 + $0x50] ss:$12 sps:$4 sm:$0xff]  }
  0x47   :  { %v4295_v23 = vld [vmem:[#allocation2 + $0x4c] ss:$12 sps:$4 sm:$0xff]   ;;  %v4297_v24 = vld [vmem:[#allocation2 + $0x48] ss:$12 sps:$4 sm:$0xff]   ;;  %v4643_v27 = vmov 0   ;;  %vm4644_vm0 = vmmov 0  }
  0x48   :  { %v120_v0 = vld [vmem:[%s5357_s21] sm:$0xff]  ;;  %v121_v1 = vld [vmem:[%s5357_s21 + $0x8] sm:$0xff]  ;;  %345 = vmatpush1.bf16.msra.mxu0 %v4285_v15  ;;  %3963 = vmatpush3.bf16.msra.mxu1 %v4286_v16  ;;  %v4301_v28 = vld [vmem:[#allocation2 + $0x30] ss:$12 sps:$4 sm:$0xff]   ;;  %v4791_v54 = vshrl.u32 %v199_v53, 7  ;;  %vm465_vm1 = vcmask 261120  }
  0x49   :  { %125 = vadd.xlane.f32.xlu0 %v120_v0  ;;  %3964 = vmatprep.subr.bf16.mxu1 %v4642_v4  ;;  %v4299_v26 = vld [vmem:[#allocation2 + $0x34] ss:$12 sps:$4 sm:$0xff]   ;;  %v4302_v29 = vld [vmem:[#allocation2 + $0x38] ss:$12 sps:$4 sm:$0xff]   ;;  %v4303_v30 = vld [vmem:[#allocation2 + $0x1c] ss:$12 sps:$4 sm:$0xff]  }
  0x4a   :  { %346 = vmatprep.subr.bf16.mxu0 %v4287_v17  ;;  %374 = vmatprep.mubr.bf16.mxu0 %v4643_v27  ;;  %v4305_v31 = vld [vmem:[#allocation2 + $0x18] ss:$12 sps:$4 sm:$0xff]   ;;  %v4306_v32 = vld [vmem:[#allocation2 + $0x20] ss:$12 sps:$4 sm:$0xff]   ;;  %v4310_v35 = vld [vmem:[#allocation2 + $0x8] ss:$12 sps:$4 sm:$0xff]  }
  0x4b   :  { %3976 = vmatprep.mubr.msk.bf16.mxu1 %vm4644_vm0, %v4642_v4  ;;  %v4307_v33 = vld [vmem:[#allocation2 + $0x4] ss:$12 sps:$4 sm:$0xff]   ;;  %v4309_v34 = vld [vmem:[#allocation2] ss:$12 sps:$4 sm:$0xff]   ;;  %v4794_v55 = vsub.s32 1, %v4791_v54  ;;  %v209_v57 = vsub.s32 2, %v4791_v54 }
  0x4c   :  { %347 = vmatpush1.bf16.msra.mxu0 %v4289_v18  ;;  %3965 = vmatpush3.bf16.msra.mxu1 %v4290_v19  ;;  %v3633_v44 = vld [vmem:[%s5340_s2] ss:$0 sm:$0xff]  ;;  %v4802_v61 = vsub.s32 0, %v4791_v54  ;;  %vm586_vm2 = vcmask 1043456   ;;  %vm558_vm3 = vcmask 64512   ;;  %s4647_s17 = smov 32  }
  0x4d   :  { %127 = vadd.xlane.f32.xlu0 %v121_v1  ;;  %3966 = vmatprep.subr.bf16.mxu1 %v4642_v4  ;;  %v3634_v48 = vld [vmem:[%s5341_s3] ss:$0 sm:$0xff]  ;;  %vm1368_vm4 = vcmask 523264   ;;  %vm1371_vm5 = vcmask 785408  }
  0x4e   :  { %348 = vmatprep.subr.bf16.mxu0 %v4291_v20  ;;  %v197_v56 = vld [vmem:[%s5343_s5] sm:$0x7] }
  0x4f   :  { %v206_v58 = vrot.slane %v197_v56, %v4794_v55  ;;  %v202_v5 = vrot.slane %v197_v56, %v4802_v61 }
  0x50   :  { %349 = vmatpush1.bf16.msra.mxu0 %v4293_v21  ;;  %3967 = vmatpush3.bf16.msra.mxu1 %v4294_v22  ;;  %v4645_v21 = vmov 1966171168  }
  0x51   :  { %350 = vmatprep.subr.bf16.mxu0 %v4295_v23  ;;  %3968 = vmatprep.subr.bf16.mxu1 %v4642_v4  ;;  %v442_v22 = vunpack.c.l.s4 %v4645_v21 }
  0x53   :  { %v443_v23 = vunpack.c.0.s8 %v442_v22 }
  0x54   :  { %351 = vmatpush1.bf16.msra.mxu0 %v4297_v24  ;;  %3969 = vmatpush3.bf16.msra.mxu1 %v4298_v25  ;;  %v3659_v25 = vld.sshfl [vmem:[%s5339_s1] sm:$0x11 pattern:$0x75316420]  ;;  %s4646_s1 = smov 96  }
  0x55   :  { %352 = vmatprep.subr.bf16.mxu0 %v4299_v26  ;;  %3970 = vmatprep.subr.bf16.mxu1 %v4642_v4  ;;  %v446_v24 = vsub.s32 %v443_v23, %v4791_v54 }
  0x57   :  { %v447_v26 = vrot.slane %v3659_v25, %v446_v24 }
  0x58   :  { %353 = vmatpush1.bf16.msra.mxu0 %v4301_v28  ;;  %3971 = vmatpush3.bf16.msra.mxu1 %v4302_v29  ;;  %v440_v29 = vcombine.high %v3659_v25, %v3659_v25 }
  0x59   :  { %354 = vmatprep.subr.bf16.mxu0 %v4303_v30  ;;  %3972 = vmatprep.subr.bf16.mxu1 %v4642_v4  ;;  %v4841_v28 = vrot.slane %v447_v26, %v4802_v61 }
  0x5c   :  { %355 = vmatpush1.bf16.msra.mxu0 %v4305_v31  ;;  %3973 = vmatpush3.bf16.msra.mxu1 %v4306_v32  ;;  %v454_v32 = vrot.slane %v440_v29, %v446_v24 }
  0x5d   :  { %356 = vmatprep.subr.bf16.mxu0 %v4307_v33  ;;  %3974 = vmatprep.subr.bf16.mxu1 %v4642_v4 }
  0x60   :  { %357 = vmatpush1.bf16.msra.mxu0 %v4309_v34  ;;  %3975 = vmatpush3.bf16.msra.mxu1 %v4310_v35 }
  0x61   :  { %3980 = vmatprep.subr.bf16.mxu1 %v4642_v4  ;;  %4004 = vmatprep.subr.bf16.mxu0 %v4642_v4 }
  0xd2   :  { %v126_v6 = vpop.xlane.xlu0 %125 }
  0xd3   :  { %v130_v7 = vmul.f32 0.0078125, %v126_v6 }
  0xd5   :  { %v4760_v8 = vsub.f32 %v120_v0, %v130_v7  ;;  %v210_v0 = vrot.slane %v197_v56, %v209_v57 }
  0xd6   :  { %v128_v9 = vpop.xlane.xlu0 %127 }
  0xd7   :  { %v131_v10 = vmul.f32 0.0078125, %v128_v9  ;;  %v134_v11 = vmul.f32 %v4760_v8, %v4760_v8 }
  0xd9   :  { %v4764_v12 = vsub.f32 %v121_v1, %v131_v10  ;;  %136 = vadd.xlane.f32.xlu1 %v134_v11 }
  0xdb   :  { %v135_v13 = vmul.f32 %v4764_v12, %v4764_v12 }
  0xdd   :  { %138 = vadd.xlane.f32.xlu1 %v135_v13 }
 0x162   :  { %v137_v36 = vpop.xlane.xlu1 %136 }
 0x163   :  { %v140_v37 = vmul.f32 0.0078125, %v137_v36  ;;  %v4846_v36 = vrot.slane %v454_v32, %v4802_v61 }
 0x165   :  { %v142_v38 = vadd.f32 1e-05, %v140_v37 }
 0x166   :  { %v139_v39 = vpop.xlane.xlu1 %138 }
 0x167   :  { %4439 = vrsqrt.f32 %v142_v38  ;;  %v141_v40 = vmul.f32 0.0078125, %v139_v39 }
 0x169   :  { %v143_v41 = vadd.f32 1e-05, %v141_v40 }
 0x16b   :  { %4441 = vrsqrt.f32 %v143_v41 }
 0x174   :  { %v4440_v42 = vpop.eup %4439 }
 0x175   :  { %v146_v43 = vmul.f32 %v4440_v42, %v4760_v8 }
 0x177   :  { %v154_v47 = vmul.f32 %v3633_v44, %v146_v43 }
 0x178   :  { %v4442_v45 = vpop.eup %4441 }
 0x179   :  { %v147_v46 = vmul.f32 %v4442_v45, %v4764_v12  ;;  %v162_v50 = vadd.f32 %v3634_v48, %v154_v47 }
 0x17b   :  { %v155_v49 = vmul.f32 %v3633_v44, %v147_v46 }
 0x17d   :  { %v163_v51 = vadd.f32 %v3634_v48, %v155_v49 }
 0x17f   :  { %v196_v52 = vpack.c.bf16 %v163_v51, %v162_v50 }
 0x181   :  { %375 = vmatmul.mubr.bf16.vlgmr.msra.gmra.mxu0 %v196_v52  ;;  %3977 = vmatmul.mubr.bf16.vlgmr.msra.gmra.mxu1 %v196_v52 }
 0x182   :  { %3982 = vmatprep.mubr.msk.bf16.mxu1 %vm4644_vm0, %v4642_v4  ;;  %4006 = vmatprep.mubr.msk.bf16.mxu0 %vm4644_vm0, %v4642_v4 }
 0x241   :  { %v376_v59 = vpop.f32.mrf.mxu0  ;;  %v419_v60 = vpop.f32.mrf.mxu1 }
 0x242   :  { %v377_v12 = vadd.f32 %v376_v59, %v202_v5  ;;  %v420_v15 = vadd.f32 %v419_v60, %v210_v0 }
 0x243   :  { %v378_v62 = vpop.f32.mrf.mxu0  ;;  %v3978_v63 = vpop.f32.mrf.mxu1 }
 0x244   :  { %v379_v1 = vadd.f32 %v378_v62, %v206_v58  ;;  %v4816_v14 = vpack.c.bf16 %v377_v12, %v377_v12  ;;  %v4825_v18 = vpack.c.bf16 %v420_v15, %v420_v15 }
 0x245   :  { %v380_v2 = vpop.f32.mrf.mxu0  ;;  %v422_v3 = vpop.f32.mrf.mxu1 }
 0x246   :  { %v4807_v6 = vpack.c.bf16 %v379_v1, %v379_v1  ;;  %v4809_v7 = vadd.f32 %v422_v3, %v210_v0  ;;  %v381_v17 = vadd.f32 %v380_v2, %v202_v5  ;;  %v588_v20 = vsel %vm586_vm2, %v4825_v18, 0 }
 0x247   :  { %v382_v8 = vpop.f32.mrf.mxu0  ;;  %v3979_v9 = vpop.f32.mrf.mxu1 }
 0x248   :  { %v383_v10 = vadd.f32 %v382_v8, %v206_v58  ;;  %v470_v11 = vsel %vm465_vm1, %v4807_v6, 0  ;;  %v4827_v19 = vpack.c.bf16 %v381_v17, %v381_v17  ;;  %v4867_v1 = vpack.c.bf16 %v4809_v7, %v4809_v7 }
 0x249   :  { %3981 = vmatpush3.bf16.xpose.msra.mxu1 %v470_v11 }
 0x24a   :  { %3986 = vmatprep.subr.bf16.mxu1 %v4642_v4  ;;  %v4814_v13 = vpack.c.bf16 %v383_v10, %v383_v10  ;;  %v634_v5 = vsel %vm586_vm2, %v4867_v1, 0 }
 0x24c   :  { %v516_v16 = vsel %vm465_vm1, %v4814_v13, 0 }
 0x250   :  { %3983 = vmatmul.mubr.msk.bf16.vlgmr.msra.gmra.mxu1 %vm465_vm1, %v4816_v14 }
 0x251   :  { %3987 = vmatpush3.bf16.xpose.msra.mxu1 %v516_v16  ;;  %3988 = vmatprep.mubr.msk.bf16.mxu1 %vm4644_vm0, %v4642_v4 }
 0x252   :  { %3992 = vmatprep.subr.bf16.mxu1 %v4642_v4 }
 0x258   :  { %3989 = vmatmul.mubr.msk.bf16.vlgmr.msra.gmra.mxu1 %vm465_vm1, %v4827_v19 }
 0x259   :  { %3993 = vmatpush3.bf16.msra.mxu1 %v588_v20  ;;  %3994 = vmatprep.mubr.msk.bf16.mxu1 %vm4644_vm0, %v4642_v4 }
 0x25a   :  { %3998 = vmatprep.subr.bf16.mxu1 %v4642_v4 }
 0x310   :  { %v506_v30 = vpop.f32.mrf.mxu1 }
 0x311   :  { %v507_v31 = vadd.f32 %v506_v30, %v4841_v28 }
 0x312   :  { %v3984_v33 = vpop.f32.mrf.mxu1 }
 0x313   :  { %v559_v34 = vsel %vm558_vm3, %v507_v31, -inf }
 0x314   :  { %560 = vmax.xlane.f32.xlu0 %v559_v34  ;;  %v509_v35 = vpop.f32.mrf.mxu1 }
 0x316   :  { %v3985_v37 = vpop.f32.mrf.mxu1 }
 0x318   :  { %v552_v38 = vpop.f32.mrf.mxu1 }
 0x319   :  { %v553_v39 = vadd.f32 %v552_v38, %v4846_v36 }
 0x31a   :  { %v3990_v40 = vpop.f32.mrf.mxu1 }
 0x31b   :  { %v562_v41 = vsel %vm558_vm3, %v553_v39, -inf }
 0x31c   :  { %563 = vmax.xlane.f32.xlu1 %v562_v41  ;;  %v555_v42 = vpop.f32.mrf.mxu1 }
 0x31e   :  { %v3991_v43 = vpop.f32.mrf.mxu1 }
 0x32d   :  { %732 = vrot.lane.b32.xlu1 %v4814_v13, %s4646_s1 }
 0x39d   :  { %v561_v44 = vpop.xlane.xlu0 %560 }
 0x39e   :  { %v565_v45 = vsub.f32 %v507_v31, %v561_v44 }
 0x3a0   :  { %v567_v46 = vmul.f32 1.442695, %v565_v45 }
 0x3a2   :  { %4443 = vpow2.f32 %v567_v46 }
 0x3a5   :  { %v564_v47 = vpop.xlane.xlu1 %563 }
 0x3a6   :  { %v566_v48 = vsub.f32 %v553_v39, %v564_v47 }
 0x3a8   :  { %v569_v49 = vmul.f32 1.442695, %v566_v48 }
 0x3a9   :  { %v733_v58 = vpop.permute.xlu1 %732 }
 0x3aa   :  { %4445 = vpow2.f32 %v569_v49  ;;  %v738_v11 = vsel %vm465_vm1, %v733_v58, 0 }
 0x3af   :  { %v4444_v50 = vpop.eup %4443 }
 0x3b0   :  { %v571_v51 = vsel %vm558_vm3, %v4444_v50, 0.0 }
 0x3b1   :  { %572 = vadd.xlane.f32.xlu0 %v571_v51 }
 0x3b7   :  { %v4446_v52 = vpop.eup %4445 }
 0x3b8   :  { %v574_v53 = vsel %vm558_vm3, %v4446_v52, 0.0 }
 0x3b9   :  { %575 = vadd.xlane.f32.xlu1 %v574_v53 }
 0x3c7   :  { %680 = vrot.lane.b32.xlu0 %v4807_v6, %s4646_s1 }
 0x3ca   :  { %677 = vrot.lane.b32.xlu1 %v4816_v14, %s4646_s1 }
 0x3ce   :  { %729 = vrot.lane.b32.xlu1 %v4827_v19, %s4646_s1 }
 0x43a   :  { %v573_v56 = vpop.xlane.xlu0 %572 }
 0x43b   :  { %4447 = vrcp.f32 %v573_v56 }
 0x43e   :  { %v681_v59 = vpop.permute.xlu0 %680 }
 0x43f   :  { %v686_v60 = vsel %vm465_vm1, %v681_v59, 0 }
 0x440   :  { %4005 = vmatpush3.bf16.xpose.msra.mxu0 %v686_v60 }
 0x441   :  { %4016 = vmatprep.subr.bf16.mxu0 %v4642_v4 }
 0x442   :  { %v576_v62 = vpop.xlane.xlu1 %575 }
 0x443   :  { %4449 = vrcp.f32 %v576_v62 }
 0x446   :  { %v678_v63 = vpop.permute.xlu1 %677 }
 0x447   :  { %4007 = vmatmul.mubr.msk.bf16.vlgmr.msra.gmra.mxu0 %vm465_vm1, %v678_v63 }
 0x448   :  { %v4448_v0 = vpop.eup %4447  ;;  %4018 = vmatprep.mubr.msk.bf16.mxu0 %vm4644_vm0, %v4642_v4 }
 0x449   :  { %v579_v2 = vmul.f32 %v4448_v0, %v4444_v50 }
 0x44a   :  { %v730_v7 = vpop.permute.xlu1 %729 }
 0x44b   :  { %v581_v3 = vpack.c.bf16 %v579_v2, %v579_v2 }
 0x44d   :  { %3995 = vmatmul.mubr.msk.bf16.vlgmr.msra.gmra.mxu1 %vm558_vm3, %v581_v3 }
 0x44e   :  { %3999 = vmatpush3.bf16.msra.mxu1 %v634_v5  ;;  %4000 = vmatprep.mubr.msk.bf16.mxu1 %vm4644_vm0, %v4642_v4 }
 0x44f   :  { %4010 = vmatprep.subr.bf16.mxu1 %v4642_v4 }
 0x450   :  { %v4450_v8 = vpop.eup %4449 }
 0x451   :  { %v580_v9 = vmul.f32 %v4450_v8, %v4446_v52 }
 0x453   :  { %v582_v10 = vpack.c.bf16 %v580_v9, %v580_v9 }
 0x455   :  { %4001 = vmatmul.mubr.msk.bf16.vlgmr.msra.gmra.mxu1 %vm558_vm3, %v582_v10 }
 0x456   :  { %4011 = vmatpush3.bf16.xpose.msra.mxu1 %v738_v11  ;;  %4012 = vmatprep.mubr.msk.bf16.mxu1 %vm4644_vm0, %v4642_v4 }
 0x457   :  { %4022 = vmatprep.subr.bf16.mxu1 %v4642_v4 }
 0x45d   :  { %4013 = vmatmul.mubr.msk.bf16.vlgmr.msra.gmra.mxu1 %vm465_vm1, %v730_v7 }
 0x45e   :  { %4024 = vmatprep.mubr.msk.bf16.mxu1 %vm4644_vm0, %v4642_v4 }
 0x507   :  { %v722_v12 = vpop.f32.mrf.mxu0 }
 0x508   :  { %v723_v15 = vadd.f32 %v722_v12, %v4841_v28 }
 0x509   :  { %v4008_v16 = vpop.f32.mrf.mxu0 }
 0x50a   :  { %v780_v17 = vsel %vm558_vm3, %v723_v15, -inf }
 0x50b   :  { %781 = vmax.xlane.f32.xlu0 %v780_v17  ;;  %v725_v20 = vpop.f32.mrf.mxu0 }
 0x50d   :  { %v4885_v21 = vpop.f32.mrf.mxu1  ;;  %v4009_v22 = vpop.f32.mrf.mxu0 }
 0x50f   :  { %v3996_v23 = vpop.f32.mrf.mxu1 }
 0x511   :  { %v627_v24 = vpop.f32.mrf.mxu1 }
 0x513   :  { %v3997_v25 = vpop.f32.mrf.mxu1 }
 0x515   :  { %v4887_v26 = vpop.f32.mrf.mxu1 }
 0x517   :  { %v4002_v29 = vpop.f32.mrf.mxu1 }
 0x519   :  { %v673_v30 = vpop.f32.mrf.mxu1 }
 0x51b   :  { %v4003_v31 = vpop.f32.mrf.mxu1 }
 0x51d   :  { %v774_v32 = vpop.f32.mrf.mxu1 }
 0x51e   :  { %v775_v33 = vadd.f32 %v774_v32, %v4846_v36 }
 0x51f   :  { %v4014_v34 = vpop.f32.mrf.mxu1 }
 0x520   :  { %v783_v35 = vsel %vm558_vm3, %v775_v33, -inf }
 0x521   :  { %784 = vmax.xlane.f32.xlu1 %v783_v35  ;;  %v777_v37 = vpop.f32.mrf.mxu1 }
 0x523   :  { %v4015_v38 = vpop.f32.mrf.mxu1 }
 0x532   :  { %854 = vrot.lane.b32.xlu1 %v4867_v1, %s4646_s1 }
 0x536   :  { %904 = vrot.lane.b32.xlu1 %v4807_v6, %s4632_s24 }
 0x53a   :  { %954 = vrot.lane.b32.xlu1 %v4814_v13, %s4632_s24 }
 0x53e   :  { %952 = vrot.lane.b32.xlu1 %v4827_v19, %s4632_s24 }
 0x594   :  { %v782_v39 = vpop.xlane.xlu0 %781 }
 0x595   :  { %v786_v40 = vsub.f32 %v723_v15, %v782_v39 }
 0x597   :  { %v788_v41 = vmul.f32 1.442695, %v786_v40 }
 0x599   :  { %4451 = vpow2.f32 %v788_v41 }
 0x5a6   :  { %v4452_v42 = vpop.eup %4451 }
 0x5a7   :  { %v792_v43 = vsel %vm558_vm3, %v4452_v42, 0.0 }
 0x5a8   :  { %793 = vadd.xlane.f32.xlu0 %v792_v43 }
 0x5aa   :  { %v785_v44 = vpop.xlane.xlu1 %784 }
 0x5ab   :  { %v787_v45 = vsub.f32 %v775_v33, %v785_v44 }
 0x5ad   :  { %v790_v46 = vmul.f32 1.442695, %v787_v45 }
 0x5ae   :  { %v855_v47 = vpop.permute.xlu1 %854 }
 0x5af   :  { %4453 = vpow2.f32 %v790_v46  ;;  %v860_v48 = vsel %vm586_vm2, %v855_v47, 0 }
 0x5b0   :  { %4023 = vmatpush3.bf16.msra.mxu1 %v860_v48 }
 0x5b1   :  { %4034 = vmatprep.subr.bf16.mxu1 %v4642_v4 }
 0x5b2   :  { %v905_v60 = vpop.permute.xlu1 %904 }
 0x5b3   :  { %v910_v63 = vsel %vm465_vm1, %v905_v60, 0 }
 0x5b6   :  { %v955_v3 = vpop.permute.xlu1 %954 }
 0x5b7   :  { %v960_v9 = vsel %vm465_vm1, %v955_v3, 0 }
 0x5ba   :  { %v953_v10 = vpop.permute.xlu1 %952 }
 0x5bc   :  { %v4454_v49 = vpop.eup %4453 }
 0x5bd   :  { %v795_v50 = vsel %vm558_vm3, %v4454_v49, 0.0 }
 0x5be   :  { %796 = vadd.xlane.f32.xlu0 %v795_v50 }
 0x5d4   :  { %805 = vrot.lane.b32.xlu0 %v4825_v18, %s4646_s1 }
 0x5d8   :  { %902 = vrot.lane.b32.xlu0 %v4816_v14, %s4632_s24 }
 0x631   :  { %v794_v51 = vpop.xlane.xlu0 %793 }
 0x632   :  { %4455 = vrcp.f32 %v794_v51 }
 0x63f   :  { %v4456_v52 = vpop.eup %4455 }
 0x640   :  { %v800_v56 = vmul.f32 %v4456_v52, %v4452_v42 }
 0x642   :  { %v802_v62 = vpack.c.bf16 %v800_v56, %v800_v56 }
 0x647   :  { %v797_v53 = vpop.xlane.xlu0 %796 }
 0x648   :  { %4457 = vrcp.f32 %v797_v53 }
 0x64b   :  { %v806_v58 = vpop.permute.xlu0 %805 }
 0x64c   :  { %v811_v59 = vsel %vm586_vm2, %v806_v58, 0 }
 0x64d   :  { %4017 = vmatpush3.bf16.msra.mxu0 %v811_v59 }
 0x64e   :  { %4028 = vmatprep.subr.bf16.mxu0 %v4642_v4 }
 0x64f   :  { %v903_v5 = vpop.permute.xlu0 %902 }
 0x650   :  { %4019 = vmatmul.mubr.msk.bf16.vlgmr.msra.gmra.mxu0 %vm558_vm3, %v802_v62 }
 0x651   :  { %4029 = vmatpush3.bf16.xpose.msra.mxu0 %v910_v63  ;;  %4030 = vmatprep.mubr.msk.bf16.mxu0 %vm4644_vm0, %v4642_v4 }
 0x652   :  { %4040 = vmatprep.subr.bf16.mxu0 %v4642_v4 }
 0x655   :  { %v4458_v0 = vpop.eup %4457 }
 0x656   :  { %v801_v2 = vmul.f32 %v4458_v0, %v4454_v49 }
 0x658   :  { %4031 = vmatmul.mubr.msk.bf16.vlgmr.msra.gmra.mxu0 %vm465_vm1, %v903_v5  ;;  %v803_v8 = vpack.c.bf16 %v801_v2, %v801_v2 }
 0x659   :  { %4042 = vmatprep.mubr.msk.bf16.mxu0 %vm4644_vm0, %v4642_v4 }
 0x65a   :  { %4025 = vmatmul.mubr.msk.bf16.vlgmr.msra.gmra.mxu1 %vm558_vm3, %v803_v8 }
 0x65b   :  { %4035 = vmatpush3.bf16.xpose.msra.mxu1 %v960_v9  ;;  %4036 = vmatprep.mubr.msk.bf16.mxu1 %vm4644_vm0, %v4642_v4 }
 0x65c   :  { %4046 = vmatprep.subr.bf16.mxu1 %v4642_v4 }
 0x662   :  { %4037 = vmatmul.mubr.msk.bf16.vlgmr.msra.gmra.mxu1 %vm465_vm1, %v953_v10 }
 0x663   :  { %4048 = vmatprep.mubr.msk.bf16.mxu1 %vm4644_vm0, %v4642_v4 }
 0x710   :  { %v4925_v11 = vpop.f32.mrf.mxu0 }
 0x712   :  { %v4020_v7 = vpop.f32.mrf.mxu0 }
 0x714   :  { %v850_v12 = vpop.f32.mrf.mxu0 }
 0x716   :  { %v4021_v15 = vpop.f32.mrf.mxu0 }
 0x718   :  { %v946_v16 = vpop.f32.mrf.mxu0 }
 0x719   :  { %v947_v17 = vadd.f32 %v946_v16, %v4841_v28 }
 0x71a   :  { %v4928_v20 = vpop.f32.mrf.mxu1  ;;  %v4032_v22 = vpop.f32.mrf.mxu0 }
 0x71b   :  { %v4249_v23 = vpack.i.bf16 %v4928_v20, %v4925_v11  ;;  %v1002_v24 = vsel %vm558_vm3, %v947_v17, -inf }
 0x71c   :  { %1003 = vmax.xlane.f32.xlu0 %v1002_v24  ;;  %v4026_v25 = vpop.f32.mrf.mxu1  ;;  %v949_v29 = vpop.f32.mrf.mxu0 }
 0x71e   :  { %v899_v30 = vpop.f32.mrf.mxu1  ;;  %v4033_v31 = vpop.f32.mrf.mxu0 }
 0x720   :  { %v4027_v32 = vpop.f32.mrf.mxu1 }
 0x722   :  { %v996_v33 = vpop.f32.mrf.mxu1 }
 0x723   :  { %v997_v34 = vadd.f32 %v996_v33, %v4846_v36 }
 0x724   :  { %v4038_v35 = vpop.f32.mrf.mxu1 }
 0x725   :  { %v1005_v37 = vsel %vm558_vm3, %v997_v34, -inf }
 0x726   :  { %1006 = vmax.xlane.f32.xlu1 %v1005_v37  ;;  %v999_v38 = vpop.f32.mrf.mxu1 }
 0x728   :  { %v4039_v39 = vpop.f32.mrf.mxu1 }
 0x737   :  { %1074 = vrot.lane.b32.xlu1 %v4867_v1, %s4632_s24 }
 0x73b   :  { %1124 = vrot.lane.b32.xlu1 %v4807_v6, %s4647_s17 }
 0x73f   :  { %1174 = vrot.lane.b32.xlu1 %v4814_v13, %s4647_s17 }
 0x743   :  { %1172 = vrot.lane.b32.xlu1 %v4827_v19, %s4647_s17 }
 0x7a5   :  { %v1004_v40 = vpop.xlane.xlu0 %1003 }
 0x7a6   :  { %v1008_v41 = vsub.f32 %v947_v17, %v1004_v40 }
 0x7a8   :  { %v1010_v42 = vmul.f32 1.442695, %v1008_v41 }
 0x7aa   :  { %4459 = vpow2.f32 %v1010_v42 }
 0x7af   :  { %v1007_v43 = vpop.xlane.xlu1 %1006 }
 0x7b0   :  { %v1009_v44 = vsub.f32 %v997_v34, %v1007_v43 }
 0x7b2   :  { %v1012_v45 = vmul.f32 1.442695, %v1009_v44 }
 0x7b3   :  { %v1075_v46 = vpop.permute.xlu1 %1074 }
 0x7b4   :  { %4461 = vpow2.f32 %v1012_v45  ;;  %v1080_v47 = vsel %vm586_vm2, %v1075_v46, 0 }
 0x7b5   :  { %4047 = vmatpush3.bf16.msra.mxu1 %v1080_v47 }
 0x7b6   :  { %4058 = vmatprep.subr.bf16.mxu1 %v4642_v4 }
 0x7b7   :  { %v4460_v6 = vpop.eup %4459  ;;  %v1125_v58 = vpop.permute.xlu1 %1124 }
 0x7b8   :  { %v1014_v13 = vsel %vm558_vm3, %v4460_v6, 0.0  ;;  %v1130_v60 = vsel %vm465_vm1, %v1125_v58, 0  ;;  %v4312_v58 = vld [vmem:[#allocation4 + $0x30] sm:$0xff]  }
 0x7b9   :  { %1015 = vadd.xlane.f32.xlu0 %v1014_v13 }
 0x7bb   :  { %v1175_v63 = vpop.permute.xlu1 %1174 }
 0x7bc   :  { %v1180_v3 = vsel %vm465_vm1, %v1175_v63, 0  ;;  %v4317_v63 = vld [vmem:[#allocation4 + $0x8] sm:$0xff]  }
 0x7bf   :  { %v1173_v5 = vpop.permute.xlu1 %1172 }
 0x7c1   :  { %v4462_v48 = vpop.eup %4461 }
 0x7c2   :  { %v1017_v19 = vsel %vm558_vm3, %v4462_v48, 0.0 }
 0x7c3   :  { %1018 = vadd.xlane.f32.xlu0 %v1017_v19 }
 0x7d9   :  { %1026 = vrot.lane.b32.xlu0 %v4825_v18, %s4632_s24 }
 0x7dd   :  { %1122 = vrot.lane.b32.xlu0 %v4816_v14, %s4647_s17 }
 0x842   :  { %v1016_v49 = vpop.xlane.xlu0 %1015 }
 0x843   :  { %4463 = vrcp.f32 %v1016_v49 }
 0x84c   :  { %v1019_v50 = vpop.xlane.xlu0 %1018 }
 0x84d   :  { %4465 = vrcp.f32 %v1019_v50 }
 0x850   :  { %v4464_v51 = vpop.eup %4463  ;;  %v1027_v52 = vpop.permute.xlu0 %1026 }
 0x851   :  { %v1032_v53 = vsel %vm586_vm2, %v1027_v52, 0  ;;  %v1022_v56 = vmul.f32 %v4464_v51, %v4460_v6 }
 0x852   :  { %4041 = vmatpush3.bf16.msra.mxu0 %v1032_v53 }
 0x853   :  { %v1024_v59 = vpack.c.bf16 %v1022_v56, %v1022_v56  ;;  %4052 = vmatprep.subr.bf16.mxu0 %v4642_v4  ;;  %v4311_v56 = vld [vmem:[#allocation4 + $0x38] sm:$0xff]  }
 0x854   :  { %v1123_v0 = vpop.permute.xlu0 %1122 }
 0x855   :  { %4043 = vmatmul.mubr.msk.bf16.vlgmr.msra.gmra.mxu0 %vm558_vm3, %v1024_v59  ;;  %v4313_v59 = vld [vmem:[#allocation4 + $0x28] sm:$0xff]  }
 0x856   :  { %4053 = vmatpush3.bf16.xpose.msra.mxu0 %v1130_v60  ;;  %4054 = vmatprep.mubr.msk.bf16.mxu0 %vm4644_vm0, %v4642_v4  ;;  %v4314_v60 = vld [vmem:[#allocation4 + $0x20] sm:$0xff]  }
 0x857   :  { %4064 = vmatprep.subr.bf16.mxu0 %v4642_v4 }
 0x85a   :  { %v4466_v14 = vpop.eup %4465 }
 0x85b   :  { %v1023_v62 = vmul.f32 %v4466_v14, %v4462_v48  ;;  %v4315_v14 = vld [vmem:[#allocation4 + $0x18] sm:$0xff]  }
 0x85d   :  { %4055 = vmatmul.mubr.msk.bf16.vlgmr.msra.gmra.mxu0 %vm465_vm1, %v1123_v0  ;;  %v1025_v2 = vpack.c.bf16 %v1023_v62, %v1023_v62  ;;  %v4316_v62 = vld [vmem:[#allocation4 + $0x10] sm:$0xff]  }
 0x85e   :  { %4066 = vmatprep.mubr.msk.bf16.mxu0 %vm4644_vm0, %v4642_v4 }
 0x85f   :  { %4049 = vmatmul.mubr.msk.bf16.vlgmr.msra.gmra.mxu1 %vm558_vm3, %v1025_v2  ;;  %v4318_v2 = vld [vmem:[#allocation4] sm:$0xff]  }
 0x860   :  { %4059 = vmatpush3.bf16.xpose.msra.mxu1 %v1180_v3  ;;  %4060 = vmatprep.mubr.msk.bf16.mxu1 %vm4644_vm0, %v4642_v4 }
 0x861   :  { %4070 = vmatprep.subr.bf16.mxu1 %v4642_v4 }
 0x867   :  { %4061 = vmatmul.mubr.msk.bf16.vlgmr.msra.gmra.mxu1 %vm465_vm1, %v1173_v5 }
 0x868   :  { %4072 = vmatprep.mubr.msk.bf16.mxu1 %vm4644_vm0, %v4642_v4 }
 0x915   :  { %v1068_v8 = vpop.f32.mrf.mxu0 }
 0x917   :  { %v4044_v9 = vpop.f32.mrf.mxu0 }
 0x919   :  { %v1071_v10 = vpop.f32.mrf.mxu0 }
 0x91b   :  { %v4045_v7 = vpop.f32.mrf.mxu0 }
 0x91d   :  { %v1166_v12 = vpop.f32.mrf.mxu0 }
 0x91e   :  { %v1167_v15 = vadd.f32 %v1166_v12, %v4841_v28 }
 0x91f   :  { %v1116_v16 = vpop.f32.mrf.mxu1  ;;  %v4056_v17 = vpop.f32.mrf.mxu0 }
 0x920   :  { %v1222_v22 = vsel %vm558_vm3, %v1167_v15, -inf  ;;  %v4254_v39 = vpack.i.bf16 %v1116_v16, %v1068_v8 }
 0x921   :  { %1223 = vmax.xlane.f32.xlu0 %v1222_v22  ;;  %v4050_v24 = vpop.f32.mrf.mxu1  ;;  %v1169_v25 = vpop.f32.mrf.mxu0 }
 0x923   :  { %v1119_v29 = vpop.f32.mrf.mxu1  ;;  %v4057_v30 = vpop.f32.mrf.mxu0 }
 0x925   :  { %v4051_v31 = vpop.f32.mrf.mxu1 }
 0x927   :  { %v1216_v32 = vpop.f32.mrf.mxu1 }
 0x928   :  { %v1217_v33 = vadd.f32 %v1216_v32, %v4846_v36 }
 0x929   :  { %v4062_v34 = vpop.f32.mrf.mxu1 }
 0x92a   :  { %v1225_v35 = vsel %vm558_vm3, %v1217_v33, -inf }
 0x92b   :  { %1226 = vmax.xlane.f32.xlu1 %v1225_v35  ;;  %v1219_v37 = vpop.f32.mrf.mxu1 }
 0x92d   :  { %v4063_v38 = vpop.f32.mrf.mxu1 }
 0x93c   :  { %1294 = vrot.lane.b32.xlu1 %v4867_v1, %s4647_s17 }
 0x940   :  { %4250 = vrot.lane.b32.xlu1 %v4249_v23, %s4647_s17 }
 0x944   :  { %4255 = vrot.lane.b32.xlu1 %v4254_v39, %s4632_s24 }
 0x9aa   :  { %v1224_v40 = vpop.xlane.xlu0 %1223 }
 0x9ab   :  { %v1228_v41 = vsub.f32 %v1167_v15, %v1224_v40 }
 0x9ad   :  { %v1230_v42 = vmul.f32 1.442695, %v1228_v41 }
 0x9af   :  { %4467 = vpow2.f32 %v1230_v42 }
 0x9b4   :  { %v1227_v43 = vpop.xlane.xlu1 %1226 }
 0x9b5   :  { %v1229_v44 = vsub.f32 %v1217_v33, %v1227_v43 }
 0x9b7   :  { %v1232_v45 = vmul.f32 1.442695, %v1229_v44 }
 0x9b8   :  { %v1295_v46 = vpop.permute.xlu1 %1294 }
 0x9b9   :  { %4469 = vpow2.f32 %v1232_v45  ;;  %v1300_v47 = vsel %vm586_vm2, %v1295_v46, 0  ;;  %v4524_v46 = vld [vmem:[%s5357_s21 + $0x8] sm:$0xff] }
 0x9ba   :  { %4071 = vmatpush3.bf16.msra.mxu1 %v1300_v47 }
 0x9bc   :  { %v4468_v1 = vpop.eup %4467  ;;  %v4251_v16 = vpop.permute.xlu1 %4250 }
 0x9bd   :  { %v1234_v6 = vsel %vm558_vm3, %v4468_v1, 0.0  ;;  %v4253_v22 = vunpack.i.h.bf16 %v4251_v16  ;;  %v4252_v24 = vunpack.i.l.bf16 %v4251_v16  ;;  %v4348_v16 = vld [vmem:[#allocation7 + $0x28] sm:$0xff]  }
 0x9be   :  { %1235 = vadd.xlane.f32.xlu0 %v1234_v6 }
 0x9bf   :  { %v1367_v31 = vsel %vm465_vm1, %v4887_v26, %v4253_v22  ;;  %v1366_v32 = vsel %vm465_vm1, %v4885_v21, %v4252_v24  ;;  %v3684_v26 = vld [vmem:[%s5345_s7] ss:$0 sm:$0xff]  ;;  %v4351_v24 = vld [vmem:[#allocation7 + $0x58] sm:$0xff]  }
 0x9c0   :  { %v4256_v17 = vpop.permute.xlu1 %4255  ;;  %v4523_v21 = vld [vmem:[%s5357_s21] sm:$0xff] }
 0x9c1   :  { %v4258_v25 = vunpack.i.h.bf16 %v4256_v17  ;;  %v4257_v29 = vunpack.i.l.bf16 %v4256_v17  ;;  %v4349_v17 = vld [vmem:[#allocation7 + $0x60] sm:$0xff]  }
 0x9c2   :  { %v4350_v22 = vld [vmem:[#allocation7 + $0x20] sm:$0xff]  }
 0x9c3   :  { %v1369_v35 = vsel %vm1368_vm4, %v1366_v32, %v4257_v29  ;;  %v1370_v37 = vsel %vm1368_vm4, %v1367_v31, %v4258_v25  ;;  %v4352_v25 = vld [vmem:[#allocation7 + $0x18] sm:$0xff]  }
 0x9c6   :  { %v4470_v11 = vpop.eup %4469 }
 0x9c7   :  { %v1237_v20 = vsel %vm558_vm3, %v4470_v11, 0.0 }
 0x9c8   :  { %1238 = vadd.xlane.f32.xlu0 %v1237_v20  ;;  %v4321_v20 = vld [vmem:[#allocation6 + $0x74] ss:$8 sps:$4 sm:$0xff]  }
 0x9c9   :  { %1640 = vmatprep.subr.bf16.mxu1 %v4321_v20  ;;  %v4357_v20 = vld [vmem:[#allocation7 + $0x40] sm:$0xff]  }
 0x9de   :  { %1246 = vrot.lane.b32.xlu0 %v4825_v18, %s4647_s17 }
 0xa47   :  { %v1236_v23 = vpop.xlane.xlu0 %1235 }
 0xa48   :  { %4471 = vrcp.f32 %v1236_v23 }
 0xa51   :  { %v1239_v13 = vpop.xlane.xlu0 %1238 }
 0xa52   :  { %4473 = vrcp.f32 %v1239_v13 }
 0xa55   :  { %v4472_v48 = vpop.eup %4471  ;;  %v1247_v19 = vpop.permute.xlu0 %1246 }
 0xa56   :  { %v1252_v49 = vsel %vm586_vm2, %v1247_v19, 0  ;;  %v1242_v50 = vmul.f32 %v4472_v48, %v4468_v1 }
 0xa57   :  { %4065 = vmatpush3.bf16.msra.mxu0 %v1252_v49 }
 0xa58   :  { %v1244_v51 = vpack.c.bf16 %v1242_v50, %v1242_v50  ;;  %4076 = vmatprep.subr.bf16.mxu0 %v4642_v4 }
 0xa5a   :  { %4067 = vmatmul.mubr.msk.bf16.vlgmr.msra.gmra.mxu0 %vm558_vm3, %v1244_v51 }
 0xa5b   :  { %4092 = vmatprep.mubr.msk.bf16.mxu0 %vm4644_vm0, %v4642_v4  ;;  %4077 = vmatpush3.bf16.msra.mxu0 %v4311_v56  ;;  %v4327_v56 = vld [vmem:[#allocation6 + $0x54] ss:$8 sps:$4 sm:$0xff]  }
 0xa5c   :  { %4078 = vmatprep.subr.bf16.mxu0 %v4642_v4 }
 0xa5f   :  { %v4474_v52 = vpop.eup %4473  ;;  %4079 = vmatpush3.bf16.msra.mxu0 %v4312_v58  ;;  %v4325_v58 = vld [vmem:[#allocation6 + $0x50] ss:$8 sps:$4 sm:$0xff]  }
 0xa60   :  { %v1243_v18 = vmul.f32 %v4474_v52, %v4470_v11  ;;  %4080 = vmatprep.subr.bf16.mxu0 %v4642_v4  ;;  %v4319_v11 = vld [vmem:[#allocation6 + $0x70] ss:$8 sps:$4 sm:$0xff]  }
 0xa62   :  { %v1245_v53 = vpack.c.bf16 %v1243_v18, %v1243_v18  ;;  %v4324_v18 = vld [vmem:[#allocation6 + $0x64] ss:$8 sps:$4 sm:$0xff]  }
 0xa63   :  { %4081 = vmatpush3.bf16.msra.mxu0 %v4313_v59  ;;  %v4328_v59 = vld [vmem:[#allocation6 + $0x40] ss:$8 sps:$4 sm:$0xff]  }
 0xa64   :  { %4073 = vmatmul.mubr.msk.bf16.vlgmr.msra.gmra.mxu1 %vm558_vm3, %v1245_v53  ;;  %4082 = vmatprep.subr.bf16.mxu0 %v4642_v4  ;;  %v4322_v53 = vld [vmem:[#allocation6 + $0x60] ss:$8 sps:$4 sm:$0xff]  }
 0xa65   :  { %1672 = vmatprep.mubr.bf16.mxu1 %v4643_v27  ;;  %1641 = vmatpush1.bf16.msra.mxu1 %v4319_v11  ;;  %v4356_v11 = vld [vmem:[#allocation7 + $0x8] sm:$0xff]  }
 0xa66   :  { %1642 = vmatprep.subr.bf16.mxu1 %v4324_v18 }
 0xa67   :  { %4083 = vmatpush3.bf16.msra.mxu0 %v4314_v60  ;;  %v4330_v60 = vld [vmem:[#allocation6 + $0x44] ss:$8 sps:$4 sm:$0xff]  }
 0xa68   :  { %4084 = vmatprep.subr.bf16.mxu0 %v4642_v4 }
 0xa69   :  { %1643 = vmatpush1.bf16.msra.mxu1 %v4322_v53 }
 0xa6a   :  { %1644 = vmatprep.subr.bf16.mxu1 %v4327_v56 }
 0xa6b   :  { %4085 = vmatpush3.bf16.msra.mxu0 %v4315_v14  ;;  %v4333_v14 = vld [vmem:[#allocation6 + $0x34] ss:$8 sps:$4 sm:$0xff]  }
 0xa6c   :  { %4086 = vmatprep.subr.bf16.mxu0 %v4642_v4 }
 0xa6d   :  { %1645 = vmatpush1.bf16.msra.mxu1 %v4325_v58 }
 0xa6e   :  { %1646 = vmatprep.subr.bf16.mxu1 %v4330_v60 }
 0xa6f   :  { %4087 = vmatpush3.bf16.msra.mxu0 %v4316_v62  ;;  %v4331_v62 = vld [vmem:[#allocation6 + $0x30] ss:$8 sps:$4 sm:$0xff]  }
 0xa70   :  { %4088 = vmatprep.subr.bf16.mxu0 %v4642_v4 }
 0xa71   :  { %1647 = vmatpush1.bf16.msra.mxu1 %v4328_v59 }
 0xa72   :  { %1648 = vmatprep.subr.bf16.mxu1 %v4333_v14 }
 0xa73   :  { %4089 = vmatpush3.bf16.msra.mxu0 %v4317_v63  ;;  %v4336_v63 = vld [vmem:[#allocation6 + $0x24] ss:$8 sps:$4 sm:$0xff]  }
 0xa74   :  { %4090 = vmatprep.subr.bf16.mxu0 %v4642_v4 }
 0xa75   :  { %1649 = vmatpush1.bf16.msra.mxu1 %v4331_v62 }
 0xa76   :  { %1650 = vmatprep.subr.bf16.mxu1 %v4336_v63 }
 0xa77   :  { %4091 = vmatpush3.bf16.msra.mxu0 %v4318_v2  ;;  %v4339_v2 = vld [vmem:[#allocation6 + $0x14] ss:$8 sps:$4 sm:$0xff]  }
 0xb1a   :  { %v1288_v0 = vpop.f32.mrf.mxu0 }
 0xb1c   :  { %v4068_v3 = vpop.f32.mrf.mxu0 }
 0xb1d   :  { %v4337_v3 = vld [vmem:[#allocation6 + $0x10] ss:$8 sps:$4 sm:$0xff]  }
 0xb1e   :  { %v1291_v5 = vpop.f32.mrf.mxu0 }
 0xb1f   :  { %v4342_v5 = vld [vmem:[#allocation6 + $0x4] ss:$8 sps:$4 sm:$0xff]  }
 0xb20   :  { %v4069_v8 = vpop.f32.mrf.mxu0 }
 0xb21   :  { %v4340_v8 = vld [vmem:[#allocation6] ss:$8 sps:$4 sm:$0xff]  }
 0xb24   :  { %v1336_v9 = vpop.f32.mrf.mxu1 }
 0xb25   :  { %v4259_v10 = vpack.i.bf16 %v1336_v9, %v1288_v0  ;;  %v4334_v0 = vld [vmem:[#allocation6 + $0x20] ss:$8 sps:$4 sm:$0xff]   ;;  %v4343_v9 = vld [vmem:[#allocation7 + $0x78] sm:$0xff]  }
 0xb26   :  { %v4074_v7 = vpop.f32.mrf.mxu1  ;;  %1651 = vmatpush1.bf16.msra.mxu1 %v4334_v0  ;;  %3866 = vmatprep.subr.bf16.mxu0 %v4343_v9 }
 0xb27   :  { %4260 = vrot.lane.b32.xlu0 %v4259_v10, %s4646_s1  ;;  %1652 = vmatprep.subr.bf16.mxu1 %v4339_v2  ;;  %v4344_v10 = vld [vmem:[#allocation7 + $0x38] sm:$0xff]   ;;  %v4345_v7 = vld [vmem:[#allocation7 + $0x70] sm:$0xff]  }
 0xb28   :  { %v1339_v12 = vpop.f32.mrf.mxu1 }
 0xb29   :  { %v4346_v12 = vld [vmem:[#allocation7 + $0x30] sm:$0xff]  }
 0xb2a   :  { %v4075_v15 = vpop.f32.mrf.mxu1  ;;  %1653 = vmatpush1.bf16.msra.mxu1 %v4337_v3  ;;  %v3703_v3 = vld [vmem:[%s5351_s13] ss:$0 sm:$0xff] }
 0xb2b   :  { %1654 = vmatprep.subr.bf16.mxu1 %v4342_v5  ;;  %v4347_v15 = vld [vmem:[#allocation7 + $0x68] sm:$0xff]  }
 0xb2e   :  { %1655 = vmatpush1.bf16.msra.mxu1 %v4340_v8 }
 0xb99   :  { %v4261_v30 = vpop.permute.xlu0 %4260 }
 0xb9a   :  { %v4263_v33 = vunpack.i.h.bf16 %v4261_v30  ;;  %v4262_v34 = vunpack.i.l.bf16 %v4261_v30 }
 0xb9c   :  { %v1373_v38 = vsel %vm1371_vm5, %v1370_v37, %v4263_v33  ;;  %v1372_v39 = vsel %vm1371_vm5, %v1369_v35, %v4262_v34 }
 0xb9d   :  { %v1390_v40 = vpack.c.bf16 %v1373_v38, %v1372_v39  ;;  %v3685_v38 = vld [vmem:[%s5346_s8] ss:$0 sm:$0xff] }
 0xb9f   :  { %4093 = vmatmul.mubr.bf16.vlgmr.msra.gmra.mxu0 %v1390_v40 }
 0xba0   :  { %3867 = vmatpush3.bf16.msra.mxu0 %v4344_v10 }
 0xba1   :  { %3868 = vmatprep.subr.bf16.mxu0 %v4345_v7 }
 0xba4   :  { %3869 = vmatpush3.bf16.msra.mxu0 %v4346_v12 }
 0xba5   :  { %3870 = vmatprep.subr.bf16.mxu0 %v4347_v15 }
 0xba8   :  { %3871 = vmatpush3.bf16.msra.mxu0 %v4348_v16 }
 0xba9   :  { %3872 = vmatprep.subr.bf16.mxu0 %v4349_v17 }
 0xbac   :  { %3873 = vmatpush3.bf16.msra.mxu0 %v4350_v22  ;;  %v4359_v22 = vld [vmem:[#allocation2 + $0x168] ss:$12 sps:$4 sm:$0xff]  }
 0xbad   :  { %3874 = vmatprep.subr.bf16.mxu0 %v4351_v24  ;;  %v4361_v24 = vld [vmem:[#allocation2 + $0x16c] ss:$12 sps:$4 sm:$0xff]  }
 0xbae   :  { %2089 = vmatprep.subr.bf16.mxu1 %v4361_v24 }
 0xbb0   :  { %3875 = vmatpush3.bf16.msra.mxu0 %v4352_v25  ;;  %v4362_v25 = vld [vmem:[#allocation2 + $0x170] ss:$12 sps:$4 sm:$0xff]  }
 0xc5f   :  { %v1473_v41 = vpop.f32.mrf.mxu0 }
 0xc60   :  { %v1480_v42 = vadd.f32 %v4523_v21, %v1473_v41 }
 0xc61   :  { %v4094_v43 = vpop.f32.mrf.mxu0 }
 0xc62   :  { %v5014_v44 = vadd.f32 %v3684_v26, %v1480_v42 }
 0xc63   :  { %v1476_v45 = vpop.f32.mrf.mxu0 }
 0xc64   :  { %v1481_v47 = vadd.f32 %v4524_v46, %v1476_v45  ;;  %1493 = vadd.xlane.f32.xlu1 %v5014_v44  ;;  %v4353_v46 = vld [vmem:[#allocation7 + $0x50] sm:$0xff]  }
 0xc65   :  { %v4095_v1 = vpop.f32.mrf.mxu0  ;;  %3876 = vmatprep.subr.bf16.mxu0 %v4353_v46  ;;  %v4378_v46 = vld [vmem:[#allocation2 + $0x110] ss:$12 sps:$4 sm:$0xff]  }
 0xc66   :  { %v5020_v6 = vadd.f32 %v3684_v26, %v1481_v47  ;;  %v3686_v26 = vld [vmem:[%s5347_s9] ss:$0 sm:$0xff]  ;;  %v4354_v47 = vld [vmem:[#allocation7 + $0x10] sm:$0xff]   ;;  %v4355_v1 = vld [vmem:[#allocation7 + $0x48] sm:$0xff]  }
 0xc67   :  { %3877 = vmatpush3.bf16.msra.mxu0 %v4354_v47  ;;  %v4381_v47 = vld [vmem:[#allocation2 + $0xf4] ss:$12 sps:$4 sm:$0xff]  }
 0xc68   :  { %1495 = vadd.xlane.f32.xlu0 %v5020_v6  ;;  %3878 = vmatprep.subr.bf16.mxu0 %v4355_v1  ;;  %v4379_v1 = vld [vmem:[#allocation2 + $0xf0] ss:$12 sps:$4 sm:$0xff]  }
 0xc6b   :  { %3879 = vmatpush3.bf16.msra.mxu0 %v4356_v11  ;;  %v4382_v11 = vld [vmem:[#allocation2 + $0xf8] ss:$12 sps:$4 sm:$0xff]  }
 0xc6c   :  { %3880 = vmatprep.subr.bf16.mxu0 %v4357_v20  ;;  %v4385_v20 = vld [vmem:[#allocation2 + $0xdc] ss:$12 sps:$4 sm:$0xff]  }
 0xced   :  { %v1494_v23 = vpop.xlane.xlu1 %1493 }
 0xcee   :  { %v1497_v13 = vmul.f32 0.0078125, %v1494_v23  ;;  %v4358_v23 = vld [vmem:[#allocation7] sm:$0xff]  }
 0xcef   :  { %3881 = vmatpush3.bf16.msra.mxu0 %v4358_v23  ;;  %v4383_v23 = vld [vmem:[#allocation2 + $0xd8] ss:$12 sps:$4 sm:$0xff]  }
 0xcf0   :  { %v5024_v48 = vsub.f32 %v5014_v44, %v1497_v13  ;;  %4096 = vmatprep.subr.bf16.mxu0 %v4642_v4  ;;  %v1548_v13 = vld [vmem:[%s5349_s11] sm:$0x3] }
 0xcf1   :  { %v1496_v19 = vpop.xlane.xlu0 %1495 }
 0xcf2   :  { %v1498_v49 = vmul.f32 0.0078125, %v1496_v19  ;;  %v1501_v50 = vmul.f32 %v5024_v48, %v5024_v48  ;;  %v1557_v19 = vrot.slane %v1548_v13, %v4794_v55 }
 0xcf4   :  { %v5029_v51 = vsub.f32 %v5020_v6, %v1498_v49  ;;  %1503 = vadd.xlane.f32.xlu0 %v1501_v50  ;;  %v1553_v49 = vrot.slane %v1548_v13, %v4802_v61  ;;  %v4386_v13 = vld [vmem:[#allocation2 + $0xe0] ss:$12 sps:$4 sm:$0xff]  }
 0xcf6   :  { %v1502_v52 = vmul.f32 %v5029_v51, %v5029_v51 }
 0xcf8   :  { %1505 = vadd.xlane.f32.xlu0 %v1502_v52 }
 0xd7d   :  { %v1504_v29 = vpop.xlane.xlu0 %1503 }
 0xd7e   :  { %v1507_v30 = vmul.f32 0.0078125, %v1504_v29 }
 0xd80   :  { %v1509_v31 = vadd.f32 1e-05, %v1507_v30 }
 0xd81   :  { %v1506_v32 = vpop.xlane.xlu0 %1505 }
 0xd82   :  { %4475 = vrsqrt.f32 %v1509_v31  ;;  %v1508_v33 = vmul.f32 0.0078125, %v1506_v32 }
 0xd84   :  { %v1510_v34 = vadd.f32 1e-05, %v1508_v33 }
 0xd86   :  { %4477 = vrsqrt.f32 %v1510_v34 }
 0xd8f   :  { %v4476_v35 = vpop.eup %4475 }
 0xd90   :  { %v1513_v37 = vmul.f32 %v4476_v35, %v5024_v48  ;;  %v4365_v35 = vld [vmem:[#allocation2 + $0x154] ss:$12 sps:$4 sm:$0xff]  }
 0xd92   :  { %v1521_v41 = vmul.f32 %v3685_v38, %v1513_v37  ;;  %v4363_v37 = vld [vmem:[#allocation2 + $0x150] ss:$12 sps:$4 sm:$0xff]  }
 0xd93   :  { %v4478_v39 = vpop.eup %4477 }
 0xd94   :  { %v1514_v40 = vmul.f32 %v4478_v39, %v5029_v51  ;;  %v1529_v42 = vadd.f32 %v3686_v26, %v1521_v41  ;;  %v4369_v39 = vld [vmem:[#allocation2 + $0x13c] ss:$12 sps:$4 sm:$0xff]   ;;  %v4370_v41 = vld [vmem:[#allocation2 + $0x140] ss:$12 sps:$4 sm:$0xff]  }
 0xd96   :  { %v1522_v21 = vmul.f32 %v3685_v38, %v1514_v40  ;;  %v4366_v38 = vld [vmem:[#allocation2 + $0x158] ss:$12 sps:$4 sm:$0xff]  }
 0xd97   :  { %v4367_v40 = vld [vmem:[#allocation2 + $0x138] ss:$12 sps:$4 sm:$0xff]  }
 0xd98   :  { %v1530_v43 = vadd.f32 %v3686_v26, %v1522_v21  ;;  %v4371_v26 = vld [vmem:[#allocation2 + $0x120] ss:$12 sps:$4 sm:$0xff]   ;;  %v4373_v21 = vld [vmem:[#allocation2 + $0x124] ss:$12 sps:$4 sm:$0xff]  }
 0xd9a   :  { %v1547_v45 = vpack.c.bf16 %v1530_v43, %v1529_v42  ;;  %v4374_v42 = vld [vmem:[#allocation2 + $0x128] ss:$12 sps:$4 sm:$0xff]   ;;  %v4377_v43 = vld [vmem:[#allocation2 + $0x10c] ss:$12 sps:$4 sm:$0xff]  }
 0xd9c   :  { %1673 = vmatmul.mubr.bf16.vlgmr.msra.gmra.mxu1 %v1547_v45  ;;  %v4375_v45 = vld [vmem:[#allocation2 + $0x108] ss:$12 sps:$4 sm:$0xff]  }
 0xd9d   :  { %2121 = vmatprep.mubr.bf16.mxu1 %v4643_v27  ;;  %2090 = vmatpush1.bf16.msra.mxu1 %v4359_v22 }
 0xd9e   :  { %2091 = vmatprep.subr.bf16.mxu1 %v4365_v35 }
 0xda1   :  { %2092 = vmatpush1.bf16.msra.mxu1 %v4363_v37 }
 0xda2   :  { %2093 = vmatprep.subr.bf16.mxu1 %v4369_v39 }
 0xda5   :  { %2094 = vmatpush1.bf16.msra.mxu1 %v4367_v40 }
 0xda6   :  { %2095 = vmatprep.subr.bf16.mxu1 %v4373_v21 }
 0xda9   :  { %2096 = vmatpush1.bf16.msra.mxu1 %v4371_v26 }
 0xdaa   :  { %2097 = vmatprep.subr.bf16.mxu1 %v4377_v43 }
 0xdad   :  { %2098 = vmatpush1.bf16.msra.mxu1 %v4375_v45 }
 0xdae   :  { %2099 = vmatprep.subr.bf16.mxu1 %v4381_v47 }
 0xdb1   :  { %2100 = vmatpush1.bf16.msra.mxu1 %v4379_v1 }
 0xdb2   :  { %2101 = vmatprep.subr.bf16.mxu1 %v4385_v20 }
 0xdb5   :  { %2102 = vmatpush1.bf16.msra.mxu1 %v4383_v23 }
 0xe5c   :  { %v1674_v48 = vpop.f32.mrf.mxu1 }
 0xe5d   :  { %v1675_v53 = vadd.f32 %v1674_v48, %v1553_v49  ;;  %v4389_v48 = vld [vmem:[#allocation2 + $0xc4] ss:$12 sps:$4 sm:$0xff]  }
 0xe5e   :  { %v1676_v50 = vpop.f32.mrf.mxu1  ;;  %2103 = vmatprep.subr.bf16.mxu1 %v4389_v48 }
 0xe5f   :  { %v1677_v52 = vadd.f32 %v1676_v50, %v1557_v19  ;;  %v1683_v62 = vmax.f32 %v1675_v53, 0.0 }
 0xe60   :  { %v1678_v51 = vpop.f32.mrf.mxu1 }
 0xe61   :  { %v1679_v18 = vadd.f32 %v1678_v51, %v1553_v49  ;;  %v1684_v60 = vmax.f32 %v1677_v52, 0.0  ;;  %v4390_v49 = vld [vmem:[#allocation2 + $0xc8] ss:$12 sps:$4 sm:$0xff]  }
 0xe62   :  { %v1680_v56 = vpop.f32.mrf.mxu1 }
 0xe63   :  { %v1681_v58 = vadd.f32 %v1680_v56, %v1557_v19  ;;  %v1685_v59 = vmax.f32 %v1679_v18, 0.0  ;;  %v4387_v19 = vld [vmem:[#allocation2 + $0xc0] ss:$12 sps:$4 sm:$0xff]  }
 0xe64   :  { %2104 = vmatpush1.bf16.msra.mxu1 %v4387_v19 }
 0xe65   :  { %v1686_v14 = vmax.f32 %v1681_v58, 0.0  ;;  %v1719_v0 = vpack.c.bf16 %v1685_v59, %v1683_v62  ;;  %4116 = vmatprep.subr.bf16.mxu1 %v4642_v4 }
 0xe67   :  { %v1720_v63 = vpack.c.bf16 %v1686_v14, %v1684_v60  ;;  %v3722_v60 = vld [vmem:[%s5340_s2 + $0x1] ss:$0 sm:$0xff] }
 0xe69   :  { %1856 = vmatprep.mubr.bf16.mxu0 %v1720_v63 }
 0xe6a   :  { %1857 = vmatmul.mubr.bf16.vlgmr.msra.gmra.mxu0 %v1719_v0  ;;  %v3723_v0 = vld [vmem:[%s5341_s3 + $0x1] ss:$0 sm:$0xff] }
 0xe6b   :  { %4112 = vmatprep.mubr.msk.bf16.mxu0 %vm4644_vm0, %v4642_v4  ;;  %4097 = vmatpush3.bf16.msra.mxu0 %v4362_v25 }
 0xe6c   :  { %4098 = vmatprep.subr.bf16.mxu0 %v4642_v4 }
 0xe6f   :  { %4099 = vmatpush3.bf16.msra.mxu0 %v4366_v38 }
 0xe70   :  { %4100 = vmatprep.subr.bf16.mxu0 %v4642_v4 }
 0xe73   :  { %4101 = vmatpush3.bf16.msra.mxu0 %v4370_v41 }
 0xe74   :  { %4102 = vmatprep.subr.bf16.mxu0 %v4642_v4 }
 0xe77   :  { %4103 = vmatpush3.bf16.msra.mxu0 %v4374_v42 }
 0xe78   :  { %4104 = vmatprep.subr.bf16.mxu0 %v4642_v4 }
 0xe7b   :  { %4105 = vmatpush3.bf16.msra.mxu0 %v4378_v46 }
 0xe7c   :  { %4106 = vmatprep.subr.bf16.mxu0 %v4642_v4 }
 0xe7f   :  { %4107 = vmatpush3.bf16.msra.mxu0 %v4382_v11 }
 0xe80   :  { %4108 = vmatprep.subr.bf16.mxu0 %v4642_v4 }
 0xe83   :  { %4109 = vmatpush3.bf16.msra.mxu0 %v4386_v13 }
 0xe84   :  { %4110 = vmatprep.subr.bf16.mxu0 %v4642_v4 }
 0xe87   :  { %4111 = vmatpush3.bf16.msra.mxu0 %v4390_v49 }
 0xe88   :  { %4140 = vmatprep.subr.bf16.mxu0 %v4642_v4 }
 0xf2a   :  { %v3882_v2 = vpop.f32.mrf.mxu0 }
 0xf2c   :  { %v3883_v5 = vpop.f32.mrf.mxu0 }
 0xf2d   :  { %v3884_v8 = vadd.f32 %v3883_v5, %v3882_v2 }
 0xf2e   :  { %v3885_v9 = vpop.f32.mrf.mxu0 }
 0xf2f   :  { %v1859_v10 = vadd.f32 %v3884_v8, %v3703_v3 }
 0xf30   :  { %v3886_v7 = vpop.f32.mrf.mxu0 }
 0xf31   :  { %v3887_v12 = vadd.f32 %v3886_v7, %v3885_v9  ;;  %v5054_v15 = vadd.f32 %v1859_v10, %v5014_v44  ;;  %v3724_v9 = vld [vmem:[%s5343_s5 + $0x3] sm:$0x7] }
 0xf32   :  { %v1953_v10 = vrot.slane %v3724_v9, %v4794_v55  ;;  %v1957_v24 = vrot.slane %v3724_v9, %v209_v57 }
 0xf33   :  { %v1862_v16 = vadd.f32 %v3887_v12, %v3703_v3  ;;  %1871 = vadd.xlane.f32.xlu1 %v5054_v15 }
 0xf35   :  { %v5058_v17 = vadd.f32 %v1862_v16, %v5020_v6 }
 0xf37   :  { %1873 = vadd.xlane.f32.xlu0 %v5058_v17 }
 0xfbc   :  { %v1872_v29 = vpop.xlane.xlu1 %1871 }
 0xfbd   :  { %v1875_v30 = vmul.f32 0.0078125, %v1872_v29 }
 0xfbf   :  { %v5063_v44 = vsub.f32 %v5054_v15, %v1875_v30 }
 0xfc0   :  { %v1874_v31 = vpop.xlane.xlu0 %1873 }
 0xfc1   :  { %v1876_v32 = vmul.f32 0.0078125, %v1874_v31  ;;  %v1879_v6 = vmul.f32 %v5063_v44, %v5063_v44 }
 0xfc3   :  { %v5068_v33 = vsub.f32 %v5058_v17, %v1876_v32  ;;  %1881 = vadd.xlane.f32.xlu1 %v1879_v6 }
 0xfc5   :  { %v1880_v34 = vmul.f32 %v5068_v33, %v5068_v33 }
 0xfc7   :  { %1883 = vadd.xlane.f32.xlu0 %v1880_v34 }
0x104c   :  { %v1882_v50 = vpop.xlane.xlu1 %1881 }
0x104d   :  { %v1885_v51 = vmul.f32 0.0078125, %v1882_v50 }
0x104f   :  { %v1887_v52 = vadd.f32 1e-05, %v1885_v51 }
0x1050   :  { %v1884_v18 = vpop.xlane.xlu0 %1883 }
0x1051   :  { %4479 = vrsqrt.f32 %v1887_v52  ;;  %v1886_v53 = vmul.f32 0.0078125, %v1884_v18 }
0x1053   :  { %v1888_v56 = vadd.f32 1e-05, %v1886_v53 }
0x1055   :  { %4481 = vrsqrt.f32 %v1888_v56 }
0x105e   :  { %v4480_v58 = vpop.eup %4479 }
0x105f   :  { %v1891_v59 = vmul.f32 %v4480_v58, %v5063_v44  ;;  %v1949_v44 = vrot.slane %v3724_v9, %v4802_v61 }
0x1061   :  { %v1899_v63 = vmul.f32 %v3722_v60, %v1891_v59 }
0x1062   :  { %v4482_v14 = vpop.eup %4481 }
0x1063   :  { %v1892_v62 = vmul.f32 %v4482_v14, %v5068_v33  ;;  %v1907_v3 = vadd.f32 %v3723_v0, %v1899_v63 }
0x1065   :  { %v1900_v2 = vmul.f32 %v3722_v60, %v1892_v62 }
0x1067   :  { %v1908_v5 = vadd.f32 %v3723_v0, %v1900_v2 }
0x1069   :  { %v1942_v8 = vpack.c.bf16 %v1908_v5, %v1907_v3 }
0x106b   :  { %2122 = vmatmul.mubr.bf16.vlgmr.msra.gmra.mxu1 %v1942_v8  ;;  %4113 = vmatmul.mubr.bf16.vlgmr.msra.gmra.mxu0 %v1942_v8 }
0x106c   :  { %4118 = vmatprep.mubr.msk.bf16.mxu1 %vm4644_vm0, %v4642_v4  ;;  %4142 = vmatprep.mubr.msk.bf16.mxu0 %vm4644_vm0, %v4642_v4 }
0x112b   :  { %v2123_v7 = vpop.f32.mrf.mxu1  ;;  %v2166_v12 = vpop.f32.mrf.mxu0 }
0x112c   :  { %v2124_v37 = vadd.f32 %v2123_v7, %v1949_v44  ;;  %v2167_v38 = vadd.f32 %v2166_v12, %v1957_v24 }
0x112d   :  { %v2125_v16 = vpop.f32.mrf.mxu1  ;;  %v4114_v22 = vpop.f32.mrf.mxu0 }
0x112e   :  { %v2126_v25 = vadd.f32 %v2125_v16, %v1953_v10  ;;  %v5108_v57 = vpack.c.bf16 %v2124_v37, %v2124_v37  ;;  %v5117_v41 = vpack.c.bf16 %v2167_v38, %v2167_v38 }
0x112f   :  { %v2127_v29 = vpop.f32.mrf.mxu1  ;;  %v2169_v30 = vpop.f32.mrf.mxu0 }
0x1130   :  { %v5099_v31 = vpack.c.bf16 %v2126_v25, %v2126_v25  ;;  %v5101_v32 = vadd.f32 %v2169_v30, %v1957_v24  ;;  %v2128_v40 = vadd.f32 %v2127_v29, %v1949_v44  ;;  %v2299_v21 = vsel %vm586_vm2, %v5117_v41, 0 }
0x1131   :  { %v2129_v6 = vpop.f32.mrf.mxu1  ;;  %v4115_v33 = vpop.f32.mrf.mxu0 }
0x1132   :  { %v2130_v34 = vadd.f32 %v2129_v6, %v1953_v10  ;;  %v2183_v35 = vsel %vm465_vm1, %v5099_v31, 0  ;;  %v5119_v26 = vpack.c.bf16 %v2128_v40, %v2128_v40  ;;  %v5149_v5 = vpack.c.bf16 %v5101_v32, %v5101_v32 }
0x1133   :  { %4117 = vmatpush3.bf16.xpose.msra.mxu1 %v2183_v35 }
0x1134   :  { %4122 = vmatprep.subr.bf16.mxu1 %v4642_v4  ;;  %v5106_v54 = vpack.c.bf16 %v2130_v34, %v2130_v34  ;;  %v2345_v10 = vsel %vm586_vm2, %v5149_v5, 0 }
0x1136   :  { %v2229_v39 = vsel %vm465_vm1, %v5106_v54, 0 }
0x113a   :  { %4119 = vmatmul.mubr.msk.bf16.vlgmr.msra.gmra.mxu1 %vm465_vm1, %v5108_v57 }
0x113b   :  { %4123 = vmatpush3.bf16.xpose.msra.mxu1 %v2229_v39  ;;  %4124 = vmatprep.mubr.msk.bf16.mxu1 %vm4644_vm0, %v4642_v4 }
0x113c   :  { %4128 = vmatprep.subr.bf16.mxu1 %v4642_v4 }
0x1142   :  { %4125 = vmatmul.mubr.msk.bf16.vlgmr.msra.gmra.mxu1 %vm465_vm1, %v5119_v26 }
0x1143   :  { %4129 = vmatpush3.bf16.msra.mxu1 %v2299_v21  ;;  %4130 = vmatprep.mubr.msk.bf16.mxu1 %vm4644_vm0, %v4642_v4 }
0x1144   :  { %4134 = vmatprep.subr.bf16.mxu1 %v4642_v4 }
0x11fa   :  { %v2219_v42 = vpop.f32.mrf.mxu1 }
0x11fb   :  { %v2220_v43 = vadd.f32 %v2219_v42, %v4841_v28 }
0x11fc   :  { %v4120_v45 = vpop.f32.mrf.mxu1 }
0x11fd   :  { %v2271_v46 = vsel %vm558_vm3, %v2220_v43, -inf }
0x11fe   :  { %2272 = vmax.xlane.f32.xlu1 %v2271_v46  ;;  %v2222_v47 = vpop.f32.mrf.mxu1 }
0x1200   :  { %v4121_v1 = vpop.f32.mrf.mxu1 }
0x1202   :  { %v2265_v11 = vpop.f32.mrf.mxu1 }
0x1203   :  { %v2266_v20 = vadd.f32 %v2265_v11, %v4846_v36 }
0x1204   :  { %v4126_v23 = vpop.f32.mrf.mxu1 }
0x1205   :  { %v2274_v13 = vsel %vm558_vm3, %v2266_v20, -inf }
0x1206   :  { %2275 = vmax.xlane.f32.xlu0 %v2274_v13  ;;  %v2268_v48 = vpop.f32.mrf.mxu1 }
0x1208   :  { %v4127_v19 = vpop.f32.mrf.mxu1 }
0x1287   :  { %v2273_v49 = vpop.xlane.xlu1 %2272 }
0x1288   :  { %v2277_v50 = vsub.f32 %v2220_v43, %v2273_v49 }
0x128a   :  { %v2279_v51 = vmul.f32 1.442695, %v2277_v50 }
0x128c   :  { %4483 = vpow2.f32 %v2279_v51 }
0x128f   :  { %v2276_v52 = vpop.xlane.xlu0 %2275 }
0x1290   :  { %v2278_v18 = vsub.f32 %v2266_v20, %v2276_v52 }
0x1292   :  { %v2281_v53 = vmul.f32 1.442695, %v2278_v18 }
0x1294   :  { %4485 = vpow2.f32 %v2281_v53 }
0x1299   :  { %v4484_v56 = vpop.eup %4483 }
0x129a   :  { %v2283_v58 = vsel %vm558_vm3, %v4484_v56, 0.0 }
0x129b   :  { %2284 = vadd.xlane.f32.xlu1 %v2283_v58 }
0x12a1   :  { %v4486_v59 = vpop.eup %4485 }
0x12a2   :  { %v2286_v60 = vsel %vm558_vm3, %v4486_v59, 0.0 }
0x12a3   :  { %2287 = vadd.xlane.f32.xlu0 %v2286_v60 }
0x12ac   :  { %2391 = vrot.lane.b32.xlu1 %v5099_v31, %s4646_s1 }
0x12b0   :  { %2388 = vrot.lane.b32.xlu1 %v5108_v57, %s4646_s1 }
0x12b4   :  { %2440 = vrot.lane.b32.xlu1 %v5119_v26, %s4646_s1 }
0x12b9   :  { %2443 = vrot.lane.b32.xlu0 %v5106_v54, %s4646_s1 }
0x1324   :  { %v2285_v14 = vpop.xlane.xlu1 %2284 }
0x1325   :  { %4487 = vrcp.f32 %v2285_v14 }
0x1328   :  { %v2392_v62 = vpop.permute.xlu1 %2391 }
0x1329   :  { %v2397_v63 = vsel %vm465_vm1, %v2392_v62, 0 }
0x132a   :  { %4141 = vmatpush3.bf16.xpose.msra.mxu0 %v2397_v63 }
0x132b   :  { %4152 = vmatprep.subr.bf16.mxu0 %v4642_v4 }
0x132c   :  { %v2288_v0 = vpop.xlane.xlu0 %2287  ;;  %v2389_v2 = vpop.permute.xlu1 %2388 }
0x132d   :  { %4489 = vrcp.f32 %v2288_v0 }
0x1330   :  { %v2444_v16 = vpop.permute.xlu0 %2443  ;;  %v2441_v25 = vpop.permute.xlu1 %2440 }
0x1331   :  { %4143 = vmatmul.mubr.msk.bf16.vlgmr.msra.gmra.mxu0 %vm465_vm1, %v2389_v2  ;;  %v2449_v24 = vsel %vm465_vm1, %v2444_v16, 0 }
0x1332   :  { %v4488_v3 = vpop.eup %4487  ;;  %4154 = vmatprep.mubr.msk.bf16.mxu0 %vm4644_vm0, %v4642_v4 }
0x1333   :  { %v2291_v8 = vmul.f32 %v4488_v3, %v4484_v56 }
0x1335   :  { %v2293_v9 = vpack.c.bf16 %v2291_v8, %v2291_v8 }
0x1337   :  { %4131 = vmatmul.mubr.msk.bf16.vlgmr.msra.gmra.mxu1 %vm558_vm3, %v2293_v9 }
0x1338   :  { %4135 = vmatpush3.bf16.msra.mxu1 %v2345_v10  ;;  %4136 = vmatprep.mubr.msk.bf16.mxu1 %vm4644_vm0, %v4642_v4 }
0x1339   :  { %4146 = vmatprep.subr.bf16.mxu1 %v4642_v4 }
0x133a   :  { %v4490_v7 = vpop.eup %4489 }
0x133b   :  { %v2292_v12 = vmul.f32 %v4490_v7, %v4486_v59 }
0x133d   :  { %v2294_v22 = vpack.c.bf16 %v2292_v12, %v2292_v12 }
0x133f   :  { %4137 = vmatmul.mubr.msk.bf16.vlgmr.msra.gmra.mxu1 %vm558_vm3, %v2294_v22 }
0x1340   :  { %4147 = vmatpush3.bf16.xpose.msra.mxu1 %v2449_v24  ;;  %4148 = vmatprep.mubr.msk.bf16.mxu1 %vm4644_vm0, %v4642_v4 }
0x1341   :  { %4158 = vmatprep.subr.bf16.mxu1 %v4642_v4 }
0x1347   :  { %4149 = vmatmul.mubr.msk.bf16.vlgmr.msra.gmra.mxu1 %vm465_vm1, %v2441_v25 }
0x1348   :  { %4160 = vmatprep.mubr.msk.bf16.mxu1 %vm4644_vm0, %v4642_v4 }
0x13f1   :  { %v2433_v29 = vpop.f32.mrf.mxu0 }
0x13f2   :  { %v2434_v30 = vadd.f32 %v2433_v29, %v4841_v28 }
0x13f3   :  { %v4144_v44 = vpop.f32.mrf.mxu0 }
0x13f4   :  { %v2491_v32 = vsel %vm558_vm3, %v2434_v30, -inf }
0x13f5   :  { %2492 = vmax.xlane.f32.xlu1 %v2491_v32  ;;  %v2436_v6 = vpop.f32.mrf.mxu0 }
0x13f7   :  { %v5167_v33 = vpop.f32.mrf.mxu1  ;;  %v4145_v34 = vpop.f32.mrf.mxu0 }
0x13f9   :  { %v4132_v35 = vpop.f32.mrf.mxu1 }
0x13fb   :  { %v2338_v37 = vpop.f32.mrf.mxu1 }
0x13fd   :  { %v4133_v38 = vpop.f32.mrf.mxu1 }
0x13ff   :  { %v5169_v39 = vpop.f32.mrf.mxu1 }
0x1401   :  { %v4138_v40 = vpop.f32.mrf.mxu1 }
0x1403   :  { %v2384_v21 = vpop.f32.mrf.mxu1 }
0x1405   :  { %v4139_v42 = vpop.f32.mrf.mxu1 }
0x1406   :  { %2516 = vrot.lane.b32.xlu1 %v5117_v41, %s4646_s1 }
0x1407   :  { %v2485_v43 = vpop.f32.mrf.mxu1 }
0x1408   :  { %v2486_v45 = vadd.f32 %v2485_v43, %v4846_v36 }
0x1409   :  { %v4150_v46 = vpop.f32.mrf.mxu1 }
0x140a   :  { %2615 = vrot.lane.b32.xlu1 %v5099_v31, %s4632_s24  ;;  %v2494_v47 = vsel %vm558_vm3, %v2486_v45, -inf }
0x140b   :  { %2495 = vmax.xlane.f32.xlu0 %v2494_v47  ;;  %v2488_v1 = vpop.f32.mrf.mxu1 }
0x140d   :  { %v4151_v11 = vpop.f32.mrf.mxu1 }
0x140e   :  { %2665 = vrot.lane.b32.xlu1 %v5106_v54, %s4632_s24 }
0x1412   :  { %2613 = vrot.lane.b32.xlu1 %v5108_v57, %s4632_s24 }
0x147e   :  { %v2493_v20 = vpop.xlane.xlu1 %2492 }
0x147f   :  { %v2497_v23 = vsub.f32 %v2434_v30, %v2493_v20 }
0x1481   :  { %v2499_v13 = vmul.f32 1.442695, %v2497_v23 }
0x1482   :  { %v2517_v48 = vpop.permute.xlu1 %2516 }
0x1483   :  { %4491 = vpow2.f32 %v2499_v13  ;;  %v2522_v19 = vsel %vm586_vm2, %v2517_v48, 0 }
0x1484   :  { %4153 = vmatpush3.bf16.msra.mxu0 %v2522_v19 }
0x1485   :  { %4164 = vmatprep.subr.bf16.mxu0 %v4642_v4 }
0x1486   :  { %v2616_v60 = vpop.permute.xlu1 %2615 }
0x1487   :  { %v2621_v63 = vsel %vm465_vm1, %v2616_v60, 0 }
0x148a   :  { %v2666_v0 = vpop.permute.xlu1 %2665 }
0x148b   :  { %v2671_v16 = vsel %vm465_vm1, %v2666_v0, 0 }
0x148e   :  { %v2614_v3 = vpop.permute.xlu1 %2613 }
0x1490   :  { %v4492_v49 = vpop.eup %4491 }
0x1491   :  { %v2503_v50 = vsel %vm558_vm3, %v4492_v49, 0.0 }
0x1492   :  { %2504 = vadd.xlane.f32.xlu0 %v2503_v50 }
0x1494   :  { %v2496_v51 = vpop.xlane.xlu0 %2495 }
0x1495   :  { %v2498_v52 = vsub.f32 %v2486_v45, %v2496_v51 }
0x1497   :  { %v2501_v18 = vmul.f32 1.442695, %v2498_v52 }
0x1499   :  { %4493 = vpow2.f32 %v2501_v18 }
0x14a6   :  { %v4494_v53 = vpop.eup %4493 }
0x14a7   :  { %v2506_v56 = vsel %vm558_vm3, %v4494_v53, 0.0 }
0x14a8   :  { %2507 = vadd.xlane.f32.xlu0 %v2506_v56 }
0x14be   :  { %2565 = vrot.lane.b32.xlu0 %v5149_v5, %s4646_s1 }
0x14c2   :  { %2663 = vrot.lane.b32.xlu0 %v5119_v26, %s4632_s24 }
0x151b   :  { %v2505_v58 = vpop.xlane.xlu0 %2504 }
0x151c   :  { %4495 = vrcp.f32 %v2505_v58 }
0x1529   :  { %v4496_v59 = vpop.eup %4495 }
0x152a   :  { %v2511_v14 = vmul.f32 %v4496_v59, %v4492_v49 }
0x152c   :  { %v2513_v62 = vpack.c.bf16 %v2511_v14, %v2511_v14 }
0x152e   :  { %4155 = vmatmul.mubr.msk.bf16.vlgmr.msra.gmra.mxu0 %vm558_vm3, %v2513_v62 }
0x152f   :  { %4165 = vmatpush3.bf16.xpose.msra.mxu0 %v2621_v63  ;;  %4166 = vmatprep.mubr.msk.bf16.mxu0 %vm4644_vm0, %v4642_v4 }
0x1530   :  { %4176 = vmatprep.subr.bf16.mxu0 %v4642_v4 }
0x1531   :  { %v2508_v2 = vpop.xlane.xlu0 %2507 }
0x1532   :  { %4497 = vrcp.f32 %v2508_v2 }
0x1535   :  { %v2566_v8 = vpop.permute.xlu0 %2565 }
0x1536   :  { %v2571_v9 = vsel %vm586_vm2, %v2566_v8, 0  ;;  %4167 = vmatmul.mubr.msk.bf16.vlgmr.msra.gmra.mxu0 %vm465_vm1, %v2614_v3 }
0x1537   :  { %4159 = vmatpush3.bf16.msra.mxu1 %v2571_v9  ;;  %4178 = vmatprep.mubr.msk.bf16.mxu0 %vm4644_vm0, %v4642_v4 }
0x1538   :  { %4170 = vmatprep.subr.bf16.mxu1 %v4642_v4 }
0x1539   :  { %v2664_v22 = vpop.permute.xlu0 %2663 }
0x153f   :  { %v4498_v10 = vpop.eup %4497 }
0x1540   :  { %v2512_v7 = vmul.f32 %v4498_v10, %v4494_v53 }
0x1542   :  { %v2514_v12 = vpack.c.bf16 %v2512_v7, %v2512_v7 }
0x1544   :  { %4161 = vmatmul.mubr.msk.bf16.vlgmr.msra.gmra.mxu1 %vm558_vm3, %v2514_v12 }
0x1545   :  { %4171 = vmatpush3.bf16.xpose.msra.mxu1 %v2671_v16  ;;  %4172 = vmatprep.mubr.msk.bf16.mxu1 %vm4644_vm0, %v4642_v4 }
0x1546   :  { %4182 = vmatprep.subr.bf16.mxu1 %v4642_v4 }
0x154c   :  { %4173 = vmatmul.mubr.msk.bf16.vlgmr.msra.gmra.mxu1 %vm465_vm1, %v2664_v22 }
0x154d   :  { %4184 = vmatprep.mubr.msk.bf16.mxu1 %vm4644_vm0, %v4642_v4 }
0x15ee   :  { %v5207_v24 = vpop.f32.mrf.mxu0 }
0x15f0   :  { %v4156_v25 = vpop.f32.mrf.mxu0 }
0x15f2   :  { %v2561_v29 = vpop.f32.mrf.mxu0 }
0x15f4   :  { %v4157_v30 = vpop.f32.mrf.mxu0 }
0x15f6   :  { %v2657_v44 = vpop.f32.mrf.mxu0 }
0x15f7   :  { %v2658_v32 = vadd.f32 %v2657_v44, %v4841_v28 }
0x15f8   :  { %v4168_v6 = vpop.f32.mrf.mxu0 }
0x15f9   :  { %v2713_v34 = vsel %vm558_vm3, %v2658_v32, -inf }
0x15fa   :  { %2714 = vmax.xlane.f32.xlu1 %v2713_v34  ;;  %v2660_v35 = vpop.f32.mrf.mxu0 }
0x15fc   :  { %v4169_v37 = vpop.f32.mrf.mxu0 }
0x1604   :  { %v5211_v38 = vpop.f32.mrf.mxu1 }
0x1605   :  { %v4264_v40 = vpack.i.bf16 %v5211_v38, %v5207_v24 }
0x1606   :  { %v4162_v21 = vpop.f32.mrf.mxu1 }
0x1608   :  { %v2610_v42 = vpop.f32.mrf.mxu1 }
0x160a   :  { %v4163_v43 = vpop.f32.mrf.mxu1 }
0x160b   :  { %2737 = vrot.lane.b32.xlu1 %v5117_v41, %s4632_s24 }
0x160c   :  { %v2707_v45 = vpop.f32.mrf.mxu1 }
0x160d   :  { %v2708_v46 = vadd.f32 %v2707_v45, %v4846_v36 }
0x160e   :  { %v4174_v47 = vpop.f32.mrf.mxu1 }
0x160f   :  { %2835 = vrot.lane.b32.xlu1 %v5099_v31, %s4647_s17  ;;  %v2716_v1 = vsel %vm558_vm3, %v2708_v46, -inf }
0x1610   :  { %2717 = vmax.xlane.f32.xlu0 %v2716_v1  ;;  %v2710_v11 = vpop.f32.mrf.mxu1 }
0x1612   :  { %v4175_v20 = vpop.f32.mrf.mxu1 }
0x1613   :  { %2885 = vrot.lane.b32.xlu1 %v5106_v54, %s4647_s17 }
0x1617   :  { %2833 = vrot.lane.b32.xlu1 %v5108_v57, %s4647_s17 }
0x1683   :  { %v2715_v23 = vpop.xlane.xlu1 %2714 }
0x1684   :  { %v2719_v13 = vsub.f32 %v2658_v32, %v2715_v23 }
0x1686   :  { %v2721_v48 = vmul.f32 1.442695, %v2719_v13 }
0x1687   :  { %v2738_v19 = vpop.permute.xlu1 %2737 }
0x1688   :  { %4499 = vpow2.f32 %v2721_v48  ;;  %v2743_v49 = vsel %vm586_vm2, %v2738_v19, 0 }
0x1689   :  { %4177 = vmatpush3.bf16.msra.mxu0 %v2743_v49 }
0x168a   :  { %4188 = vmatprep.subr.bf16.mxu0 %v4642_v4 }
0x168b   :  { %v2836_v58 = vpop.permute.xlu1 %2835 }
0x168c   :  { %v2841_v14 = vsel %vm465_vm1, %v2836_v58, 0 }
0x168f   :  { %v2886_v62 = vpop.permute.xlu1 %2885 }
0x1690   :  { %v2891_v10 = vsel %vm465_vm1, %v2886_v62, 0  ;;  %v4394_v62 = vld [vmem:[#allocation4 + $0x60] sm:$0xff]  }
0x1695   :  { %v4500_v31 = vpop.eup %4499 }
0x1696   :  { %v2725_v50 = vsel %vm558_vm3, %v4500_v31, 0.0 }
0x1697   :  { %2726 = vadd.xlane.f32.xlu0 %v2725_v50 }
0x1699   :  { %v2718_v51 = vpop.xlane.xlu0 %2717 }
0x169a   :  { %v2720_v52 = vsub.f32 %v2708_v46, %v2718_v51 }
0x169c   :  { %v2723_v54 = vmul.f32 1.442695, %v2720_v52 }
0x169e   :  { %4501 = vpow2.f32 %v2723_v54 }
0x16ab   :  { %v4502_v18 = vpop.eup %4501 }
0x16ac   :  { %v2728_v57 = vsel %vm558_vm3, %v4502_v18, 0.0 }
0x16ad   :  { %2729 = vadd.xlane.f32.xlu0 %v2728_v57 }
0x16c3   :  { %2785 = vrot.lane.b32.xlu0 %v5149_v5, %s4632_s24 }
0x16c7   :  { %2883 = vrot.lane.b32.xlu0 %v5119_v26, %s4647_s17  ;;  %v2834_v26 = vpop.permute.xlu1 %2833 }
0x1720   :  { %v2727_v53 = vpop.xlane.xlu0 %2726 }
0x1721   :  { %4503 = vrcp.f32 %v2727_v53 }
0x172e   :  { %v4504_v56 = vpop.eup %4503 }
0x172f   :  { %v2733_v59 = vmul.f32 %v4504_v56, %v4500_v31 }
0x1731   :  { %v2735_v60 = vpack.c.bf16 %v2733_v59, %v2733_v59 }
0x1733   :  { %4179 = vmatmul.mubr.msk.bf16.vlgmr.msra.gmra.mxu0 %vm558_vm3, %v2735_v60  ;;  %v4392_v60 = vld [vmem:[#allocation4 + $0x70] sm:$0xff]  }
0x1734   :  { %4189 = vmatpush3.bf16.xpose.msra.mxu0 %v2841_v14  ;;  %4190 = vmatprep.mubr.msk.bf16.mxu0 %vm4644_vm0, %v4642_v4  ;;  %v4393_v14 = vld [vmem:[#allocation4 + $0x68] sm:$0xff]  }
0x1735   :  { %4200 = vmatprep.subr.bf16.mxu0 %v4642_v4 }
0x1736   :  { %v2730_v63 = vpop.xlane.xlu0 %2729 }
0x1737   :  { %4505 = vrcp.f32 %v2730_v63  ;;  %v4395_v63 = vld [vmem:[#allocation4 + $0x58] sm:$0xff]  }
0x173a   :  { %v2786_v0 = vpop.permute.xlu0 %2785 }
0x173b   :  { %v2791_v2 = vsel %vm586_vm2, %v2786_v0, 0  ;;  %4191 = vmatmul.mubr.msk.bf16.vlgmr.msra.gmra.mxu0 %vm465_vm1, %v2834_v26  ;;  %v4396_v26 = vld [vmem:[#allocation4 + $0x50] sm:$0xff]  }
0x173c   :  { %4183 = vmatpush3.bf16.msra.mxu1 %v2791_v2  ;;  %4202 = vmatprep.mubr.msk.bf16.mxu0 %vm4644_vm0, %v4642_v4 }
0x173d   :  { %4194 = vmatprep.subr.bf16.mxu1 %v4642_v4 }
0x173e   :  { %v2884_v7 = vpop.permute.xlu0 %2883 }
0x1744   :  { %v4506_v3 = vpop.eup %4505 }
0x1745   :  { %v2734_v8 = vmul.f32 %v4506_v3, %v4502_v18 }
0x1747   :  { %v2736_v9 = vpack.c.bf16 %v2734_v8, %v2734_v8 }
0x1749   :  { %4185 = vmatmul.mubr.msk.bf16.vlgmr.msra.gmra.mxu1 %vm558_vm3, %v2736_v9  ;;  %v4398_v9 = vld [vmem:[#allocation4 + $0x40] sm:$0xff]  }
0x174a   :  { %4195 = vmatpush3.bf16.xpose.msra.mxu1 %v2891_v10  ;;  %4196 = vmatprep.mubr.msk.bf16.mxu1 %vm4644_vm0, %v4642_v4 }
0x174b   :  { %4206 = vmatprep.subr.bf16.mxu1 %v4642_v4 }
0x1751   :  { %4197 = vmatmul.mubr.msk.bf16.vlgmr.msra.gmra.mxu1 %vm465_vm1, %v2884_v7 }
0x1752   :  { %4208 = vmatprep.mubr.msk.bf16.mxu1 %vm4644_vm0, %v4642_v4 }
0x17f3   :  { %v2779_v12 = vpop.f32.mrf.mxu0 }
0x17f5   :  { %v4180_v16 = vpop.f32.mrf.mxu0 }
0x17f7   :  { %v2782_v22 = vpop.f32.mrf.mxu0 }
0x17f9   :  { %v4181_v25 = vpop.f32.mrf.mxu0 }
0x17fb   :  { %v2877_v29 = vpop.f32.mrf.mxu0 }
0x17fc   :  { %v2878_v30 = vadd.f32 %v2877_v29, %v4841_v28 }
0x17fd   :  { %v4192_v44 = vpop.f32.mrf.mxu0 }
0x17fe   :  { %v2933_v32 = vsel %vm558_vm3, %v2878_v30, -inf }
0x17ff   :  { %2934 = vmax.xlane.f32.xlu1 %v2933_v32  ;;  %v2880_v6 = vpop.f32.mrf.mxu0 }
0x1801   :  { %v4193_v34 = vpop.f32.mrf.mxu0 }
0x1809   :  { %v2827_v35 = vpop.f32.mrf.mxu1 }
0x180a   :  { %v4269_v1 = vpack.i.bf16 %v2827_v35, %v2779_v12 }
0x180b   :  { %v4186_v37 = vpop.f32.mrf.mxu1 }
0x180d   :  { %v2830_v21 = vpop.f32.mrf.mxu1 }
0x180f   :  { %v4187_v42 = vpop.f32.mrf.mxu1 }
0x1810   :  { %2957 = vrot.lane.b32.xlu1 %v5117_v41, %s4647_s17 }
0x1811   :  { %v2927_v43 = vpop.f32.mrf.mxu1 }
0x1812   :  { %v2928_v45 = vadd.f32 %v2927_v43, %v4846_v36 }
0x1813   :  { %v4198_v46 = vpop.f32.mrf.mxu1 }
0x1814   :  { %4265 = vrot.lane.b32.xlu1 %v4264_v40, %s4647_s17  ;;  %v2936_v28 = vsel %vm558_vm3, %v2928_v45, -inf }
0x1815   :  { %2937 = vmax.xlane.f32.xlu0 %v2936_v28  ;;  %v2930_v47 = vpop.f32.mrf.mxu1 }
0x1817   :  { %v4199_v11 = vpop.f32.mrf.mxu1 }
0x1818   :  { %4270 = vrot.lane.b32.xlu1 %v4269_v1, %s4632_s24 }
0x1888   :  { %v2935_v20 = vpop.xlane.xlu1 %2934 }
0x1889   :  { %v2939_v23 = vsub.f32 %v2878_v30, %v2935_v20 }
0x188b   :  { %v2941_v41 = vmul.f32 1.442695, %v2939_v23 }
0x188c   :  { %v2958_v13 = vpop.permute.xlu1 %2957 }
0x188d   :  { %4507 = vpow2.f32 %v2941_v41  ;;  %v2963_v36 = vsel %vm586_vm2, %v2958_v13, 0 }
0x188e   :  { %4201 = vmatpush3.bf16.msra.mxu0 %v2963_v36  ;;  %v4399_v36 = vld [vmem:[#allocation6 + $0xf0] ss:$8 sps:$4 sm:$0xff]  }
0x188f   :  { %4212 = vmatprep.subr.bf16.mxu0 %v4642_v4 }
0x1890   :  { %v4266_v25 = vpop.permute.xlu1 %4265 }
0x1891   :  { %v4268_v30 = vunpack.i.h.bf16 %v4266_v25  ;;  %v4267_v44 = vunpack.i.l.bf16 %v4266_v25 }
0x1893   :  { %v3078_v34 = vsel %vm465_vm1, %v5169_v39, %v4268_v30  ;;  %v3077_v35 = vsel %vm465_vm1, %v5167_v33, %v4267_v44  ;;  %v3774_v39 = vld [vmem:[%s5345_s7 + $0x1] ss:$0 sm:$0xff] }
0x1894   :  { %v4271_v29 = vpop.permute.xlu1 %4270 }
0x1895   :  { %v4273_v32 = vunpack.i.h.bf16 %v4271_v29  ;;  %v4272_v6 = vunpack.i.l.bf16 %v4271_v29 }
0x1897   :  { %v3080_v42 = vsel %vm1368_vm4, %v3078_v34, %v4273_v32  ;;  %v3079_v43 = vsel %vm1368_vm4, %v3077_v35, %v4272_v6  ;;  %v3777_v6 = vld [vmem:[%s5346_s8 + $0x1] ss:$0 sm:$0xff] }
0x189a   :  { %v4508_v24 = vpop.eup %4507 }
0x189b   :  { %v2945_v38 = vsel %vm558_vm3, %v4508_v24, 0.0 }
0x189c   :  { %2946 = vadd.xlane.f32.xlu0 %v2945_v38 }
0x189e   :  { %v2938_v40 = vpop.xlane.xlu0 %2937 }
0x189f   :  { %v2940_v48 = vsub.f32 %v2928_v45, %v2938_v40 }
0x18a1   :  { %v2943_v19 = vmul.f32 1.442695, %v2940_v48 }
0x18a3   :  { %4509 = vpow2.f32 %v2943_v19 }
0x18b0   :  { %v4510_v49 = vpop.eup %4509 }
0x18b1   :  { %v2948_v31 = vsel %vm558_vm3, %v4510_v49, 0.0 }
0x18b2   :  { %2949 = vadd.xlane.f32.xlu0 %v2948_v31 }
0x18c8   :  { %3005 = vrot.lane.b32.xlu0 %v5149_v5, %s4647_s17  ;;  %v4391_v5 = vld [vmem:[#allocation4 + $0x78] sm:$0xff]  }
0x1925   :  { %v2947_v50 = vpop.xlane.xlu0 %2946 }
0x1926   :  { %4511 = vrcp.f32 %v2947_v50  ;;  %v4404_v50 = vld [vmem:[#allocation6 + $0xe4] ss:$8 sps:$4 sm:$0xff]  }
0x1933   :  { %v4512_v51 = vpop.eup %4511 }
0x1934   :  { %v2953_v52 = vmul.f32 %v4512_v51, %v4508_v24  ;;  %v4401_v24 = vld [vmem:[#allocation6 + $0xf4] ss:$8 sps:$4 sm:$0xff]   ;;  %v4402_v51 = vld [vmem:[#allocation6 + $0xe0] ss:$8 sps:$4 sm:$0xff]  }
0x1936   :  { %v2955_v54 = vpack.c.bf16 %v2953_v52, %v2953_v52  ;;  %v4407_v52 = vld [vmem:[#allocation6 + $0xd4] ss:$8 sps:$4 sm:$0xff]  }
0x1938   :  { %4203 = vmatmul.mubr.msk.bf16.vlgmr.msra.gmra.mxu0 %vm558_vm3, %v2955_v54  ;;  %v4405_v54 = vld [vmem:[#allocation6 + $0xd0] ss:$8 sps:$4 sm:$0xff]  }
0x1939   :  { %4228 = vmatprep.mubr.msk.bf16.mxu0 %vm4644_vm0, %v4642_v4  ;;  %4213 = vmatpush3.bf16.msra.mxu0 %v4391_v5  ;;  %v4419_v5 = vld [vmem:[#allocation6 + $0x94] ss:$8 sps:$4 sm:$0xff]  }
0x193a   :  { %4214 = vmatprep.subr.bf16.mxu0 %v4642_v4 }
0x193b   :  { %v2950_v18 = vpop.xlane.xlu0 %2949 }
0x193c   :  { %4513 = vrcp.f32 %v2950_v18  ;;  %v4408_v18 = vld [vmem:[#allocation6 + $0xc0] ss:$8 sps:$4 sm:$0xff]  }
0x193d   :  { %4215 = vmatpush3.bf16.msra.mxu0 %v4392_v60  ;;  %v4417_v60 = vld [vmem:[#allocation6 + $0x90] ss:$8 sps:$4 sm:$0xff]  }
0x193e   :  { %4216 = vmatprep.subr.bf16.mxu0 %v4642_v4 }
0x193f   :  { %v3006_v57 = vpop.permute.xlu0 %3005 }
0x1940   :  { %v3011_v53 = vsel %vm586_vm2, %v3006_v57, 0  ;;  %v4410_v57 = vld [vmem:[#allocation6 + $0xc4] ss:$8 sps:$4 sm:$0xff]  }
0x1941   :  { %4207 = vmatpush3.bf16.msra.mxu1 %v3011_v53  ;;  %4217 = vmatpush3.bf16.msra.mxu0 %v4393_v14  ;;  %v4413_v53 = vld [vmem:[#allocation6 + $0xb4] ss:$8 sps:$4 sm:$0xff]   ;;  %v4422_v14 = vld [vmem:[#allocation6 + $0x84] ss:$8 sps:$4 sm:$0xff]  }
0x1942   :  { %4218 = vmatprep.subr.bf16.mxu0 %v4642_v4  ;;  %3355 = vmatprep.subr.bf16.mxu1 %v4401_v24 }
0x1945   :  { %4219 = vmatpush3.bf16.msra.mxu0 %v4394_v62  ;;  %v4420_v62 = vld [vmem:[#allocation6 + $0x80] ss:$8 sps:$4 sm:$0xff]  }
0x1946   :  { %4220 = vmatprep.subr.bf16.mxu0 %v4642_v4 }
0x1949   :  { %v4514_v56 = vpop.eup %4513  ;;  %4221 = vmatpush3.bf16.msra.mxu0 %v4395_v63  ;;  %v4423_v63 = vld [vmem:[#allocation7 + $0xf8] sm:$0xff]  }
0x194a   :  { %v2954_v58 = vmul.f32 %v4514_v56, %v4510_v49  ;;  %4222 = vmatprep.subr.bf16.mxu0 %v4642_v4  ;;  %v4411_v56 = vld [vmem:[#allocation6 + $0xb0] ss:$8 sps:$4 sm:$0xff]  }
0x194c   :  { %v2956_v59 = vpack.c.bf16 %v2954_v58, %v2954_v58  ;;  %v4416_v58 = vld [vmem:[#allocation6 + $0xa4] ss:$8 sps:$4 sm:$0xff]  }
0x194d   :  { %4223 = vmatpush3.bf16.msra.mxu0 %v4396_v26  ;;  %v4424_v26 = vld [vmem:[#allocation7 + $0xb8] sm:$0xff]  }
0x194e   :  { %4209 = vmatmul.mubr.msk.bf16.vlgmr.msra.gmra.mxu1 %vm558_vm3, %v2956_v59  ;;  %4224 = vmatprep.subr.bf16.mxu0 %v4642_v4  ;;  %v4414_v59 = vld [vmem:[#allocation6 + $0xa0] ss:$8 sps:$4 sm:$0xff]  }
0x194f   :  { %3387 = vmatprep.mubr.bf16.mxu1 %v4643_v27  ;;  %v4397_v27 = vld [vmem:[#allocation4 + $0x48] sm:$0xff]   ;;  %3356 = vmatpush1.bf16.msra.mxu1 %v4399_v36 }
0x1950   :  { %3357 = vmatprep.subr.bf16.mxu1 %v4404_v50 }
0x1951   :  { %4225 = vmatpush3.bf16.msra.mxu0 %v4397_v27  ;;  %v4425_v27 = vld [vmem:[#allocation7 + $0xf0] sm:$0xff]  }
0x1952   :  { %4226 = vmatprep.subr.bf16.mxu0 %v4642_v4 }
0x1953   :  { %3358 = vmatpush1.bf16.msra.mxu1 %v4402_v51 }
0x1954   :  { %3359 = vmatprep.subr.bf16.mxu1 %v4407_v52 }
0x1955   :  { %4227 = vmatpush3.bf16.msra.mxu0 %v4398_v9  ;;  %v4430_v9 = vld [vmem:[#allocation7 + $0xa0] sm:$0xff]  }
0x1956   :  { %3938 = vmatprep.subr.bf16.mxu0 %v4423_v63 }
0x1957   :  { %3360 = vmatpush1.bf16.msra.mxu1 %v4405_v54 }
0x1958   :  { %3361 = vmatprep.subr.bf16.mxu1 %v4410_v57 }
0x195b   :  { %3362 = vmatpush1.bf16.msra.mxu1 %v4408_v18 }
0x195c   :  { %3363 = vmatprep.subr.bf16.mxu1 %v4413_v53 }
0x195f   :  { %3364 = vmatpush1.bf16.msra.mxu1 %v4411_v56 }
0x1960   :  { %3365 = vmatprep.subr.bf16.mxu1 %v4416_v58 }
0x1963   :  { %3366 = vmatpush1.bf16.msra.mxu1 %v4414_v59 }
0x1964   :  { %3367 = vmatprep.subr.bf16.mxu1 %v4419_v5 }
0x1967   :  { %3368 = vmatpush1.bf16.msra.mxu1 %v4417_v60 }
0x1968   :  { %3369 = vmatprep.subr.bf16.mxu1 %v4422_v14 }
0x196b   :  { %3370 = vmatpush1.bf16.msra.mxu1 %v4420_v62 }
0x19f8   :  { %v2999_v0 = vpop.f32.mrf.mxu0 }
0x19fa   :  { %v4204_v2 = vpop.f32.mrf.mxu0 }
0x19fb   :  { %v4427_v2 = vld [vmem:[#allocation7 + $0xe8] sm:$0xff]  }
0x19fc   :  { %v3002_v3 = vpop.f32.mrf.mxu0 }
0x19fd   :  { %v4428_v3 = vld [vmem:[#allocation7 + $0xa8] sm:$0xff]  }
0x19fe   :  { %v4205_v8 = vpop.f32.mrf.mxu0 }
0x19ff   :  { %v4429_v8 = vld [vmem:[#allocation7 + $0xe0] sm:$0xff]  }
0x1a0e   :  { %v3047_v10 = vpop.f32.mrf.mxu1 }
0x1a0f   :  { %v4274_v7 = vpack.i.bf16 %v3047_v10, %v2999_v0  ;;  %v4426_v0 = vld [vmem:[#allocation7 + $0xb0] sm:$0xff]   ;;  %v4431_v10 = vld [vmem:[#allocation7 + $0xd8] sm:$0xff]  }
0x1a10   :  { %v4210_v12 = vpop.f32.mrf.mxu1 }
0x1a11   :  { %4275 = vrot.lane.b32.xlu1 %v4274_v7, %s4646_s1  ;;  %v4432_v7 = vld [vmem:[#allocation7 + $0x98] sm:$0xff]  }
0x1a12   :  { %v3050_v16 = vpop.f32.mrf.mxu1 }
0x1a14   :  { %v4211_v22 = vpop.f32.mrf.mxu1 }
0x1a83   :  { %v4276_v4 = vpop.permute.xlu1 %4275 }
0x1a84   :  { %v4278_v37 = vunpack.i.h.bf16 %v4276_v4  ;;  %v4277_v21 = vunpack.i.l.bf16 %v4276_v4 }
0x1a86   :  { %v3082_v45 = vsel %vm1371_vm5, %v3080_v42, %v4278_v37  ;;  %v3081_v46 = vsel %vm1371_vm5, %v3079_v43, %v4277_v21  ;;  %v3778_v37 = vld [vmem:[%s5347_s9 + $0x1] ss:$0 sm:$0xff] }
0x1a87   :  { %v3100_v28 = vpack.c.bf16 %v3082_v45, %v3081_v46  ;;  %v4433_v46 = vld [vmem:[#allocation7 + $0xd0] sm:$0xff]  }
0x1a89   :  { %4229 = vmatmul.mubr.bf16.vlgmr.msra.gmra.mxu0 %v3100_v28  ;;  %v4434_v28 = vld [vmem:[#allocation7 + $0x90] sm:$0xff]  }
0x1a8a   :  { %3939 = vmatpush3.bf16.msra.mxu0 %v4424_v26 }
0x1a8b   :  { %3940 = vmatprep.subr.bf16.mxu0 %v4425_v27 }
0x1a8e   :  { %3941 = vmatpush3.bf16.msra.mxu0 %v4426_v0 }
0x1a8f   :  { %3942 = vmatprep.subr.bf16.mxu0 %v4427_v2 }
0x1a92   :  { %3943 = vmatpush3.bf16.msra.mxu0 %v4428_v3 }
0x1a93   :  { %3944 = vmatprep.subr.bf16.mxu0 %v4429_v8 }
0x1a96   :  { %3945 = vmatpush3.bf16.msra.mxu0 %v4430_v9 }
0x1a97   :  { %3946 = vmatprep.subr.bf16.mxu0 %v4431_v10 }
0x1a9a   :  { %3947 = vmatpush3.bf16.msra.mxu0 %v4432_v7 }
0x1a9b   :  { %3948 = vmatprep.subr.bf16.mxu0 %v4433_v46 }
0x1a9e   :  { %3949 = vmatpush3.bf16.msra.mxu0 %v4434_v28 }
0x1b49   :  { %v3183_v47 = vpop.f32.mrf.mxu0 }
0x1b4a   :  { %v3190_v1 = vadd.f32 %v3183_v47, %v5054_v15  ;;  %v4435_v47 = vld [vmem:[#allocation7 + $0xc8] sm:$0xff]  }
0x1b4b   :  { %v4230_v33 = vpop.f32.mrf.mxu0  ;;  %3950 = vmatprep.subr.bf16.mxu0 %v4435_v47 }
0x1b4c   :  { %v5294_v11 = vadd.f32 %v3774_v39, %v3190_v1  ;;  %v4437_v1 = vld [vmem:[#allocation7 + $0xc0] sm:$0xff]  }
0x1b4d   :  { %v3186_v20 = vpop.f32.mrf.mxu0  ;;  %v4438_v33 = vld [vmem:[#allocation7 + $0x80] sm:$0xff]  }
0x1b4e   :  { %v3191_v23 = vadd.f32 %v3186_v20, %v5058_v17  ;;  %3206 = vadd.xlane.f32.xlu0 %v5294_v11  ;;  %v3779_v20 = vld [vmem:[%s5349_s11 + $0x2] sm:$0x3] }
0x1b4f   :  { %v4231_v41 = vpop.f32.mrf.mxu0  ;;  %v3268_v36 = vrot.slane %v3779_v20, %v4802_v61 }
0x1b50   :  { %v5298_v13 = vadd.f32 %v3774_v39, %v3191_v23  ;;  %v4436_v39 = vld [vmem:[#allocation7 + $0x88] sm:$0xff]   ;;  %v3272_v41 = vrot.slane %v3779_v20, %v4794_v55  ;;  %v3797_v55 = vld [vmem:[%s5351_s13 + $0x1] ss:$0 sm:$0xff] }
0x1b51   :  { %3951 = vmatpush3.bf16.msra.mxu0 %v4436_v39 }
0x1b52   :  { %3208 = vadd.xlane.f32.xlu1 %v5298_v13  ;;  %3952 = vmatprep.subr.bf16.mxu0 %v4437_v1 }
0x1b55   :  { %3953 = vmatpush3.bf16.msra.mxu0 %v4438_v33 }
0x1bd7   :  { %v3207_v38 = vpop.xlane.xlu0 %3206 }
0x1bd8   :  { %v3210_v40 = vmul.f32 0.0078125, %v3207_v38 }
0x1bda   :  { %v5302_v15 = vsub.f32 %v5294_v11, %v3210_v40 }
0x1bdb   :  { %v3209_v48 = vpop.xlane.xlu1 %3208 }
0x1bdc   :  { %v3211_v19 = vmul.f32 0.0078125, %v3209_v48  ;;  %v3214_v17 = vmul.f32 %v5302_v15, %v5302_v15 }
0x1bde   :  { %v5307_v49 = vsub.f32 %v5298_v13, %v3211_v19  ;;  %3216 = vadd.xlane.f32.xlu0 %v3214_v17 }
0x1be0   :  { %v3215_v31 = vmul.f32 %v5307_v49, %v5307_v49 }
0x1be2   :  { %3218 = vadd.xlane.f32.xlu0 %v3215_v31 }
0x1c67   :  { %v3217_v12 = vpop.xlane.xlu0 %3216 }
0x1c68   :  { %v3220_v16 = vmul.f32 0.0078125, %v3217_v12 }
0x1c6a   :  { %v3222_v22 = vadd.f32 1e-05, %v3220_v16 }
0x1c6b   :  { %v3219_v25 = vpop.xlane.xlu0 %3218 }
0x1c6c   :  { %4515 = vrsqrt.f32 %v3222_v22  ;;  %v3221_v29 = vmul.f32 0.0078125, %v3219_v25  ;;  %v3814_v22 = vld [vmem:[%s5352_s14] ss:$0 sm:$0xff] }
0x1c6e   :  { %v3223_v30 = vadd.f32 1e-05, %v3221_v29  ;;  %v3815_v29 = vld [vmem:[#allocation9] ss:$0 sm:$0xff] }
0x1c70   :  { %4517 = vrsqrt.f32 %v3223_v30 }
0x1c79   :  { %v4516_v44 = vpop.eup %4515 }
0x1c7a   :  { %v3226_v32 = vmul.f32 %v4516_v44, %v5302_v15 }
0x1c7c   :  { %v3234_v35 = vmul.f32 %v3777_v6, %v3226_v32 }
0x1c7d   :  { %v4518_v4 = vpop.eup %4517 }
0x1c7e   :  { %v3227_v34 = vmul.f32 %v4518_v4, %v5307_v49  ;;  %v3242_v42 = vadd.f32 %v3778_v37, %v3234_v35 }
0x1c80   :  { %v3235_v21 = vmul.f32 %v3777_v6, %v3227_v34 }
0x1c82   :  { %v3243_v43 = vadd.f32 %v3778_v37, %v3235_v21 }
0x1c84   :  { %v3261_v45 = vpack.c.bf16 %v3243_v43, %v3242_v42 }
0x1c86   :  { %3388 = vmatmul.mubr.bf16.vlgmr.msra.gmra.mxu1 %v3261_v45 }
0x1d46   :  { %v3389_v23 = vpop.f32.mrf.mxu1 }
0x1d47   :  { %v3390_v48 = vadd.f32 %v3389_v23, %v3268_v36 }
0x1d48   :  { %v3391_v24 = vpop.f32.mrf.mxu1 }
0x1d49   :  { %v3392_v40 = vadd.f32 %v3391_v24, %v3272_v41  ;;  %v3398_v51 = vmax.f32 %v3390_v48, 0.0 }
0x1d4a   :  { %v3393_v38 = vpop.f32.mrf.mxu1 }
0x1d4b   :  { %v3394_v15 = vadd.f32 %v3393_v38, %v3268_v36  ;;  %v3399_v31 = vmax.f32 %v3392_v40, 0.0 }
0x1d4c   :  { %v3395_v19 = vpop.f32.mrf.mxu1 }
0x1d4d   :  { %v3396_v17 = vadd.f32 %v3395_v19, %v3272_v41  ;;  %v3400_v49 = vmax.f32 %v3394_v15, 0.0 }
0x1d4f   :  { %v3401_v50 = vmax.f32 %v3396_v17, 0.0  ;;  %v3435_v54 = vpack.c.bf16 %v3400_v49, %v3398_v51 }
0x1d51   :  { %v3436_v52 = vpack.c.bf16 %v3401_v50, %v3399_v31 }
0x1d53   :  { %3573 = vmatprep.mubr.bf16.mxu0 %v3436_v52 }
0x1d54   :  { %3574 = vmatmul.mubr.bf16.vlgmr.msra.gmra.mxu0 %v3435_v54 }
0x1e14   :  { %v3954_v18 = vpop.f32.mrf.mxu0 }
0x1e16   :  { %v3955_v61 = vpop.f32.mrf.mxu0 }
0x1e17   :  { %v3956_v57 = vadd.f32 %v3955_v61, %v3954_v18 }
0x1e18   :  { %v3957_v53 = vpop.f32.mrf.mxu0 }
0x1e19   :  { %v3576_v56 = vadd.f32 %v3956_v57, %v3797_v55 }
0x1e1a   :  { %v3958_v58 = vpop.f32.mrf.mxu0 }
0x1e1b   :  { %v3959_v59 = vadd.f32 %v3958_v58, %v3957_v53  ;;  %v3582_v5 = vadd.f32 %v3576_v56, %v5294_v11 }
0x1e1d   :  { %v3579_v60 = vadd.f32 %v3959_v59, %v3797_v55  ;;  %3586 = vadd.xlane.f32.xlu0 %v3582_v5 }
0x1e1f   :  { %v3583_v14 = vadd.f32 %v3579_v60, %v5298_v13 }
0x1e21   :  { %3588 = vadd.xlane.f32.xlu1 %v3583_v14 }
0x1ea6   :  { %v3587_v62 = vpop.xlane.xlu0 %3586 }
0x1ea7   :  { %v3590_v63 = vmul.f32 0.0078125, %v3587_v62 }
0x1ea9   :  { %v3592_v26 = vsub.f32 %v3582_v5, %v3590_v63 }
0x1eaa   :  { %v3589_v27 = vpop.xlane.xlu1 %3588 }
0x1eab   :  { %v3591_v0 = vmul.f32 0.0078125, %v3589_v27  ;;  %v3594_v2 = vmul.f32 %v3592_v26, %v3592_v26 }
0x1ead   :  { %v3593_v3 = vsub.f32 %v3583_v14, %v3591_v0  ;;  %3596 = vadd.xlane.f32.xlu0 %v3594_v2 }
0x1eaf   :  { %v3595_v8 = vmul.f32 %v3593_v3, %v3593_v3 }
0x1eb1   :  { %3598 = vadd.xlane.f32.xlu1 %v3595_v8 }
0x1f36   :  { %v3597_v9 = vpop.xlane.xlu0 %3596 }
0x1f37   :  { %v3600_v10 = vmul.f32 0.0078125, %v3597_v9 }
0x1f39   :  { %v3602_v7 = vadd.f32 1e-05, %v3600_v10 }
0x1f3a   :  { %v3599_v12 = vpop.xlane.xlu1 %3598 }
0x1f3b   :  { %4519 = vrsqrt.f32 %v3602_v7  ;;  %v3601_v11 = vmul.f32 0.0078125, %v3599_v12 }
0x1f3d   :  { %v3603_v16 = vadd.f32 1e-05, %v3601_v11 }
0x1f3f   :  { %4521 = vrsqrt.f32 %v3603_v16 }
0x1f48   :  { %v4520_v13 = vpop.eup %4519 }
0x1f49   :  { %v3606_v25 = vmul.f32 %v4520_v13, %v3592_v26 }
0x1f4b   :  { %v3614_v30 = vmul.f32 %v3814_v22, %v3606_v25 }
0x1f4c   :  { %v4522_v44 = vpop.eup %4521 }
0x1f4d   :  { %v3622_v32 = vadd.f32 %v3815_v29, %v3614_v30  ;;  %v3607_v6 = vmul.f32 %v4522_v44, %v3593_v3 }
0x1f4f   :  { %3624 = vst [vmem:[%s5354_s16] sm:$0xff] %v3622_v32  ;;  %v3615_v4 = vmul.f32 %v3814_v22, %v3607_v6 }
0x1f51   :  { %v3623_v34 = vadd.f32 %v3815_v29, %v3615_v4 }
0x1f53   :  { %3625 = vst [vmem:[%s5354_s16 + $0x8] sm:$0xff] %v3623_v34 }
0x1f54   :  { %3630 = vsyncpa [#allocation3], 1 }
0x1f55   :  { %3631 = vsyncpa [#allocation5], 1 }
0x1f56   :  { %3632 = vsyncpa [#allocation8], 1 }

// kernel: m2m100_forward.3
= control target key start
LH: loop header
LB: loop body
LE: loop exit
PB: predicated region body
PF: predicated region fallthrough
CT: control target
= control target key end

     0   :  { %s10099_s0 = inlined_call_operand.vmem [shape: f32[16,128], index: 0, kind: input, shape index: {}]   ;;  %s10100_s1 = inlined_call_operand.vmem [shape: f32[16,128], index: 1, kind: input, shape index: {}]   ;;  %s10101_s2 = inlined_call_operand.vmem [shape: f32[2,8], index: 2, kind: input, shape index: {}]   ;;  %s10102_s3 = inlined_call_operand.vmem [shape: f32[8,8], index: 3, kind: input, shape index: {}]   ;;  %s10103_s4 = inlined_call_operand.vmem [shape: f32[2,1,128], index: 4, kind: input, shape index: {}]   ;;  %s10104_s5 = inlined_call_operand.vmem [shape: f32[2,1,128], index: 5, kind: input, shape index: {}]   ;;  %s10105_s6 = inlined_call_operand.vmem [shape: bf16[2,128,384], index: 6, kind: input, shape index: {}]   ;;  %s10106_s7 = inlined_call_operand.vmem [shape: f32[2,1,384], index: 7, kind: input, shape index: {}]   ;;  %s10107_s8 = inlined_call_operand.vmem [shape: bf16[2,128,128], index: 8, kind: input, shape index: {}]   ;;  %s10108_s9 = inlined_call_operand.vmem [shape: f32[2,1,128], index: 9, kind: input, shape index: {}]   ;;  %s10109_s10 = inlined_call_operand.vmem [shape: f32[2,1,128], index: 10, kind: input, shape index: {}]   ;;  %s10110_s11 = inlined_call_operand.vmem [shape: f32[2,1,128], index: 11, kind: input, shape index: {}]   ;;  %s10111_s12 = inlined_call_operand.hbm [shape: bf16[2,128,128], index: 12, kind: input, shape index: {}]   ;;  %s10112_s13 = inlined_call_operand.vmem [shape: f32[2,1,128], index: 13, kind: input, shape index: {}]   ;;  %s10113_s14 = inlined_call_operand.vmem [shape: bf16[2,128,256], index: 14, kind: input, shape index: {}]   ;;  %s10114_s15 = inlined_call_operand.vmem [shape: f32[2,1,256], index: 15, kind: input, shape index: {}]   ;;  %s10115_s16 = inlined_call_operand.hbm [shape: bf16[2,128,128], index: 16, kind: input, shape index: {}]   ;;  %s10116_s17 = inlined_call_operand.vmem [shape: f32[2,1,128], index: 17, kind: input, shape index: {}]   ;;  %s10117_s18 = inlined_call_operand.vmem [shape: f32[2,1,128], index: 18, kind: input, shape index: {}]   ;;  %s10118_s19 = inlined_call_operand.vmem [shape: f32[2,1,128], index: 19, kind: input, shape index: {}]   ;;  %s10119_s20 = inlined_call_operand.vmem [shape: bf16[2,128,256], index: 20, kind: input, shape index: {}]   ;;  %s10120_s21 = inlined_call_operand.vmem [shape: f32[2,1,256], index: 21, kind: input, shape index: {}]   ;;  %s10121_s22 = inlined_call_operand.vmem [shape: bf16[2,256,128], index: 22, kind: input, shape index: {}]   ;;  %s10122_s23 = inlined_call_operand.vmem [shape: f32[2,1,128], index: 23, kind: input, shape index: {}]   ;;  %s10123_s24 = inlined_call_operand.hbm [shape: f32[1,128], index: 24, kind: input, shape index: {}]   ;;  %s10124_s25 = inlined_call_operand.hbm [shape: f32[1,128], index: 25, kind: input, shape index: {}]   ;;  %s10125_s26 = inlined_call_operand.vmem [shape: bf16[256,128], index: 26, kind: input, shape index: {}]   ;;  %s10126_s27 = inlined_call_operand.hbm [shape: f32[16,256], index: 27, kind: output, shape index: {}]  }
   0x1   :  { %10144 = sst [smem:[#allocation15_spill]] %s10099_s0 }
   0x2   :  { %10145 = sst [smem:[#allocation16_spill]] %s10100_s1 }
   0x3   :  { %10146 = sst [smem:[#allocation17_spill]] %s10101_s2 }
   0x4   :  { %10147 = sst [smem:[#allocation18_spill]] %s10102_s3 }
   0x5   :  { %10148 = sst [smem:[#allocation19_spill]] %s10103_s4 }
   0x6   :  { %10149 = sst [smem:[#allocation20_spill]] %s10104_s5 }
   0x7   :  { %10150 = sst [smem:[#allocation21_spill]] %s10105_s6 }
   0x8   :  { %10151 = sst [smem:[#allocation22_spill]] %s10106_s7 }
   0x9   :  { %10152 = sst [smem:[#allocation23_spill]] %s10107_s8 }
   0xa   :  { %10153 = sst [smem:[#allocation24_spill]] %s10108_s9 }
   0xb   :  { %10154 = sst [smem:[#allocation25_spill]] %s10109_s10 }
   0xc   :  { %10155 = sst [smem:[#allocation26_spill]] %s10110_s11 }
   0xd   :  { %10156 = sst [smem:[#allocation27_spill]] %s10126_s27 }
   0xe   :  { %32 = vsyncpa [#allocation3], 0 }
   0xf   :  { %33 = vsyncpa [#allocation6], 0 }
  0x10   :  { %34 = vsyncpa [#allocation9], 0 }
  0x11   :  { %35 = vsyncpa [#allocation4], 0  ;;  %s8336_s7 = smov [#allocation5]   ;;  %s8337_s8 = smov [#allocation2]  }
  0x12   :  { %s83_s4 = sshll.u32 %s8336_s7, 4  ;;  %s65_s30 = sshll.u32 %s8337_s8, 4  ;;  %s84_s4 = int_to_ptr.vmem [resolvable:$true] %s83_s4  ;;  %s66_s30 = int_to_ptr.vmem [resolvable:$true] %s65_s30 }
  0x13   :  { %s8236_s9 = scalar_lea.vmem %s84_s4, 2048  ;;  %p8241_p1 = scmp.lt.s32.totalorder %s84_s4, %s84_s4 }
  0x14   :  { %p8237_p0 = scmp.ne.s32.totalorder %s84_s4, %s8236_s9  ;;  %p8242_p2 = scmp.lt.s32.totalorder %s8236_s9, %s8236_s9 }
  0x16   :  { %p8243_p3 = por %p8242_p2, %p8241_p1 }
  0x18   :  { %p8244_p4 = pnand %p8243_p3, %p8237_p0 }
  0x1a   :  { %8247 = shalt.err (!%p8244_p4)
}
  0x1b   :  { %s10140_s5 = smov 64   ;;  %s8339_s28 = smov 4  }
  0x1c   :  { %89 = dma.hbm_to_vmem [thread:$0]  %s10115_s16, 2048, %s84_s4, [#allocation6], %s10140_s5, %s10140_s5, %s8339_s28  }
  0x1d   :  { %s8256_s29 = scalar_lea.vmem %s66_s30, 2048  ;;  %p8261_p6 = scmp.lt.s32.totalorder %s66_s30, %s66_s30 }
  0x1e   :  { %p8257_p5 = scmp.ne.s32.totalorder %s66_s30, %s8256_s29  ;;  %p8262_p7 = scmp.lt.s32.totalorder %s8256_s29, %s8256_s29 }
  0x20   :  { %p8263_p8 = por %p8262_p7, %p8261_p6 }
  0x22   :  { %p8264_p9 = pnand %p8263_p8, %p8257_p5 }
  0x24   :  { %8267 = shalt.err (!%p8264_p9)
}
  0x25   :  { %71 = dma.hbm_to_vmem [thread:$0]  %s10111_s12, 2048, %s66_s30, [#allocation3], %s10140_s5, %s10140_s5, %s8339_s28  }
  0x26   :  { %s8340_s11 = smov [#allocation7]   ;;  %s8341_s3 = smov [#allocation8]  }
  0x27   :  { %s110_s2 = sshll.u32 %s8340_s11, 4  ;;  %s120_s7 = sshll.u32 %s8341_s3, 4  ;;  %s111_s2 = int_to_ptr.vmem [resolvable:$true] %s110_s2  ;;  %s121_s7 = int_to_ptr.vmem [resolvable:$true] %s120_s7 }
  0x28   :  { %s8276_s16 = scalar_lea.vmem %s111_s2, 16  ;;  %s8280_s4 = scalar_lea.vmem %s111_s2, 32 }
  0x29   :  { %p8277_p10 = scmp.ne.s32.totalorder %s111_s2, %s8276_s16  ;;  %p8281_p11 = scmp.lt.s32.totalorder %s111_s2, %s111_s2 }
  0x2a   :  { %p8282_p12 = scmp.lt.s32.totalorder %s8280_s4, %s8276_s16 }
  0x2c   :  { %p8283_p13 = por %p8282_p12, %p8281_p11 }
  0x2e   :  { %p8284_p0 = pnand %p8283_p13, %p8277_p10 }
  0x30   :  { %8287 = shalt.err (!%p8284_p0)
}
  0x31   :  { %113 = dma.hbm_to_vmem [thread:$0]  %s10123_s24, 16, %s111_s2, [#allocation6]  }
  0x32   :  { %s8296_s0 = scalar_lea.vmem %s121_s7, 16  ;;  %s8300_s12 = scalar_lea.vmem %s121_s7, 32 }
  0x33   :  { %p8297_p1 = scmp.ne.s32.totalorder %s121_s7, %s8296_s0  ;;  %p8301_p2 = scmp.lt.s32.totalorder %s121_s7, %s121_s7 }
  0x34   :  { %p8302_p3 = scmp.lt.s32.totalorder %s8300_s12, %s8296_s0 }
  0x36   :  { %p8303_p4 = por %p8302_p3, %p8301_p2 }
  0x38   :  { %p8304_p5 = pnand %p8303_p4, %p8297_p1 }
  0x3a   :  { %8307 = shalt.err (!%p8304_p5)
}
  0x3b   :  { %123 = dma.hbm_to_vmem [thread:$0]  %s10124_s25, 16, %s121_s7, [#allocation9]  }
  0x3c   :  { %8328 = dma.done.wait [#allocation3], 2048  }
  0x3d   :  { %8329 = vsyncadd [#allocation3], 4294965248 }
  0x3e   :  { %8330 = dma.done.wait [#allocation6], 2064  }
  0x3f   :  { %8331 = vsyncadd [#allocation6], 4294965232 }
  0x40   :  { %8332 = dma.done.wait [#allocation9], 16  }
  0x41   :  { %8333 = vsyncadd [#allocation9], 4294967280  ;;  %s10157_s29 = sld [smem:[#allocation15_spill]]  ;;  %v8342_v4 = vmov 0.0   ;;  %v8343_v27 = vmov 0   ;;  %vm8344_vm0 = vmmov 0   ;;  %v221_v53 = vlaneseq }
  0x42   :  { %s10158_s3 = sld [smem:[#allocation21_spill]]  ;;  %7194 = vmatprep.subr.bf16.mxu1 %v8342_v4  ;;  %396 = vmatprep.mubr.bf16.mxu0 %v8343_v27  ;;  %vm454_vm1 = vcmask 261120   ;;  %vm575_vm2 = vcmask 1043456   ;;  %vm547_vm3 = vcmask 64512   ;;  %s10142_s10 = smov 96   ;;  %vm1357_vm4 = vcmask 523264  }
  0x43   :  { %7210 = vmatprep.mubr.msk.bf16.mxu1 %vm8344_vm0, %v8342_v4  ;;  %s10159_s25 = sld [smem:[#allocation19_spill]]  ;;  %v8618_v54 = vshrl.u32 %v221_v53, 7  ;;  %s10138_s24 = smov 32   ;;  %vm1360_vm5 = vcmask 785408  }
  0x44   :  { %s10160_s4 = sld [smem:[#allocation20_spill]]  ;;  %s10169_s9 = smov 32  }
  0x45   :  { %v8621_v55 = vsub.s32 1, %v8618_v54  ;;  %s10161_s0 = sld [smem:[#allocation22_spill]]  ;;  %v231_v57 = vsub.s32 2, %v8618_v54  ;;  %v8629_v61 = vsub.s32 0, %v8618_v54 }
  0x46   :  { %s10162_s28 = sld [smem:[#allocation18_spill]] }
  0x47   :  { %v139_v0 = vld [vmem:[%s10157_s29] sm:$0xff]  ;;  %v140_v1 = vld [vmem:[%s10157_s29 + $0x8] sm:$0xff]  ;;  %s10163_s11 = sld [smem:[#allocation23_spill]] }
  0x48   :  { %147 = vadd.xlane.f32.xlu0 %v139_v0  ;;  %v7813_v2 = vld [vmem:[%s10158_s3 + $0xac] ss:$12 sps:$4 sm:$0xff]   ;;  %v7815_v3 = vld [vmem:[%s10158_s3 + $0xa8] ss:$12 sps:$4 sm:$0xff]   ;;  %v7816_v5 = vld [vmem:[%s10158_s3 + $0xb0] ss:$12 sps:$4 sm:$0xff]  }
  0x49   :  { %364 = vmatprep.subr.bf16.mxu0 %v7813_v2  ;;  %7195 = vmatpush3.bf16.msra.mxu1 %v7816_v5  ;;  %v7817_v14 = vld [vmem:[%s10158_s3 + $0x94] ss:$12 sps:$4 sm:$0xff]   ;;  %v7819_v15 = vld [vmem:[%s10158_s3 + $0x90] ss:$12 sps:$4 sm:$0xff]   ;;  %v7820_v16 = vld [vmem:[%s10158_s3 + $0x98] ss:$12 sps:$4 sm:$0xff]  }
  0x4a   :  { %365 = vmatpush1.bf16.msra.mxu0 %v7815_v3  ;;  %7196 = vmatprep.subr.bf16.mxu1 %v8342_v4  ;;  %v7821_v17 = vld [vmem:[%s10158_s3 + $0x7c] ss:$12 sps:$4 sm:$0xff]   ;;  %v7823_v18 = vld [vmem:[%s10158_s3 + $0x78] ss:$12 sps:$4 sm:$0xff]   ;;  %v7824_v19 = vld [vmem:[%s10158_s3 + $0x80] ss:$12 sps:$4 sm:$0xff]  }
  0x4b   :  { %366 = vmatprep.subr.bf16.mxu0 %v7817_v14  ;;  %v7825_v20 = vld [vmem:[%s10158_s3 + $0x64] ss:$12 sps:$4 sm:$0xff]   ;;  %v7827_v21 = vld [vmem:[%s10158_s3 + $0x60] ss:$12 sps:$4 sm:$0xff]   ;;  %v7828_v22 = vld [vmem:[%s10158_s3 + $0x68] ss:$12 sps:$4 sm:$0xff]  }
  0x4c   :  { %149 = vadd.xlane.f32.xlu0 %v140_v1  ;;  %v7829_v23 = vld [vmem:[%s10158_s3 + $0x4c] ss:$12 sps:$4 sm:$0xff]   ;;  %v7831_v24 = vld [vmem:[%s10158_s3 + $0x48] ss:$12 sps:$4 sm:$0xff]   ;;  %v7832_v25 = vld [vmem:[%s10158_s3 + $0x50] ss:$12 sps:$4 sm:$0xff]  }
  0x4d   :  { %7197 = vmatpush3.bf16.msra.mxu1 %v7820_v16  ;;  %v7833_v26 = vld [vmem:[%s10158_s3 + $0x34] ss:$12 sps:$4 sm:$0xff]   ;;  %v7835_v28 = vld [vmem:[%s10158_s3 + $0x30] ss:$12 sps:$4 sm:$0xff]   ;;  %v7836_v29 = vld [vmem:[%s10158_s3 + $0x38] ss:$12 sps:$4 sm:$0xff]  }
  0x4e   :  { %367 = vmatpush1.bf16.msra.mxu0 %v7819_v15  ;;  %7198 = vmatprep.subr.bf16.mxu1 %v8342_v4  ;;  %v7837_v30 = vld [vmem:[%s10158_s3 + $0x1c] ss:$12 sps:$4 sm:$0xff]   ;;  %v7839_v31 = vld [vmem:[%s10158_s3 + $0x18] ss:$12 sps:$4 sm:$0xff]   ;;  %v7840_v32 = vld [vmem:[%s10158_s3 + $0x20] ss:$12 sps:$4 sm:$0xff]  }
  0x4f   :  { %368 = vmatprep.subr.bf16.mxu0 %v7821_v17  ;;  %v7841_v33 = vld [vmem:[%s10158_s3 + $0x4] ss:$12 sps:$4 sm:$0xff]   ;;  %v7843_v34 = vld [vmem:[%s10158_s3] ss:$12 sps:$4 sm:$0xff]   ;;  %v7844_v35 = vld [vmem:[%s10158_s3 + $0x8] ss:$12 sps:$4 sm:$0xff]  }
  0x50   :  { %v6512_v44 = vld [vmem:[%s10159_s25] ss:$0 sm:$0xff]  ;;  %s10164_s1 = sld [smem:[#allocation24_spill]] }
  0x51   :  { %7199 = vmatpush3.bf16.msra.mxu1 %v7824_v19  ;;  %v6513_v48 = vld [vmem:[%s10160_s4] ss:$0 sm:$0xff]  ;;  %s10165_s6 = sld [smem:[#allocation16_spill]] }
  0x52   :  { %369 = vmatpush1.bf16.msra.mxu0 %v7823_v18  ;;  %7200 = vmatprep.subr.bf16.mxu1 %v8342_v4  ;;  %v219_v56 = vld [vmem:[%s10161_s0] sm:$0x7]  ;;  %s10166_s16 = sld [smem:[#allocation25_spill]] }
  0x53   :  { %370 = vmatprep.subr.bf16.mxu0 %v7825_v20  ;;  %v228_v58 = vrot.slane %v219_v56, %v8621_v55  ;;  %v224_v5 = vrot.slane %v219_v56, %v8629_v61  ;;  %s10167_s12 = sld [smem:[#allocation26_spill]] }
  0x54   :  { %s10168_s8 = sld [smem:[#allocation17_spill]] }
  0x55   :  { %7201 = vmatpush3.bf16.msra.mxu1 %v7828_v22 }
  0x56   :  { %371 = vmatpush1.bf16.msra.mxu0 %v7827_v21  ;;  %7202 = vmatprep.subr.bf16.mxu1 %v8342_v4  ;;  %v8666_v21 = vld [vmem:[%s10162_s28] sm:$0xff] }
  0x57   :  { %372 = vmatprep.subr.bf16.mxu0 %v7829_v23 }
  0x59   :  { %7203 = vmatpush3.bf16.msra.mxu1 %v7832_v25 }
  0x5a   :  { %373 = vmatpush1.bf16.msra.mxu0 %v7831_v24  ;;  %7204 = vmatprep.subr.bf16.mxu1 %v8342_v4 }
  0x5b   :  { %374 = vmatprep.subr.bf16.mxu0 %v7833_v26 }
  0x5d   :  { %7205 = vmatpush3.bf16.msra.mxu1 %v7836_v29 }
  0x5e   :  { %375 = vmatpush1.bf16.msra.mxu0 %v7835_v28  ;;  %7206 = vmatprep.subr.bf16.mxu1 %v8342_v4 }
  0x5f   :  { %376 = vmatprep.subr.bf16.mxu0 %v7837_v30 }
  0x61   :  { %7207 = vmatpush3.bf16.msra.mxu1 %v7840_v32 }
  0x62   :  { %377 = vmatpush1.bf16.msra.mxu0 %v7839_v31  ;;  %7208 = vmatprep.subr.bf16.mxu1 %v8342_v4 }
  0x63   :  { %378 = vmatprep.subr.bf16.mxu0 %v7841_v33 }
  0x65   :  { %7209 = vmatpush3.bf16.msra.mxu1 %v7844_v35 }
  0x66   :  { %379 = vmatpush1.bf16.msra.mxu0 %v7843_v34  ;;  %7244 = vmatprep.subr.bf16.mxu1 %v8342_v4 }
  0x67   :  { %7214 = vmatprep.subr.bf16.mxu0 %v8342_v4 }
  0xd1   :  { %v148_v6 = vpop.xlane.xlu0 %147 }
  0xd2   :  { %v152_v7 = vmul.f32 0.0078125, %v148_v6 }
  0xd4   :  { %v8524_v8 = vsub.f32 %v139_v0, %v152_v7  ;;  %v232_v0 = vrot.slane %v219_v56, %v231_v57 }
  0xd5   :  { %v150_v9 = vpop.xlane.xlu0 %149 }
  0xd6   :  { %v153_v10 = vmul.f32 0.0078125, %v150_v9  ;;  %v156_v11 = vmul.f32 %v8524_v8, %v8524_v8 }
  0xd8   :  { %158 = vadd.xlane.f32.xlu1 %v156_v11  ;;  %v8528_v12 = vsub.f32 %v140_v1, %v153_v10 }
  0xda   :  { %v157_v13 = vmul.f32 %v8528_v12, %v8528_v12 }
  0xdc   :  { %160 = vadd.xlane.f32.xlu1 %v157_v13 }
 0x161   :  { %v159_v36 = vpop.xlane.xlu1 %158 }
 0x162   :  { %v162_v37 = vmul.f32 0.0078125, %v159_v36 }
 0x164   :  { %v164_v38 = vadd.f32 1e-05, %v162_v37 }
 0x165   :  { %v161_v39 = vpop.xlane.xlu1 %160 }
 0x166   :  { %8069 = vrsqrt.f32 %v164_v38  ;;  %v163_v40 = vmul.f32 0.0078125, %v161_v39 }
 0x168   :  { %v165_v41 = vadd.f32 1e-05, %v163_v40 }
 0x16a   :  { %8071 = vrsqrt.f32 %v165_v41 }
 0x173   :  { %v8070_v42 = vpop.eup %8069 }
 0x174   :  { %v168_v43 = vmul.f32 %v8070_v42, %v8524_v8 }
 0x176   :  { %v176_v47 = vmul.f32 %v6512_v44, %v168_v43 }
 0x177   :  { %v8072_v45 = vpop.eup %8071 }
 0x178   :  { %v169_v46 = vmul.f32 %v8072_v45, %v8528_v12  ;;  %v184_v50 = vadd.f32 %v6513_v48, %v176_v47 }
 0x17a   :  { %v177_v49 = vmul.f32 %v6512_v44, %v169_v46 }
 0x17c   :  { %v185_v51 = vadd.f32 %v6513_v48, %v177_v49 }
 0x17e   :  { %v218_v52 = vpack.c.bf16 %v185_v51, %v184_v50 }
 0x180   :  { %397 = vmatmul.mubr.bf16.vlgmr.msra.gmra.mxu0 %v218_v52  ;;  %7211 = vmatmul.mubr.bf16.vlgmr.msra.gmra.mxu1 %v218_v52 }
 0x181   :  { %7216 = vmatprep.mubr.msk.bf16.mxu0 %vm8344_vm0, %v8342_v4  ;;  %7246 = vmatprep.mubr.msk.bf16.mxu1 %vm8344_vm0, %v8342_v4 }
 0x240   :  { %v398_v59 = vpop.f32.mrf.mxu0  ;;  %v441_v60 = vpop.f32.mrf.mxu1 }
 0x241   :  { %v399_v12 = vadd.f32 %v398_v59, %v224_v5  ;;  %v442_v15 = vadd.f32 %v441_v60, %v232_v0 }
 0x242   :  { %v400_v62 = vpop.f32.mrf.mxu0  ;;  %v7212_v63 = vpop.f32.mrf.mxu1 }
 0x243   :  { %v401_v1 = vadd.f32 %v400_v62, %v228_v58  ;;  %v8643_v14 = vpack.c.bf16 %v399_v12, %v399_v12  ;;  %v8652_v18 = vpack.c.bf16 %v442_v15, %v442_v15 }
 0x244   :  { %v402_v2 = vpop.f32.mrf.mxu0  ;;  %v444_v3 = vpop.f32.mrf.mxu1 }
 0x245   :  { %v8634_v6 = vpack.c.bf16 %v401_v1, %v401_v1  ;;  %v8636_v7 = vadd.f32 %v444_v3, %v232_v0  ;;  %v403_v17 = vadd.f32 %v402_v2, %v224_v5  ;;  %v577_v20 = vsel %vm575_vm2, %v8652_v18, 0 }
 0x246   :  { %v404_v8 = vpop.f32.mrf.mxu0  ;;  %v7213_v9 = vpop.f32.mrf.mxu1 }
 0x247   :  { %v405_v10 = vadd.f32 %v404_v8, %v228_v58  ;;  %v459_v11 = vsel %vm454_vm1, %v8634_v6, 0  ;;  %v8654_v19 = vpack.c.bf16 %v403_v17, %v403_v17  ;;  %v8686_v51 = vpack.c.bf16 %v8636_v7, %v8636_v7 }
 0x248   :  { %7215 = vmatpush3.bf16.xpose.msra.mxu0 %v459_v11 }
 0x249   :  { %7220 = vmatprep.subr.bf16.mxu0 %v8342_v4  ;;  %v8641_v13 = vpack.c.bf16 %v405_v10, %v405_v10  ;;  %v623_v58 = vsel %vm575_vm2, %v8686_v51, 0 }
 0x24b   :  { %v505_v16 = vsel %vm454_vm1, %v8641_v13, 0 }
 0x24f   :  { %7217 = vmatmul.mubr.msk.bf16.vlgmr.msra.gmra.mxu0 %vm454_vm1, %v8643_v14 }
 0x250   :  { %7221 = vmatpush3.bf16.xpose.msra.mxu0 %v505_v16  ;;  %7222 = vmatprep.mubr.msk.bf16.mxu0 %vm8344_vm0, %v8342_v4 }
 0x251   :  { %7226 = vmatprep.subr.bf16.mxu0 %v8342_v4 }
 0x257   :  { %7223 = vmatmul.mubr.msk.bf16.vlgmr.msra.gmra.mxu0 %vm454_vm1, %v8654_v19 }
 0x258   :  { %7227 = vmatpush3.bf16.msra.mxu0 %v577_v20  ;;  %7228 = vmatprep.mubr.msk.bf16.mxu0 %vm8344_vm0, %v8342_v4 }
 0x259   :  { %7232 = vmatprep.subr.bf16.mxu0 %v8342_v4 }
 0x30f   :  { %v495_v22 = vpop.f32.mrf.mxu0 }
 0x310   :  { %v496_v23 = vadd.f32 %v495_v22, %v8666_v21 }
 0x311   :  { %v7218_v24 = vpop.f32.mrf.mxu0 }
 0x312   :  { %v548_v25 = vsel %vm547_vm3, %v496_v23, -inf }
 0x313   :  { %549 = vmax.xlane.f32.xlu0 %v548_v25  ;;  %v498_v26 = vpop.f32.mrf.mxu0 }
 0x315   :  { %v7219_v28 = vpop.f32.mrf.mxu0 }
 0x317   :  { %v541_v29 = vpop.f32.mrf.mxu0 }
 0x318   :  { %v542_v30 = vadd.f32 %v541_v29, %v8666_v21 }
 0x319   :  { %v7224_v31 = vpop.f32.mrf.mxu0 }
 0x31a   :  { %v551_v32 = vsel %vm547_vm3, %v542_v30, -inf }
 0x31b   :  { %552 = vmax.xlane.f32.xlu1 %v551_v32  ;;  %v544_v33 = vpop.f32.mrf.mxu0 }
 0x31d   :  { %v7225_v34 = vpop.f32.mrf.mxu0 }
 0x32c   :  { %721 = vrot.lane.b32.xlu1 %v8641_v13, %s10142_s10 }
 0x39c   :  { %v550_v35 = vpop.xlane.xlu0 %549 }
 0x39d   :  { %v554_v36 = vsub.f32 %v496_v23, %v550_v35 }
 0x39f   :  { %v556_v37 = vmul.f32 1.442695, %v554_v36 }
 0x3a1   :  { %8073 = vpow2.f32 %v556_v37 }
 0x3a4   :  { %v553_v38 = vpop.xlane.xlu1 %552 }
 0x3a5   :  { %v555_v39 = vsub.f32 %v542_v30, %v553_v38 }
 0x3a7   :  { %v558_v40 = vmul.f32 1.442695, %v555_v39 }
 0x3a8   :  { %v722_v41 = vpop.permute.xlu1 %721 }
 0x3a9   :  { %8075 = vpow2.f32 %v558_v40  ;;  %v727_v42 = vsel %vm454_vm1, %v722_v41, 0 }
 0x3aa   :  { %7245 = vmatpush3.bf16.xpose.msra.mxu1 %v727_v42 }
 0x3ab   :  { %7256 = vmatprep.subr.bf16.mxu1 %v8342_v4 }
 0x3ae   :  { %v8074_v43 = vpop.eup %8073 }
 0x3af   :  { %v560_v44 = vsel %vm547_vm3, %v8074_v43, 0.0 }
 0x3b0   :  { %561 = vadd.xlane.f32.xlu0 %v560_v44 }
 0x3b6   :  { %v8076_v45 = vpop.eup %8075 }
 0x3b7   :  { %v563_v46 = vsel %vm547_vm3, %v8076_v45, 0.0 }
 0x3b8   :  { %564 = vadd.xlane.f32.xlu1 %v563_v46 }
 0x3c6   :  { %669 = vrot.lane.b32.xlu0 %v8634_v6, %s10142_s10 }
 0x3c9   :  { %666 = vrot.lane.b32.xlu1 %v8643_v14, %s10142_s10 }
 0x3cd   :  { %718 = vrot.lane.b32.xlu1 %v8654_v19, %s10142_s10 }
 0x439   :  { %v562_v47 = vpop.xlane.xlu0 %561 }
 0x43a   :  { %8077 = vrcp.f32 %v562_v47 }
 0x43d   :  { %v670_v62 = vpop.permute.xlu0 %669 }
 0x43e   :  { %v675_v0 = vsel %vm454_vm1, %v670_v62, 0 }
 0x441   :  { %v565_v48 = vpop.xlane.xlu1 %564 }
 0x442   :  { %8079 = vrcp.f32 %v565_v48 }
 0x445   :  { %v667_v49 = vpop.permute.xlu1 %666 }
 0x447   :  { %v8078_v50 = vpop.eup %8077 }
 0x448   :  { %v568_v52 = vmul.f32 %v8078_v50, %v8074_v43 }
 0x449   :  { %v719_v53 = vpop.permute.xlu1 %718 }
 0x44a   :  { %7247 = vmatmul.mubr.msk.bf16.vlgmr.msra.gmra.mxu1 %vm454_vm1, %v719_v53  ;;  %v570_v56 = vpack.c.bf16 %v568_v52, %v568_v52 }
 0x44b   :  { %7258 = vmatprep.mubr.msk.bf16.mxu1 %vm8344_vm0, %v8342_v4 }
 0x44c   :  { %7229 = vmatmul.mubr.msk.bf16.vlgmr.msra.gmra.mxu0 %vm547_vm3, %v570_v56 }
 0x44d   :  { %7233 = vmatpush3.bf16.msra.mxu0 %v623_v58  ;;  %7234 = vmatprep.mubr.msk.bf16.mxu0 %vm8344_vm0, %v8342_v4 }
 0x44e   :  { %7238 = vmatprep.subr.bf16.mxu0 %v8342_v4 }
 0x44f   :  { %v8080_v59 = vpop.eup %8079 }
 0x450   :  { %v569_v60 = vmul.f32 %v8080_v59, %v8076_v45 }
 0x452   :  { %v571_v63 = vpack.c.bf16 %v569_v60, %v569_v60 }
 0x454   :  { %7235 = vmatmul.mubr.msk.bf16.vlgmr.msra.gmra.mxu0 %vm547_vm3, %v571_v63 }
 0x455   :  { %7239 = vmatpush3.bf16.xpose.msra.mxu0 %v675_v0  ;;  %7240 = vmatprep.mubr.msk.bf16.mxu0 %vm8344_vm0, %v8342_v4 }
 0x456   :  { %7250 = vmatprep.subr.bf16.mxu0 %v8342_v4 }
 0x45c   :  { %7241 = vmatmul.mubr.msk.bf16.vlgmr.msra.gmra.mxu0 %vm454_vm1, %v667_v49 }
 0x45d   :  { %7252 = vmatprep.mubr.msk.bf16.mxu0 %vm8344_vm0, %v8342_v4 }
 0x50a   :  { %v763_v1 = vpop.f32.mrf.mxu1 }
 0x50b   :  { %v764_v2 = vadd.f32 %v763_v1, %v8666_v21 }
 0x50c   :  { %v8706_v3 = vpop.f32.mrf.mxu0  ;;  %v7248_v5 = vpop.f32.mrf.mxu1 }
 0x50d   :  { %v772_v7 = vsel %vm547_vm3, %v764_v2, -inf }
 0x50e   :  { %773 = vmax.xlane.f32.xlu1 %v772_v7  ;;  %v7230_v8 = vpop.f32.mrf.mxu0  ;;  %v766_v9 = vpop.f32.mrf.mxu1 }
 0x510   :  { %v616_v10 = vpop.f32.mrf.mxu0  ;;  %v7249_v11 = vpop.f32.mrf.mxu1 }
 0x512   :  { %v7231_v12 = vpop.f32.mrf.mxu0 }
 0x514   :  { %v8709_v15 = vpop.f32.mrf.mxu0 }
 0x516   :  { %v7236_v16 = vpop.f32.mrf.mxu0 }
 0x518   :  { %v662_v17 = vpop.f32.mrf.mxu0 }
 0x51a   :  { %v7237_v20 = vpop.f32.mrf.mxu0 }
 0x51c   :  { %v711_v22 = vpop.f32.mrf.mxu0 }
 0x51d   :  { %v712_v23 = vadd.f32 %v711_v22, %v8666_v21 }
 0x51e   :  { %v7242_v24 = vpop.f32.mrf.mxu0 }
 0x51f   :  { %843 = vrot.lane.b32.xlu1 %v8686_v51, %s10142_s10  ;;  %v769_v25 = vsel %vm547_vm3, %v712_v23, -inf }
 0x520   :  { %770 = vmax.xlane.f32.xlu0 %v769_v25  ;;  %v714_v26 = vpop.f32.mrf.mxu0 }
 0x522   :  { %v7243_v28 = vpop.f32.mrf.mxu0 }
 0x523   :  { %893 = vrot.lane.b32.xlu1 %v8634_v6, %s10140_s5 }
 0x527   :  { %943 = vrot.lane.b32.xlu1 %v8641_v13, %s10140_s5 }
 0x52b   :  { %941 = vrot.lane.b32.xlu1 %v8654_v19, %s10140_s5 }
 0x597   :  { %v774_v29 = vpop.xlane.xlu1 %773 }
 0x598   :  { %v776_v30 = vsub.f32 %v764_v2, %v774_v29 }
 0x59a   :  { %v779_v31 = vmul.f32 1.442695, %v776_v30 }
 0x59b   :  { %v844_v32 = vpop.permute.xlu1 %843 }
 0x59c   :  { %8081 = vpow2.f32 %v779_v31  ;;  %v849_v33 = vsel %vm575_vm2, %v844_v32, 0 }
 0x59d   :  { %7257 = vmatpush3.bf16.msra.mxu1 %v849_v33 }
 0x59e   :  { %7268 = vmatprep.subr.bf16.mxu1 %v8342_v4 }
 0x59f   :  { %v894_v42 = vpop.permute.xlu1 %893 }
 0x5a0   :  { %v899_v59 = vsel %vm454_vm1, %v894_v42, 0 }
 0x5a3   :  { %v944_v45 = vpop.permute.xlu1 %943 }
 0x5a4   :  { %v949_v48 = vsel %vm454_vm1, %v944_v45, 0 }
 0x5a7   :  { %v942_v52 = vpop.permute.xlu1 %941 }
 0x5a9   :  { %v8082_v34 = vpop.eup %8081  ;;  %v771_v35 = vpop.xlane.xlu0 %770 }
 0x5aa   :  { %v775_v36 = vsub.f32 %v712_v23, %v771_v35  ;;  %v784_v37 = vsel %vm547_vm3, %v8082_v34, 0.0 }
 0x5ab   :  { %785 = vadd.xlane.f32.xlu0 %v784_v37 }
 0x5ac   :  { %v777_v38 = vmul.f32 1.442695, %v775_v36 }
 0x5ae   :  { %8083 = vpow2.f32 %v777_v38 }
 0x5bb   :  { %v8084_v39 = vpop.eup %8083 }
 0x5bc   :  { %v781_v40 = vsel %vm547_vm3, %v8084_v39, 0.0 }
 0x5bd   :  { %782 = vadd.xlane.f32.xlu0 %v781_v40 }
 0x5d3   :  { %794 = vrot.lane.b32.xlu0 %v8652_v18, %s10142_s10 }
 0x5d7   :  { %891 = vrot.lane.b32.xlu0 %v8643_v14, %s10140_s5 }
 0x634   :  { %v786_v41 = vpop.xlane.xlu0 %785 }
 0x635   :  { %8085 = vrcp.f32 %v786_v41 }
 0x642   :  { %v8086_v43 = vpop.eup %8085 }
 0x643   :  { %v790_v44 = vmul.f32 %v8086_v43, %v8082_v34 }
 0x645   :  { %v792_v46 = vpack.c.bf16 %v790_v44, %v790_v44 }
 0x646   :  { %v783_v47 = vpop.xlane.xlu0 %782 }
 0x647   :  { %8087 = vrcp.f32 %v783_v47  ;;  %7259 = vmatmul.mubr.msk.bf16.vlgmr.msra.gmra.mxu1 %vm547_vm3, %v792_v46 }
 0x648   :  { %7269 = vmatpush3.bf16.xpose.msra.mxu1 %v949_v48  ;;  %7270 = vmatprep.mubr.msk.bf16.mxu1 %vm8344_vm0, %v8342_v4 }
 0x649   :  { %7280 = vmatprep.subr.bf16.mxu1 %v8342_v4 }
 0x64a   :  { %v795_v49 = vpop.permute.xlu0 %794 }
 0x64b   :  { %v800_v50 = vsel %vm575_vm2, %v795_v49, 0 }
 0x64c   :  { %7251 = vmatpush3.bf16.msra.mxu0 %v800_v50 }
 0x64d   :  { %7262 = vmatprep.subr.bf16.mxu0 %v8342_v4 }
 0x64e   :  { %v892_v60 = vpop.permute.xlu0 %891 }
 0x64f   :  { %7271 = vmatmul.mubr.msk.bf16.vlgmr.msra.gmra.mxu1 %vm454_vm1, %v942_v52 }
 0x650   :  { %7282 = vmatprep.mubr.msk.bf16.mxu1 %vm8344_vm0, %v8342_v4 }
 0x654   :  { %v8088_v53 = vpop.eup %8087 }
 0x655   :  { %v789_v56 = vmul.f32 %v8088_v53, %v8084_v39 }
 0x657   :  { %v791_v58 = vpack.c.bf16 %v789_v56, %v789_v56 }
 0x659   :  { %7253 = vmatmul.mubr.msk.bf16.vlgmr.msra.gmra.mxu0 %vm547_vm3, %v791_v58 }
 0x65a   :  { %7263 = vmatpush3.bf16.xpose.msra.mxu0 %v899_v59  ;;  %7264 = vmatprep.mubr.msk.bf16.mxu0 %vm8344_vm0, %v8342_v4 }
 0x65b   :  { %7274 = vmatprep.subr.bf16.mxu0 %v8342_v4 }
 0x661   :  { %7265 = vmatmul.mubr.msk.bf16.vlgmr.msra.gmra.mxu0 %vm454_vm1, %v892_v60 }
 0x662   :  { %7276 = vmatprep.mubr.msk.bf16.mxu0 %vm8344_vm0, %v8342_v4 }
 0x707   :  { %v8747_v62 = vpop.f32.mrf.mxu1 }
 0x709   :  { %v7260_v63 = vpop.f32.mrf.mxu1 }
 0x70b   :  { %v888_v0 = vpop.f32.mrf.mxu1 }
 0x70d   :  { %v7261_v1 = vpop.f32.mrf.mxu1 }
 0x70f   :  { %v985_v2 = vpop.f32.mrf.mxu1 }
 0x710   :  { %v986_v5 = vadd.f32 %v985_v2, %v8666_v21 }
 0x711   :  { %v7272_v7 = vpop.f32.mrf.mxu1 }
 0x712   :  { %v994_v8 = vsel %vm547_vm3, %v986_v5, -inf }
 0x713   :  { %995 = vmax.xlane.f32.xlu1 %v994_v8  ;;  %v988_v9 = vpop.f32.mrf.mxu1 }
 0x715   :  { %v7273_v10 = vpop.f32.mrf.mxu1 }
 0x719   :  { %v8751_v11 = vpop.f32.mrf.mxu0 }
 0x71a   :  { %v7753_v12 = vpack.i.bf16 %v8747_v62, %v8751_v11 }
 0x71b   :  { %v7254_v16 = vpop.f32.mrf.mxu0 }
 0x71d   :  { %v839_v17 = vpop.f32.mrf.mxu0 }
 0x71f   :  { %v7255_v20 = vpop.f32.mrf.mxu0 }
 0x721   :  { %v935_v22 = vpop.f32.mrf.mxu0 }
 0x722   :  { %v936_v23 = vadd.f32 %v935_v22, %v8666_v21 }
 0x723   :  { %v7266_v24 = vpop.f32.mrf.mxu0 }
 0x724   :  { %1063 = vrot.lane.b32.xlu1 %v8686_v51, %s10140_s5  ;;  %v991_v25 = vsel %vm547_vm3, %v936_v23, -inf }
 0x725   :  { %992 = vmax.xlane.f32.xlu0 %v991_v25  ;;  %v938_v26 = vpop.f32.mrf.mxu0 }
 0x727   :  { %v7267_v28 = vpop.f32.mrf.mxu0 }
 0x728   :  { %1113 = vrot.lane.b32.xlu1 %v8634_v6, %s10138_s24 }
 0x72c   :  { %1163 = vrot.lane.b32.xlu1 %v8641_v13, %s10138_s24 }
 0x730   :  { %1161 = vrot.lane.b32.xlu1 %v8654_v19, %s10138_s24 }
 0x79c   :  { %v996_v29 = vpop.xlane.xlu1 %995 }
 0x79d   :  { %v998_v30 = vsub.f32 %v986_v5, %v996_v29 }
 0x79f   :  { %v1001_v31 = vmul.f32 1.442695, %v998_v30 }
 0x7a0   :  { %v1064_v32 = vpop.permute.xlu1 %1063 }
 0x7a1   :  { %8089 = vpow2.f32 %v1001_v31  ;;  %v1069_v33 = vsel %vm575_vm2, %v1064_v32, 0 }
 0x7a2   :  { %7281 = vmatpush3.bf16.msra.mxu1 %v1069_v33 }
 0x7a3   :  { %7292 = vmatprep.subr.bf16.mxu1 %v8342_v4 }
 0x7a4   :  { %v1114_v39 = vpop.permute.xlu1 %1113 }
 0x7a5   :  { %v1119_v52 = vsel %vm454_vm1, %v1114_v39, 0 }
 0x7a8   :  { %v1164_v42 = vpop.permute.xlu1 %1163 }
 0x7a9   :  { %v1169_v45 = vsel %vm454_vm1, %v1164_v42, 0  ;;  %v7846_v42 = vld [vmem:[%s10163_s11 + $0x30] sm:$0xff]  }
 0x7ac   :  { %v1162_v47 = vpop.permute.xlu1 %1161 }
 0x7ae   :  { %v8090_v34 = vpop.eup %8089  ;;  %v993_v35 = vpop.xlane.xlu0 %992 }
 0x7af   :  { %v997_v36 = vsub.f32 %v936_v23, %v993_v35  ;;  %v1006_v6 = vsel %vm547_vm3, %v8090_v34, 0.0 }
 0x7b0   :  { %1007 = vadd.xlane.f32.xlu0 %v1006_v6 }
 0x7b1   :  { %v999_v13 = vmul.f32 1.442695, %v997_v36 }
 0x7b3   :  { %8091 = vpow2.f32 %v999_v13 }
 0x7c0   :  { %v8092_v37 = vpop.eup %8091 }
 0x7c1   :  { %v1003_v19 = vsel %vm547_vm3, %v8092_v37, 0.0 }
 0x7c2   :  { %1004 = vadd.xlane.f32.xlu0 %v1003_v19 }
 0x7d8   :  { %1015 = vrot.lane.b32.xlu0 %v8652_v18, %s10140_s5 }
 0x7dc   :  { %1111 = vrot.lane.b32.xlu0 %v8643_v14, %s10138_s24 }
 0x839   :  { %v1008_v38 = vpop.xlane.xlu0 %1007 }
 0x83a   :  { %8093 = vrcp.f32 %v1008_v38 }
 0x847   :  { %v8094_v40 = vpop.eup %8093 }
 0x848   :  { %v1012_v41 = vmul.f32 %v8094_v40, %v8090_v34 }
 0x84a   :  { %v1014_v43 = vpack.c.bf16 %v1012_v41, %v1012_v41  ;;  %v7845_v41 = vld [vmem:[%s10163_s11 + $0x38] sm:$0xff]  }
 0x84b   :  { %v1005_v44 = vpop.xlane.xlu0 %1004 }
 0x84c   :  { %8095 = vrcp.f32 %v1005_v44  ;;  %7283 = vmatmul.mubr.msk.bf16.vlgmr.msra.gmra.mxu1 %vm547_vm3, %v1014_v43  ;;  %v7847_v43 = vld [vmem:[%s10163_s11 + $0x28] sm:$0xff]   ;;  %v7848_v44 = vld [vmem:[%s10163_s11 + $0x20] sm:$0xff]  }
 0x84d   :  { %7293 = vmatpush3.bf16.xpose.msra.mxu1 %v1169_v45  ;;  %7294 = vmatprep.mubr.msk.bf16.mxu1 %vm8344_vm0, %v8342_v4  ;;  %v7849_v45 = vld [vmem:[%s10163_s11 + $0x18] sm:$0xff]  }
 0x84e   :  { %7304 = vmatprep.subr.bf16.mxu1 %v8342_v4 }
 0x84f   :  { %v1016_v14 = vpop.permute.xlu0 %1015 }
 0x850   :  { %v1021_v46 = vsel %vm575_vm2, %v1016_v14, 0  ;;  %v7850_v14 = vld [vmem:[%s10163_s11 + $0x10] sm:$0xff]  }
 0x851   :  { %7275 = vmatpush3.bf16.msra.mxu0 %v1021_v46  ;;  %v7851_v46 = vld [vmem:[%s10163_s11 + $0x8] sm:$0xff]  }
 0x852   :  { %7286 = vmatprep.subr.bf16.mxu0 %v8342_v4 }
 0x853   :  { %v1112_v53 = vpop.permute.xlu0 %1111 }
 0x854   :  { %7295 = vmatmul.mubr.msk.bf16.vlgmr.msra.gmra.mxu1 %vm454_vm1, %v1162_v47 }
 0x855   :  { %7306 = vmatprep.mubr.msk.bf16.mxu1 %vm8344_vm0, %v8342_v4 }
 0x859   :  { %v8096_v48 = vpop.eup %8095 }
 0x85a   :  { %v1011_v49 = vmul.f32 %v8096_v48, %v8092_v37 }
 0x85c   :  { %v1013_v50 = vpack.c.bf16 %v1011_v49, %v1011_v49 }
 0x85e   :  { %7277 = vmatmul.mubr.msk.bf16.vlgmr.msra.gmra.mxu0 %vm547_vm3, %v1013_v50 }
 0x85f   :  { %7287 = vmatpush3.bf16.xpose.msra.mxu0 %v1119_v52  ;;  %7288 = vmatprep.mubr.msk.bf16.mxu0 %vm8344_vm0, %v8342_v4  ;;  %v7852_v52 = vld [vmem:[%s10163_s11] sm:$0xff]  }
 0x860   :  { %7298 = vmatprep.subr.bf16.mxu0 %v8342_v4 }
 0x866   :  { %7289 = vmatmul.mubr.msk.bf16.vlgmr.msra.gmra.mxu0 %vm454_vm1, %v1112_v53 }
 0x867   :  { %7300 = vmatprep.mubr.msk.bf16.mxu0 %vm8344_vm0, %v8342_v4 }
 0x90c   :  { %v1105_v56 = vpop.f32.mrf.mxu1 }
 0x90e   :  { %v7284_v58 = vpop.f32.mrf.mxu1 }
 0x910   :  { %v1108_v59 = vpop.f32.mrf.mxu1 }
 0x912   :  { %v7285_v60 = vpop.f32.mrf.mxu1 }
 0x914   :  { %v1205_v63 = vpop.f32.mrf.mxu1 }
 0x915   :  { %v1206_v0 = vadd.f32 %v1205_v63, %v8666_v21 }
 0x916   :  { %v7296_v1 = vpop.f32.mrf.mxu1 }
 0x917   :  { %v1214_v2 = vsel %vm547_vm3, %v1206_v0, -inf }
 0x918   :  { %1215 = vmax.xlane.f32.xlu1 %v1214_v2  ;;  %v1208_v5 = vpop.f32.mrf.mxu1 }
 0x91a   :  { %v7297_v7 = vpop.f32.mrf.mxu1 }
 0x91e   :  { %v1057_v8 = vpop.f32.mrf.mxu0 }
 0x91f   :  { %v7758_v26 = vpack.i.bf16 %v1105_v56, %v1057_v8 }
 0x920   :  { %v7278_v9 = vpop.f32.mrf.mxu0 }
 0x922   :  { %v1060_v10 = vpop.f32.mrf.mxu0 }
 0x924   :  { %v7279_v16 = vpop.f32.mrf.mxu0 }
 0x926   :  { %v1155_v17 = vpop.f32.mrf.mxu0 }
 0x927   :  { %v1156_v20 = vadd.f32 %v1155_v17, %v8666_v21 }
 0x928   :  { %v7290_v22 = vpop.f32.mrf.mxu0 }
 0x929   :  { %1283 = vrot.lane.b32.xlu1 %v8686_v51, %s10138_s24  ;;  %v1211_v23 = vsel %vm547_vm3, %v1156_v20, -inf }
 0x92a   :  { %1212 = vmax.xlane.f32.xlu0 %v1211_v23  ;;  %v1158_v24 = vpop.f32.mrf.mxu0 }
 0x92c   :  { %v7291_v25 = vpop.f32.mrf.mxu0 }
 0x92d   :  { %7754 = vrot.lane.b32.xlu1 %v7753_v12, %s10138_s24 }
 0x931   :  { %7759 = vrot.lane.b32.xlu1 %v7758_v26, %s10140_s5 }
 0x9a1   :  { %v1216_v28 = vpop.xlane.xlu1 %1215 }
 0x9a2   :  { %v1218_v29 = vsub.f32 %v1206_v0, %v1216_v28 }
 0x9a4   :  { %v1221_v21 = vmul.f32 1.442695, %v1218_v29 }
 0x9a5   :  { %v1284_v30 = vpop.permute.xlu1 %1283 }
 0x9a6   :  { %8097 = vpow2.f32 %v1221_v21  ;;  %v1289_v51 = vsel %vm575_vm2, %v1284_v30, 0 }
 0x9a7   :  { %7305 = vmatpush3.bf16.msra.mxu1 %v1289_v51  ;;  %v8226_v51 = vld [vmem:[%s10157_s29 + $0x8] sm:$0xff] }
 0x9a8   :  { %7330 = vmatprep.subr.bf16.mxu1 %v8342_v4 }
 0x9a9   :  { %v7755_v63 = vpop.permute.xlu1 %7754 }
 0x9aa   :  { %v7757_v1 = vunpack.i.h.bf16 %v7755_v63  ;;  %v7756_v2 = vunpack.i.l.bf16 %v7755_v63 }
 0x9ac   :  { %v1356_v9 = vsel %vm454_vm1, %v8709_v15, %v7757_v1  ;;  %v1355_v10 = vsel %vm454_vm1, %v8706_v3, %v7756_v2  ;;  %v6562_v15 = vld [vmem:[%s10164_s1] ss:$0 sm:$0xff]  ;;  %v7883_v1 = vld [vmem:[#allocation2 + $0x8] sm:$0xff]  }
 0x9ad   :  { %v7760_v0 = vpop.permute.xlu1 %7759  ;;  %v8225_v3 = vld [vmem:[%s10157_s29] sm:$0xff] }
 0x9ae   :  { %v7762_v5 = vunpack.i.h.bf16 %v7760_v0  ;;  %v7761_v7 = vunpack.i.l.bf16 %v7760_v0  ;;  %v7882_v0 = vld [vmem:[#allocation2 + $0x10] sm:$0xff]   ;;  %v7884_v2 = vld [vmem:[#allocation2] sm:$0xff]  }
 0x9b0   :  { %v1358_v22 = vsel %vm1357_vm4, %v1355_v10, %v7761_v7 }
 0x9b3   :  { %v8098_v31 = vpop.eup %8097  ;;  %v1213_v32 = vpop.xlane.xlu0 %1212 }
 0x9b4   :  { %v1217_v33 = vsub.f32 %v1156_v20, %v1213_v32  ;;  %v1226_v34 = vsel %vm547_vm3, %v8098_v31, 0.0  ;;  %v1359_v20 = vsel %vm1357_vm4, %v1356_v9, %v7762_v5 }
 0x9b5   :  { %1227 = vadd.xlane.f32.xlu0 %v1226_v34  ;;  %v7853_v34 = vld [vmem:[%s10113_s14 + $0x70] ss:$8 sps:$4 sm:$0xff]  }
 0x9b6   :  { %v1219_v62 = vmul.f32 1.442695, %v1217_v33 }
 0x9b8   :  { %8099 = vpow2.f32 %v1219_v62  ;;  %v7855_v62 = vld [vmem:[%s10113_s14 + $0x74] ss:$8 sps:$4 sm:$0xff]  }
 0x9c5   :  { %v8100_v11 = vpop.eup %8099 }
 0x9c6   :  { %v1223_v12 = vsel %vm547_vm3, %v8100_v11, 0.0 }
 0x9c7   :  { %1224 = vadd.xlane.f32.xlu0 %v1223_v12  ;;  %v7865_v12 = vld [vmem:[#allocation2 + $0x38] sm:$0xff]  }
 0x9dd   :  { %1235 = vrot.lane.b32.xlu0 %v8652_v18, %s10138_s24 }
 0xa3e   :  { %v1228_v35 = vpop.xlane.xlu0 %1227 }
 0xa3f   :  { %8101 = vrcp.f32 %v1228_v35  ;;  %v7856_v35 = vld [vmem:[%s10113_s14 + $0x60] ss:$8 sps:$4 sm:$0xff]  }
 0xa4c   :  { %v8102_v36 = vpop.eup %8101 }
 0xa4d   :  { %v1232_v6 = vmul.f32 %v8102_v36, %v8098_v31  ;;  %v7861_v36 = vld [vmem:[%s10113_s14 + $0x54] ss:$8 sps:$4 sm:$0xff]  }
 0xa4f   :  { %v1234_v13 = vpack.c.bf16 %v1232_v6, %v1232_v6  ;;  %v7859_v6 = vld [vmem:[%s10113_s14 + $0x50] ss:$8 sps:$4 sm:$0xff]  }
 0xa50   :  { %v1225_v37 = vpop.xlane.xlu0 %1224 }
 0xa51   :  { %8103 = vrcp.f32 %v1225_v37  ;;  %7307 = vmatmul.mubr.msk.bf16.vlgmr.msra.gmra.mxu1 %vm547_vm3, %v1234_v13  ;;  %v7864_v13 = vld [vmem:[%s10113_s14 + $0x44] ss:$8 sps:$4 sm:$0xff]   ;;  %v7862_v37 = vld [vmem:[%s10113_s14 + $0x40] ss:$8 sps:$4 sm:$0xff]  }
 0xa52   :  { %7346 = vmatprep.mubr.msk.bf16.mxu1 %vm8344_vm0, %v8342_v4  ;;  %7331 = vmatpush3.bf16.msra.mxu1 %v7865_v12 }
 0xa53   :  { %7332 = vmatprep.subr.bf16.mxu1 %v8342_v4 }
 0xa54   :  { %v1236_v19 = vpop.permute.xlu0 %1235 }
 0xa55   :  { %v1241_v38 = vsel %vm575_vm2, %v1236_v19, 0 }
 0xa56   :  { %7299 = vmatpush3.bf16.msra.mxu0 %v1241_v38 }
 0xa57   :  { %7310 = vmatprep.subr.bf16.mxu0 %v8342_v4 }
 0xa5e   :  { %v8104_v39 = vpop.eup %8103 }
 0xa5f   :  { %v1231_v18 = vmul.f32 %v8104_v39, %v8100_v11  ;;  %v7858_v11 = vld [vmem:[%s10113_s14 + $0x64] ss:$8 sps:$4 sm:$0xff]  }
 0xa61   :  { %v1233_v40 = vpack.c.bf16 %v1231_v18, %v1231_v18 }
 0xa63   :  { %7301 = vmatmul.mubr.msk.bf16.vlgmr.msra.gmra.mxu0 %vm547_vm3, %v1233_v40 }
 0xa64   :  { %7326 = vmatprep.mubr.msk.bf16.mxu0 %vm8344_vm0, %v8342_v4  ;;  %7311 = vmatpush3.bf16.msra.mxu0 %v7845_v41 }
 0xa65   :  { %7312 = vmatprep.subr.bf16.mxu0 %v8342_v4 }
 0xa68   :  { %7313 = vmatpush3.bf16.msra.mxu0 %v7846_v42 }
 0xa69   :  { %7314 = vmatprep.subr.bf16.mxu0 %v8342_v4 }
 0xa6c   :  { %7315 = vmatpush3.bf16.msra.mxu0 %v7847_v43 }
 0xa6d   :  { %7316 = vmatprep.subr.bf16.mxu0 %v8342_v4 }
 0xa70   :  { %7317 = vmatpush3.bf16.msra.mxu0 %v7848_v44  ;;  %v7868_v44 = vld [vmem:[%s10113_s14 + $0x34] ss:$8 sps:$4 sm:$0xff]  }
 0xa71   :  { %7318 = vmatprep.subr.bf16.mxu0 %v8342_v4 }
 0xa74   :  { %7319 = vmatpush3.bf16.msra.mxu0 %v7849_v45  ;;  %v7866_v45 = vld [vmem:[%s10113_s14 + $0x30] ss:$8 sps:$4 sm:$0xff]  }
 0xa75   :  { %7320 = vmatprep.subr.bf16.mxu0 %v8342_v4 }
 0xa78   :  { %7321 = vmatpush3.bf16.msra.mxu0 %v7850_v14  ;;  %v7869_v14 = vld [vmem:[#allocation2 + $0x30] sm:$0xff]  }
 0xa79   :  { %7322 = vmatprep.subr.bf16.mxu0 %v8342_v4  ;;  %7333 = vmatpush3.bf16.msra.mxu1 %v7869_v14 }
 0xa7a   :  { %7334 = vmatprep.subr.bf16.mxu1 %v8342_v4 }
 0xa7c   :  { %7323 = vmatpush3.bf16.msra.mxu0 %v7851_v46  ;;  %v7872_v46 = vld [vmem:[%s10113_s14 + $0x24] ss:$8 sps:$4 sm:$0xff]  }
 0xa7d   :  { %7324 = vmatprep.subr.bf16.mxu0 %v8342_v4 }
 0xa80   :  { %7325 = vmatpush3.bf16.msra.mxu0 %v7852_v52  ;;  %v7877_v52 = vld [vmem:[#allocation2 + $0x20] sm:$0xff]  }
 0xa81   :  { %1742 = vmatprep.subr.bf16.mxu0 %v7855_v62 }
 0xb11   :  { %v1325_v47 = vpop.f32.mrf.mxu1 }
 0xb13   :  { %v7308_v48 = vpop.f32.mrf.mxu1 }
 0xb14   :  { %v7873_v48 = vld [vmem:[#allocation2 + $0x28] sm:$0xff]  }
 0xb15   :  { %v1328_v49 = vpop.f32.mrf.mxu1  ;;  %7335 = vmatpush3.bf16.msra.mxu1 %v7873_v48 }
 0xb16   :  { %v7876_v49 = vld [vmem:[%s10113_s14 + $0x14] ss:$8 sps:$4 sm:$0xff]   ;;  %7336 = vmatprep.subr.bf16.mxu1 %v8342_v4 }
 0xb17   :  { %v7309_v50 = vpop.f32.mrf.mxu1 }
 0xb18   :  { %v7874_v50 = vld [vmem:[%s10113_s14 + $0x10] ss:$8 sps:$4 sm:$0xff]  }
 0xb19   :  { %7337 = vmatpush3.bf16.msra.mxu1 %v7877_v52 }
 0xb1a   :  { %7338 = vmatprep.subr.bf16.mxu1 %v8342_v4 }
 0xb23   :  { %v1277_v53 = vpop.f32.mrf.mxu0 }
 0xb24   :  { %v7763_v56 = vpack.i.bf16 %v1325_v47, %v1277_v53  ;;  %v7870_v47 = vld [vmem:[%s10113_s14 + $0x20] ss:$8 sps:$4 sm:$0xff]   ;;  %v7880_v53 = vld [vmem:[%s10113_s14 + $0x4] ss:$8 sps:$4 sm:$0xff]  }
 0xb25   :  { %v7302_v58 = vpop.f32.mrf.mxu0 }
 0xb26   :  { %7764 = vrot.lane.b32.xlu0 %v7763_v56, %s10142_s10  ;;  %v7878_v56 = vld [vmem:[%s10113_s14] ss:$8 sps:$4 sm:$0xff]  }
 0xb27   :  { %v1280_v59 = vpop.f32.mrf.mxu0  ;;  %v141_v58 = vld [vmem:[%s10165_s6] sm:$0xff] }
 0xb28   :  { %v142_v59 = vld [vmem:[%s10165_s6 + $0x8] sm:$0xff] }
 0xb29   :  { %v7303_v60 = vpop.f32.mrf.mxu0  ;;  %v8932_v63 = vpack.c.bf16 %v142_v59, %v141_v58 }
 0xb2a   :  { %v7881_v60 = vld [vmem:[#allocation2 + $0x18] sm:$0xff]  }
 0xb2b   :  { %7339 = vmatpush3.bf16.msra.mxu1 %v7881_v60 }
 0xb2c   :  { %7340 = vmatprep.subr.bf16.mxu1 %v8342_v4 }
 0xb2f   :  { %7341 = vmatpush3.bf16.msra.mxu1 %v7882_v0 }
 0xb30   :  { %7342 = vmatprep.subr.bf16.mxu1 %v8342_v4 }
 0xb33   :  { %7343 = vmatpush3.bf16.msra.mxu1 %v7883_v1 }
 0xb34   :  { %7344 = vmatprep.subr.bf16.mxu1 %v8342_v4 }
 0xb37   :  { %7345 = vmatpush3.bf16.msra.mxu1 %v7884_v2 }
 0xb38   :  { %7350 = vmatprep.subr.bf16.mxu1 %v8342_v4 }
 0xb98   :  { %v7765_v8 = vpop.permute.xlu0 %7764 }
 0xb99   :  { %v7767_v16 = vunpack.i.h.bf16 %v7765_v8  ;;  %v7766_v17 = vunpack.i.l.bf16 %v7765_v8 }
 0xb9b   :  { %v1362_v23 = vsel %vm1360_vm5, %v1359_v20, %v7767_v16  ;;  %v1361_v24 = vsel %vm1360_vm5, %v1358_v22, %v7766_v17  ;;  %v6563_v22 = vld [vmem:[%s10166_s16] ss:$0 sm:$0xff] }
 0xb9c   :  { %v1379_v25 = vpack.c.bf16 %v1362_v23, %v1361_v24 }
 0xb9e   :  { %7327 = vmatmul.mubr.bf16.vlgmr.msra.gmra.mxu0 %v1379_v25 }
 0xb9f   :  { %1774 = vmatprep.mubr.bf16.mxu0 %v8343_v27  ;;  %1743 = vmatpush1.bf16.msra.mxu0 %v7853_v34 }
 0xba0   :  { %1744 = vmatprep.subr.bf16.mxu0 %v7858_v11 }
 0xba3   :  { %1745 = vmatpush1.bf16.msra.mxu0 %v7856_v35 }
 0xba4   :  { %1746 = vmatprep.subr.bf16.mxu0 %v7861_v36  ;;  %v6565_v36 = vld [vmem:[%s10112_s13] ss:$0 sm:$0xff] }
 0xba7   :  { %1747 = vmatpush1.bf16.msra.mxu0 %v7859_v6 }
 0xba8   :  { %1748 = vmatprep.subr.bf16.mxu0 %v7864_v13 }
 0xbab   :  { %1749 = vmatpush1.bf16.msra.mxu0 %v7862_v37 }
 0xbac   :  { %1750 = vmatprep.subr.bf16.mxu0 %v7868_v44 }
 0xbaf   :  { %1751 = vmatpush1.bf16.msra.mxu0 %v7866_v45 }
 0xbb0   :  { %1752 = vmatprep.subr.bf16.mxu0 %v7872_v46  ;;  %v8347_v46 = vmov 1966171168  }
 0xbb3   :  { %1753 = vmatpush1.bf16.msra.mxu0 %v7870_v47  ;;  %v1801_v47 = vunpack.c.l.s4 %v8347_v46 }
 0xbb4   :  { %1754 = vmatprep.subr.bf16.mxu0 %v7876_v49 }
 0xbb5   :  { %v1802_v48 = vunpack.c.0.s8 %v1801_v47 }
 0xbb7   :  { %1755 = vmatpush1.bf16.msra.mxu0 %v7874_v50  ;;  %v1805_v49 = vsub.s32 %v1802_v48, %v8618_v54  ;;  %v6590_v50 = vld.sshfl [vmem:[%s10168_s8] sm:$0x11 pattern:$0x75316420]  ;;  %s10170_s8 = smov 96  }
 0xbb8   :  { %1756 = vmatprep.subr.bf16.mxu0 %v7880_v53 }
 0xbb9   :  { %v1806_v52 = vrot.slane %v6590_v50, %v1805_v49 }
 0xbbb   :  { %1757 = vmatpush1.bf16.msra.mxu0 %v7878_v56  ;;  %v8993_v53 = vrot.slane %v1806_v52, %v8629_v61  ;;  %v1799_v56 = vcombine.high %v6590_v50, %v6590_v50 }
 0xbbc   :  { %7374 = vmatprep.subr.bf16.mxu0 %v8342_v4 }
 0xbbd   :  { %v1813_v60 = vrot.slane %v1799_v56, %v1805_v49 }
 0xbbe   :  { %1775 = vmatmul.mubr.bf16.vlgmr.msra.gmra.mxu0 %v8932_v63 }
 0xbbf   :  { %7376 = vmatprep.mubr.msk.bf16.mxu0 %vm8344_vm0, %v8342_v4 }
 0xc5e   :  { %v1462_v26 = vpop.f32.mrf.mxu0 }
 0xc5f   :  { %v1469_v28 = vadd.f32 %v8225_v3, %v1462_v26  ;;  %v6564_v26 = vld [vmem:[%s10167_s12] ss:$0 sm:$0xff] }
 0xc60   :  { %v7328_v29 = vpop.f32.mrf.mxu0 }
 0xc61   :  { %v8863_v21 = vadd.f32 %v6562_v15, %v1469_v28 }
 0xc62   :  { %v1465_v30 = vpop.f32.mrf.mxu0 }
 0xc63   :  { %v1470_v31 = vadd.f32 %v8226_v51, %v1465_v30  ;;  %1482 = vadd.xlane.f32.xlu1 %v8863_v21  ;;  %v1650_v30 = vld [vmem:[%s10114_s15] sm:$0x3] }
 0xc64   :  { %v7329_v32 = vpop.f32.mrf.mxu0  ;;  %v1655_v51 = vrot.slane %v1650_v30, %v8629_v61  ;;  %v8963_v13 = vrot.slane %v1650_v30, %v8621_v55 }
 0xc65   :  { %v8869_v33 = vadd.f32 %v6562_v15, %v1470_v31 }
 0xc67   :  { %1484 = vadd.xlane.f32.xlu0 %v8869_v33 }
 0xc7e   :  { %v1776_v31 = vpop.f32.mrf.mxu0 }
 0xc7f   :  { %v1777_v32 = vadd.f32 %v1776_v31, %v1655_v51 }
 0xc80   :  { %v1778_v11 = vpop.f32.mrf.mxu0 }
 0xc81   :  { %v8954_v34 = vpack.c.bf16 %v1777_v32, %v1777_v32 }
 0xc82   :  { %v1780_v12 = vpop.f32.mrf.mxu0 }
 0xc83   :  { %v1828_v62 = vsel %vm454_vm1, %v8954_v34, 0  ;;  %v1781_v35 = vadd.f32 %v1780_v12, %v1655_v51 }
 0xc85   :  { %v8965_v37 = vpack.c.bf16 %v1781_v35, %v1781_v35 }
 0xcec   :  { %v1483_v19 = vpop.xlane.xlu1 %1482 }
 0xced   :  { %v1486_v38 = vmul.f32 0.0078125, %v1483_v19 }
 0xcef   :  { %v1488_v39 = vsub.f32 %v8863_v21, %v1486_v38 }
 0xcf0   :  { %v1485_v18 = vpop.xlane.xlu0 %1484 }
 0xcf1   :  { %v1487_v40 = vmul.f32 0.0078125, %v1485_v18  ;;  %v1490_v41 = vmul.f32 %v1488_v39, %v1488_v39 }
 0xcf3   :  { %1492 = vadd.xlane.f32.xlu0 %v1490_v41  ;;  %v1489_v42 = vsub.f32 %v8869_v33, %v1487_v40  ;;  %v1779_v40 = vadd.f32 %v1778_v11, %v8963_v13  ;;  %v1874_v41 = vsel %vm454_vm1, %v8965_v37, 0 }
 0xcf5   :  { %v1491_v43 = vmul.f32 %v1489_v42, %v1489_v42  ;;  %v8977_v44 = vpack.c.bf16 %v1779_v40, %v1779_v40 }
 0xcf7   :  { %1494 = vadd.xlane.f32.xlu0 %v1491_v43  ;;  %v1944_v14 = vsel %vm575_vm2, %v8977_v44, 0 }
 0xd7c   :  { %v1493_v5 = vpop.xlane.xlu0 %1492 }
 0xd7d   :  { %v1496_v7 = vmul.f32 0.0078125, %v1493_v5  ;;  %v8998_v5 = vrot.slane %v1813_v60, %v8629_v61 }
 0xd7f   :  { %v1498_v8 = vadd.f32 1e-05, %v1496_v7 }
 0xd80   :  { %v1495_v9 = vpop.xlane.xlu0 %1494 }
 0xd81   :  { %8105 = vrsqrt.f32 %v1498_v8  ;;  %v1497_v10 = vmul.f32 0.0078125, %v1495_v9 }
 0xd83   :  { %v1499_v16 = vadd.f32 1e-05, %v1497_v10 }
 0xd85   :  { %8107 = vrsqrt.f32 %v1499_v16 }
 0xd8e   :  { %v8106_v17 = vpop.eup %8105 }
 0xd8f   :  { %v1502_v20 = vmul.f32 %v8106_v17, %v1488_v39 }
 0xd91   :  { %v1510_v25 = vmul.f32 %v6563_v22, %v1502_v20 }
 0xd92   :  { %v8108_v23 = vpop.eup %8107 }
 0xd93   :  { %v1503_v24 = vmul.f32 %v8108_v23, %v1489_v42  ;;  %v1518_v3 = vadd.f32 %v6564_v26, %v1510_v25 }
 0xd95   :  { %v1511_v15 = vmul.f32 %v6563_v22, %v1503_v24 }
 0xd97   :  { %v1519_v28 = vadd.f32 %v6564_v26, %v1511_v15 }
 0xd99   :  { %v1536_v29 = vpack.c.bf16 %v1519_v28, %v1518_v3 }
 0xd9b   :  { %7347 = vmatmul.mubr.bf16.vlgmr.msra.gmra.mxu1 %v1536_v29 }
 0xd9c   :  { %7352 = vmatprep.mubr.msk.bf16.mxu1 %vm8344_vm0, %v8342_v4  ;;  %7351 = vmatpush3.bf16.xpose.msra.mxu1 %v1828_v62  ;;  %v1782_v62 = vpop.f32.mrf.mxu0 }
 0xd9d   :  { %7356 = vmatprep.subr.bf16.mxu1 %v8342_v4  ;;  %v1783_v12 = vadd.f32 %v1782_v62, %v8963_v13 }
 0xe5b   :  { %v1626_v6 = vpop.f32.mrf.mxu1 }
 0xe5c   :  { %v1627_v19 = vadd.f32 %v6565_v36, %v1626_v6  ;;  %v9018_v6 = vpack.c.bf16 %v1783_v12, %v1783_v12 }
 0xe5d   :  { %v7348_v38 = vpop.f32.mrf.mxu1 }
 0xe5e   :  { %v8967_v39 = vpack.c.bf16 %v1627_v19, %v1627_v19 }
 0xe5f   :  { %v1629_v18 = vpop.f32.mrf.mxu1 }
 0xe60   :  { %7353 = vmatmul.mubr.msk.bf16.vlgmr.msra.gmra.mxu1 %vm454_vm1, %v8967_v39  ;;  %v1630_v43 = vadd.f32 %v6565_v36, %v1629_v18  ;;  %v1990_v18 = vsel %vm575_vm2, %v9018_v6, 0 }
 0xe61   :  { %7357 = vmatpush3.bf16.xpose.msra.mxu1 %v1874_v41  ;;  %v7349_v42 = vpop.f32.mrf.mxu1  ;;  %7358 = vmatprep.mubr.msk.bf16.mxu1 %vm8344_vm0, %v8342_v4 }
 0xe62   :  { %7362 = vmatprep.subr.bf16.mxu1 %v8342_v4  ;;  %v8979_v45 = vpack.c.bf16 %v1630_v43, %v1630_v43 }
 0xe68   :  { %7359 = vmatmul.mubr.msk.bf16.vlgmr.msra.gmra.mxu1 %vm454_vm1, %v8979_v45 }
 0xe69   :  { %7363 = vmatpush3.bf16.msra.mxu1 %v1944_v14  ;;  %7364 = vmatprep.mubr.msk.bf16.mxu1 %vm8344_vm0, %v8342_v4 }
 0xe6a   :  { %7368 = vmatprep.subr.bf16.mxu1 %v8342_v4 }
 0xf20   :  { %v1864_v58 = vpop.f32.mrf.mxu1 }
 0xf21   :  { %v1865_v59 = vadd.f32 %v1864_v58, %v8993_v53 }
 0xf22   :  { %v7354_v0 = vpop.f32.mrf.mxu1 }
 0xf23   :  { %v1916_v1 = vsel %vm547_vm3, %v1865_v59, -inf }
 0xf24   :  { %1917 = vmax.xlane.f32.xlu1 %v1916_v1  ;;  %v1867_v2 = vpop.f32.mrf.mxu1 }
 0xf26   :  { %v7355_v7 = vpop.f32.mrf.mxu1 }
 0xf28   :  { %v1910_v8 = vpop.f32.mrf.mxu1 }
 0xf29   :  { %v1911_v9 = vadd.f32 %v1910_v8, %v8998_v5 }
 0xf2a   :  { %v7360_v10 = vpop.f32.mrf.mxu1 }
 0xf2b   :  { %v1919_v16 = vsel %vm547_vm3, %v1911_v9, -inf }
 0xf2c   :  { %1920 = vmax.xlane.f32.xlu0 %v1919_v16  ;;  %v1913_v17 = vpop.f32.mrf.mxu1 }
 0xf2e   :  { %v7361_v20 = vpop.f32.mrf.mxu1 }
 0xfad   :  { %v1918_v22 = vpop.xlane.xlu1 %1917 }
 0xfae   :  { %v1922_v23 = vsub.f32 %v1865_v59, %v1918_v22 }
 0xfb0   :  { %v1924_v24 = vmul.f32 1.442695, %v1922_v23 }
 0xfb2   :  { %8109 = vpow2.f32 %v1924_v24 }
 0xfb5   :  { %v1921_v25 = vpop.xlane.xlu0 %1920 }
 0xfb6   :  { %v1923_v26 = vsub.f32 %v1911_v9, %v1921_v25 }
 0xfb8   :  { %v1926_v15 = vmul.f32 1.442695, %v1923_v26 }
 0xfba   :  { %8111 = vpow2.f32 %v1926_v15 }
 0xfbf   :  { %v8110_v3 = vpop.eup %8109 }
 0xfc0   :  { %v1928_v28 = vsel %vm547_vm3, %v8110_v3, 0.0 }
 0xfc1   :  { %1929 = vadd.xlane.f32.xlu1 %v1928_v28 }
 0xfc7   :  { %v8112_v29 = vpop.eup %8111 }
 0xfc8   :  { %v1931_v30 = vsel %vm547_vm3, %v8112_v29, 0.0 }
 0xfc9   :  { %1932 = vadd.xlane.f32.xlu0 %v1931_v30 }
 0xfd2   :  { %2036 = vrot.lane.b32.xlu1 %v8954_v34, %s10142_s10 }
 0xfd6   :  { %2033 = vrot.lane.b32.xlu1 %v8967_v39, %s10142_s10 }
 0xfda   :  { %2085 = vrot.lane.b32.xlu1 %v8979_v45, %s10142_s10 }
 0xfdf   :  { %2088 = vrot.lane.b32.xlu0 %v8965_v37, %s10142_s10 }
0x104a   :  { %v1930_v51 = vpop.xlane.xlu1 %1929 }
0x104b   :  { %8113 = vrcp.f32 %v1930_v51 }
0x104e   :  { %v2037_v31 = vpop.permute.xlu1 %2036 }
0x104f   :  { %v2042_v32 = vsel %vm454_vm1, %v2037_v31, 0 }
0x1050   :  { %7375 = vmatpush3.bf16.xpose.msra.mxu0 %v2042_v32 }
0x1051   :  { %7386 = vmatprep.subr.bf16.mxu0 %v8342_v4 }
0x1052   :  { %v1933_v11 = vpop.xlane.xlu0 %1932  ;;  %v2034_v35 = vpop.permute.xlu1 %2033 }
0x1053   :  { %8115 = vrcp.f32 %v1933_v11 }
0x1056   :  { %v2089_v41 = vpop.permute.xlu0 %2088  ;;  %v2086_v14 = vpop.permute.xlu1 %2085 }
0x1057   :  { %7377 = vmatmul.mubr.msk.bf16.vlgmr.msra.gmra.mxu0 %vm454_vm1, %v2034_v35  ;;  %v2094_v43 = vsel %vm454_vm1, %v2089_v41, 0 }
0x1058   :  { %v8114_v36 = vpop.eup %8113  ;;  %7388 = vmatprep.mubr.msk.bf16.mxu0 %vm8344_vm0, %v8342_v4 }
0x1059   :  { %v1936_v19 = vmul.f32 %v8114_v36, %v8110_v3 }
0x105b   :  { %v1938_v38 = vpack.c.bf16 %v1936_v19, %v1936_v19 }
0x105d   :  { %7365 = vmatmul.mubr.msk.bf16.vlgmr.msra.gmra.mxu1 %vm547_vm3, %v1938_v38 }
0x105e   :  { %7369 = vmatpush3.bf16.msra.mxu1 %v1990_v18  ;;  %7370 = vmatprep.mubr.msk.bf16.mxu1 %vm8344_vm0, %v8342_v4 }
0x105f   :  { %7380 = vmatprep.subr.bf16.mxu1 %v8342_v4 }
0x1060   :  { %v8116_v13 = vpop.eup %8115 }
0x1061   :  { %v1937_v40 = vmul.f32 %v8116_v13, %v8112_v29 }
0x1063   :  { %v1939_v42 = vpack.c.bf16 %v1937_v40, %v1937_v40 }
0x1065   :  { %7371 = vmatmul.mubr.msk.bf16.vlgmr.msra.gmra.mxu1 %vm547_vm3, %v1939_v42 }
0x1066   :  { %7381 = vmatpush3.bf16.xpose.msra.mxu1 %v2094_v43  ;;  %7382 = vmatprep.mubr.msk.bf16.mxu1 %vm8344_vm0, %v8342_v4 }
0x1067   :  { %7392 = vmatprep.subr.bf16.mxu1 %v8342_v4 }
0x106d   :  { %7383 = vmatmul.mubr.msk.bf16.vlgmr.msra.gmra.mxu1 %vm454_vm1, %v2086_v14 }
0x106e   :  { %7394 = vmatprep.mubr.msk.bf16.mxu1 %vm8344_vm0, %v8342_v4 }
0x1117   :  { %v2078_v46 = vpop.f32.mrf.mxu0 }
0x1118   :  { %v2079_v47 = vadd.f32 %v2078_v46, %v8993_v53 }
0x1119   :  { %v7378_v48 = vpop.f32.mrf.mxu0 }
0x111a   :  { %v2136_v49 = vsel %vm547_vm3, %v2079_v47, -inf }
0x111b   :  { %2137 = vmax.xlane.f32.xlu1 %v2136_v49  ;;  %v2081_v50 = vpop.f32.mrf.mxu0 }
0x111d   :  { %v9036_v52 = vpop.f32.mrf.mxu1  ;;  %v7379_v56 = vpop.f32.mrf.mxu0 }
0x111f   :  { %v7366_v58 = vpop.f32.mrf.mxu1 }
0x1121   :  { %v1983_v59 = vpop.f32.mrf.mxu1 }
0x1123   :  { %v7367_v60 = vpop.f32.mrf.mxu1 }
0x1125   :  { %v9038_v0 = vpop.f32.mrf.mxu1 }
0x1127   :  { %v7372_v1 = vpop.f32.mrf.mxu1 }
0x1129   :  { %v2029_v2 = vpop.f32.mrf.mxu1 }
0x112b   :  { %v7373_v7 = vpop.f32.mrf.mxu1 }
0x112c   :  { %2161 = vrot.lane.b32.xlu1 %v8977_v44, %s10142_s10 }
0x112d   :  { %v2130_v8 = vpop.f32.mrf.mxu1 }
0x112e   :  { %v2131_v9 = vadd.f32 %v2130_v8, %v8998_v5 }
0x112f   :  { %v7384_v10 = vpop.f32.mrf.mxu1 }
0x1130   :  { %2260 = vrot.lane.b32.xlu1 %v8954_v34, %s10140_s5  ;;  %v2139_v16 = vsel %vm547_vm3, %v2131_v9, -inf }
0x1131   :  { %2140 = vmax.xlane.f32.xlu0 %v2139_v16  ;;  %v2133_v17 = vpop.f32.mrf.mxu1 }
0x1133   :  { %v7385_v20 = vpop.f32.mrf.mxu1 }
0x1134   :  { %2310 = vrot.lane.b32.xlu1 %v8965_v37, %s10140_s5 }
0x1138   :  { %2258 = vrot.lane.b32.xlu1 %v8967_v39, %s10140_s5 }
0x11a4   :  { %v2138_v22 = vpop.xlane.xlu1 %2137 }
0x11a5   :  { %v2142_v23 = vsub.f32 %v2079_v47, %v2138_v22 }
0x11a7   :  { %v2144_v24 = vmul.f32 1.442695, %v2142_v23 }
0x11a8   :  { %v2162_v25 = vpop.permute.xlu1 %2161 }
0x11a9   :  { %8117 = vpow2.f32 %v2144_v24  ;;  %v2167_v26 = vsel %vm575_vm2, %v2162_v25, 0 }
0x11aa   :  { %7387 = vmatpush3.bf16.msra.mxu0 %v2167_v26 }
0x11ab   :  { %7398 = vmatprep.subr.bf16.mxu0 %v8342_v4 }
0x11ac   :  { %v2261_v11 = vpop.permute.xlu1 %2260 }
0x11ad   :  { %v2266_v36 = vsel %vm454_vm1, %v2261_v11, 0 }
0x11b0   :  { %v2311_v19 = vpop.permute.xlu1 %2310 }
0x11b1   :  { %v2316_v14 = vsel %vm454_vm1, %v2311_v19, 0 }
0x11b4   :  { %v2259_v18 = vpop.permute.xlu1 %2258 }
0x11b6   :  { %v8118_v15 = vpop.eup %8117 }
0x11b7   :  { %v2148_v3 = vsel %vm547_vm3, %v8118_v15, 0.0 }
0x11b8   :  { %2149 = vadd.xlane.f32.xlu0 %v2148_v3 }
0x11ba   :  { %v2141_v28 = vpop.xlane.xlu0 %2140 }
0x11bb   :  { %v2143_v29 = vsub.f32 %v2131_v9, %v2141_v28 }
0x11bd   :  { %v2146_v30 = vmul.f32 1.442695, %v2143_v29 }
0x11bf   :  { %8119 = vpow2.f32 %v2146_v30 }
0x11cc   :  { %v8120_v51 = vpop.eup %8119 }
0x11cd   :  { %v2151_v31 = vsel %vm547_vm3, %v8120_v51, 0.0 }
0x11ce   :  { %2152 = vadd.xlane.f32.xlu0 %v2151_v31 }
0x11e4   :  { %2210 = vrot.lane.b32.xlu0 %v9018_v6, %s10142_s10 }
0x11e8   :  { %2308 = vrot.lane.b32.xlu0 %v8979_v45, %s10140_s5 }
0x1241   :  { %v2150_v32 = vpop.xlane.xlu0 %2149 }
0x1242   :  { %8121 = vrcp.f32 %v2150_v32 }
0x124f   :  { %v8122_v62 = vpop.eup %8121 }
0x1250   :  { %v2156_v12 = vmul.f32 %v8122_v62, %v8118_v15 }
0x1252   :  { %v2158_v35 = vpack.c.bf16 %v2156_v12, %v2156_v12 }
0x1254   :  { %7389 = vmatmul.mubr.msk.bf16.vlgmr.msra.gmra.mxu0 %vm547_vm3, %v2158_v35 }
0x1255   :  { %7399 = vmatpush3.bf16.xpose.msra.mxu0 %v2266_v36  ;;  %7400 = vmatprep.mubr.msk.bf16.mxu0 %vm8344_vm0, %v8342_v4 }
0x1256   :  { %7410 = vmatprep.subr.bf16.mxu0 %v8342_v4 }
0x1257   :  { %v2153_v38 = vpop.xlane.xlu0 %2152 }
0x1258   :  { %8123 = vrcp.f32 %v2153_v38 }
0x125b   :  { %v2211_v13 = vpop.permute.xlu0 %2210 }
0x125c   :  { %v2216_v40 = vsel %vm575_vm2, %v2211_v13, 0  ;;  %7401 = vmatmul.mubr.msk.bf16.vlgmr.msra.gmra.mxu0 %vm454_vm1, %v2259_v18 }
0x125d   :  { %7393 = vmatpush3.bf16.msra.mxu1 %v2216_v40  ;;  %7412 = vmatprep.mubr.msk.bf16.mxu0 %vm8344_vm0, %v8342_v4 }
0x125e   :  { %7404 = vmatprep.subr.bf16.mxu1 %v8342_v4 }
0x125f   :  { %v2309_v46 = vpop.permute.xlu0 %2308 }
0x1265   :  { %v8124_v41 = vpop.eup %8123 }
0x1266   :  { %v2157_v42 = vmul.f32 %v8124_v41, %v8120_v51 }
0x1268   :  { %v2159_v43 = vpack.c.bf16 %v2157_v42, %v2157_v42 }
0x126a   :  { %7395 = vmatmul.mubr.msk.bf16.vlgmr.msra.gmra.mxu1 %vm547_vm3, %v2159_v43 }
0x126b   :  { %7405 = vmatpush3.bf16.xpose.msra.mxu1 %v2316_v14  ;;  %7406 = vmatprep.mubr.msk.bf16.mxu1 %vm8344_vm0, %v8342_v4 }
0x126c   :  { %7416 = vmatprep.subr.bf16.mxu1 %v8342_v4 }
0x1272   :  { %7407 = vmatmul.mubr.msk.bf16.vlgmr.msra.gmra.mxu1 %vm454_vm1, %v2309_v46 }
0x1273   :  { %7418 = vmatprep.mubr.msk.bf16.mxu1 %vm8344_vm0, %v8342_v4 }
0x1314   :  { %v9076_v47 = vpop.f32.mrf.mxu0 }
0x1316   :  { %v7390_v48 = vpop.f32.mrf.mxu0 }
0x1318   :  { %v2206_v49 = vpop.f32.mrf.mxu0 }
0x131a   :  { %v7391_v50 = vpop.f32.mrf.mxu0 }
0x131c   :  { %v2302_v56 = vpop.f32.mrf.mxu0 }
0x131d   :  { %v2303_v58 = vadd.f32 %v2302_v56, %v8993_v53 }
0x131e   :  { %v7402_v59 = vpop.f32.mrf.mxu0 }
0x131f   :  { %v2358_v60 = vsel %vm547_vm3, %v2303_v58, -inf }
0x1320   :  { %2359 = vmax.xlane.f32.xlu1 %v2358_v60  ;;  %v2305_v1 = vpop.f32.mrf.mxu0 }
0x1322   :  { %v7403_v2 = vpop.f32.mrf.mxu0 }
0x132a   :  { %v9080_v7 = vpop.f32.mrf.mxu1 }
0x132b   :  { %v7768_v8 = vpack.i.bf16 %v9080_v7, %v9076_v47 }
0x132c   :  { %v7396_v9 = vpop.f32.mrf.mxu1 }
0x132e   :  { %v2255_v10 = vpop.f32.mrf.mxu1 }
0x1330   :  { %v7397_v16 = vpop.f32.mrf.mxu1 }
0x1331   :  { %2382 = vrot.lane.b32.xlu1 %v8977_v44, %s10140_s5 }
0x1332   :  { %v2352_v17 = vpop.f32.mrf.mxu1 }
0x1333   :  { %v2353_v20 = vadd.f32 %v2352_v17, %v8998_v5 }
0x1334   :  { %v7408_v22 = vpop.f32.mrf.mxu1 }
0x1335   :  { %2480 = vrot.lane.b32.xlu1 %v8954_v34, %s10169_s9  ;;  %v2361_v23 = vsel %vm547_vm3, %v2353_v20, -inf }
0x1336   :  { %2362 = vmax.xlane.f32.xlu0 %v2361_v23  ;;  %v2355_v24 = vpop.f32.mrf.mxu1 }
0x1338   :  { %v7409_v25 = vpop.f32.mrf.mxu1 }
0x1339   :  { %2530 = vrot.lane.b32.xlu1 %v8965_v37, %s10169_s9 }
0x133d   :  { %2478 = vrot.lane.b32.xlu1 %v8967_v39, %s10169_s9 }
0x13a9   :  { %v2360_v26 = vpop.xlane.xlu1 %2359 }
0x13aa   :  { %v2364_v15 = vsub.f32 %v2303_v58, %v2360_v26 }
0x13ac   :  { %v2366_v3 = vmul.f32 1.442695, %v2364_v15 }
0x13ad   :  { %v2383_v28 = vpop.permute.xlu1 %2382 }
0x13ae   :  { %8125 = vpow2.f32 %v2366_v3  ;;  %v2388_v29 = vsel %vm575_vm2, %v2383_v28, 0 }
0x13af   :  { %7411 = vmatpush3.bf16.msra.mxu0 %v2388_v29 }
0x13b0   :  { %7422 = vmatprep.subr.bf16.mxu0 %v8342_v4 }
0x13b1   :  { %v2481_v12 = vpop.permute.xlu1 %2480 }
0x13b2   :  { %v2486_v19 = vsel %vm454_vm1, %v2481_v12, 0 }
0x13b5   :  { %v2531_v38 = vpop.permute.xlu1 %2530 }
0x13b6   :  { %v2536_v14 = vsel %vm454_vm1, %v2531_v38, 0 }
0x13bb   :  { %v8126_v34 = vpop.eup %8125 }
0x13bc   :  { %v2370_v30 = vsel %vm547_vm3, %v8126_v34, 0.0 }
0x13bd   :  { %2371 = vadd.xlane.f32.xlu0 %v2370_v30 }
0x13bf   :  { %v2363_v51 = vpop.xlane.xlu0 %2362 }
0x13c0   :  { %v2365_v31 = vsub.f32 %v2353_v20, %v2363_v51 }
0x13c2   :  { %v2368_v37 = vmul.f32 1.442695, %v2365_v31 }
0x13c4   :  { %8127 = vpow2.f32 %v2368_v37 }
0x13d1   :  { %v8128_v32 = vpop.eup %8127 }
0x13d2   :  { %v2373_v39 = vsel %vm547_vm3, %v8128_v32, 0.0 }
0x13d3   :  { %2374 = vadd.xlane.f32.xlu0 %v2373_v39 }
0x13e9   :  { %2430 = vrot.lane.b32.xlu0 %v9018_v6, %s10140_s5 }
0x13ed   :  { %2528 = vrot.lane.b32.xlu0 %v8979_v45, %s10169_s9  ;;  %v2479_v45 = vpop.permute.xlu1 %2478 }
0x1446   :  { %v2372_v62 = vpop.xlane.xlu0 %2371 }
0x1447   :  { %8129 = vrcp.f32 %v2372_v62 }
0x1454   :  { %v8130_v11 = vpop.eup %8129 }
0x1455   :  { %v2378_v35 = vmul.f32 %v8130_v11, %v8126_v34 }
0x1457   :  { %v2380_v36 = vpack.c.bf16 %v2378_v35, %v2378_v35 }
0x1459   :  { %7413 = vmatmul.mubr.msk.bf16.vlgmr.msra.gmra.mxu0 %vm547_vm3, %v2380_v36 }
0x145a   :  { %7423 = vmatpush3.bf16.xpose.msra.mxu0 %v2486_v19  ;;  %7424 = vmatprep.mubr.msk.bf16.mxu0 %vm8344_vm0, %v8342_v4 }
0x145b   :  { %7434 = vmatprep.subr.bf16.mxu0 %v8342_v4 }
0x145c   :  { %v2375_v18 = vpop.xlane.xlu0 %2374 }
0x145d   :  { %8131 = vrcp.f32 %v2375_v18 }
0x1460   :  { %v2431_v13 = vpop.permute.xlu0 %2430 }
0x1461   :  { %v2436_v40 = vsel %vm575_vm2, %v2431_v13, 0  ;;  %7425 = vmatmul.mubr.msk.bf16.vlgmr.msra.gmra.mxu0 %vm454_vm1, %v2479_v45  ;;  %v7886_v13 = vld [vmem:[#allocation5 + $0x30] sm:$0xff]  }
0x1462   :  { %7417 = vmatpush3.bf16.msra.mxu1 %v2436_v40  ;;  %7436 = vmatprep.mubr.msk.bf16.mxu0 %vm8344_vm0, %v8342_v4  ;;  %v7887_v40 = vld [vmem:[#allocation5 + $0x28] sm:$0xff]  }
0x1463   :  { %7428 = vmatprep.subr.bf16.mxu1 %v8342_v4 }
0x1464   :  { %v2529_v46 = vpop.permute.xlu0 %2528 }
0x146a   :  { %v8132_v41 = vpop.eup %8131 }
0x146b   :  { %v2379_v42 = vmul.f32 %v8132_v41, %v8128_v32  ;;  %v7888_v41 = vld [vmem:[#allocation5 + $0x20] sm:$0xff]  }
0x146d   :  { %v2381_v43 = vpack.c.bf16 %v2379_v42, %v2379_v42  ;;  %v7889_v42 = vld [vmem:[#allocation5 + $0x18] sm:$0xff]  }
0x146f   :  { %7419 = vmatmul.mubr.msk.bf16.vlgmr.msra.gmra.mxu1 %vm547_vm3, %v2381_v43  ;;  %v7890_v43 = vld [vmem:[#allocation5 + $0x10] sm:$0xff]  }
0x1470   :  { %7429 = vmatpush3.bf16.xpose.msra.mxu1 %v2536_v14  ;;  %7430 = vmatprep.mubr.msk.bf16.mxu1 %vm8344_vm0, %v8342_v4  ;;  %v7891_v14 = vld [vmem:[#allocation5 + $0x8] sm:$0xff]  }
0x1471   :  { %7440 = vmatprep.subr.bf16.mxu1 %v8342_v4 }
0x1477   :  { %7431 = vmatmul.mubr.msk.bf16.vlgmr.msra.gmra.mxu1 %vm454_vm1, %v2529_v46 }
0x1478   :  { %7442 = vmatprep.mubr.msk.bf16.mxu1 %vm8344_vm0, %v8342_v4 }
0x1519   :  { %v2424_v48 = vpop.f32.mrf.mxu0 }
0x151b   :  { %v7414_v49 = vpop.f32.mrf.mxu0 }
0x151d   :  { %v2427_v50 = vpop.f32.mrf.mxu0 }
0x151f   :  { %v7415_v56 = vpop.f32.mrf.mxu0 }
0x1520   :  { %v7892_v56 = vld [vmem:[#allocation5] sm:$0xff]  }
0x1521   :  { %v2522_v58 = vpop.f32.mrf.mxu0 }
0x1522   :  { %v2523_v59 = vadd.f32 %v2522_v58, %v8993_v53 }
0x1523   :  { %v7426_v60 = vpop.f32.mrf.mxu0 }
0x1524   :  { %v2578_v1 = vsel %vm547_vm3, %v2523_v59, -inf }
0x1525   :  { %2579 = vmax.xlane.f32.xlu1 %v2578_v1  ;;  %v2525_v2 = vpop.f32.mrf.mxu0 }
0x1527   :  { %v7427_v9 = vpop.f32.mrf.mxu0 }
0x152f   :  { %v2472_v10 = vpop.f32.mrf.mxu1 }
0x1530   :  { %v7773_v15 = vpack.i.bf16 %v2472_v10, %v2424_v48 }
0x1531   :  { %v7420_v16 = vpop.f32.mrf.mxu1 }
0x1533   :  { %v2475_v17 = vpop.f32.mrf.mxu1 }
0x1535   :  { %v7421_v20 = vpop.f32.mrf.mxu1 }
0x1536   :  { %2602 = vrot.lane.b32.xlu1 %v8977_v44, %s10169_s9 }
0x1537   :  { %v2572_v22 = vpop.f32.mrf.mxu1 }
0x1538   :  { %v2573_v23 = vadd.f32 %v2572_v22, %v8998_v5 }
0x1539   :  { %v7432_v24 = vpop.f32.mrf.mxu1 }
0x153a   :  { %7769 = vrot.lane.b32.xlu1 %v7768_v8, %s10169_s9  ;;  %v2581_v25 = vsel %vm547_vm3, %v2573_v23, -inf }
0x153b   :  { %2582 = vmax.xlane.f32.xlu0 %v2581_v25  ;;  %v2575_v26 = vpop.f32.mrf.mxu1 }
0x153d   :  { %v7433_v3 = vpop.f32.mrf.mxu1 }
0x153e   :  { %7774 = vrot.lane.b32.xlu1 %v7773_v15, %s10140_s5 }
0x15ae   :  { %v2580_v28 = vpop.xlane.xlu1 %2579 }
0x15af   :  { %v2584_v29 = vsub.f32 %v2523_v59, %v2580_v28 }
0x15b1   :  { %v2586_v44 = vmul.f32 1.442695, %v2584_v29 }
0x15b2   :  { %v2603_v34 = vpop.permute.xlu1 %2602 }
0x15b3   :  { %8133 = vpow2.f32 %v2586_v44  ;;  %v2608_v30 = vsel %vm575_vm2, %v2603_v34, 0 }
0x15b4   :  { %7435 = vmatpush3.bf16.msra.mxu0 %v2608_v30 }
0x15b5   :  { %7446 = vmatprep.subr.bf16.mxu0 %v8342_v4 }
0x15b6   :  { %v7770_v9 = vpop.permute.xlu1 %7769 }
0x15b7   :  { %v7772_v16 = vunpack.i.h.bf16 %v7770_v9  ;;  %v7771_v17 = vunpack.i.l.bf16 %v7770_v9  ;;  %v7923_v9 = vld [vmem:[%s10121_s22 + $0x60] sm:$0xff]  }
0x15b9   :  { %v2723_v24 = vsel %vm454_vm1, %v9038_v0, %v7772_v16  ;;  %v2722_v25 = vsel %vm454_vm1, %v9036_v52, %v7771_v17  ;;  %v6615_v0 = vld [vmem:[%s10116_s17] ss:$0 sm:$0xff]  ;;  %v7925_v16 = vld [vmem:[%s10121_s22 + $0x58] sm:$0xff]  }
0x15ba   :  { %v7775_v10 = vpop.permute.xlu1 %7774  ;;  %v7926_v17 = vld [vmem:[%s10121_s22 + $0x18] sm:$0xff]  }
0x15bb   :  { %v7777_v20 = vunpack.i.h.bf16 %v7775_v10  ;;  %v7776_v22 = vunpack.i.l.bf16 %v7775_v10  ;;  %v7924_v10 = vld [vmem:[%s10121_s22 + $0x20] sm:$0xff]  }
0x15bd   :  { %v2725_v3 = vsel %vm1357_vm4, %v2723_v24, %v7777_v20  ;;  %v2724_v28 = vsel %vm1357_vm4, %v2722_v25, %v7776_v22 }
0x15c0   :  { %v8134_v47 = vpop.eup %8133 }
0x15c1   :  { %v2590_v7 = vsel %vm547_vm3, %v8134_v47, 0.0 }
0x15c2   :  { %2591 = vadd.xlane.f32.xlu0 %v2590_v7 }
0x15c4   :  { %v2583_v8 = vpop.xlane.xlu0 %2582 }
0x15c5   :  { %v2585_v51 = vsub.f32 %v2573_v23, %v2583_v8 }
0x15c7   :  { %v2588_v31 = vmul.f32 1.442695, %v2585_v51 }
0x15c9   :  { %8135 = vpow2.f32 %v2588_v31 }
0x15d6   :  { %v8136_v37 = vpop.eup %8135 }
0x15d7   :  { %v2593_v32 = vsel %vm547_vm3, %v8136_v37, 0.0 }
0x15d8   :  { %2594 = vadd.xlane.f32.xlu0 %v2593_v32  ;;  %v7893_v32 = vld [vmem:[%s10119_s20 + $0x70] ss:$8 sps:$4 sm:$0xff]  }
0x15ee   :  { %2650 = vrot.lane.b32.xlu0 %v9018_v6, %s10169_s9  ;;  %v7885_v6 = vld [vmem:[#allocation5 + $0x38] sm:$0xff]  }
0x164b   :  { %v2592_v39 = vpop.xlane.xlu0 %2591 }
0x164c   :  { %8137 = vrcp.f32 %v2592_v39 }
0x1659   :  { %v8138_v62 = vpop.eup %8137 }
0x165a   :  { %v2598_v11 = vmul.f32 %v8138_v62, %v8134_v47 }
0x165c   :  { %v2600_v12 = vpack.c.bf16 %v2598_v11, %v2598_v11 }
0x165e   :  { %7437 = vmatmul.mubr.msk.bf16.vlgmr.msra.gmra.mxu0 %vm547_vm3, %v2600_v12 }
0x165f   :  { %7462 = vmatprep.mubr.msk.bf16.mxu0 %vm8344_vm0, %v8342_v4  ;;  %7447 = vmatpush3.bf16.msra.mxu0 %v7885_v6  ;;  %v7899_v6 = vld [vmem:[%s10119_s20 + $0x50] ss:$8 sps:$4 sm:$0xff]  }
0x1660   :  { %7448 = vmatprep.subr.bf16.mxu0 %v8342_v4 }
0x1661   :  { %v2595_v35 = vpop.xlane.xlu0 %2594 }
0x1662   :  { %8139 = vrcp.f32 %v2595_v35 }
0x1663   :  { %7449 = vmatpush3.bf16.msra.mxu0 %v7886_v13  ;;  %v7902_v13 = vld [vmem:[%s10119_s20 + $0x40] ss:$8 sps:$4 sm:$0xff]  }
0x1664   :  { %7450 = vmatprep.subr.bf16.mxu0 %v8342_v4 }
0x1665   :  { %v2651_v36 = vpop.permute.xlu0 %2650 }
0x1666   :  { %v2656_v19 = vsel %vm575_vm2, %v2651_v36, 0 }
0x1667   :  { %7441 = vmatpush3.bf16.msra.mxu1 %v2656_v19  ;;  %7451 = vmatpush3.bf16.msra.mxu0 %v7887_v40  ;;  %v7904_v40 = vld [vmem:[%s10119_s20 + $0x44] ss:$8 sps:$4 sm:$0xff]  }
0x1668   :  { %7452 = vmatprep.subr.bf16.mxu0 %v8342_v4 }
0x166b   :  { %7453 = vmatpush3.bf16.msra.mxu0 %v7888_v41  ;;  %v7907_v41 = vld [vmem:[%s10119_s20 + $0x34] ss:$8 sps:$4 sm:$0xff]  }
0x166c   :  { %7454 = vmatprep.subr.bf16.mxu0 %v8342_v4 }
0x166f   :  { %v8140_v38 = vpop.eup %8139  ;;  %7455 = vmatpush3.bf16.msra.mxu0 %v7889_v42  ;;  %v7905_v42 = vld [vmem:[%s10119_s20 + $0x30] ss:$8 sps:$4 sm:$0xff]  }
0x1670   :  { %v2599_v18 = vmul.f32 %v8140_v38, %v8136_v37  ;;  %7456 = vmatprep.subr.bf16.mxu0 %v8342_v4  ;;  %v7898_v38 = vld [vmem:[%s10119_s20 + $0x64] ss:$8 sps:$4 sm:$0xff]  }
0x1672   :  { %v2601_v45 = vpack.c.bf16 %v2599_v18, %v2599_v18  ;;  %v7896_v18 = vld [vmem:[%s10119_s20 + $0x60] ss:$8 sps:$4 sm:$0xff]  }
0x1673   :  { %7457 = vmatpush3.bf16.msra.mxu0 %v7890_v43  ;;  %v7910_v43 = vld [vmem:[%s10119_s20 + $0x24] ss:$8 sps:$4 sm:$0xff]  }
0x1674   :  { %7443 = vmatmul.mubr.msk.bf16.vlgmr.msra.gmra.mxu1 %vm547_vm3, %v2601_v45  ;;  %7458 = vmatprep.subr.bf16.mxu0 %v8342_v4  ;;  %v7901_v45 = vld [vmem:[%s10119_s20 + $0x54] ss:$8 sps:$4 sm:$0xff]  }
0x1675   :  { %3026 = vmatprep.mubr.bf16.mxu1 %v8343_v27 }
0x1677   :  { %7459 = vmatpush3.bf16.msra.mxu0 %v7891_v14  ;;  %v7908_v14 = vld [vmem:[%s10119_s20 + $0x20] ss:$8 sps:$4 sm:$0xff]  }
0x1678   :  { %7460 = vmatprep.subr.bf16.mxu0 %v8342_v4 }
0x167b   :  { %7461 = vmatpush3.bf16.msra.mxu0 %v7892_v56  ;;  %v7917_v56 = vld [vmem:[%s10121_s22 + $0x78] sm:$0xff]  }
0x167c   :  { %7032 = vmatprep.subr.bf16.mxu0 %v7917_v56 }
0x171e   :  { %v2644_v46 = vpop.f32.mrf.mxu0 }
0x1720   :  { %v7438_v48 = vpop.f32.mrf.mxu0 }
0x1721   :  { %v7911_v48 = vld [vmem:[%s10119_s20 + $0x10] ss:$8 sps:$4 sm:$0xff]  }
0x1722   :  { %v2647_v49 = vpop.f32.mrf.mxu0 }
0x1723   :  { %v7916_v49 = vld [vmem:[%s10119_s20 + $0x4] ss:$8 sps:$4 sm:$0xff]  }
0x1724   :  { %v7439_v50 = vpop.f32.mrf.mxu0 }
0x1725   :  { %v7914_v50 = vld [vmem:[%s10119_s20] ss:$8 sps:$4 sm:$0xff]  }
0x1734   :  { %v2692_v58 = vpop.f32.mrf.mxu1 }
0x1735   :  { %v7778_v59 = vpack.i.bf16 %v2692_v58, %v2644_v46  ;;  %v7913_v46 = vld [vmem:[%s10119_s20 + $0x14] ss:$8 sps:$4 sm:$0xff]  }
0x1736   :  { %v7444_v60 = vpop.f32.mrf.mxu1  ;;  %v7918_v58 = vld [vmem:[%s10121_s22 + $0x38] sm:$0xff]  }
0x1737   :  { %7779 = vrot.lane.b32.xlu1 %v7778_v59, %s10142_s10  ;;  %v7919_v59 = vld [vmem:[%s10121_s22 + $0x70] sm:$0xff]  }
0x1738   :  { %v2695_v1 = vpop.f32.mrf.mxu1  ;;  %v7920_v60 = vld [vmem:[%s10121_s22 + $0x30] sm:$0xff]  }
0x1739   :  { %v7921_v1 = vld [vmem:[%s10121_s22 + $0x68] sm:$0xff]  }
0x173a   :  { %v7445_v2 = vpop.f32.mrf.mxu1 }
0x173b   :  { %v7922_v2 = vld [vmem:[%s10121_s22 + $0x28] sm:$0xff]  }
0x17a9   :  { %v7780_v23 = vpop.permute.xlu1 %7779 }
0x17aa   :  { %v7782_v26 = vunpack.i.h.bf16 %v7780_v23  ;;  %v7781_v15 = vunpack.i.l.bf16 %v7780_v23 }
0x17ac   :  { %v2727_v29 = vsel %vm1360_vm5, %v2725_v3, %v7782_v26  ;;  %v2726_v44 = vsel %vm1360_vm5, %v2724_v28, %v7781_v15  ;;  %v6616_v28 = vld [vmem:[%s10117_s18] ss:$0 sm:$0xff] }
0x17ad   :  { %v2744_v34 = vpack.c.bf16 %v2727_v29, %v2726_v44 }
0x17af   :  { %7463 = vmatmul.mubr.bf16.vlgmr.msra.gmra.mxu0 %v2744_v34 }
0x17b0   :  { %7033 = vmatpush3.bf16.msra.mxu0 %v7918_v58 }
0x17b1   :  { %7034 = vmatprep.subr.bf16.mxu0 %v7919_v59 }
0x17b4   :  { %7035 = vmatpush3.bf16.msra.mxu0 %v7920_v60 }
0x17b5   :  { %7036 = vmatprep.subr.bf16.mxu0 %v7921_v1 }
0x17b8   :  { %7037 = vmatpush3.bf16.msra.mxu0 %v7922_v2 }
0x17b9   :  { %7038 = vmatprep.subr.bf16.mxu0 %v7923_v9 }
0x17bc   :  { %7039 = vmatpush3.bf16.msra.mxu0 %v7924_v10 }
0x17bd   :  { %7040 = vmatprep.subr.bf16.mxu0 %v7925_v16  ;;  %v7933_v16 = vld [vmem:[%s10158_s3 + $0x168] ss:$12 sps:$4 sm:$0xff]  }
0x17c0   :  { %7041 = vmatpush3.bf16.msra.mxu0 %v7926_v17  ;;  %v7935_v17 = vld [vmem:[%s10158_s3 + $0x16c] ss:$12 sps:$4 sm:$0xff]  }
0x186f   :  { %v2827_v30 = vpop.f32.mrf.mxu0 }
0x1870   :  { %v2834_v47 = vadd.f32 %v2827_v30, %v8863_v21  ;;  %v7895_v21 = vld [vmem:[%s10119_s20 + $0x74] ss:$8 sps:$4 sm:$0xff]   ;;  %v6617_v30 = vld [vmem:[%s10118_s19] ss:$0 sm:$0xff] }
0x1871   :  { %v7464_v52 = vpop.f32.mrf.mxu0  ;;  %2994 = vmatprep.subr.bf16.mxu1 %v7895_v21  ;;  %v7930_v21 = vld [vmem:[%s10121_s22 + $0x8] sm:$0xff]  }
0x1872   :  { %v9163_v7 = vadd.f32 %v6615_v0, %v2834_v47  ;;  %2995 = vmatpush1.bf16.msra.mxu1 %v7893_v32  ;;  %v7929_v32 = vld [vmem:[%s10121_s22 + $0x48] sm:$0xff]  }
0x1873   :  { %v2830_v8 = vpop.f32.mrf.mxu0  ;;  %2996 = vmatprep.subr.bf16.mxu1 %v7898_v38 }
0x1874   :  { %v2835_v51 = vadd.f32 %v2830_v8, %v8869_v33  ;;  %2847 = vadd.xlane.f32.xlu0 %v9163_v7 }
0x1875   :  { %v7465_v31 = vpop.f32.mrf.mxu0 }
0x1876   :  { %v9167_v37 = vadd.f32 %v6615_v0, %v2835_v51  ;;  %2997 = vmatpush1.bf16.msra.mxu1 %v7896_v18  ;;  %v7927_v51 = vld [vmem:[%s10121_s22 + $0x50] sm:$0xff]  }
0x1877   :  { %2998 = vmatprep.subr.bf16.mxu1 %v7901_v45  ;;  %v7928_v31 = vld [vmem:[%s10121_s22 + $0x10] sm:$0xff]   ;;  %7042 = vmatprep.subr.bf16.mxu0 %v7927_v51 }
0x1878   :  { %2849 = vadd.xlane.f32.xlu1 %v9167_v37  ;;  %7043 = vmatpush3.bf16.msra.mxu0 %v7928_v31  ;;  %v7949_v51 = vld [vmem:[%s10158_s3 + $0x108] ss:$12 sps:$4 sm:$0xff]   ;;  %v7952_v31 = vld [vmem:[%s10158_s3 + $0x110] ss:$12 sps:$4 sm:$0xff]  }
0x1879   :  { %7044 = vmatprep.subr.bf16.mxu0 %v7929_v32  ;;  %v7955_v32 = vld [vmem:[%s10158_s3 + $0xf4] ss:$12 sps:$4 sm:$0xff]  }
0x187a   :  { %2999 = vmatpush1.bf16.msra.mxu1 %v7899_v6 }
0x187b   :  { %3000 = vmatprep.subr.bf16.mxu1 %v7904_v40 }
0x187c   :  { %7045 = vmatpush3.bf16.msra.mxu0 %v7930_v21  ;;  %v7953_v21 = vld [vmem:[%s10158_s3 + $0xf0] ss:$12 sps:$4 sm:$0xff]  }
0x187e   :  { %3001 = vmatpush1.bf16.msra.mxu1 %v7902_v13 }
0x187f   :  { %3002 = vmatprep.subr.bf16.mxu1 %v7907_v41 }
0x1882   :  { %3003 = vmatpush1.bf16.msra.mxu1 %v7905_v42 }
0x1883   :  { %3004 = vmatprep.subr.bf16.mxu1 %v7910_v43 }
0x1886   :  { %3005 = vmatpush1.bf16.msra.mxu1 %v7908_v14 }
0x1887   :  { %3006 = vmatprep.subr.bf16.mxu1 %v7913_v46 }
0x188a   :  { %3007 = vmatpush1.bf16.msra.mxu1 %v7911_v48 }
0x188b   :  { %3008 = vmatprep.subr.bf16.mxu1 %v7916_v49  ;;  %v6634_v49 = vld [vmem:[%s10122_s23] ss:$0 sm:$0xff] }
0x188e   :  { %3009 = vmatpush1.bf16.msra.mxu1 %v7914_v50 }
0x188f   :  { %3443 = vmatprep.subr.bf16.mxu1 %v7935_v17 }
0x18fd   :  { %v2848_v39 = vpop.xlane.xlu0 %2847 }
0x18fe   :  { %v2851_v62 = vmul.f32 0.0078125, %v2848_v39  ;;  %v7931_v39 = vld [vmem:[%s10121_s22 + $0x40] sm:$0xff]  }
0x18ff   :  { %7046 = vmatprep.subr.bf16.mxu0 %v7931_v39  ;;  %v7956_v39 = vld [vmem:[%s10158_s3 + $0xf8] ss:$12 sps:$4 sm:$0xff]  }
0x1900   :  { %v9177_v33 = vsub.f32 %v9163_v7, %v2851_v62  ;;  %v7932_v62 = vld [vmem:[%s10121_s22] sm:$0xff]  }
0x1901   :  { %v2850_v11 = vpop.xlane.xlu1 %2849  ;;  %7047 = vmatpush3.bf16.msra.mxu0 %v7932_v62  ;;  %v7959_v62 = vld [vmem:[%s10158_s3 + $0xdc] ss:$12 sps:$4 sm:$0xff]  }
0x1902   :  { %v2852_v12 = vmul.f32 0.0078125, %v2850_v11  ;;  %v2855_v35 = vmul.f32 %v9177_v33, %v9177_v33  ;;  %7466 = vmatprep.subr.bf16.mxu0 %v8342_v4 }
0x1904   :  { %v9182_v36 = vsub.f32 %v9167_v37, %v2852_v12  ;;  %2857 = vadd.xlane.f32.xlu0 %v2855_v35 }
0x1906   :  { %v2856_v19 = vmul.f32 %v9182_v36, %v9182_v36 }
0x1908   :  { %2859 = vadd.xlane.f32.xlu0 %v2856_v19 }
0x198d   :  { %v2858_v20 = vpop.xlane.xlu0 %2857 }
0x198e   :  { %v2861_v22 = vmul.f32 0.0078125, %v2858_v20 }
0x1990   :  { %v2863_v23 = vadd.f32 1e-05, %v2861_v22 }
0x1991   :  { %v2860_v24 = vpop.xlane.xlu0 %2859 }
0x1992   :  { %8141 = vrsqrt.f32 %v2863_v23  ;;  %v2862_v25 = vmul.f32 0.0078125, %v2860_v24 }
0x1994   :  { %v2864_v26 = vadd.f32 1e-05, %v2862_v25 }
0x1996   :  { %8143 = vrsqrt.f32 %v2864_v26 }
0x199f   :  { %v8142_v15 = vpop.eup %8141 }
0x19a0   :  { %v2867_v3 = vmul.f32 %v8142_v15, %v9177_v33  ;;  %v2902_v33 = vld [vmem:[%s10120_s21] sm:$0x3] }
0x19a1   :  { %v2911_v12 = vrot.slane %v2902_v33, %v8621_v55  ;;  %v2907_v35 = vrot.slane %v2902_v33, %v8629_v61  ;;  %v7957_v33 = vld [vmem:[%s10158_s3 + $0xd8] ss:$12 sps:$4 sm:$0xff]  }
0x19a2   :  { %v2875_v34 = vmul.f32 %v6616_v28, %v2867_v3  ;;  %v7939_v3 = vld [vmem:[%s10158_s3 + $0x154] ss:$12 sps:$4 sm:$0xff]  }
0x19a3   :  { %v8144_v29 = vpop.eup %8143 }
0x19a4   :  { %v2868_v44 = vmul.f32 %v8144_v29, %v9182_v36  ;;  %v2883_v47 = vadd.f32 %v6617_v30, %v2875_v34  ;;  %v7940_v29 = vld [vmem:[%s10158_s3 + $0x158] ss:$12 sps:$4 sm:$0xff]  }
0x19a5   :  { %v7941_v34 = vld [vmem:[%s10158_s3 + $0x138] ss:$12 sps:$4 sm:$0xff]  }
0x19a6   :  { %v2876_v0 = vmul.f32 %v6616_v28, %v2868_v44  ;;  %v7937_v28 = vld [vmem:[%s10158_s3 + $0x150] ss:$12 sps:$4 sm:$0xff]  }
0x19a7   :  { %v7943_v44 = vld [vmem:[%s10158_s3 + $0x13c] ss:$12 sps:$4 sm:$0xff]  }
0x19a8   :  { %v2884_v52 = vadd.f32 %v6617_v30, %v2876_v0  ;;  %v7944_v30 = vld [vmem:[%s10158_s3 + $0x140] ss:$12 sps:$4 sm:$0xff]  }
0x19a9   :  { %v7945_v0 = vld [vmem:[%s10158_s3 + $0x120] ss:$12 sps:$4 sm:$0xff]  }
0x19aa   :  { %v2901_v8 = vpack.c.bf16 %v2884_v52, %v2883_v47  ;;  %v7947_v47 = vld [vmem:[%s10158_s3 + $0x124] ss:$12 sps:$4 sm:$0xff]   ;;  %v7948_v52 = vld [vmem:[%s10158_s3 + $0x128] ss:$12 sps:$4 sm:$0xff]  }
0x19ac   :  { %3027 = vmatmul.mubr.bf16.vlgmr.msra.gmra.mxu1 %v2901_v8  ;;  %v7951_v8 = vld [vmem:[%s10158_s3 + $0x10c] ss:$12 sps:$4 sm:$0xff]  }
0x19ad   :  { %3475 = vmatprep.mubr.bf16.mxu1 %v8343_v27  ;;  %3444 = vmatpush1.bf16.msra.mxu1 %v7933_v16 }
0x19ae   :  { %3445 = vmatprep.subr.bf16.mxu1 %v7939_v3 }
0x19b1   :  { %3446 = vmatpush1.bf16.msra.mxu1 %v7937_v28 }
0x19b2   :  { %3447 = vmatprep.subr.bf16.mxu1 %v7943_v44 }
0x19b5   :  { %3448 = vmatpush1.bf16.msra.mxu1 %v7941_v34 }
0x19b6   :  { %3449 = vmatprep.subr.bf16.mxu1 %v7947_v47 }
0x19b9   :  { %3450 = vmatpush1.bf16.msra.mxu1 %v7945_v0 }
0x19ba   :  { %3451 = vmatprep.subr.bf16.mxu1 %v7951_v8 }
0x19bd   :  { %3452 = vmatpush1.bf16.msra.mxu1 %v7949_v51  ;;  %v9446_v51 = vld [vmem:[%s10162_s28] sm:$0xff]  ;;  %s10171_s28 = smov 64  }
0x19be   :  { %3453 = vmatprep.subr.bf16.mxu1 %v7955_v32 }
0x19c1   :  { %3454 = vmatpush1.bf16.msra.mxu1 %v7953_v21 }
0x19c2   :  { %3455 = vmatprep.subr.bf16.mxu1 %v7959_v62 }
0x19c5   :  { %3456 = vmatpush1.bf16.msra.mxu1 %v7957_v33 }
0x1a6c   :  { %v3028_v11 = vpop.f32.mrf.mxu1 }
0x1a6d   :  { %v3029_v45 = vadd.f32 %v3028_v11, %v2907_v35  ;;  %v7960_v11 = vld [vmem:[%s10158_s3 + $0xe0] ss:$12 sps:$4 sm:$0xff]  }
0x1a6e   :  { %v3030_v36 = vpop.f32.mrf.mxu1 }
0x1a6f   :  { %v3031_v38 = vadd.f32 %v3030_v36, %v2911_v12  ;;  %v3037_v43 = vmax.f32 %v3029_v45, 0.0  ;;  %v7964_v36 = vld [vmem:[%s10158_s3 + $0xc8] ss:$12 sps:$4 sm:$0xff]  }
0x1a70   :  { %v3032_v19 = vpop.f32.mrf.mxu1 }
0x1a71   :  { %v3033_v18 = vadd.f32 %v3032_v19, %v2907_v35  ;;  %v3038_v41 = vmax.f32 %v3031_v38, 0.0  ;;  %v7961_v35 = vld [vmem:[%s10158_s3 + $0xc0] ss:$12 sps:$4 sm:$0xff]  }
0x1a72   :  { %v3034_v6 = vpop.f32.mrf.mxu1 }
0x1a73   :  { %v3035_v13 = vadd.f32 %v3034_v6, %v2911_v12  ;;  %v3039_v40 = vmax.f32 %v3033_v18, 0.0  ;;  %v7963_v12 = vld [vmem:[%s10158_s3 + $0xc4] ss:$12 sps:$4 sm:$0xff]  }
0x1a74   :  { %3457 = vmatprep.subr.bf16.mxu1 %v7963_v12 }
0x1a75   :  { %v3040_v42 = vmax.f32 %v3035_v13, 0.0  ;;  %v3073_v46 = vpack.c.bf16 %v3039_v40, %v3037_v43  ;;  %3458 = vmatpush1.bf16.msra.mxu1 %v7961_v35 }
0x1a76   :  { %7486 = vmatprep.subr.bf16.mxu1 %v8342_v4 }
0x1a77   :  { %v3074_v14 = vpack.c.bf16 %v3040_v42, %v3038_v41  ;;  %v6653_v42 = vld [vmem:[%s10159_s25 + $0x1] ss:$0 sm:$0xff] }
0x1a79   :  { %3210 = vmatprep.mubr.bf16.mxu0 %v3074_v14 }
0x1a7a   :  { %3211 = vmatmul.mubr.bf16.vlgmr.msra.gmra.mxu0 %v3073_v46 }
0x1a7b   :  { %7482 = vmatprep.mubr.msk.bf16.mxu0 %vm8344_vm0, %v8342_v4 }
0x1b3a   :  { %v7048_v48 = vpop.f32.mrf.mxu0 }
0x1b3c   :  { %v7049_v50 = vpop.f32.mrf.mxu0 }
0x1b3d   :  { %v7050_v56 = vadd.f32 %v7049_v50, %v7048_v48  ;;  %v6654_v48 = vld [vmem:[%s10160_s4 + $0x1] ss:$0 sm:$0xff] }
0x1b3e   :  { %v7051_v58 = vpop.f32.mrf.mxu0 }
0x1b3f   :  { %v3213_v59 = vadd.f32 %v7050_v56, %v6634_v49 }
0x1b40   :  { %v7052_v60 = vpop.f32.mrf.mxu0 }
0x1b41   :  { %v7053_v1 = vadd.f32 %v7052_v60, %v7051_v58  ;;  %v9297_v2 = vadd.f32 %v3213_v59, %v9163_v7  ;;  %v7936_v7 = vld [vmem:[%s10158_s3 + $0x170] ss:$12 sps:$4 sm:$0xff]   ;;  %v6687_v59 = vld [vmem:[%s10161_s0 + $0x3] sm:$0x7] }
0x1b42   :  { %7467 = vmatpush3.bf16.msra.mxu0 %v7936_v7  ;;  %v3307_v60 = vrot.slane %v6687_v59, %v8621_v55  ;;  %v3311_v7 = vrot.slane %v6687_v59, %v231_v57 }
0x1b43   :  { %v3216_v9 = vadd.f32 %v7053_v1, %v6634_v49  ;;  %3225 = vadd.xlane.f32.xlu0 %v9297_v2  ;;  %7468 = vmatprep.subr.bf16.mxu0 %v8342_v4 }
0x1b45   :  { %v9301_v10 = vadd.f32 %v3216_v9, %v9167_v37 }
0x1b46   :  { %7469 = vmatpush3.bf16.msra.mxu0 %v7940_v29 }
0x1b47   :  { %3227 = vadd.xlane.f32.xlu1 %v9301_v10  ;;  %7470 = vmatprep.subr.bf16.mxu0 %v8342_v4 }
0x1b4a   :  { %7471 = vmatpush3.bf16.msra.mxu0 %v7944_v30 }
0x1b4b   :  { %7472 = vmatprep.subr.bf16.mxu0 %v8342_v4 }
0x1b4e   :  { %7473 = vmatpush3.bf16.msra.mxu0 %v7948_v52 }
0x1b4f   :  { %7474 = vmatprep.subr.bf16.mxu0 %v8342_v4 }
0x1b52   :  { %7475 = vmatpush3.bf16.msra.mxu0 %v7952_v31 }
0x1b53   :  { %7476 = vmatprep.subr.bf16.mxu0 %v8342_v4 }
0x1b56   :  { %7477 = vmatpush3.bf16.msra.mxu0 %v7956_v39 }
0x1b57   :  { %7478 = vmatprep.subr.bf16.mxu0 %v8342_v4 }
0x1b5a   :  { %7479 = vmatpush3.bf16.msra.mxu0 %v7960_v11 }
0x1b5b   :  { %7480 = vmatprep.subr.bf16.mxu0 %v8342_v4 }
0x1b5e   :  { %7481 = vmatpush3.bf16.msra.mxu0 %v7964_v36 }
0x1b5f   :  { %7510 = vmatprep.subr.bf16.mxu0 %v8342_v4 }
0x1bcc   :  { %v3226_v37 = vpop.xlane.xlu0 %3225 }
0x1bcd   :  { %v3229_v20 = vmul.f32 0.0078125, %v3226_v37 }
0x1bcf   :  { %v9315_v22 = vsub.f32 %v9297_v2, %v3229_v20 }
0x1bd0   :  { %v3228_v23 = vpop.xlane.xlu1 %3227 }
0x1bd1   :  { %v3230_v24 = vmul.f32 0.0078125, %v3228_v23  ;;  %v3233_v25 = vmul.f32 %v9315_v22, %v9315_v22  ;;  %v3303_v23 = vrot.slane %v6687_v59, %v8629_v61 }
0x1bd3   :  { %v9320_v26 = vsub.f32 %v9301_v10, %v3230_v24  ;;  %3235 = vadd.xlane.f32.xlu0 %v3233_v25 }
0x1bd5   :  { %v3234_v15 = vmul.f32 %v9320_v26, %v9320_v26 }
0x1bd7   :  { %3237 = vadd.xlane.f32.xlu1 %v3234_v15 }
0x1c5c   :  { %v3236_v19 = vpop.xlane.xlu0 %3235 }
0x1c5d   :  { %v3239_v38 = vmul.f32 0.0078125, %v3236_v19 }
0x1c5f   :  { %v3241_v18 = vadd.f32 1e-05, %v3239_v38 }
0x1c60   :  { %v3238_v45 = vpop.xlane.xlu1 %3237 }
0x1c61   :  { %8145 = vrsqrt.f32 %v3241_v18  ;;  %v3240_v6 = vmul.f32 0.0078125, %v3238_v45 }
0x1c63   :  { %v3242_v13 = vadd.f32 1e-05, %v3240_v6 }
0x1c65   :  { %8147 = vrsqrt.f32 %v3242_v13 }
0x1c6e   :  { %v8146_v40 = vpop.eup %8145 }
0x1c6f   :  { %v3245_v41 = vmul.f32 %v8146_v40, %v9315_v22 }
0x1c71   :  { %v3253_v46 = vmul.f32 %v6653_v42, %v3245_v41 }
0x1c72   :  { %v8148_v43 = vpop.eup %8147 }
0x1c73   :  { %v3246_v14 = vmul.f32 %v8148_v43, %v9320_v26  ;;  %v3261_v50 = vadd.f32 %v6654_v48, %v3253_v46 }
0x1c75   :  { %v3254_v49 = vmul.f32 %v6653_v42, %v3246_v14 }
0x1c77   :  { %v3262_v56 = vadd.f32 %v6654_v48, %v3254_v49 }
0x1c79   :  { %v3296_v58 = vpack.c.bf16 %v3262_v56, %v3261_v50 }
0x1c7b   :  { %3476 = vmatmul.mubr.bf16.vlgmr.msra.gmra.mxu1 %v3296_v58  ;;  %7483 = vmatmul.mubr.bf16.vlgmr.msra.gmra.mxu0 %v3296_v58 }
0x1c7c   :  { %7488 = vmatprep.mubr.msk.bf16.mxu1 %vm8344_vm0, %v8342_v4  ;;  %7512 = vmatprep.mubr.msk.bf16.mxu0 %vm8344_vm0, %v8342_v4 }
0x1d3b   :  { %v3477_v1 = vpop.f32.mrf.mxu1  ;;  %v3520_v9 = vpop.f32.mrf.mxu0 }
0x1d3c   :  { %v3478_v29 = vadd.f32 %v3477_v1, %v3303_v23  ;;  %v3521_v44 = vadd.f32 %v3520_v9, %v3311_v7 }
0x1d3d   :  { %v3479_v16 = vpop.f32.mrf.mxu1  ;;  %v7484_v17 = vpop.f32.mrf.mxu0 }
0x1d3e   :  { %v3480_v37 = vadd.f32 %v3479_v16, %v3307_v60  ;;  %v9423_v57 = vpack.c.bf16 %v3478_v29, %v3478_v29  ;;  %v9432_v0 = vpack.c.bf16 %v3521_v44, %v3521_v44 }
0x1d3f   :  { %v3481_v20 = vpop.f32.mrf.mxu1  ;;  %v3523_v22 = vpop.f32.mrf.mxu0 }
0x1d40   :  { %v9414_v24 = vpack.c.bf16 %v3480_v37, %v3480_v37  ;;  %v9416_v25 = vadd.f32 %v3523_v22, %v3311_v7  ;;  %v3482_v30 = vadd.f32 %v3481_v20, %v3303_v23  ;;  %v3653_v52 = vsel %vm575_vm2, %v9432_v0, 0 }
0x1d41   :  { %v3483_v26 = vpop.f32.mrf.mxu1  ;;  %v7485_v15 = vpop.f32.mrf.mxu0 }
0x1d42   :  { %v3484_v3 = vadd.f32 %v3483_v26, %v3307_v60  ;;  %v3537_v28 = vsel %vm454_vm1, %v9414_v24, 0  ;;  %v9434_v47 = vpack.c.bf16 %v3482_v30, %v3482_v30  ;;  %v9469_v60 = vpack.c.bf16 %v9416_v25, %v9416_v25 }
0x1d43   :  { %7487 = vmatpush3.bf16.xpose.msra.mxu1 %v3537_v28 }
0x1d44   :  { %7492 = vmatprep.subr.bf16.mxu1 %v8342_v4  ;;  %v9421_v54 = vpack.c.bf16 %v3484_v3, %v3484_v3  ;;  %v3699_v16 = vsel %vm575_vm2, %v9469_v60, 0 }
0x1d46   :  { %v3583_v34 = vsel %vm454_vm1, %v9421_v54, 0 }
0x1d4a   :  { %7489 = vmatmul.mubr.msk.bf16.vlgmr.msra.gmra.mxu1 %vm454_vm1, %v9423_v57 }
0x1d4b   :  { %7493 = vmatpush3.bf16.xpose.msra.mxu1 %v3583_v34  ;;  %7494 = vmatprep.mubr.msk.bf16.mxu1 %vm8344_vm0, %v8342_v4 }
0x1d4c   :  { %7498 = vmatprep.subr.bf16.mxu1 %v8342_v4 }
0x1d52   :  { %7495 = vmatmul.mubr.msk.bf16.vlgmr.msra.gmra.mxu1 %vm454_vm1, %v9434_v47 }
0x1d53   :  { %7499 = vmatpush3.bf16.msra.mxu1 %v3653_v52  ;;  %7500 = vmatprep.mubr.msk.bf16.mxu1 %vm8344_vm0, %v8342_v4 }
0x1d54   :  { %7504 = vmatprep.subr.bf16.mxu1 %v8342_v4 }
0x1e0a   :  { %v3573_v8 = vpop.f32.mrf.mxu1 }
0x1e0b   :  { %v3574_v31 = vadd.f32 %v9446_v51, %v3573_v8 }
0x1e0c   :  { %v7490_v32 = vpop.f32.mrf.mxu1 }
0x1e0d   :  { %v3625_v21 = vsel %vm547_vm3, %v3574_v31, -inf }
0x1e0e   :  { %3626 = vmax.xlane.f32.xlu0 %v3625_v21  ;;  %v3576_v39 = vpop.f32.mrf.mxu1 }
0x1e10   :  { %v7491_v62 = vpop.f32.mrf.mxu1 }
0x1e12   :  { %v3619_v33 = vpop.f32.mrf.mxu1 }
0x1e13   :  { %v3620_v11 = vadd.f32 %v9446_v51, %v3619_v33 }
0x1e14   :  { %v7496_v12 = vpop.f32.mrf.mxu1 }
0x1e15   :  { %v3628_v35 = vsel %vm547_vm3, %v3620_v11, -inf }
0x1e16   :  { %3629 = vmax.xlane.f32.xlu1 %v3628_v35  ;;  %v3622_v36 = vpop.f32.mrf.mxu1 }
0x1e18   :  { %v7497_v19 = vpop.f32.mrf.mxu1 }
0x1e27   :  { %3797 = vrot.lane.b32.xlu1 %v9421_v54, %s10170_s8 }
0x1e97   :  { %v3627_v38 = vpop.xlane.xlu0 %3626 }
0x1e98   :  { %v3631_v18 = vsub.f32 %v3574_v31, %v3627_v38 }
0x1e9a   :  { %v3633_v45 = vmul.f32 1.442695, %v3631_v18 }
0x1e9c   :  { %8149 = vpow2.f32 %v3633_v45 }
0x1e9f   :  { %v3630_v6 = vpop.xlane.xlu1 %3629 }
0x1ea0   :  { %v3632_v13 = vsub.f32 %v3620_v11, %v3630_v6 }
0x1ea2   :  { %v3635_v40 = vmul.f32 1.442695, %v3632_v13 }
0x1ea3   :  { %v3798_v48 = vpop.permute.xlu1 %3797 }
0x1ea4   :  { %8151 = vpow2.f32 %v3635_v40  ;;  %v3803_v20 = vsel %vm454_vm1, %v3798_v48, 0 }
0x1ea9   :  { %v8150_v41 = vpop.eup %8149 }
0x1eaa   :  { %v3637_v42 = vsel %vm547_vm3, %v8150_v41, 0.0 }
0x1eab   :  { %3638 = vadd.xlane.f32.xlu0 %v3637_v42 }
0x1eb1   :  { %v8152_v43 = vpop.eup %8151 }
0x1eb2   :  { %v3640_v14 = vsel %vm547_vm3, %v8152_v43, 0.0 }
0x1eb3   :  { %3641 = vadd.xlane.f32.xlu1 %v3640_v14 }
0x1ec1   :  { %3745 = vrot.lane.b32.xlu0 %v9414_v24, %s10170_s8 }
0x1ec4   :  { %3742 = vrot.lane.b32.xlu1 %v9423_v57, %s10170_s8 }
0x1ec8   :  { %3794 = vrot.lane.b32.xlu1 %v9434_v47, %s10170_s8 }
0x1f34   :  { %v3639_v46 = vpop.xlane.xlu0 %3638 }
0x1f35   :  { %8153 = vrcp.f32 %v3639_v46 }
0x1f38   :  { %v3746_v49 = vpop.permute.xlu0 %3745 }
0x1f39   :  { %v3751_v50 = vsel %vm454_vm1, %v3746_v49, 0 }
0x1f3a   :  { %7511 = vmatpush3.bf16.xpose.msra.mxu0 %v3751_v50 }
0x1f3b   :  { %7522 = vmatprep.subr.bf16.mxu0 %v8342_v4 }
0x1f3c   :  { %v3642_v56 = vpop.xlane.xlu1 %3641 }
0x1f3d   :  { %8155 = vrcp.f32 %v3642_v56 }
0x1f40   :  { %v3743_v58 = vpop.permute.xlu1 %3742 }
0x1f41   :  { %7513 = vmatmul.mubr.msk.bf16.vlgmr.msra.gmra.mxu0 %vm454_vm1, %v3743_v58 }
0x1f42   :  { %v8154_v59 = vpop.eup %8153  ;;  %7524 = vmatprep.mubr.msk.bf16.mxu0 %vm8344_vm0, %v8342_v4 }
0x1f43   :  { %v3645_v1 = vmul.f32 %v8154_v59, %v8150_v41 }
0x1f44   :  { %v3795_v22 = vpop.permute.xlu1 %3794 }
0x1f45   :  { %v3647_v9 = vpack.c.bf16 %v3645_v1, %v3645_v1 }
0x1f47   :  { %7501 = vmatmul.mubr.msk.bf16.vlgmr.msra.gmra.mxu1 %vm547_vm3, %v3647_v9 }
0x1f48   :  { %7505 = vmatpush3.bf16.msra.mxu1 %v3699_v16  ;;  %7506 = vmatprep.mubr.msk.bf16.mxu1 %vm8344_vm0, %v8342_v4 }
0x1f49   :  { %7516 = vmatprep.subr.bf16.mxu1 %v8342_v4 }
0x1f4a   :  { %v8156_v17 = vpop.eup %8155 }
0x1f4b   :  { %v3646_v7 = vmul.f32 %v8156_v17, %v8152_v43 }
0x1f4d   :  { %v3648_v37 = vpack.c.bf16 %v3646_v7, %v3646_v7 }
0x1f4f   :  { %7507 = vmatmul.mubr.msk.bf16.vlgmr.msra.gmra.mxu1 %vm547_vm3, %v3648_v37 }
0x1f50   :  { %7517 = vmatpush3.bf16.xpose.msra.mxu1 %v3803_v20  ;;  %7518 = vmatprep.mubr.msk.bf16.mxu1 %vm8344_vm0, %v8342_v4 }
0x1f51   :  { %7528 = vmatprep.subr.bf16.mxu1 %v8342_v4 }
0x1f57   :  { %7519 = vmatmul.mubr.msk.bf16.vlgmr.msra.gmra.mxu1 %vm454_vm1, %v3795_v22 }
0x1f58   :  { %7530 = vmatprep.mubr.msk.bf16.mxu1 %vm8344_vm0, %v8342_v4 }
0x2001   :  { %v3787_v23 = vpop.f32.mrf.mxu0 }
0x2002   :  { %v3788_v25 = vadd.f32 %v9446_v51, %v3787_v23 }
0x2003   :  { %v7514_v26 = vpop.f32.mrf.mxu0 }
0x2004   :  { %v3845_v15 = vsel %vm547_vm3, %v3788_v25, -inf }
0x2005   :  { %3846 = vmax.xlane.f32.xlu0 %v3845_v15  ;;  %v3790_v3 = vpop.f32.mrf.mxu0 }
0x2007   :  { %v9487_v28 = vpop.f32.mrf.mxu1  ;;  %v7515_v29 = vpop.f32.mrf.mxu0 }
0x2009   :  { %v7502_v44 = vpop.f32.mrf.mxu1 }
0x200b   :  { %v3692_v34 = vpop.f32.mrf.mxu1 }
0x200d   :  { %v7503_v30 = vpop.f32.mrf.mxu1 }
0x200f   :  { %v9489_v52 = vpop.f32.mrf.mxu1 }
0x2011   :  { %v7508_v8 = vpop.f32.mrf.mxu1 }
0x2013   :  { %v3738_v31 = vpop.f32.mrf.mxu1 }
0x2015   :  { %v7509_v32 = vpop.f32.mrf.mxu1 }
0x2017   :  { %v3839_v21 = vpop.f32.mrf.mxu1 }
0x2018   :  { %v3840_v39 = vadd.f32 %v9446_v51, %v3839_v21 }
0x2019   :  { %v7520_v62 = vpop.f32.mrf.mxu1 }
0x201a   :  { %v3848_v33 = vsel %vm547_vm3, %v3840_v39, -inf }
0x201b   :  { %3849 = vmax.xlane.f32.xlu1 %v3848_v33  ;;  %v3842_v11 = vpop.f32.mrf.mxu1 }
0x201d   :  { %v7521_v12 = vpop.f32.mrf.mxu1 }
0x202c   :  { %3919 = vrot.lane.b32.xlu1 %v9469_v60, %s10170_s8 }
0x2030   :  { %3969 = vrot.lane.b32.xlu1 %v9414_v24, %s10171_s28 }
0x2034   :  { %4019 = vrot.lane.b32.xlu1 %v9421_v54, %s10171_s28 }
0x2038   :  { %4017 = vrot.lane.b32.xlu1 %v9434_v47, %s10171_s28 }
0x208e   :  { %v3847_v35 = vpop.xlane.xlu0 %3846 }
0x208f   :  { %v3851_v36 = vsub.f32 %v3788_v25, %v3847_v35 }
0x2091   :  { %v3853_v19 = vmul.f32 1.442695, %v3851_v36 }
0x2093   :  { %8157 = vpow2.f32 %v3853_v19 }
0x20a0   :  { %v8158_v38 = vpop.eup %8157 }
0x20a1   :  { %v3857_v18 = vsel %vm547_vm3, %v8158_v38, 0.0 }
0x20a2   :  { %3858 = vadd.xlane.f32.xlu0 %v3857_v18 }
0x20a4   :  { %v3850_v45 = vpop.xlane.xlu1 %3849 }
0x20a5   :  { %v3852_v6 = vsub.f32 %v3840_v39, %v3850_v45 }
0x20a7   :  { %v3855_v13 = vmul.f32 1.442695, %v3852_v6 }
0x20a8   :  { %v3920_v40 = vpop.permute.xlu1 %3919 }
0x20a9   :  { %8159 = vpow2.f32 %v3855_v13  ;;  %v3925_v41 = vsel %vm575_vm2, %v3920_v40, 0 }
0x20aa   :  { %7529 = vmatpush3.bf16.msra.mxu1 %v3925_v41 }
0x20ab   :  { %7540 = vmatprep.subr.bf16.mxu1 %v8342_v4 }
0x20ac   :  { %v3970_v58 = vpop.permute.xlu1 %3969 }
0x20ad   :  { %v3975_v1 = vsel %vm454_vm1, %v3970_v58, 0 }
0x20b0   :  { %v4020_v17 = vpop.permute.xlu1 %4019 }
0x20b1   :  { %v4025_v20 = vsel %vm454_vm1, %v4020_v17, 0 }
0x20b4   :  { %v4018_v22 = vpop.permute.xlu1 %4017 }
0x20b6   :  { %v8160_v42 = vpop.eup %8159 }
0x20b7   :  { %v3860_v43 = vsel %vm547_vm3, %v8160_v42, 0.0 }
0x20b8   :  { %3861 = vadd.xlane.f32.xlu0 %v3860_v43 }
0x20ce   :  { %3870 = vrot.lane.b32.xlu0 %v9432_v0, %s10170_s8 }
0x20d2   :  { %3967 = vrot.lane.b32.xlu0 %v9423_v57, %s10171_s28 }
0x212b   :  { %v3859_v14 = vpop.xlane.xlu0 %3858 }
0x212c   :  { %8161 = vrcp.f32 %v3859_v14 }
0x2139   :  { %v8162_v46 = vpop.eup %8161 }
0x213a   :  { %v3865_v49 = vmul.f32 %v8162_v46, %v8158_v38 }
0x213c   :  { %v3867_v59 = vpack.c.bf16 %v3865_v49, %v3865_v49 }
0x2141   :  { %v3862_v48 = vpop.xlane.xlu0 %3861 }
0x2142   :  { %8163 = vrcp.f32 %v3862_v48 }
0x2145   :  { %v3871_v50 = vpop.permute.xlu0 %3870 }
0x2146   :  { %v3876_v56 = vsel %vm575_vm2, %v3871_v50, 0 }
0x2147   :  { %7523 = vmatpush3.bf16.msra.mxu0 %v3876_v56 }
0x2148   :  { %7534 = vmatprep.subr.bf16.mxu0 %v8342_v4 }
0x2149   :  { %v3968_v7 = vpop.permute.xlu0 %3967 }
0x214a   :  { %7525 = vmatmul.mubr.msk.bf16.vlgmr.msra.gmra.mxu0 %vm547_vm3, %v3867_v59 }
0x214b   :  { %7535 = vmatpush3.bf16.xpose.msra.mxu0 %v3975_v1  ;;  %7536 = vmatprep.mubr.msk.bf16.mxu0 %vm8344_vm0, %v8342_v4 }
0x214c   :  { %7546 = vmatprep.subr.bf16.mxu0 %v8342_v4 }
0x214f   :  { %v8164_v9 = vpop.eup %8163 }
0x2150   :  { %v3866_v16 = vmul.f32 %v8164_v9, %v8160_v42 }
0x2152   :  { %7537 = vmatmul.mubr.msk.bf16.vlgmr.msra.gmra.mxu0 %vm454_vm1, %v3968_v7  ;;  %v3868_v37 = vpack.c.bf16 %v3866_v16, %v3866_v16 }
0x2153   :  { %7548 = vmatprep.mubr.msk.bf16.mxu0 %vm8344_vm0, %v8342_v4 }
0x2154   :  { %7531 = vmatmul.mubr.msk.bf16.vlgmr.msra.gmra.mxu1 %vm547_vm3, %v3868_v37 }
0x2155   :  { %7541 = vmatpush3.bf16.xpose.msra.mxu1 %v4025_v20  ;;  %7542 = vmatprep.mubr.msk.bf16.mxu1 %vm8344_vm0, %v8342_v4 }
0x2156   :  { %7552 = vmatprep.subr.bf16.mxu1 %v8342_v4 }
0x215c   :  { %7543 = vmatmul.mubr.msk.bf16.vlgmr.msra.gmra.mxu1 %vm454_vm1, %v4018_v22 }
0x215d   :  { %7554 = vmatprep.mubr.msk.bf16.mxu1 %vm8344_vm0, %v8342_v4 }
0x220a   :  { %v9527_v23 = vpop.f32.mrf.mxu0 }
0x220c   :  { %v7526_v25 = vpop.f32.mrf.mxu0 }
0x220e   :  { %v3915_v26 = vpop.f32.mrf.mxu0 }
0x2210   :  { %v7527_v15 = vpop.f32.mrf.mxu0 }
0x2212   :  { %v4011_v3 = vpop.f32.mrf.mxu0 }
0x2213   :  { %v4012_v29 = vadd.f32 %v9446_v51, %v4011_v3 }
0x2214   :  { %v9530_v44 = vpop.f32.mrf.mxu1  ;;  %v7538_v34 = vpop.f32.mrf.mxu0 }
0x2215   :  { %v7783_v30 = vpack.i.bf16 %v9530_v44, %v9527_v23  ;;  %v4067_v8 = vsel %vm547_vm3, %v4012_v29, -inf }
0x2216   :  { %4068 = vmax.xlane.f32.xlu0 %v4067_v8  ;;  %v7532_v31 = vpop.f32.mrf.mxu1  ;;  %v4014_v32 = vpop.f32.mrf.mxu0 }
0x2218   :  { %v3964_v21 = vpop.f32.mrf.mxu1  ;;  %v7539_v39 = vpop.f32.mrf.mxu0 }
0x221a   :  { %v7533_v62 = vpop.f32.mrf.mxu1 }
0x221c   :  { %v4061_v33 = vpop.f32.mrf.mxu1 }
0x221d   :  { %v4062_v11 = vadd.f32 %v9446_v51, %v4061_v33 }
0x221e   :  { %v7544_v12 = vpop.f32.mrf.mxu1 }
0x221f   :  { %v4070_v35 = vsel %vm547_vm3, %v4062_v11, -inf }
0x2220   :  { %4071 = vmax.xlane.f32.xlu1 %v4070_v35  ;;  %v4064_v36 = vpop.f32.mrf.mxu1 }
0x2222   :  { %v7545_v19 = vpop.f32.mrf.mxu1 }
0x2231   :  { %4139 = vrot.lane.b32.xlu1 %v9469_v60, %s10171_s28 }
0x2235   :  { %4189 = vrot.lane.b32.xlu1 %v9414_v24, %s10169_s9 }
0x2239   :  { %4239 = vrot.lane.b32.xlu1 %v9421_v54, %s10169_s9 }
0x223d   :  { %4237 = vrot.lane.b32.xlu1 %v9434_v47, %s10169_s9 }
0x229f   :  { %v4069_v38 = vpop.xlane.xlu0 %4068 }
0x22a0   :  { %v4073_v18 = vsub.f32 %v4012_v29, %v4069_v38 }
0x22a2   :  { %v4075_v45 = vmul.f32 1.442695, %v4073_v18 }
0x22a4   :  { %8165 = vpow2.f32 %v4075_v45 }
0x22a9   :  { %v4072_v6 = vpop.xlane.xlu1 %4071 }
0x22aa   :  { %v4074_v13 = vsub.f32 %v4062_v11, %v4072_v6 }
0x22ac   :  { %v4077_v40 = vmul.f32 1.442695, %v4074_v13 }
0x22ad   :  { %v4140_v41 = vpop.permute.xlu1 %4139 }
0x22ae   :  { %8167 = vpow2.f32 %v4077_v40  ;;  %v4145_v42 = vsel %vm575_vm2, %v4140_v41, 0 }
0x22af   :  { %7553 = vmatpush3.bf16.msra.mxu1 %v4145_v42 }
0x22b0   :  { %7564 = vmatprep.subr.bf16.mxu1 %v8342_v4 }
0x22b1   :  { %v8166_v24 = vpop.eup %8165  ;;  %v4190_v58 = vpop.permute.xlu1 %4189 }
0x22b2   :  { %v4079_v54 = vsel %vm547_vm3, %v8166_v24, 0.0  ;;  %v4195_v1 = vsel %vm454_vm1, %v4190_v58, 0  ;;  %v7965_v58 = vld [vmem:[%s10163_s11 + $0x78] sm:$0xff]  }
0x22b3   :  { %4080 = vadd.xlane.f32.xlu0 %v4079_v54 }
0x22b5   :  { %v4240_v16 = vpop.permute.xlu1 %4239 }
0x22b6   :  { %v4245_v37 = vsel %vm454_vm1, %v4240_v16, 0  ;;  %v7970_v16 = vld [vmem:[%s10163_s11 + $0x50] sm:$0xff]  }
0x22b9   :  { %v4238_v20 = vpop.permute.xlu1 %4237 }
0x22bb   :  { %v8168_v43 = vpop.eup %8167 }
0x22bc   :  { %v4082_v47 = vsel %vm547_vm3, %v8168_v43, 0.0 }
0x22bd   :  { %4083 = vadd.xlane.f32.xlu0 %v4082_v47 }
0x22d3   :  { %4091 = vrot.lane.b32.xlu0 %v9432_v0, %s10171_s28 }
0x22d7   :  { %4187 = vrot.lane.b32.xlu0 %v9423_v57, %s10169_s9 }
0x233c   :  { %v4081_v14 = vpop.xlane.xlu0 %4080 }
0x233d   :  { %8169 = vrcp.f32 %v4081_v14 }
0x2346   :  { %v4084_v46 = vpop.xlane.xlu0 %4083 }
0x2347   :  { %8171 = vrcp.f32 %v4084_v46 }
0x234a   :  { %v8170_v48 = vpop.eup %8169  ;;  %v4092_v49 = vpop.permute.xlu0 %4091 }
0x234b   :  { %v4097_v50 = vsel %vm575_vm2, %v4092_v49, 0  ;;  %v4087_v56 = vmul.f32 %v8170_v48, %v8166_v24 }
0x234c   :  { %7547 = vmatpush3.bf16.msra.mxu0 %v4097_v50 }
0x234d   :  { %v4089_v59 = vpack.c.bf16 %v4087_v56, %v4087_v56  ;;  %7558 = vmatprep.subr.bf16.mxu0 %v8342_v4 }
0x234e   :  { %v4188_v17 = vpop.permute.xlu0 %4187 }
0x234f   :  { %7549 = vmatmul.mubr.msk.bf16.vlgmr.msra.gmra.mxu0 %vm547_vm3, %v4089_v59  ;;  %v7966_v59 = vld [vmem:[%s10163_s11 + $0x70] sm:$0xff]  }
0x2350   :  { %7559 = vmatpush3.bf16.xpose.msra.mxu0 %v4195_v1  ;;  %7560 = vmatprep.mubr.msk.bf16.mxu0 %vm8344_vm0, %v8342_v4  ;;  %v7967_v1 = vld [vmem:[%s10163_s11 + $0x68] sm:$0xff]  }
0x2351   :  { %7570 = vmatprep.subr.bf16.mxu0 %v8342_v4 }
0x2354   :  { %v8172_v57 = vpop.eup %8171 }
0x2355   :  { %v4088_v9 = vmul.f32 %v8172_v57, %v8168_v43  ;;  %v7968_v57 = vld [vmem:[%s10163_s11 + $0x60] sm:$0xff]  }
0x2357   :  { %7561 = vmatmul.mubr.msk.bf16.vlgmr.msra.gmra.mxu0 %vm454_vm1, %v4188_v17  ;;  %v4090_v7 = vpack.c.bf16 %v4088_v9, %v4088_v9  ;;  %v7969_v9 = vld [vmem:[%s10163_s11 + $0x58] sm:$0xff]   ;;  %v7971_v17 = vld [vmem:[%s10163_s11 + $0x48] sm:$0xff]  }
0x2358   :  { %7572 = vmatprep.mubr.msk.bf16.mxu0 %vm8344_vm0, %v8342_v4 }
0x2359   :  { %7555 = vmatmul.mubr.msk.bf16.vlgmr.msra.gmra.mxu1 %vm547_vm3, %v4090_v7 }
0x235a   :  { %7565 = vmatpush3.bf16.xpose.msra.mxu1 %v4245_v37  ;;  %7566 = vmatprep.mubr.msk.bf16.mxu1 %vm8344_vm0, %v8342_v4  ;;  %v7972_v37 = vld [vmem:[%s10163_s11 + $0x40] sm:$0xff]  }
0x235b   :  { %7576 = vmatprep.subr.bf16.mxu1 %v8342_v4 }
0x2361   :  { %7567 = vmatmul.mubr.msk.bf16.vlgmr.msra.gmra.mxu1 %vm454_vm1, %v4238_v20 }
0x2362   :  { %7578 = vmatprep.mubr.msk.bf16.mxu1 %vm8344_vm0, %v8342_v4 }
0x240f   :  { %v4133_v22 = vpop.f32.mrf.mxu0 }
0x2411   :  { %v7550_v25 = vpop.f32.mrf.mxu0 }
0x2413   :  { %v4136_v26 = vpop.f32.mrf.mxu0 }
0x2415   :  { %v7551_v15 = vpop.f32.mrf.mxu0 }
0x2417   :  { %v4231_v3 = vpop.f32.mrf.mxu0 }
0x2418   :  { %v4232_v29 = vadd.f32 %v9446_v51, %v4231_v3 }
0x2419   :  { %v4181_v34 = vpop.f32.mrf.mxu1  ;;  %v7562_v8 = vpop.f32.mrf.mxu0 }
0x241a   :  { %v4287_v31 = vsel %vm547_vm3, %v4232_v29, -inf  ;;  %v7788_v18 = vpack.i.bf16 %v4181_v34, %v4133_v22 }
0x241b   :  { %4288 = vmax.xlane.f32.xlu0 %v4287_v31  ;;  %v7556_v32 = vpop.f32.mrf.mxu1  ;;  %v4234_v21 = vpop.f32.mrf.mxu0 }
0x241d   :  { %v4184_v39 = vpop.f32.mrf.mxu1  ;;  %v7563_v62 = vpop.f32.mrf.mxu0 }
0x241f   :  { %v7557_v33 = vpop.f32.mrf.mxu1 }
0x2421   :  { %v4281_v11 = vpop.f32.mrf.mxu1 }
0x2422   :  { %v4282_v12 = vadd.f32 %v9446_v51, %v4281_v11 }
0x2423   :  { %v7568_v35 = vpop.f32.mrf.mxu1 }
0x2424   :  { %v4290_v36 = vsel %vm547_vm3, %v4282_v12, -inf }
0x2425   :  { %4291 = vmax.xlane.f32.xlu1 %v4290_v36  ;;  %v4284_v19 = vpop.f32.mrf.mxu1 }
0x2427   :  { %v7569_v38 = vpop.f32.mrf.mxu1 }
0x2436   :  { %4359 = vrot.lane.b32.xlu1 %v9469_v60, %s10169_s9 }
0x243a   :  { %7784 = vrot.lane.b32.xlu1 %v7783_v30, %s10169_s9 }
0x243e   :  { %7789 = vrot.lane.b32.xlu1 %v7788_v18, %s10171_s28 }
0x24a4   :  { %v4289_v45 = vpop.xlane.xlu0 %4288 }
0x24a5   :  { %v4293_v6 = vsub.f32 %v4232_v29, %v4289_v45 }
0x24a7   :  { %v4295_v51 = vmul.f32 1.442695, %v4293_v6 }
0x24a9   :  { %8173 = vpow2.f32 %v4295_v51 }
0x24ae   :  { %v4292_v13 = vpop.xlane.xlu1 %4291 }
0x24af   :  { %v4294_v40 = vsub.f32 %v4282_v12, %v4292_v13 }
0x24b1   :  { %v4297_v41 = vmul.f32 1.442695, %v4294_v40 }
0x24b2   :  { %v4360_v42 = vpop.permute.xlu1 %4359 }
0x24b3   :  { %8175 = vpow2.f32 %v4297_v41  ;;  %v4365_v24 = vsel %vm575_vm2, %v4360_v42, 0 }
0x24b4   :  { %7577 = vmatpush3.bf16.msra.mxu1 %v4365_v24 }
0x24b5   :  { %7602 = vmatprep.subr.bf16.mxu1 %v8342_v4 }
0x24b6   :  { %v8174_v60 = vpop.eup %8173  ;;  %v7785_v8 = vpop.permute.xlu1 %7784 }
0x24b7   :  { %v4299_v23 = vsel %vm547_vm3, %v8174_v60, 0.0  ;;  %v7787_v32 = vunpack.i.h.bf16 %v7785_v8  ;;  %v7786_v21 = vunpack.i.l.bf16 %v7785_v8 }
0x24b8   :  { %4300 = vadd.xlane.f32.xlu0 %v4299_v23  ;;  %v7973_v23 = vld [vmem:[%s10113_s14 + $0xf0] ss:$8 sps:$4 sm:$0xff]  }
0x24b9   :  { %v4432_v11 = vsel %vm454_vm1, %v9489_v52, %v7787_v32  ;;  %v4431_v12 = vsel %vm454_vm1, %v9487_v28, %v7786_v21  ;;  %v6753_v52 = vld [vmem:[%s10164_s1 + $0x1] ss:$0 sm:$0xff] }
0x24ba   :  { %v7790_v31 = vpop.permute.xlu1 %7789 }
0x24bb   :  { %v7792_v39 = vunpack.i.h.bf16 %v7790_v31  ;;  %v7791_v62 = vunpack.i.l.bf16 %v7790_v31 }
0x24bd   :  { %v4433_v19 = vsel %vm1357_vm4, %v4431_v12, %v7791_v62  ;;  %v4434_v38 = vsel %vm1357_vm4, %v4432_v11, %v7792_v39  ;;  %v6756_v11 = vld [vmem:[%s10166_s16 + $0x1] ss:$0 sm:$0xff] }
0x24c0   :  { %v8176_v44 = vpop.eup %8175 }
0x24c1   :  { %v4302_v30 = vsel %vm547_vm3, %v8176_v44, 0.0 }
0x24c2   :  { %4303 = vadd.xlane.f32.xlu0 %v4302_v30  ;;  %v7976_v30 = vld [vmem:[%s10113_s14 + $0xe0] ss:$8 sps:$4 sm:$0xff]  }
0x24d8   :  { %4311 = vrot.lane.b32.xlu0 %v9432_v0, %s10169_s9 }
0x2541   :  { %v4301_v54 = vpop.xlane.xlu0 %4300 }
0x2542   :  { %8177 = vrcp.f32 %v4301_v54  ;;  %v7981_v54 = vld [vmem:[%s10113_s14 + $0xd4] ss:$8 sps:$4 sm:$0xff]  }
0x254b   :  { %v4304_v43 = vpop.xlane.xlu0 %4303 }
0x254c   :  { %8179 = vrcp.f32 %v4304_v43  ;;  %v7979_v43 = vld [vmem:[%s10113_s14 + $0xd0] ss:$8 sps:$4 sm:$0xff]  }
0x254f   :  { %v8178_v47 = vpop.eup %8177  ;;  %v4312_v14 = vpop.permute.xlu0 %4311 }
0x2550   :  { %v4317_v46 = vsel %vm575_vm2, %v4312_v14, 0  ;;  %v4307_v48 = vmul.f32 %v8178_v47, %v8174_v60  ;;  %v7984_v47 = vld [vmem:[%s10113_s14 + $0xc4] ss:$8 sps:$4 sm:$0xff]   ;;  %v7982_v14 = vld [vmem:[%s10113_s14 + $0xc0] ss:$8 sps:$4 sm:$0xff]  }
0x2551   :  { %7571 = vmatpush3.bf16.msra.mxu0 %v4317_v46 }
0x2552   :  { %v4309_v49 = vpack.c.bf16 %v4307_v48, %v4307_v48  ;;  %7582 = vmatprep.subr.bf16.mxu0 %v8342_v4 }
0x2554   :  { %7573 = vmatmul.mubr.msk.bf16.vlgmr.msra.gmra.mxu0 %vm547_vm3, %v4309_v49 }
0x2555   :  { %7598 = vmatprep.mubr.msk.bf16.mxu0 %vm8344_vm0, %v8342_v4  ;;  %7583 = vmatpush3.bf16.msra.mxu0 %v7965_v58 }
0x2556   :  { %7584 = vmatprep.subr.bf16.mxu0 %v8342_v4 }
0x2559   :  { %v8180_v50 = vpop.eup %8179  ;;  %7585 = vmatpush3.bf16.msra.mxu0 %v7966_v59 }
0x255a   :  { %v4308_v0 = vmul.f32 %v8180_v50, %v8176_v44  ;;  %7586 = vmatprep.subr.bf16.mxu0 %v8342_v4  ;;  %v7978_v44 = vld [vmem:[%s10113_s14 + $0xe4] ss:$8 sps:$4 sm:$0xff]  }
0x255c   :  { %v4310_v56 = vpack.c.bf16 %v4308_v0, %v4308_v0 }
0x255d   :  { %7587 = vmatpush3.bf16.msra.mxu0 %v7967_v1  ;;  %v7988_v1 = vld [vmem:[%s10113_s14 + $0xb4] ss:$8 sps:$4 sm:$0xff]  }
0x255e   :  { %7579 = vmatmul.mubr.msk.bf16.vlgmr.msra.gmra.mxu1 %vm547_vm3, %v4310_v56  ;;  %7588 = vmatprep.subr.bf16.mxu0 %v8342_v4 }
0x255f   :  { %7618 = vmatprep.mubr.msk.bf16.mxu1 %vm8344_vm0, %v8342_v4 }
0x2561   :  { %7589 = vmatpush3.bf16.msra.mxu0 %v7968_v57  ;;  %v7986_v57 = vld [vmem:[%s10113_s14 + $0xb0] ss:$8 sps:$4 sm:$0xff]  }
0x2562   :  { %7590 = vmatprep.subr.bf16.mxu0 %v8342_v4 }
0x2565   :  { %7591 = vmatpush3.bf16.msra.mxu0 %v7969_v9  ;;  %v7989_v9 = vld [vmem:[#allocation2 + $0x70] sm:$0xff]  }
0x2566   :  { %7592 = vmatprep.subr.bf16.mxu0 %v8342_v4 }
0x2569   :  { %7593 = vmatpush3.bf16.msra.mxu0 %v7970_v16  ;;  %v7992_v16 = vld [vmem:[%s10113_s14 + $0xa4] ss:$8 sps:$4 sm:$0xff]  }
0x256a   :  { %7594 = vmatprep.subr.bf16.mxu0 %v8342_v4 }
0x256d   :  { %7595 = vmatpush3.bf16.msra.mxu0 %v7971_v17  ;;  %v7990_v17 = vld [vmem:[%s10113_s14 + $0xa0] ss:$8 sps:$4 sm:$0xff]  }
0x256e   :  { %7596 = vmatprep.subr.bf16.mxu0 %v8342_v4 }
0x2571   :  { %7597 = vmatpush3.bf16.msra.mxu0 %v7972_v37  ;;  %v7996_v37 = vld [vmem:[%s10113_s14 + $0x94] ss:$8 sps:$4 sm:$0xff]  }
0x2614   :  { %v4353_v7 = vpop.f32.mrf.mxu0 }
0x2616   :  { %v7574_v20 = vpop.f32.mrf.mxu0 }
0x2617   :  { %v7994_v20 = vld [vmem:[%s10113_s14 + $0x90] ss:$8 sps:$4 sm:$0xff]  }
0x2618   :  { %v4356_v22 = vpop.f32.mrf.mxu0 }
0x2619   :  { %v7997_v22 = vld [vmem:[#allocation2 + $0x60] sm:$0xff]  }
0x261a   :  { %v7575_v25 = vpop.f32.mrf.mxu0 }
0x261b   :  { %v8000_v25 = vld [vmem:[%s10113_s14 + $0x84] ss:$8 sps:$4 sm:$0xff]  }
0x261e   :  { %v4401_v26 = vpop.f32.mrf.mxu1 }
0x261f   :  { %v7793_v15 = vpack.i.bf16 %v4401_v26, %v4353_v7  ;;  %v7993_v7 = vld [vmem:[#allocation2 + $0x68] sm:$0xff]  }
0x2620   :  { %v7580_v3 = vpop.f32.mrf.mxu1  ;;  %v7998_v26 = vld [vmem:[%s10113_s14 + $0x80] ss:$8 sps:$4 sm:$0xff]  }
0x2621   :  { %7794 = vrot.lane.b32.xlu0 %v7793_v15, %s10170_s8  ;;  %v8001_v15 = vld [vmem:[#allocation2 + $0x58] sm:$0xff]   ;;  %v8002_v3 = vld [vmem:[#allocation2 + $0x50] sm:$0xff]  }
0x2622   :  { %v4404_v29 = vpop.f32.mrf.mxu1 }
0x2623   :  { %v8003_v29 = vld [vmem:[#allocation2 + $0x48] sm:$0xff]  }
0x2624   :  { %v7581_v34 = vpop.f32.mrf.mxu1 }
0x2625   :  { %v8004_v34 = vld [vmem:[#allocation2 + $0x40] sm:$0xff]  }
0x2693   :  { %v7795_v33 = vpop.permute.xlu0 %7794 }
0x2694   :  { %v7797_v35 = vunpack.i.h.bf16 %v7795_v33  ;;  %v7796_v36 = vunpack.i.l.bf16 %v7795_v33 }
0x2696   :  { %v4436_v18 = vsel %vm1360_vm5, %v4434_v38, %v7797_v35  ;;  %v4435_v45 = vsel %vm1360_vm5, %v4433_v19, %v7796_v36  ;;  %v6757_v19 = vld [vmem:[%s10167_s12 + $0x1] ss:$0 sm:$0xff] }
0x2697   :  { %v4454_v6 = vpack.c.bf16 %v4436_v18, %v4435_v45 }
0x2699   :  { %7599 = vmatmul.mubr.bf16.vlgmr.msra.gmra.mxu0 %v4454_v6 }
0x269a   :  { %4855 = vmatprep.mubr.bf16.mxu0 %v8343_v27 }
0x2759   :  { %v4537_v51 = vpop.f32.mrf.mxu0 }
0x275a   :  { %v4544_v28 = vadd.f32 %v4537_v51, %v9297_v2  ;;  %v7975_v2 = vld [vmem:[%s10113_s14 + $0xf4] ss:$8 sps:$4 sm:$0xff]   ;;  %v6784_v51 = vld [vmem:[%s10114_s15 + $0x2] sm:$0x3] }
0x275b   :  { %v7600_v13 = vpop.f32.mrf.mxu0  ;;  %4823 = vmatprep.subr.bf16.mxu0 %v7975_v2 }
0x275c   :  { %v9641_v40 = vadd.f32 %v6753_v52, %v4544_v28  ;;  %4824 = vmatpush1.bf16.msra.mxu0 %v7973_v23 }
0x275d   :  { %v4540_v41 = vpop.f32.mrf.mxu0  ;;  %4825 = vmatprep.subr.bf16.mxu0 %v7978_v44  ;;  %v6759_v44 = vld [vmem:[%s10112_s13 + $0x1] ss:$0 sm:$0xff] }
0x275e   :  { %v4545_v42 = vadd.f32 %v4540_v41, %v9301_v10  ;;  %4560 = vadd.xlane.f32.xlu1 %v9641_v40  ;;  %v7985_v10 = vld [vmem:[#allocation2 + $0x78] sm:$0xff]  }
0x275f   :  { %v7601_v24 = vpop.f32.mrf.mxu0  ;;  %7603 = vmatpush3.bf16.msra.mxu1 %v7985_v10 }
0x2760   :  { %v9645_v60 = vadd.f32 %v6753_v52, %v4545_v42  ;;  %7604 = vmatprep.subr.bf16.mxu1 %v8342_v4  ;;  %4826 = vmatpush1.bf16.msra.mxu0 %v7976_v30  ;;  %v4736_v52 = vrot.slane %v6784_v51, %v8629_v61  ;;  %v4740_v30 = vrot.slane %v6784_v51, %v8621_v55 }
0x2761   :  { %4827 = vmatprep.subr.bf16.mxu0 %v7981_v54 }
0x2762   :  { %4562 = vadd.xlane.f32.xlu0 %v9645_v60 }
0x2763   :  { %7605 = vmatpush3.bf16.msra.mxu1 %v7989_v9 }
0x2764   :  { %4828 = vmatpush1.bf16.msra.mxu0 %v7979_v43  ;;  %7606 = vmatprep.subr.bf16.mxu1 %v8342_v4 }
0x2765   :  { %4829 = vmatprep.subr.bf16.mxu0 %v7984_v47 }
0x2767   :  { %7607 = vmatpush3.bf16.msra.mxu1 %v7993_v7 }
0x2768   :  { %4830 = vmatpush1.bf16.msra.mxu0 %v7982_v14  ;;  %7608 = vmatprep.subr.bf16.mxu1 %v8342_v4 }
0x2769   :  { %4831 = vmatprep.subr.bf16.mxu0 %v7988_v1 }
0x276b   :  { %7609 = vmatpush3.bf16.msra.mxu1 %v7997_v22 }
0x276c   :  { %4832 = vmatpush1.bf16.msra.mxu0 %v7986_v57  ;;  %7610 = vmatprep.subr.bf16.mxu1 %v8342_v4 }
0x276d   :  { %4833 = vmatprep.subr.bf16.mxu0 %v7992_v16 }
0x276f   :  { %7611 = vmatpush3.bf16.msra.mxu1 %v8001_v15 }
0x2770   :  { %4834 = vmatpush1.bf16.msra.mxu0 %v7990_v17  ;;  %7612 = vmatprep.subr.bf16.mxu1 %v8342_v4 }
0x2771   :  { %4835 = vmatprep.subr.bf16.mxu0 %v7996_v37 }
0x2773   :  { %7613 = vmatpush3.bf16.msra.mxu1 %v8002_v3 }
0x2774   :  { %4836 = vmatpush1.bf16.msra.mxu0 %v7994_v20  ;;  %7614 = vmatprep.subr.bf16.mxu1 %v8342_v4 }
0x2775   :  { %4837 = vmatprep.subr.bf16.mxu0 %v8000_v25 }
0x2777   :  { %7615 = vmatpush3.bf16.msra.mxu1 %v8003_v29 }
0x2778   :  { %4838 = vmatpush1.bf16.msra.mxu0 %v7998_v26  ;;  %7616 = vmatprep.subr.bf16.mxu1 %v8342_v4 }
0x2779   :  { %7646 = vmatprep.subr.bf16.mxu0 %v8342_v4 }
0x277b   :  { %4856 = vmatmul.mubr.bf16.vlgmr.msra.gmra.mxu0 %v8932_v63  ;;  %7617 = vmatpush3.bf16.msra.mxu1 %v8004_v34 }
0x277c   :  { %7648 = vmatprep.mubr.msk.bf16.mxu0 %vm8344_vm0, %v8342_v4  ;;  %7622 = vmatprep.subr.bf16.mxu1 %v8342_v4 }
0x27e7   :  { %v4561_v46 = vpop.xlane.xlu1 %4560 }
0x27e8   :  { %v4564_v48 = vmul.f32 0.0078125, %v4561_v46 }
0x27ea   :  { %v4566_v49 = vsub.f32 %v9641_v40, %v4564_v48 }
0x27eb   :  { %v4563_v50 = vpop.xlane.xlu0 %4562 }
0x27ec   :  { %v4565_v0 = vmul.f32 0.0078125, %v4563_v50  ;;  %v4568_v56 = vmul.f32 %v4566_v49, %v4566_v49 }
0x27ee   :  { %v4567_v58 = vsub.f32 %v9645_v60, %v4565_v0  ;;  %4570 = vadd.xlane.f32.xlu0 %v4568_v56 }
0x27f0   :  { %v4569_v59 = vmul.f32 %v4567_v58, %v4567_v58 }
0x27f2   :  { %4572 = vadd.xlane.f32.xlu0 %v4569_v59 }
0x283b   :  { %v4857_v28 = vpop.f32.mrf.mxu0 }
0x283c   :  { %v4858_v13 = vadd.f32 %v4857_v28, %v4736_v52 }
0x283d   :  { %v4859_v24 = vpop.f32.mrf.mxu0 }
0x283e   :  { %v9722_v41 = vpack.c.bf16 %v4858_v13, %v4858_v13  ;;  %v4860_v48 = vadd.f32 %v4859_v24, %v4740_v30 }
0x283f   :  { %v4861_v23 = vpop.f32.mrf.mxu0 }
0x2840   :  { %v4876_v42 = vsel %vm454_vm1, %v9722_v41, 0  ;;  %v4862_v2 = vadd.f32 %v4861_v23, %v4736_v52  ;;  %v9742_v56 = vpack.c.bf16 %v4860_v48, %v4860_v48 }
0x2842   :  { %v9731_v54 = vpack.c.bf16 %v4862_v2, %v4862_v2  ;;  %v4992_v59 = vsel %vm575_vm2, %v9742_v56, 0 }
0x2877   :  { %v4571_v8 = vpop.xlane.xlu0 %4570 }
0x2878   :  { %v4574_v31 = vmul.f32 0.0078125, %v4571_v8 }
0x287a   :  { %v4576_v63 = vadd.f32 1e-05, %v4574_v31 }
0x287b   :  { %v4573_v32 = vpop.xlane.xlu0 %4572 }
0x287c   :  { %8181 = vrsqrt.f32 %v4576_v63  ;;  %v4575_v21 = vmul.f32 0.0078125, %v4573_v32 }
0x287e   :  { %v4577_v39 = vadd.f32 1e-05, %v4575_v21 }
0x2880   :  { %8183 = vrsqrt.f32 %v4577_v39 }
0x2889   :  { %v8182_v62 = vpop.eup %8181 }
0x288a   :  { %v4580_v33 = vmul.f32 %v8182_v62, %v4566_v49  ;;  %v4922_v49 = vsel %vm454_vm1, %v9731_v54, 0 }
0x288c   :  { %v4588_v36 = vmul.f32 %v6756_v11, %v4580_v33 }
0x288d   :  { %v8184_v12 = vpop.eup %8183 }
0x288e   :  { %v4581_v35 = vmul.f32 %v8184_v12, %v4567_v58  ;;  %v4596_v18 = vadd.f32 %v6757_v19, %v4588_v36 }
0x2890   :  { %v4589_v38 = vmul.f32 %v6756_v11, %v4581_v35  ;;  %v4863_v35 = vpop.f32.mrf.mxu0 }
0x2892   :  { %v4597_v45 = vadd.f32 %v6757_v19, %v4589_v38  ;;  %v4864_v19 = vadd.f32 %v4863_v35, %v4740_v30 }
0x2894   :  { %v4615_v6 = vpack.c.bf16 %v4597_v45, %v4596_v18  ;;  %v9772_v45 = vpack.c.bf16 %v4864_v19, %v4864_v19 }
0x2896   :  { %7619 = vmatmul.mubr.bf16.vlgmr.msra.gmra.mxu1 %v4615_v6  ;;  %v5038_v52 = vsel %vm575_vm2, %v9772_v45, 0 }
0x2897   :  { %7624 = vmatprep.mubr.msk.bf16.mxu1 %vm8344_vm0, %v8342_v4  ;;  %7623 = vmatpush3.bf16.xpose.msra.mxu1 %v4876_v42 }
0x2898   :  { %7628 = vmatprep.subr.bf16.mxu1 %v8342_v4 }
0x2956   :  { %v4706_v10 = vpop.f32.mrf.mxu1 }
0x2957   :  { %v4707_v43 = vadd.f32 %v6759_v44, %v4706_v10 }
0x2958   :  { %v7620_v47 = vpop.f32.mrf.mxu1 }
0x2959   :  { %v9733_v14 = vpack.c.bf16 %v4707_v43, %v4707_v43 }
0x295a   :  { %v4709_v46 = vpop.f32.mrf.mxu1 }
0x295b   :  { %7625 = vmatmul.mubr.msk.bf16.vlgmr.msra.gmra.mxu1 %vm454_vm1, %v9733_v14  ;;  %v4710_v0 = vadd.f32 %v6759_v44, %v4709_v46 }
0x295c   :  { %7629 = vmatpush3.bf16.xpose.msra.mxu1 %v4922_v49  ;;  %v7621_v50 = vpop.f32.mrf.mxu1  ;;  %7630 = vmatprep.mubr.msk.bf16.mxu1 %vm8344_vm0, %v8342_v4 }
0x295d   :  { %7634 = vmatprep.subr.bf16.mxu1 %v8342_v4  ;;  %v9744_v58 = vpack.c.bf16 %v4710_v0, %v4710_v0 }
0x2963   :  { %7631 = vmatmul.mubr.msk.bf16.vlgmr.msra.gmra.mxu1 %vm454_vm1, %v9744_v58 }
0x2964   :  { %7635 = vmatpush3.bf16.msra.mxu1 %v4992_v59  ;;  %7636 = vmatprep.mubr.msk.bf16.mxu1 %vm8344_vm0, %v8342_v4 }
0x2965   :  { %7640 = vmatprep.subr.bf16.mxu1 %v8342_v4 }
0x2a1b   :  { %v4912_v1 = vpop.f32.mrf.mxu1 }
0x2a1c   :  { %v4913_v57 = vadd.f32 %v4912_v1, %v8993_v53 }
0x2a1d   :  { %v7626_v9 = vpop.f32.mrf.mxu1 }
0x2a1e   :  { %v4964_v16 = vsel %vm547_vm3, %v4913_v57, -inf }
0x2a1f   :  { %4965 = vmax.xlane.f32.xlu1 %v4964_v16  ;;  %v4915_v17 = vpop.f32.mrf.mxu1 }
0x2a21   :  { %v7627_v7 = vpop.f32.mrf.mxu1 }
0x2a23   :  { %v4958_v37 = vpop.f32.mrf.mxu1 }
0x2a24   :  { %v4959_v20 = vadd.f32 %v4958_v37, %v8998_v5 }
0x2a25   :  { %v7632_v22 = vpop.f32.mrf.mxu1 }
0x2a26   :  { %v4967_v25 = vsel %vm547_vm3, %v4959_v20, -inf }
0x2a27   :  { %4968 = vmax.xlane.f32.xlu0 %v4967_v25  ;;  %v4961_v26 = vpop.f32.mrf.mxu1 }
0x2a29   :  { %v7633_v15 = vpop.f32.mrf.mxu1 }
0x2aa8   :  { %v4966_v3 = vpop.xlane.xlu1 %4965 }
0x2aa9   :  { %v4970_v29 = vsub.f32 %v4913_v57, %v4966_v3 }
0x2aab   :  { %v4972_v34 = vmul.f32 1.442695, %v4970_v29 }
0x2aad   :  { %8185 = vpow2.f32 %v4972_v34 }
0x2ab0   :  { %v4969_v8 = vpop.xlane.xlu0 %4968 }
0x2ab1   :  { %v4971_v31 = vsub.f32 %v4959_v20, %v4969_v8 }
0x2ab3   :  { %v4974_v63 = vmul.f32 1.442695, %v4971_v31 }
0x2ab5   :  { %8187 = vpow2.f32 %v4974_v63 }
0x2aba   :  { %v8186_v32 = vpop.eup %8185 }
0x2abb   :  { %v4976_v21 = vsel %vm547_vm3, %v8186_v32, 0.0 }
0x2abc   :  { %4977 = vadd.xlane.f32.xlu1 %v4976_v21 }
0x2ac2   :  { %v8188_v39 = vpop.eup %8187 }
0x2ac3   :  { %v4979_v62 = vsel %vm547_vm3, %v8188_v39, 0.0 }
0x2ac4   :  { %4980 = vadd.xlane.f32.xlu0 %v4979_v62 }
0x2acd   :  { %5084 = vrot.lane.b32.xlu1 %v9722_v41, %s10170_s8 }
0x2ad1   :  { %5081 = vrot.lane.b32.xlu1 %v9733_v14, %s10170_s8 }
0x2ad5   :  { %5133 = vrot.lane.b32.xlu1 %v9744_v58, %s10170_s8 }
0x2ada   :  { %5136 = vrot.lane.b32.xlu0 %v9731_v54, %s10170_s8 }
0x2b45   :  { %v4978_v33 = vpop.xlane.xlu1 %4977 }
0x2b46   :  { %8189 = vrcp.f32 %v4978_v33 }
0x2b49   :  { %v5085_v11 = vpop.permute.xlu1 %5084 }
0x2b4a   :  { %v5090_v12 = vsel %vm454_vm1, %v5085_v11, 0 }
0x2b4b   :  { %7647 = vmatpush3.bf16.xpose.msra.mxu0 %v5090_v12 }
0x2b4c   :  { %7658 = vmatprep.subr.bf16.mxu0 %v8342_v4 }
0x2b4d   :  { %v4981_v36 = vpop.xlane.xlu0 %4980  ;;  %v5082_v38 = vpop.permute.xlu1 %5081 }
0x2b4e   :  { %8191 = vrcp.f32 %v4981_v36 }
0x2b51   :  { %v5137_v42 = vpop.permute.xlu0 %5136  ;;  %v5134_v2 = vpop.permute.xlu1 %5133 }
0x2b52   :  { %7649 = vmatmul.mubr.msk.bf16.vlgmr.msra.gmra.mxu0 %vm454_vm1, %v5082_v38  ;;  %v5142_v23 = vsel %vm454_vm1, %v5137_v42, 0 }
0x2b53   :  { %v8190_v18 = vpop.eup %8189  ;;  %7660 = vmatprep.mubr.msk.bf16.mxu0 %vm8344_vm0, %v8342_v4 }
0x2b54   :  { %v4984_v6 = vmul.f32 %v8190_v18, %v8186_v32 }
0x2b56   :  { %v4986_v51 = vpack.c.bf16 %v4984_v6, %v4984_v6 }
0x2b58   :  { %7637 = vmatmul.mubr.msk.bf16.vlgmr.msra.gmra.mxu1 %vm547_vm3, %v4986_v51 }
0x2b59   :  { %7641 = vmatpush3.bf16.msra.mxu1 %v5038_v52  ;;  %7642 = vmatprep.mubr.msk.bf16.mxu1 %vm8344_vm0, %v8342_v4 }
0x2b5a   :  { %7652 = vmatprep.subr.bf16.mxu1 %v8342_v4 }
0x2b5b   :  { %v8192_v28 = vpop.eup %8191 }
0x2b5c   :  { %v4985_v13 = vmul.f32 %v8192_v28, %v8188_v39 }
0x2b5e   :  { %v4987_v24 = vpack.c.bf16 %v4985_v13, %v4985_v13 }
0x2b60   :  { %7643 = vmatmul.mubr.msk.bf16.vlgmr.msra.gmra.mxu1 %vm547_vm3, %v4987_v24 }
0x2b61   :  { %7653 = vmatpush3.bf16.xpose.msra.mxu1 %v5142_v23  ;;  %7654 = vmatprep.mubr.msk.bf16.mxu1 %vm8344_vm0, %v8342_v4 }
0x2b62   :  { %7664 = vmatprep.subr.bf16.mxu1 %v8342_v4 }
0x2b68   :  { %7655 = vmatmul.mubr.msk.bf16.vlgmr.msra.gmra.mxu1 %vm454_vm1, %v5134_v2 }
0x2b69   :  { %7666 = vmatprep.mubr.msk.bf16.mxu1 %vm8344_vm0, %v8342_v4 }
0x2c12   :  { %v5126_v44 = vpop.f32.mrf.mxu0 }
0x2c13   :  { %v5127_v10 = vadd.f32 %v5126_v44, %v8993_v53 }
0x2c14   :  { %v7650_v30 = vpop.f32.mrf.mxu0 }
0x2c15   :  { %v5184_v43 = vsel %vm547_vm3, %v5127_v10, -inf }
0x2c16   :  { %5185 = vmax.xlane.f32.xlu1 %v5184_v43  ;;  %v5129_v47 = vpop.f32.mrf.mxu0 }
0x2c18   :  { %v9790_v46 = vpop.f32.mrf.mxu1  ;;  %v7651_v48 = vpop.f32.mrf.mxu0 }
0x2c1a   :  { %v7638_v49 = vpop.f32.mrf.mxu1 }
0x2c1c   :  { %v5031_v50 = vpop.f32.mrf.mxu1 }
0x2c1e   :  { %v7639_v0 = vpop.f32.mrf.mxu1 }
0x2c20   :  { %v9792_v59 = vpop.f32.mrf.mxu1 }
0x2c22   :  { %v7644_v1 = vpop.f32.mrf.mxu1 }
0x2c24   :  { %v5077_v57 = vpop.f32.mrf.mxu1 }
0x2c26   :  { %v7645_v9 = vpop.f32.mrf.mxu1 }
0x2c27   :  { %5209 = vrot.lane.b32.xlu1 %v9742_v56, %s10170_s8 }
0x2c28   :  { %v5178_v16 = vpop.f32.mrf.mxu1 }
0x2c29   :  { %v5179_v17 = vadd.f32 %v5178_v16, %v8998_v5 }
0x2c2a   :  { %v7656_v7 = vpop.f32.mrf.mxu1 }
0x2c2b   :  { %5308 = vrot.lane.b32.xlu1 %v9722_v41, %s10171_s28  ;;  %v5187_v37 = vsel %vm547_vm3, %v5179_v17, -inf }
0x2c2c   :  { %5188 = vmax.xlane.f32.xlu0 %v5187_v37  ;;  %v5181_v20 = vpop.f32.mrf.mxu1 }
0x2c2e   :  { %v7657_v22 = vpop.f32.mrf.mxu1 }
0x2c2f   :  { %5358 = vrot.lane.b32.xlu1 %v9731_v54, %s10171_s28 }
0x2c33   :  { %5306 = vrot.lane.b32.xlu1 %v9733_v14, %s10171_s28 }
0x2c9f   :  { %v5186_v25 = vpop.xlane.xlu1 %5185 }
0x2ca0   :  { %v5190_v26 = vsub.f32 %v5127_v10, %v5186_v25 }
0x2ca2   :  { %v5192_v15 = vmul.f32 1.442695, %v5190_v26 }
0x2ca3   :  { %v5210_v3 = vpop.permute.xlu1 %5209 }
0x2ca4   :  { %8193 = vpow2.f32 %v5192_v15  ;;  %v5215_v29 = vsel %vm575_vm2, %v5210_v3, 0 }
0x2ca5   :  { %7659 = vmatpush3.bf16.msra.mxu0 %v5215_v29 }
0x2ca6   :  { %7670 = vmatprep.subr.bf16.mxu0 %v8342_v4 }
0x2ca7   :  { %v5309_v11 = vpop.permute.xlu1 %5308 }
0x2ca8   :  { %v5314_v36 = vsel %vm454_vm1, %v5309_v11, 0 }
0x2cab   :  { %v5359_v19 = vpop.permute.xlu1 %5358 }
0x2cac   :  { %v5364_v42 = vsel %vm454_vm1, %v5359_v19, 0 }
0x2caf   :  { %v5307_v18 = vpop.permute.xlu1 %5306 }
0x2cb1   :  { %v8194_v34 = vpop.eup %8193 }
0x2cb2   :  { %v5196_v8 = vsel %vm547_vm3, %v8194_v34, 0.0 }
0x2cb3   :  { %5197 = vadd.xlane.f32.xlu0 %v5196_v8 }
0x2cb5   :  { %v5189_v31 = vpop.xlane.xlu0 %5188 }
0x2cb6   :  { %v5191_v63 = vsub.f32 %v5179_v17, %v5189_v31 }
0x2cb8   :  { %v5194_v32 = vmul.f32 1.442695, %v5191_v63 }
0x2cba   :  { %8195 = vpow2.f32 %v5194_v32 }
0x2cc7   :  { %v8196_v21 = vpop.eup %8195 }
0x2cc8   :  { %v5199_v39 = vsel %vm547_vm3, %v8196_v21, 0.0 }
0x2cc9   :  { %5200 = vadd.xlane.f32.xlu0 %v5199_v39 }
0x2cdf   :  { %5258 = vrot.lane.b32.xlu0 %v9772_v45, %s10170_s8 }
0x2ce3   :  { %5356 = vrot.lane.b32.xlu0 %v9744_v58, %s10171_s28 }
0x2d3c   :  { %v5198_v62 = vpop.xlane.xlu0 %5197 }
0x2d3d   :  { %8197 = vrcp.f32 %v5198_v62 }
0x2d4a   :  { %v8198_v33 = vpop.eup %8197 }
0x2d4b   :  { %v5204_v12 = vmul.f32 %v8198_v33, %v8194_v34 }
0x2d4d   :  { %v5206_v35 = vpack.c.bf16 %v5204_v12, %v5204_v12 }
0x2d4f   :  { %7661 = vmatmul.mubr.msk.bf16.vlgmr.msra.gmra.mxu0 %vm547_vm3, %v5206_v35 }
0x2d50   :  { %7671 = vmatpush3.bf16.xpose.msra.mxu0 %v5314_v36  ;;  %7672 = vmatprep.mubr.msk.bf16.mxu0 %vm8344_vm0, %v8342_v4 }
0x2d51   :  { %7682 = vmatprep.subr.bf16.mxu0 %v8342_v4 }
0x2d52   :  { %v5201_v38 = vpop.xlane.xlu0 %5200 }
0x2d53   :  { %8199 = vrcp.f32 %v5201_v38 }
0x2d56   :  { %v5259_v6 = vpop.permute.xlu0 %5258 }
0x2d57   :  { %v5264_v51 = vsel %vm575_vm2, %v5259_v6, 0  ;;  %7673 = vmatmul.mubr.msk.bf16.vlgmr.msra.gmra.mxu0 %vm454_vm1, %v5307_v18 }
0x2d58   :  { %7665 = vmatpush3.bf16.msra.mxu1 %v5264_v51  ;;  %7684 = vmatprep.mubr.msk.bf16.mxu0 %vm8344_vm0, %v8342_v4 }
0x2d59   :  { %7676 = vmatprep.subr.bf16.mxu1 %v8342_v4 }
0x2d5a   :  { %v5357_v24 = vpop.permute.xlu0 %5356 }
0x2d60   :  { %v8200_v52 = vpop.eup %8199 }
0x2d61   :  { %v5205_v28 = vmul.f32 %v8200_v52, %v8196_v21 }
0x2d63   :  { %v5207_v13 = vpack.c.bf16 %v5205_v28, %v5205_v28 }
0x2d65   :  { %7667 = vmatmul.mubr.msk.bf16.vlgmr.msra.gmra.mxu1 %vm547_vm3, %v5207_v13 }
0x2d66   :  { %7677 = vmatpush3.bf16.xpose.msra.mxu1 %v5364_v42  ;;  %7678 = vmatprep.mubr.msk.bf16.mxu1 %vm8344_vm0, %v8342_v4 }
0x2d67   :  { %7688 = vmatprep.subr.bf16.mxu1 %v8342_v4 }
0x2d6d   :  { %7679 = vmatmul.mubr.msk.bf16.vlgmr.msra.gmra.mxu1 %vm454_vm1, %v5357_v24 }
0x2d6e   :  { %7690 = vmatprep.mubr.msk.bf16.mxu1 %vm8344_vm0, %v8342_v4 }
0x2e0f   :  { %v9830_v23 = vpop.f32.mrf.mxu0 }
0x2e11   :  { %v7662_v2 = vpop.f32.mrf.mxu0 }
0x2e13   :  { %v5254_v44 = vpop.f32.mrf.mxu0 }
0x2e15   :  { %v7663_v10 = vpop.f32.mrf.mxu0 }
0x2e17   :  { %v5350_v30 = vpop.f32.mrf.mxu0 }
0x2e18   :  { %v5351_v43 = vadd.f32 %v5350_v30, %v8993_v53 }
0x2e19   :  { %v7674_v47 = vpop.f32.mrf.mxu0 }
0x2e1a   :  { %v5406_v48 = vsel %vm547_vm3, %v5351_v43, -inf }
0x2e1b   :  { %5407 = vmax.xlane.f32.xlu1 %v5406_v48  ;;  %v5353_v49 = vpop.f32.mrf.mxu0 }
0x2e1d   :  { %v7675_v50 = vpop.f32.mrf.mxu0 }
0x2e25   :  { %v9834_v0 = vpop.f32.mrf.mxu1 }
0x2e26   :  { %v7798_v1 = vpack.i.bf16 %v9834_v0, %v9830_v23 }
0x2e27   :  { %v7668_v57 = vpop.f32.mrf.mxu1 }
0x2e29   :  { %v5303_v9 = vpop.f32.mrf.mxu1 }
0x2e2b   :  { %v7669_v16 = vpop.f32.mrf.mxu1 }
0x2e2c   :  { %5430 = vrot.lane.b32.xlu1 %v9742_v56, %s10171_s28 }
0x2e2d   :  { %v5400_v17 = vpop.f32.mrf.mxu1 }
0x2e2e   :  { %v5401_v7 = vadd.f32 %v5400_v17, %v8998_v5 }
0x2e2f   :  { %v7680_v37 = vpop.f32.mrf.mxu1 }
0x2e30   :  { %5528 = vrot.lane.b32.xlu1 %v9722_v41, %s10169_s9  ;;  %v5409_v20 = vsel %vm547_vm3, %v5401_v7, -inf }
0x2e31   :  { %5410 = vmax.xlane.f32.xlu0 %v5409_v20  ;;  %v5403_v22 = vpop.f32.mrf.mxu1 }
0x2e33   :  { %v7681_v25 = vpop.f32.mrf.mxu1 }
0x2e34   :  { %5578 = vrot.lane.b32.xlu1 %v9731_v54, %s10169_s9 }
0x2e38   :  { %5526 = vrot.lane.b32.xlu1 %v9733_v14, %s10169_s9 }
0x2ea4   :  { %v5408_v26 = vpop.xlane.xlu1 %5407 }
0x2ea5   :  { %v5412_v15 = vsub.f32 %v5351_v43, %v5408_v26 }
0x2ea7   :  { %v5414_v3 = vmul.f32 1.442695, %v5412_v15 }
0x2ea8   :  { %v5431_v29 = vpop.permute.xlu1 %5430 }
0x2ea9   :  { %8201 = vpow2.f32 %v5414_v3  ;;  %v5436_v34 = vsel %vm575_vm2, %v5431_v29, 0 }
0x2eaa   :  { %7683 = vmatpush3.bf16.msra.mxu0 %v5436_v34 }
0x2eab   :  { %7694 = vmatprep.subr.bf16.mxu0 %v8342_v4 }
0x2eac   :  { %v5529_v62 = vpop.permute.xlu1 %5528 }
0x2ead   :  { %v5534_v12 = vsel %vm454_vm1, %v5529_v62, 0 }
0x2eb0   :  { %v5579_v35 = vpop.permute.xlu1 %5578 }
0x2eb1   :  { %v5584_v52 = vsel %vm454_vm1, %v5579_v35, 0  ;;  %v8008_v35 = vld [vmem:[#allocation5 + $0x60] sm:$0xff]  }
0x2eb6   :  { %v8202_v41 = vpop.eup %8201 }
0x2eb7   :  { %v5418_v8 = vsel %vm547_vm3, %v8202_v41, 0.0 }
0x2eb8   :  { %5419 = vadd.xlane.f32.xlu0 %v5418_v8 }
0x2eba   :  { %v5411_v31 = vpop.xlane.xlu0 %5410 }
0x2ebb   :  { %v5413_v63 = vsub.f32 %v5401_v7, %v5411_v31 }
0x2ebd   :  { %v5416_v54 = vmul.f32 1.442695, %v5413_v63 }
0x2ebf   :  { %8203 = vpow2.f32 %v5416_v54 }
0x2ecc   :  { %v8204_v32 = vpop.eup %8203 }
0x2ecd   :  { %v5421_v14 = vsel %vm547_vm3, %v8204_v32, 0.0 }
0x2ece   :  { %5422 = vadd.xlane.f32.xlu0 %v5421_v14 }
0x2ee4   :  { %5478 = vrot.lane.b32.xlu0 %v9772_v45, %s10171_s28 }
0x2ee8   :  { %5576 = vrot.lane.b32.xlu0 %v9744_v58, %s10169_s9  ;;  %v5527_v58 = vpop.permute.xlu1 %5526 }
0x2f41   :  { %v5420_v21 = vpop.xlane.xlu0 %5419 }
0x2f42   :  { %8205 = vrcp.f32 %v5420_v21 }
0x2f4f   :  { %v8206_v39 = vpop.eup %8205 }
0x2f50   :  { %v5426_v33 = vmul.f32 %v8206_v39, %v8202_v41 }
0x2f52   :  { %v5428_v11 = vpack.c.bf16 %v5426_v33, %v5426_v33 }
0x2f54   :  { %7685 = vmatmul.mubr.msk.bf16.vlgmr.msra.gmra.mxu0 %vm547_vm3, %v5428_v11  ;;  %v8006_v11 = vld [vmem:[#allocation5 + $0x70] sm:$0xff]  }
0x2f55   :  { %7695 = vmatpush3.bf16.xpose.msra.mxu0 %v5534_v12  ;;  %7696 = vmatprep.mubr.msk.bf16.mxu0 %vm8344_vm0, %v8342_v4  ;;  %v8007_v12 = vld [vmem:[#allocation5 + $0x68] sm:$0xff]  }
0x2f56   :  { %7706 = vmatprep.subr.bf16.mxu0 %v8342_v4 }
0x2f57   :  { %v5423_v36 = vpop.xlane.xlu0 %5422 }
0x2f58   :  { %8207 = vrcp.f32 %v5423_v36  ;;  %v8009_v36 = vld [vmem:[#allocation5 + $0x58] sm:$0xff]  }
0x2f5b   :  { %v5479_v19 = vpop.permute.xlu0 %5478 }
0x2f5c   :  { %v5484_v38 = vsel %vm575_vm2, %v5479_v19, 0  ;;  %7697 = vmatmul.mubr.msk.bf16.vlgmr.msra.gmra.mxu0 %vm454_vm1, %v5527_v58  ;;  %v8010_v58 = vld [vmem:[#allocation5 + $0x50] sm:$0xff]  }
0x2f5d   :  { %7689 = vmatpush3.bf16.msra.mxu1 %v5484_v38  ;;  %7708 = vmatprep.mubr.msk.bf16.mxu0 %vm8344_vm0, %v8342_v4 }
0x2f5e   :  { %7700 = vmatprep.subr.bf16.mxu1 %v8342_v4 }
0x2f5f   :  { %v5577_v28 = vpop.permute.xlu0 %5576 }
0x2f65   :  { %v8208_v18 = vpop.eup %8207 }
0x2f66   :  { %v5427_v6 = vmul.f32 %v8208_v18, %v8204_v32 }
0x2f68   :  { %v5429_v51 = vpack.c.bf16 %v5427_v6, %v5427_v6 }
0x2f6a   :  { %7691 = vmatmul.mubr.msk.bf16.vlgmr.msra.gmra.mxu1 %vm547_vm3, %v5429_v51  ;;  %v8012_v51 = vld [vmem:[#allocation5 + $0x40] sm:$0xff]  }
0x2f6b   :  { %7701 = vmatpush3.bf16.xpose.msra.mxu1 %v5584_v52  ;;  %7702 = vmatprep.mubr.msk.bf16.mxu1 %vm8344_vm0, %v8342_v4 }
0x2f6c   :  { %7712 = vmatprep.subr.bf16.mxu1 %v8342_v4 }
0x2f72   :  { %7703 = vmatmul.mubr.msk.bf16.vlgmr.msra.gmra.mxu1 %vm454_vm1, %v5577_v28 }
0x2f73   :  { %7714 = vmatprep.mubr.msk.bf16.mxu1 %vm8344_vm0, %v8342_v4 }
0x3014   :  { %v5472_v13 = vpop.f32.mrf.mxu0 }
0x3016   :  { %v7686_v42 = vpop.f32.mrf.mxu0 }
0x3018   :  { %v5475_v24 = vpop.f32.mrf.mxu0 }
0x301a   :  { %v7687_v2 = vpop.f32.mrf.mxu0 }
0x301c   :  { %v5570_v44 = vpop.f32.mrf.mxu0 }
0x301d   :  { %v5571_v10 = vadd.f32 %v5570_v44, %v8993_v53 }
0x301e   :  { %v7698_v30 = vpop.f32.mrf.mxu0 }
0x301f   :  { %v5626_v43 = vsel %vm547_vm3, %v5571_v10, -inf }
0x3020   :  { %5627 = vmax.xlane.f32.xlu1 %v5626_v43  ;;  %v5573_v47 = vpop.f32.mrf.mxu0 }
0x3022   :  { %v7699_v48 = vpop.f32.mrf.mxu0 }
0x302a   :  { %v5520_v49 = vpop.f32.mrf.mxu1 }
0x302b   :  { %v7803_v20 = vpack.i.bf16 %v5520_v49, %v5472_v13 }
0x302c   :  { %v7692_v50 = vpop.f32.mrf.mxu1 }
0x302e   :  { %v5523_v57 = vpop.f32.mrf.mxu1 }
0x3030   :  { %v7693_v9 = vpop.f32.mrf.mxu1 }
0x3031   :  { %5650 = vrot.lane.b32.xlu1 %v9742_v56, %s10169_s9 }
0x3032   :  { %v5620_v16 = vpop.f32.mrf.mxu1 }
0x3033   :  { %v5621_v17 = vadd.f32 %v5620_v16, %v8998_v5 }
0x3034   :  { %v7704_v7 = vpop.f32.mrf.mxu1 }
0x3035   :  { %7799 = vrot.lane.b32.xlu1 %v7798_v1, %s10169_s9  ;;  %v5629_v53 = vsel %vm547_vm3, %v5621_v17, -inf }
0x3036   :  { %5630 = vmax.xlane.f32.xlu0 %v5629_v53  ;;  %v5623_v37 = vpop.f32.mrf.mxu1 }
0x3038   :  { %v7705_v22 = vpop.f32.mrf.mxu1 }
0x3039   :  { %7804 = vrot.lane.b32.xlu1 %v7803_v20, %s10171_s28 }
0x30a9   :  { %v5628_v25 = vpop.xlane.xlu1 %5627 }
0x30aa   :  { %v5632_v26 = vsub.f32 %v5571_v10, %v5628_v25 }
0x30ac   :  { %v5634_v56 = vmul.f32 1.442695, %v5632_v26 }
0x30ad   :  { %v5651_v15 = vpop.permute.xlu1 %5650 }
0x30ae   :  { %8209 = vpow2.f32 %v5634_v56  ;;  %v5656_v5 = vsel %vm575_vm2, %v5651_v15, 0 }
0x30af   :  { %7707 = vmatpush3.bf16.msra.mxu0 %v5656_v5  ;;  %v8013_v5 = vld [vmem:[%s10119_s20 + $0xf0] ss:$8 sps:$4 sm:$0xff]  }
0x30b0   :  { %7718 = vmatprep.subr.bf16.mxu0 %v8342_v4 }
0x30b1   :  { %v7800_v2 = vpop.permute.xlu1 %7799 }
0x30b2   :  { %v7802_v10 = vunpack.i.h.bf16 %v7800_v2  ;;  %v7801_v30 = vunpack.i.l.bf16 %v7800_v2 }
0x30b4   :  { %v5771_v48 = vsel %vm454_vm1, %v9792_v59, %v7802_v10  ;;  %v5770_v49 = vsel %vm454_vm1, %v9790_v46, %v7801_v30  ;;  %v6826_v59 = vld [vmem:[%s10116_s17 + $0x1] ss:$0 sm:$0xff] }
0x30b5   :  { %v7805_v44 = vpop.permute.xlu1 %7804 }
0x30b6   :  { %v7807_v43 = vunpack.i.h.bf16 %v7805_v44  ;;  %v7806_v47 = vunpack.i.l.bf16 %v7805_v44 }
0x30b8   :  { %v5773_v9 = vsel %vm1357_vm4, %v5771_v48, %v7807_v43  ;;  %v5772_v16 = vsel %vm1357_vm4, %v5770_v49, %v7806_v47  ;;  %v6829_v47 = vld [vmem:[%s10117_s18 + $0x1] ss:$0 sm:$0xff] }
0x30bb   :  { %v8210_v23 = vpop.eup %8209 }
0x30bc   :  { %v5638_v0 = vsel %vm547_vm3, %v8210_v23, 0.0 }
0x30bd   :  { %5639 = vadd.xlane.f32.xlu0 %v5638_v0 }
0x30bf   :  { %v5631_v1 = vpop.xlane.xlu0 %5630 }
0x30c0   :  { %v5633_v3 = vsub.f32 %v5621_v17, %v5631_v1 }
0x30c2   :  { %v5636_v29 = vmul.f32 1.442695, %v5633_v3 }
0x30c4   :  { %8211 = vpow2.f32 %v5636_v29 }
0x30d1   :  { %v8212_v34 = vpop.eup %8211 }
0x30d2   :  { %v5641_v41 = vsel %vm547_vm3, %v8212_v34, 0.0 }
0x30d3   :  { %5642 = vadd.xlane.f32.xlu0 %v5641_v41 }
0x30e9   :  { %5698 = vrot.lane.b32.xlu0 %v9772_v45, %s10169_s9  ;;  %v8005_v45 = vld [vmem:[#allocation5 + $0x78] sm:$0xff]  }
0x3146   :  { %v5640_v8 = vpop.xlane.xlu0 %5639 }
0x3147   :  { %8213 = vrcp.f32 %v5640_v8  ;;  %v8018_v8 = vld [vmem:[%s10119_s20 + $0xe4] ss:$8 sps:$4 sm:$0xff]  }
0x3154   :  { %v8214_v31 = vpop.eup %8213 }
0x3155   :  { %v5646_v63 = vmul.f32 %v8214_v31, %v8210_v23  ;;  %v8016_v31 = vld [vmem:[%s10119_s20 + $0xe0] ss:$8 sps:$4 sm:$0xff]  }
0x3157   :  { %v5648_v54 = vpack.c.bf16 %v5646_v63, %v5646_v63  ;;  %v8021_v63 = vld [vmem:[%s10119_s20 + $0xd4] ss:$8 sps:$4 sm:$0xff]  }
0x3159   :  { %7709 = vmatmul.mubr.msk.bf16.vlgmr.msra.gmra.mxu0 %vm547_vm3, %v5648_v54  ;;  %v8019_v54 = vld [vmem:[%s10119_s20 + $0xd0] ss:$8 sps:$4 sm:$0xff]  }
0x315a   :  { %7734 = vmatprep.mubr.msk.bf16.mxu0 %vm8344_vm0, %v8342_v4  ;;  %7719 = vmatpush3.bf16.msra.mxu0 %v8005_v45  ;;  %v8033_v45 = vld [vmem:[%s10119_s20 + $0x94] ss:$8 sps:$4 sm:$0xff]  }
0x315b   :  { %7720 = vmatprep.subr.bf16.mxu0 %v8342_v4 }
0x315c   :  { %v5643_v32 = vpop.xlane.xlu0 %5642 }
0x315d   :  { %8215 = vrcp.f32 %v5643_v32  ;;  %v8024_v32 = vld [vmem:[%s10119_s20 + $0xc4] ss:$8 sps:$4 sm:$0xff]  }
0x315e   :  { %7721 = vmatpush3.bf16.msra.mxu0 %v8006_v11  ;;  %v8031_v11 = vld [vmem:[%s10119_s20 + $0x90] ss:$8 sps:$4 sm:$0xff]  }
0x315f   :  { %7722 = vmatprep.subr.bf16.mxu0 %v8342_v4 }
0x3160   :  { %v5699_v14 = vpop.permute.xlu0 %5698 }
0x3161   :  { %v5704_v21 = vsel %vm575_vm2, %v5699_v14, 0  ;;  %v8022_v14 = vld [vmem:[%s10119_s20 + $0xc0] ss:$8 sps:$4 sm:$0xff]  }
0x3162   :  { %7713 = vmatpush3.bf16.msra.mxu1 %v5704_v21  ;;  %7723 = vmatpush3.bf16.msra.mxu0 %v8007_v12  ;;  %v8027_v21 = vld [vmem:[%s10119_s20 + $0xb4] ss:$8 sps:$4 sm:$0xff]   ;;  %v8036_v12 = vld [vmem:[%s10119_s20 + $0x84] ss:$8 sps:$4 sm:$0xff]  }
0x3163   :  { %7724 = vmatprep.subr.bf16.mxu0 %v8342_v4 }
0x3166   :  { %7725 = vmatpush3.bf16.msra.mxu0 %v8008_v35  ;;  %v8034_v35 = vld [vmem:[%s10119_s20 + $0x80] ss:$8 sps:$4 sm:$0xff]  }
0x3167   :  { %7726 = vmatprep.subr.bf16.mxu0 %v8342_v4 }
0x316a   :  { %v8216_v39 = vpop.eup %8215  ;;  %7727 = vmatpush3.bf16.msra.mxu0 %v8009_v36  ;;  %v8037_v36 = vld [vmem:[%s10121_s22 + $0xf8] sm:$0xff]  }
0x316b   :  { %v5647_v62 = vmul.f32 %v8216_v39, %v8212_v34  ;;  %7728 = vmatprep.subr.bf16.mxu0 %v8342_v4  ;;  %v8025_v39 = vld [vmem:[%s10119_s20 + $0xb0] ss:$8 sps:$4 sm:$0xff]  }
0x316d   :  { %v5649_v33 = vpack.c.bf16 %v5647_v62, %v5647_v62  ;;  %v8030_v62 = vld [vmem:[%s10119_s20 + $0xa4] ss:$8 sps:$4 sm:$0xff]  }
0x316e   :  { %7729 = vmatpush3.bf16.msra.mxu0 %v8010_v58  ;;  %v8038_v58 = vld [vmem:[%s10121_s22 + $0xb8] sm:$0xff]  }
0x316f   :  { %7715 = vmatmul.mubr.msk.bf16.vlgmr.msra.gmra.mxu1 %vm547_vm3, %v5649_v33  ;;  %7730 = vmatprep.subr.bf16.mxu0 %v8342_v4  ;;  %v8028_v33 = vld [vmem:[%s10119_s20 + $0xa0] ss:$8 sps:$4 sm:$0xff]  }
0x3170   :  { %6080 = vmatprep.mubr.bf16.mxu1 %v8343_v27  ;;  %v8011_v27 = vld [vmem:[#allocation5 + $0x48] sm:$0xff]  }
0x3172   :  { %7731 = vmatpush3.bf16.msra.mxu0 %v8011_v27  ;;  %v8039_v27 = vld [vmem:[%s10121_s22 + $0xf0] sm:$0xff]  }
0x3173   :  { %7732 = vmatprep.subr.bf16.mxu0 %v8342_v4 }
0x3176   :  { %7733 = vmatpush3.bf16.msra.mxu0 %v8012_v51  ;;  %v8044_v51 = vld [vmem:[%s10121_s22 + $0xa0] sm:$0xff]  }
0x3177   :  { %7154 = vmatprep.subr.bf16.mxu0 %v8037_v36  ;;  %v8054_v36 = vld [vmem:[%s10125_s26 + $0x38] sm:$0xff]  }
0x3219   :  { %v5692_v19 = vpop.f32.mrf.mxu0 }
0x321b   :  { %v7710_v38 = vpop.f32.mrf.mxu0 }
0x321c   :  { %v8041_v38 = vld [vmem:[%s10121_s22 + $0xe8] sm:$0xff]  }
0x321d   :  { %v5695_v18 = vpop.f32.mrf.mxu0 }
0x321e   :  { %v8042_v18 = vld [vmem:[%s10121_s22 + $0xa8] sm:$0xff]  }
0x321f   :  { %v7711_v6 = vpop.f32.mrf.mxu0 }
0x3220   :  { %v8043_v6 = vld [vmem:[%s10121_s22 + $0xe0] sm:$0xff]  }
0x322f   :  { %v5740_v52 = vpop.f32.mrf.mxu1 }
0x3230   :  { %v7808_v28 = vpack.i.bf16 %v5740_v52, %v5692_v19  ;;  %v8040_v19 = vld [vmem:[%s10121_s22 + $0xb0] sm:$0xff]   ;;  %v8045_v52 = vld [vmem:[%s10121_s22 + $0xd8] sm:$0xff]  }
0x3231   :  { %v7716_v13 = vpop.f32.mrf.mxu1 }
0x3232   :  { %7809 = vrot.lane.b32.xlu1 %v7808_v28, %s10170_s8  ;;  %v8046_v28 = vld [vmem:[%s10121_s22 + $0x98] sm:$0xff]  }
0x3233   :  { %v5743_v42 = vpop.f32.mrf.mxu1 }
0x3235   :  { %v7717_v24 = vpop.f32.mrf.mxu1 }
0x32a4   :  { %v7810_v4 = vpop.permute.xlu1 %7809 }
0x32a5   :  { %v7812_v50 = vunpack.i.h.bf16 %v7810_v4  ;;  %v7811_v57 = vunpack.i.l.bf16 %v7810_v4 }
0x32a7   :  { %v5775_v17 = vsel %vm1360_vm5, %v5773_v9, %v7812_v50  ;;  %v5774_v7 = vsel %vm1360_vm5, %v5772_v16, %v7811_v57  ;;  %v6830_v50 = vld [vmem:[%s10118_s19 + $0x1] ss:$0 sm:$0xff] }
0x32a8   :  { %v5793_v53 = vpack.c.bf16 %v5775_v17, %v5774_v7  ;;  %v8047_v7 = vld [vmem:[%s10121_s22 + $0xd0] sm:$0xff]  }
0x32aa   :  { %7735 = vmatmul.mubr.bf16.vlgmr.msra.gmra.mxu0 %v5793_v53  ;;  %v8048_v53 = vld [vmem:[%s10121_s22 + $0x90] sm:$0xff]  }
0x32ab   :  { %7155 = vmatpush3.bf16.msra.mxu0 %v8038_v58  ;;  %v8055_v58 = vld [vmem:[%s10125_s26 + $0x70] sm:$0xff]  }
0x32ac   :  { %7156 = vmatprep.subr.bf16.mxu0 %v8039_v27  ;;  %v8058_v27 = vld [vmem:[%s10125_s26 + $0x28] sm:$0xff]  }
0x32af   :  { %7157 = vmatpush3.bf16.msra.mxu0 %v8040_v19  ;;  %v8059_v19 = vld [vmem:[%s10125_s26 + $0x60] sm:$0xff]  }
0x32b0   :  { %7158 = vmatprep.subr.bf16.mxu0 %v8041_v38  ;;  %v8060_v38 = vld [vmem:[%s10125_s26 + $0x20] sm:$0xff]  }
0x32b3   :  { %7159 = vmatpush3.bf16.msra.mxu0 %v8042_v18  ;;  %v8061_v18 = vld [vmem:[%s10125_s26 + $0x58] sm:$0xff]  }
0x32b4   :  { %7160 = vmatprep.subr.bf16.mxu0 %v8043_v6 }
0x32b7   :  { %7161 = vmatpush3.bf16.msra.mxu0 %v8044_v51 }
0x32b8   :  { %7162 = vmatprep.subr.bf16.mxu0 %v8045_v52 }
0x32bb   :  { %7163 = vmatpush3.bf16.msra.mxu0 %v8046_v28 }
0x32bc   :  { %7164 = vmatprep.subr.bf16.mxu0 %v8047_v7 }
0x32bf   :  { %7165 = vmatpush3.bf16.msra.mxu0 %v8048_v53 }
0x336a   :  { %v5876_v37 = vpop.f32.mrf.mxu0 }
0x336b   :  { %v5883_v20 = vadd.f32 %v5876_v37, %v9641_v40  ;;  %v8015_v40 = vld [vmem:[%s10119_s20 + $0xf4] ss:$8 sps:$4 sm:$0xff]   ;;  %v8049_v37 = vld [vmem:[%s10121_s22 + $0xc8] sm:$0xff]  }
0x336c   :  { %v7736_v46 = vpop.f32.mrf.mxu0  ;;  %6048 = vmatprep.subr.bf16.mxu1 %v8015_v40  ;;  %7166 = vmatprep.subr.bf16.mxu0 %v8049_v37  ;;  %v6914_v37 = vld [vmem:[#allocation7] ss:$0 sm:$0xff] }
0x336d   :  { %v9917_v22 = vadd.f32 %v6826_v59, %v5883_v20  ;;  %6049 = vmatpush1.bf16.msra.mxu1 %v8013_v5  ;;  %v8051_v20 = vld [vmem:[%s10121_s22 + $0xc0] sm:$0xff]  }
0x336e   :  { %v5879_v25 = vpop.f32.mrf.mxu0  ;;  %6050 = vmatprep.subr.bf16.mxu1 %v8018_v8  ;;  %v8052_v46 = vld [vmem:[%s10121_s22 + $0x80] sm:$0xff]  }
0x336f   :  { %v5884_v26 = vadd.f32 %v5879_v25, %v9645_v60  ;;  %5899 = vadd.xlane.f32.xlu0 %v9917_v22  ;;  %v6847_v25 = vld [vmem:[%s10120_s21 + $0x2] sm:$0x3] }
0x3370   :  { %v7737_v56 = vpop.f32.mrf.mxu0  ;;  %v5961_v5 = vrot.slane %v6847_v25, %v8629_v61 }
0x3371   :  { %v9921_v15 = vadd.f32 %v6826_v59, %v5884_v26  ;;  %6051 = vmatpush1.bf16.msra.mxu1 %v8016_v31  ;;  %v8050_v59 = vld [vmem:[%s10121_s22 + $0x88] sm:$0xff]   ;;  %v5965_v56 = vrot.slane %v6847_v25, %v8621_v55  ;;  %v6897_v55 = vld [vmem:[%s10122_s23 + $0x1] ss:$0 sm:$0xff]  ;;  %v6915_v25 = vld [vmem:[#allocation8] ss:$0 sm:$0xff] }
0x3372   :  { %6052 = vmatprep.subr.bf16.mxu1 %v8021_v63  ;;  %7167 = vmatpush3.bf16.msra.mxu0 %v8050_v59 }
0x3373   :  { %5901 = vadd.xlane.f32.xlu1 %v9921_v15  ;;  %7168 = vmatprep.subr.bf16.mxu0 %v8051_v20 }
0x3375   :  { %6053 = vmatpush1.bf16.msra.mxu1 %v8019_v54 }
0x3376   :  { %6054 = vmatprep.subr.bf16.mxu1 %v8024_v32  ;;  %7169 = vmatpush3.bf16.msra.mxu0 %v8052_v46 }
0x3379   :  { %6055 = vmatpush1.bf16.msra.mxu1 %v8022_v14 }
0x337a   :  { %6056 = vmatprep.subr.bf16.mxu1 %v8027_v21 }
0x337d   :  { %6057 = vmatpush1.bf16.msra.mxu1 %v8025_v39 }
0x337e   :  { %6058 = vmatprep.subr.bf16.mxu1 %v8030_v62 }
0x3381   :  { %6059 = vmatpush1.bf16.msra.mxu1 %v8028_v33 }
0x3382   :  { %6060 = vmatprep.subr.bf16.mxu1 %v8033_v45 }
0x3385   :  { %6061 = vmatpush1.bf16.msra.mxu1 %v8031_v11 }
0x3386   :  { %6062 = vmatprep.subr.bf16.mxu1 %v8036_v12 }
0x3389   :  { %6063 = vmatpush1.bf16.msra.mxu1 %v8034_v35  ;;  %v8053_v35 = vld [vmem:[%s10125_s26 + $0x78] sm:$0xff]  }
0x338a   :  { %7176 = vmatprep.subr.bf16.mxu1 %v8053_v35 }
0x33f8   :  { %v5900_v23 = vpop.xlane.xlu0 %5899 }
0x33f9   :  { %v5903_v0 = vmul.f32 0.0078125, %v5900_v23 }
0x33fb   :  { %v9931_v60 = vsub.f32 %v9917_v22, %v5903_v0 }
0x33fc   :  { %v5902_v1 = vpop.xlane.xlu1 %5901 }
0x33fd   :  { %v5904_v3 = vmul.f32 0.0078125, %v5902_v1  ;;  %v5907_v29 = vmul.f32 %v9931_v60, %v9931_v60 }
0x33ff   :  { %v9936_v34 = vsub.f32 %v9921_v15, %v5904_v3  ;;  %5909 = vadd.xlane.f32.xlu0 %v5907_v29 }
0x3401   :  { %v5908_v41 = vmul.f32 %v9936_v34, %v9936_v34 }
0x3403   :  { %5911 = vadd.xlane.f32.xlu0 %v5908_v41 }
0x3488   :  { %v5910_v13 = vpop.xlane.xlu0 %5909 }
0x3489   :  { %v5913_v42 = vmul.f32 0.0078125, %v5910_v13 }
0x348b   :  { %v5915_v24 = vadd.f32 1e-05, %v5913_v42 }
0x348c   :  { %v5912_v2 = vpop.xlane.xlu0 %5911 }
0x348d   :  { %8217 = vrsqrt.f32 %v5915_v24  ;;  %v5914_v44 = vmul.f32 0.0078125, %v5912_v2 }
0x348f   :  { %v5916_v10 = vadd.f32 1e-05, %v5914_v44  ;;  %v8062_v44 = vld [vmem:[%s10125_s26 + $0x18] sm:$0xff]  }
0x3491   :  { %8219 = vrsqrt.f32 %v5916_v10  ;;  %v8063_v10 = vld [vmem:[%s10125_s26 + $0x50] sm:$0xff]  }
0x349a   :  { %v8218_v30 = vpop.eup %8217 }
0x349b   :  { %v5919_v43 = vmul.f32 %v8218_v30, %v9931_v60  ;;  %v8064_v30 = vld [vmem:[%s10125_s26 + $0x10] sm:$0xff]  }
0x349d   :  { %v5927_v49 = vmul.f32 %v6829_v47, %v5919_v43  ;;  %v8065_v43 = vld [vmem:[%s10125_s26 + $0x48] sm:$0xff]  }
0x349e   :  { %v8220_v4 = vpop.eup %8219 }
0x349f   :  { %v5920_v48 = vmul.f32 %v8220_v4, %v9936_v34  ;;  %v5935_v9 = vadd.f32 %v6830_v50, %v5927_v49  ;;  %v8067_v4 = vld [vmem:[%s10125_s26 + $0x40] sm:$0xff]  }
0x34a1   :  { %v5928_v57 = vmul.f32 %v6829_v47, %v5920_v48  ;;  %v8066_v47 = vld [vmem:[%s10125_s26 + $0x8] sm:$0xff]   ;;  %v8068_v48 = vld [vmem:[%s10125_s26] sm:$0xff]  }
0x34a3   :  { %v5936_v16 = vadd.f32 %v6830_v50, %v5928_v57 }
0x34a5   :  { %v5954_v17 = vpack.c.bf16 %v5936_v16, %v5935_v9 }
0x34a7   :  { %6081 = vmatmul.mubr.bf16.vlgmr.msra.gmra.mxu1 %v5954_v17 }
0x34a8   :  { %7177 = vmatpush3.bf16.xpose.msra.mxu1 %v8054_v36 }
0x34a9   :  { %7178 = vmatprep.subr.bf16.mxu1 %v8055_v58 }
0x3567   :  { %v6082_v26 = vpop.f32.mrf.mxu1 }
0x3568   :  { %v6083_v1 = vadd.f32 %v6082_v26, %v5961_v5 }
0x3569   :  { %v6084_v40 = vpop.f32.mrf.mxu1 }
0x356a   :  { %v6085_v0 = vadd.f32 %v6084_v40, %v5965_v56  ;;  %v6091_v31 = vmax.f32 %v6083_v1, 0.0 }
0x356b   :  { %v6086_v23 = vpop.f32.mrf.mxu1 }
0x356c   :  { %v6087_v60 = vadd.f32 %v6086_v23, %v5961_v5  ;;  %v6092_v41 = vmax.f32 %v6085_v0, 0.0 }
0x356d   :  { %v6088_v3 = vpop.f32.mrf.mxu1 }
0x356e   :  { %v6089_v29 = vadd.f32 %v6088_v3, %v5965_v56  ;;  %v6093_v34 = vmax.f32 %v6087_v60, 0.0 }
0x3570   :  { %v6094_v8 = vmax.f32 %v6089_v29, 0.0  ;;  %v6128_v54 = vpack.c.bf16 %v6093_v34, %v6091_v31 }
0x3572   :  { %v6129_v63 = vpack.c.bf16 %v6094_v8, %v6092_v41 }
0x3574   :  { %6266 = vmatprep.mubr.bf16.mxu0 %v6129_v63 }
0x3575   :  { %6267 = vmatmul.mubr.bf16.vlgmr.msra.gmra.mxu0 %v6128_v54 }
0x3635   :  { %v7170_v32 = vpop.f32.mrf.mxu0 }
0x3637   :  { %v7171_v61 = vpop.f32.mrf.mxu0 }
0x3638   :  { %v7172_v14 = vadd.f32 %v7171_v61, %v7170_v32 }
0x3639   :  { %v7173_v21 = vpop.f32.mrf.mxu0 }
0x363a   :  { %v6269_v39 = vadd.f32 %v7172_v14, %v6897_v55 }
0x363b   :  { %v7174_v62 = vpop.f32.mrf.mxu0 }
0x363c   :  { %v7175_v33 = vadd.f32 %v7174_v62, %v7173_v21  ;;  %v6275_v45 = vadd.f32 %v6269_v39, %v9917_v22  ;;  %v8056_v22 = vld [vmem:[%s10125_s26 + $0x30] sm:$0xff]  }
0x363d   :  { %7179 = vmatpush3.bf16.xpose.msra.mxu1 %v8056_v22 }
0x363e   :  { %v6272_v11 = vadd.f32 %v7175_v33, %v6897_v55  ;;  %6279 = vadd.xlane.f32.xlu0 %v6275_v45 }
0x3640   :  { %v6276_v12 = vadd.f32 %v6272_v11, %v9921_v15  ;;  %v8057_v15 = vld [vmem:[%s10125_s26 + $0x68] sm:$0xff]   ;;  %s8348_s26 = smov [#allocation10]  }
0x3641   :  { %7180 = vmatprep.subr.bf16.mxu1 %v8057_v15  ;;  %s6498_s16 = sshll.u32 %s8348_s26, 4  ;;  %s6499_s16 = int_to_ptr.vmem [resolvable:$true] %s6498_s16 }
0x3642   :  { %6281 = vadd.xlane.f32.xlu1 %v6276_v12  ;;  %s8308_s12 = scalar_lea.vmem %s6499_s16, 512  ;;  %p8313_p7 = scmp.lt.s32.totalorder %s6499_s16, %s6499_s16 }
0x3643   :  { %p8309_p6 = scmp.ne.s32.totalorder %s6499_s16, %s8308_s12  ;;  %p8314_p8 = scmp.lt.s32.totalorder %s8308_s12, %s8308_s12 }
0x3645   :  { %7181 = vmatpush3.bf16.xpose.msra.mxu1 %v8058_v27  ;;  %p8315_p9 = por %p8314_p8, %p8313_p7 }
0x3646   :  { %7182 = vmatprep.subr.bf16.mxu1 %v8059_v19 }
0x3647   :  { %p8316_p10 = pnand %p8315_p9, %p8309_p6 }
0x364d   :  { %7183 = vmatpush3.bf16.xpose.msra.mxu1 %v8060_v38 }
0x364e   :  { %7184 = vmatprep.subr.bf16.mxu1 %v8061_v18 }
0x3655   :  { %7185 = vmatpush3.bf16.xpose.msra.mxu1 %v8062_v44 }
0x3656   :  { %7186 = vmatprep.subr.bf16.mxu1 %v8063_v10 }
0x365d   :  { %7187 = vmatpush3.bf16.xpose.msra.mxu1 %v8064_v30 }
0x365e   :  { %7188 = vmatprep.subr.bf16.mxu1 %v8065_v43 }
0x3665   :  { %7189 = vmatpush3.bf16.xpose.msra.mxu1 %v8066_v47 }
0x3666   :  { %7190 = vmatprep.subr.bf16.mxu1 %v8067_v4 }
0x366d   :  { %7191 = vmatpush3.bf16.xpose.msra.mxu1 %v8068_v48 }
0x36c7   :  { %v6280_v6 = vpop.xlane.xlu0 %6279 }
0x36c8   :  { %v6283_v51 = vmul.f32 0.0078125, %v6280_v6 }
0x36ca   :  { %v6285_v52 = vsub.f32 %v6275_v45, %v6283_v51 }
0x36cb   :  { %v6282_v28 = vpop.xlane.xlu1 %6281 }
0x36cc   :  { %v6284_v13 = vmul.f32 0.0078125, %v6282_v28  ;;  %v6287_v42 = vmul.f32 %v6285_v52, %v6285_v52 }
0x36ce   :  { %v6286_v24 = vsub.f32 %v6276_v12, %v6284_v13  ;;  %6289 = vadd.xlane.f32.xlu0 %v6287_v42 }
0x36d0   :  { %v6288_v2 = vmul.f32 %v6286_v24, %v6286_v24 }
0x36d2   :  { %6291 = vadd.xlane.f32.xlu1 %v6288_v2 }
0x3757   :  { %v6290_v49 = vpop.xlane.xlu0 %6289 }
0x3758   :  { %v6293_v50 = vmul.f32 0.0078125, %v6290_v49 }
0x375a   :  { %v6295_v57 = vadd.f32 1e-05, %v6293_v50 }
0x375b   :  { %v6292_v9 = vpop.xlane.xlu1 %6291 }
0x375c   :  { %8221 = vrsqrt.f32 %v6295_v57  ;;  %v6294_v16 = vmul.f32 0.0078125, %v6292_v9 }
0x375e   :  { %v6296_v17 = vadd.f32 1e-05, %v6294_v16 }
0x3760   :  { %8223 = vrsqrt.f32 %v6296_v17 }
0x3769   :  { %v8222_v7 = vpop.eup %8221 }
0x376a   :  { %v6299_v53 = vmul.f32 %v8222_v7, %v6285_v52 }
0x376c   :  { %v6307_v46 = vmul.f32 %v6914_v37, %v6299_v53 }
0x376d   :  { %v8224_v59 = vpop.eup %8223 }
0x376e   :  { %v6300_v20 = vmul.f32 %v8224_v59, %v6286_v24  ;;  %v6315_v56 = vadd.f32 %v6915_v25, %v6307_v46 }
0x3770   :  { %v6308_v26 = vmul.f32 %v6914_v37, %v6300_v20 }
0x3772   :  { %v6316_v5 = vadd.f32 %v6915_v25, %v6308_v26 }
0x3774   :  { %v6349_v40 = vpack.c.bf16 %v6316_v5, %v6315_v56 }
0x3776   :  { %7192 = vmatprep.mubr.bf16.mxu1 %v6349_v40 }
0x3777   :  { %7193 = vmatmul.mubr.bf16.vlgmr.msra.gmra.mxu1 %v6349_v40 }
0x3837   :  { %v6480_v23 = vpop.f32.mrf.mxu1 }
0x3838   :  { %6489 = vst [vmem:[#allocation10] sm:$0xff] %v6480_v23 }
0x3839   :  { %v6482_v0 = vpop.f32.mrf.mxu1 }
0x383a   :  { %6490 = vst [vmem:[#allocation10 + $0x8] sm:$0xff] %v6482_v0 }
0x383b   :  { %v6484_v60 = vpop.f32.mrf.mxu1 }
0x383c   :  { %6491 = vst [vmem:[#allocation10 + $0x10] sm:$0xff] %v6484_v60 }
0x383d   :  { %v6486_v1 = vpop.f32.mrf.mxu1 }
0x383e   :  { %6492 = vst [vmem:[#allocation10 + $0x18] sm:$0xff] %v6486_v1 }
0x383f   :  { %8319 = shalt.err (!%p8316_p10)
}
0x3840   :  { %s8349_s23 = smov 256   ;;  %s8350_s13 = smov 16  }
0x3841   :  { %s10172_s8 = sld [smem:[#allocation27_spill]] }
0x3847   :  { %6504 = dma.vmem_to_hbm [thread:$0]  %s6499_s16, 512, %s10172_s8, [#allocation4], %s8349_s23, %s8349_s23, %s8350_s13  }
0x3848   :  { %8334 = dma.done.wait [#allocation4], 512  }
0x3849   :  { %8335 = vsyncadd [#allocation4], 4294966784 }
0x384a   :  { %6508 = vsyncpa [#allocation3], 1 }
0x384b   :  { %6509 = vsyncpa [#allocation6], 1 }
0x384c   :  { %6510 = vsyncpa [#allocation9], 1 }
0x384d   :  { %6511 = vsyncpa [#allocation4], 1 }

</bundles_post_ra>
